<compile_context>
chip_gen: v6e
topology: v6e:2x2x1
jax: 0.10.0
libtpu: 0.0.40
codegen_flags: <defaults>
</compile_context>

<pallas_src>
import numpy as np
import jax
import jax.numpy as jnp
from jax import lax
from jax.experimental import pallas as pl
from jax.experimental.pallas import tpu as pltpu

T = 1
EMBED = 4
H = W = 14            # input spatial size (pool 14 -> 7, matching Linear(4*7*7, 10))
HP = WP = 7
N_TOK = HP * WP       # 49
FLAT = EMBED * N_TOK  # 196
TAU = 2.0
BN_EPS = 1e-5
ATTN_SCALE = 0.125


# ----------------------------------------------------------------------------
# Fused kernel: conv+BN+LIF -> AvgPool -> SSA -> Linear head
# ----------------------------------------------------------------------------
def _net_kernel(xpad_ref, convw_ref, bn1g_ref, bn1b_ref, poolt_ref,
                g3_ref, qkvb_ref, qkvg_ref, qkvbeta_ref,
                wp_ref, bp_ref, gp_ref, betap_ref,
                wlinr_ref, linb_ref,
                out_ref,
                s_scr, flat_scr, work_scr, qkv_scr):
    TB = xpad_ref.shape[0]
    B = out_ref.shape[0]

    # ---------------- conv3x3 (1 -> EMBED) + BatchNorm2d + LIF ----------------
    # The 9 shifted (padding=1) windows are loaded once and shared across channels.
    wins = [xpad_ref[:, dy:dy + H, dx:dx + W] for dy in range(3) for dx in range(3)]
    for c in range(EMBED):
        acc = convw_ref[c * 9] * wins[0]
        for k in range(1, 9):
            acc = acc + convw_ref[c * 9 + k] * wins[k]
        # BatchNorm2d, training mode: biased batch stats over (TB, H, W)
        m = jnp.mean(acc)
        v = jnp.mean((acc - m) ** 2)
        y = bn1g_ref[c] * (acc - m) * lax.rsqrt(v + BN_EPS) + bn1b_ref[c]
        # LIF (tau=2, v_th=1, single step from rest): spike = (y / tau >= 1)
        s_scr[:, c, :, :] = (y * (1.0 / TAU) >= 1.0).astype(jnp.float32)

    # ---------------- AvgPool2d(k=3, s=2, p=1), count_include_pad ----------------
    # pooled = (PA @ s @ PA^T) / 9, batched over all (b, c) with two matmuls.
    s_all = s_scr[...]                                            # (TB, E, 14, 14)
    pat = poolt_ref[...]                                          # (14, 7) = PA^T
    t = jnp.dot(s_all.reshape(TB * EMBED * H, W), pat,
                preferred_element_type=jnp.float32)               # (TB*E*14, 7)
    t = jnp.swapaxes(t.reshape(TB, EMBED, H, WP), -1, -2)         # (TB, E, 7j, 14h)
    p = jnp.dot(t.reshape(TB * EMBED * WP, H), pat,
                preferred_element_type=jnp.float32)               # (TB*E*7, 7)
    pooled = jnp.swapaxes(p.reshape(TB, EMBED, WP, HP), -1, -2) * (1.0 / 9.0)  # (TB,E,7,7)

    # ---------------- token formation: PyTorch's raw contiguous reshape ----------------
    # flat[b, c*49 + i*7 + j] = pooled[b, c, i, j];  token n / channel d = flat[4n + d]
    for c in range(EMBED):
        for i in range(HP):
            base = c * N_TOK + i * WP
            flat_scr[:, base:base + WP] = pooled[:, c, i, :]
    flat = flat_scr[...]                                          # (TB, 196)

    # ---------------- SSA: q/k/v = LIF(BN1d(Linear(tokens))) ----------------
    # Linear + token regrouping folded into one (196, 196) matmul per branch.
    # Output layout is channel-major flat: position c*49 + n.
    for idx in range(3):
        work_scr[...] = jnp.dot(flat, g3_ref[idx],
                                preferred_element_type=jnp.float32) + qkvb_ref[idx]
        for c in range(EMBED):
            seg = work_scr[:, c * N_TOK:(c + 1) * N_TOK]          # (TB, 49): channel c
            mc = jnp.mean(seg)                                    # BN1d over TB*N, biased var
            vc = jnp.mean((seg - mc) ** 2)
            yy = qkvg_ref[idx, c] * (seg - mc) * lax.rsqrt(vc + BN_EPS) + qkvbeta_ref[idx, c]
            qkv_scr[idx, :, c, :] = (yy * (1.0 / TAU) >= 1.0).astype(jnp.float32)

    q3 = jnp.swapaxes(qkv_scr[0], -1, -2)                         # (TB, 49, 4)
    k3 = jnp.swapaxes(qkv_scr[1], -1, -2)
    v3 = jnp.swapaxes(qkv_scr[2], -1, -2)

    # spiking attention (no softmax): attn = (q @ k^T) * 0.125 ; y = attn @ v
    attn = jnp.einsum('bnc,bmc->bnm', q3, k3,
                      preferred_element_type=jnp.float32) * ATTN_SCALE
    yat = jnp.einsum('bnm,bmc->bnc', attn, v3,
                     preferred_element_type=jnp.float32)
    s_at = (yat * (1.0 / TAU) >= 0.5).astype(jnp.float32)         # attn_lif, v_th=0.5

    # proj: Linear + BatchNorm1d + LIF, vectorized over all (b, n) tokens
    pre_p = jnp.dot(s_at.reshape(TB * N_TOK, EMBED), wp_ref[...],
                    preferred_element_type=jnp.float32) + bp_ref[...]    # (98, 4)
    mp = jnp.mean(pre_p, axis=0, keepdims=True)
    vp = jnp.mean((pre_p - mp) ** 2, axis=0, keepdims=True)
    yp = gp_ref[...] * (pre_p - mp) * lax.rsqrt(vp + BN_EPS) + betap_ref[...]
    proj = (yp * (1.0 / TAU) >= 1.0).astype(jnp.float32)          # (98, 4)

    # ---------------- head: Linear(196 -> 10) + mean over T ----------------
    # logits[b, o] = sum_{n,d} proj[b*49+n, d] * Wlin[o, 4n+d]   (weights regrouped per d)
    proj_cm = jnp.swapaxes(proj.reshape(TB, N_TOK, EMBED), -1, -2)       # (TB, 4, 49)
    logits = jnp.dot(proj_cm[:, 0, :], wlinr_ref[0],
                     preferred_element_type=jnp.float32)
    for d in range(1, EMBED):
        logits = logits + jnp.dot(proj_cm[:, d, :], wlinr_ref[d],
                                  preferred_element_type=jnp.float32)    # (TB, 10)

    # mean over T (T=1: identity; T>1 LIF state carry not modelled, see TODO)
    acc_t = logits[0:B, :]
    for t_ in range(1, T):
        acc_t = acc_t + logits[t_ * B:(t_ + 1) * B, :]
    out_ref[...] = acc_t * (1.0 / T) + linb_ref[...]


# ----------------------------------------------------------------------------
# Wrapper
# ----------------------------------------------------------------------------
_VMEM = pl.BlockSpec(memory_space=pltpu.MemorySpace.VMEM)
_SMEM = pl.BlockSpec(memory_space=pltpu.MemorySpace.SMEM)


def net_forward(x, params):
    # x: (B, 1, H, W) float32 (NCHW, like PyTorch)
    B = x.shape[0]
    TB = T * B
    # unsqueeze(0).repeat(T,...) + flatten(0,1); squeeze the single input channel;
    # pre-pad by 1 for the 3x3 conv (layout plumbing kept outside the kernel).
    x_tb = jnp.broadcast_to(x[None], (T, B, 1, H, W)).reshape(TB, H, W)
    x_pad = jnp.pad(x_tb, ((0, 0), (1, 1), (1, 1)))

    fused = pl.pallas_call(
        _net_kernel,
        out_shape=jax.ShapeDtypeStruct((B, 10), jnp.float32),
        in_specs=[_VMEM, _SMEM, _SMEM, _SMEM, _VMEM,
                  _VMEM, _VMEM, _SMEM, _SMEM,
                  _VMEM, _VMEM, _VMEM, _VMEM,
                  _VMEM, _VMEM],
        out_specs=_VMEM,
        scratch_shapes=[
            pltpu.VMEM((TB, EMBED, H, W), jnp.float32),      # conv spike maps
            pltpu.VMEM((TB, FLAT), jnp.float32),             # token-major flat tokens
            pltpu.VMEM((TB, FLAT), jnp.float32),             # q/k/v pre-activation (reused)
            pltpu.VMEM((3, TB, EMBED, N_TOK), jnp.float32),  # q/k/v spikes, channel-major
        ],
        cost_estimate=pl.CostEstimate(flops=800_000, transcendentals=32,
                                      bytes_accessed=600_000),
    )
    return fused(x_pad,
                 params['conv_w'], params['bn1_g'], params['bn1_b'], params['pool_t'],
                 params['qkv_g_fold'], params['qkv_b_cm'],
                 params['qkv_gamma'], params['qkv_beta'],
                 params['wp_t'], params['bp'], params['gp'], params['betap'],
                 params['wlin_r'], params['lin_b'])


def make_params(key):
    ks = jax.random.split(key, 6)

    def linear_init(k, fan_in, fan_out, scale):
        kw, kb = jax.random.split(k)
        w = jax.random.normal(kw, (fan_out, fan_in), jnp.float32) * scale
        b = jax.random.normal(kb, (fan_out,), jnp.float32) * 0.1
        return w, b

    conv_w = jax.random.normal(ks[0], (EMBED, 1, 3, 3), jnp.float32) * 0.5
    wq, bq = linear_init(ks[1], EMBED, EMBED, 0.5)
    wk, bk = linear_init(ks[2], EMBED, EMBED, 0.5)
    wv, bv = linear_init(ks[3], EMBED, EMBED, 0.5)
    wp, bp = linear_init(ks[4], EMBED, EMBED, 0.5)
    lw, lb = linear_init(ks[5], FLAT, 10, 0.1)

    def bn_affine(shift):
        g = 1.3 + 0.1 * jnp.arange(EMBED, dtype=jnp.float32) + shift
        b = 0.03 * jnp.arange(EMBED, dtype=jnp.float32) - shift * 0.1
        return g, b

    bn1_g, bn1_b = bn_affine(0.2)
    gq, betaq = bn_affine(0.0)
    gk, betak = bn_affine(0.1)
    gv, betav = bn_affine(0.2)
    gp, betap = bn_affine(0.3)

    # AvgPool2d(3, 2, 1) row/col pooling matrix PA (7, 14); /9 applied in-kernel.
    pr = np.zeros((HP, H), np.float32)
    for i in range(HP):
        lo = max(2 * i - 1, 0)
        hi = min(2 * i + 1, H - 1)
        pr[i, lo:hi + 1] = 1.0
    pool_t = jnp.asarray(pr.T)                                   # (14, 7) = PA^T

    # Fold token regrouping + q/k/v Linear into one (196,196) matrix each:
    #   G[f, c*49 + n] = W[c, f % 4] if f // 4 == n else 0   (exact: extra entries are 0)
    def fold(w):
        g = np.zeros((FLAT, FLAT), np.float32)
        wn = np.asarray(w)
        for f in range(FLAT):
            n, d = f // EMBED, f % EMBED
            for c in range(EMBED):
                g[f, c * N_TOK + n] = wn[c, d]
        return g
    qkv_g_fold = jnp.asarray(np.stack([fold(wq), fold(wk), fold(wv)]))   # (3,196,196)

    def bias_cm(b):
        return np.repeat(np.asarray(b)[:, None], N_TOK, axis=1).reshape(1, FLAT)
    qkv_b_cm = jnp.asarray(np.stack([bias_cm(bq), bias_cm(bk), bias_cm(bv)]))  # (3,1,196)

    qkv_gamma = jnp.stack([gq, gk, gv])                          # (3, EMBED) SMEM scalars
    qkv_beta = jnp.stack([betaq, betak, betav])

    # Head weight regrouped per token-channel d: Wlin_r[d, n, o] = Wlin[o, 4n + d]
    lwn = np.asarray(lw)                                         # (10, 196)
    wlin_r = np.zeros((EMBED, N_TOK, 10), np.float32)
    for n in range(N_TOK):
        for d in range(EMBED):
            wlin_r[d, n, :] = lwn[:, EMBED * n + d]

    return dict(
        conv_w=conv_w[:, 0].reshape(EMBED * 9),                  # (36,) SMEM scalars
        bn1_g=bn1_g, bn1_b=bn1_b,                                # (4,) SMEM scalars
        pool_t=pool_t,
        qkv_g_fold=qkv_g_fold, qkv_b_cm=qkv_b_cm,
        qkv_gamma=qkv_gamma, qkv_beta=qkv_beta,
        wp_t=wp.T, bp=bp.reshape(1, EMBED),
        gp=gp.reshape(1, EMBED), betap=betap.reshape(1, EMBED),
        wlin_r=jnp.asarray(wlin_r), lin_b=lb.reshape(1, 10),
    )


if __name__ == "__main__":
    key = jax.random.PRNGKey(0)
    kx, kp = jax.random.split(key)
    params = make_params(kp)
    x = jax.random.normal(kx, (2, 1, H, W), jnp.float32)         # (B=2, C=1, 14, 14)

    out = jax.jit(lambda xx: net_forward(xx, params))(x)
    out = jax.block_until_ready(out)
    assert out.shape == (2, 10) and out.dtype == jnp.float32
    assert bool(jnp.all(jnp.isfinite(out)))
    print("KERNEL_OK")
</pallas_src>

<mosaic_0001>
module attributes {stable_mosaic.version = 11 : i64} {
  func.func @_net_kernel(%arg0: memref<2x16x16xf32, #tpu.memory_space<vmem>>, %arg1: memref<36xf32, #tpu.memory_space<smem>>, %arg2: memref<4xf32, #tpu.memory_space<smem>>, %arg3: memref<4xf32, #tpu.memory_space<smem>>, %arg4: memref<14x7xf32, #tpu.memory_space<vmem>>, %arg5: memref<3x196x196xf32, #tpu.memory_space<vmem>>, %arg6: memref<3x1x196xf32, #tpu.memory_space<vmem>>, %arg7: memref<3x4xf32, #tpu.memory_space<smem>>, %arg8: memref<3x4xf32, #tpu.memory_space<smem>>, %arg9: memref<4x4xf32, #tpu.memory_space<vmem>>, %arg10: memref<1x4xf32, #tpu.memory_space<vmem>>, %arg11: memref<1x4xf32, #tpu.memory_space<vmem>>, %arg12: memref<1x4xf32, #tpu.memory_space<vmem>>, %arg13: memref<4x49x10xf32, #tpu.memory_space<vmem>>, %arg14: memref<1x10xf32, #tpu.memory_space<vmem>>, %arg15: memref<2x10xf32, #tpu.memory_space<vmem>>, %arg16: memref<2x4x14x14xf32, #tpu.memory_space<vmem>>, %arg17: memref<2x196xf32, #tpu.memory_space<vmem>>, %arg18: memref<2x196xf32, #tpu.memory_space<vmem>>, %arg19: memref<3x2x4x49xf32, #tpu.memory_space<vmem>>) attributes {dimension_semantics = [], scalar_prefetch = 0 : i64, scratch_operands = 4 : i64, tpu.core_type = #tpu.core_type<tc>} {
    %c0 = arith.constant 0 : index
    %c0_0 = arith.constant 0 : index
    %c0_1 = arith.constant 0 : index
    %0 = vector.load %arg0[%c0, %c0_0, %c0_1] : memref<2x16x16xf32, #tpu.memory_space<vmem>>, vector<2x14x14xf32>
    %c0_2 = arith.constant 0 : index
    %c0_3 = arith.constant 0 : index
    %c1 = arith.constant 1 : index
    %1 = vector.load %arg0[%c0_2, %c0_3, %c1] : memref<2x16x16xf32, #tpu.memory_space<vmem>>, vector<2x14x14xf32>
    %c0_4 = arith.constant 0 : index
    %c0_5 = arith.constant 0 : index
    %c2 = arith.constant 2 : index
    %2 = vector.load %arg0[%c0_4, %c0_5, %c2] : memref<2x16x16xf32, #tpu.memory_space<vmem>>, vector<2x14x14xf32>
    %c0_6 = arith.constant 0 : index
    %c1_7 = arith.constant 1 : index
    %c0_8 = arith.constant 0 : index
    %3 = vector.load %arg0[%c0_6, %c1_7, %c0_8] : memref<2x16x16xf32, #tpu.memory_space<vmem>>, vector<2x14x14xf32>
    %c0_9 = arith.constant 0 : index
    %c1_10 = arith.constant 1 : index
    %c1_11 = arith.constant 1 : index
    %4 = vector.load %arg0[%c0_9, %c1_10, %c1_11] : memref<2x16x16xf32, #tpu.memory_space<vmem>>, vector<2x14x14xf32>
    %c0_12 = arith.constant 0 : index
    %c1_13 = arith.constant 1 : index
    %c2_14 = arith.constant 2 : index
    %5 = vector.load %arg0[%c0_12, %c1_13, %c2_14] : memref<2x16x16xf32, #tpu.memory_space<vmem>>, vector<2x14x14xf32>
    %c0_15 = arith.constant 0 : index
    %c2_16 = arith.constant 2 : index
    %c0_17 = arith.constant 0 : index
    %6 = vector.load %arg0[%c0_15, %c2_16, %c0_17] : memref<2x16x16xf32, #tpu.memory_space<vmem>>, vector<2x14x14xf32>
    %c0_18 = arith.constant 0 : index
    %c2_19 = arith.constant 2 : index
    %c1_20 = arith.constant 1 : index
    %7 = vector.load %arg0[%c0_18, %c2_19, %c1_20] : memref<2x16x16xf32, #tpu.memory_space<vmem>>, vector<2x14x14xf32>
    %c0_21 = arith.constant 0 : index
    %c2_22 = arith.constant 2 : index
    %c2_23 = arith.constant 2 : index
    %8 = vector.load %arg0[%c0_21, %c2_22, %c2_23] : memref<2x16x16xf32, #tpu.memory_space<vmem>>, vector<2x14x14xf32>
    %c0_24 = arith.constant 0 : index
    %9 = memref.load %arg1[%c0_24] : memref<36xf32, #tpu.memory_space<smem>>
    %10 = vector.broadcast %9 : f32 to vector<2x14x14xf32>
    %11 = arith.mulf %10, %0 : vector<2x14x14xf32>
    %c1_25 = arith.constant 1 : index
    %12 = memref.load %arg1[%c1_25] : memref<36xf32, #tpu.memory_space<smem>>
    %13 = vector.broadcast %12 : f32 to vector<2x14x14xf32>
    %14 = arith.mulf %13, %1 : vector<2x14x14xf32>
    %15 = arith.addf %11, %14 : vector<2x14x14xf32>
    %c2_26 = arith.constant 2 : index
    %16 = memref.load %arg1[%c2_26] : memref<36xf32, #tpu.memory_space<smem>>
    %17 = vector.broadcast %16 : f32 to vector<2x14x14xf32>
    %18 = arith.mulf %17, %2 : vector<2x14x14xf32>
    %19 = arith.addf %15, %18 : vector<2x14x14xf32>
    %c3 = arith.constant 3 : index
    %20 = memref.load %arg1[%c3] : memref<36xf32, #tpu.memory_space<smem>>
    %21 = vector.broadcast %20 : f32 to vector<2x14x14xf32>
    %22 = arith.mulf %21, %3 : vector<2x14x14xf32>
    %23 = arith.addf %19, %22 : vector<2x14x14xf32>
    %c4 = arith.constant 4 : index
    %24 = memref.load %arg1[%c4] : memref<36xf32, #tpu.memory_space<smem>>
    %25 = vector.broadcast %24 : f32 to vector<2x14x14xf32>
    %26 = arith.mulf %25, %4 : vector<2x14x14xf32>
    %27 = arith.addf %23, %26 : vector<2x14x14xf32>
    %c5 = arith.constant 5 : index
    %28 = memref.load %arg1[%c5] : memref<36xf32, #tpu.memory_space<smem>>
    %29 = vector.broadcast %28 : f32 to vector<2x14x14xf32>
    %30 = arith.mulf %29, %5 : vector<2x14x14xf32>
    %31 = arith.addf %27, %30 : vector<2x14x14xf32>
    %c6 = arith.constant 6 : index
    %32 = memref.load %arg1[%c6] : memref<36xf32, #tpu.memory_space<smem>>
    %33 = vector.broadcast %32 : f32 to vector<2x14x14xf32>
    %34 = arith.mulf %33, %6 : vector<2x14x14xf32>
    %35 = arith.addf %31, %34 : vector<2x14x14xf32>
    %c7 = arith.constant 7 : index
    %36 = memref.load %arg1[%c7] : memref<36xf32, #tpu.memory_space<smem>>
    %37 = vector.broadcast %36 : f32 to vector<2x14x14xf32>
    %38 = arith.mulf %37, %7 : vector<2x14x14xf32>
    %39 = arith.addf %35, %38 : vector<2x14x14xf32>
    %c8 = arith.constant 8 : index
    %40 = memref.load %arg1[%c8] : memref<36xf32, #tpu.memory_space<smem>>
    %41 = vector.broadcast %40 : f32 to vector<2x14x14xf32>
    %42 = arith.mulf %41, %8 : vector<2x14x14xf32>
    %43 = arith.addf %39, %42 : vector<2x14x14xf32>
    %44 = vector.shape_cast %43 : vector<2x14x14xf32> to vector<1x2x14x14xf32>
    %cst = arith.constant dense<0.000000e+00> : vector<1xf32>
    %45 = vector.multi_reduction <add>, %44, %cst [1, 2, 3] : vector<1x2x14x14xf32> to vector<1xf32>
    %46 = vector.shape_cast %45 : vector<1xf32> to vector<1x1x1x1xf32>
    %47 = vector.extract %46[0, 0, 0, 0] : f32 from vector<1x1x1x1xf32>
    %cst_27 = arith.constant 3.920000e+02 : f32
    %48 = arith.divf %47, %cst_27 : f32
    %49 = vector.broadcast %48 : f32 to vector<2x14x14xf32>
    %50 = arith.subf %43, %49 : vector<2x14x14xf32>
    %51 = arith.mulf %50, %50 : vector<2x14x14xf32>
    %52 = vector.shape_cast %51 : vector<2x14x14xf32> to vector<1x2x14x14xf32>
    %cst_28 = arith.constant dense<0.000000e+00> : vector<1xf32>
    %53 = vector.multi_reduction <add>, %52, %cst_28 [1, 2, 3] : vector<1x2x14x14xf32> to vector<1xf32>
    %54 = vector.shape_cast %53 : vector<1xf32> to vector<1x1x1x1xf32>
    %55 = vector.extract %54[0, 0, 0, 0] : f32 from vector<1x1x1x1xf32>
    %cst_29 = arith.constant 3.920000e+02 : f32
    %56 = arith.divf %55, %cst_29 : f32
    %c0_30 = arith.constant 0 : index
    %57 = memref.load %arg2[%c0_30] : memref<4xf32, #tpu.memory_space<smem>>
    %58 = vector.broadcast %48 : f32 to vector<2x14x14xf32>
    %59 = arith.subf %43, %58 : vector<2x14x14xf32>
    %60 = vector.broadcast %57 : f32 to vector<2x14x14xf32>
    %61 = arith.mulf %60, %59 : vector<2x14x14xf32>
    %cst_31 = arith.constant 9.99999974E-6 : f32
    %62 = arith.addf %56, %cst_31 : f32
    %63 = math.rsqrt %62 : f32
    %64 = vector.broadcast %63 : f32 to vector<2x14x14xf32>
    %65 = arith.mulf %61, %64 : vector<2x14x14xf32>
    %c0_32 = arith.constant 0 : index
    %66 = memref.load %arg3[%c0_32] : memref<4xf32, #tpu.memory_space<smem>>
    %67 = vector.broadcast %66 : f32 to vector<2x14x14xf32>
    %68 = arith.addf %65, %67 : vector<2x14x14xf32>
    %cst_33 = arith.constant 5.000000e-01 : f32
    %69 = vector.broadcast %cst_33 : f32 to vector<2x14x14xf32>
    %70 = arith.mulf %68, %69 : vector<2x14x14xf32>
    %cst_34 = arith.constant 1.000000e+00 : f32
    %71 = vector.broadcast %cst_34 : f32 to vector<2x14x14xf32>
    %72 = arith.cmpf oge, %70, %71 : vector<2x14x14xf32>
    %73 = arith.extui %72 : vector<2x14x14xi1> to vector<2x14x14xi32>
    %74 = arith.sitofp %73 : vector<2x14x14xi32> to vector<2x14x14xf32>
    %c0_35 = arith.constant 0 : index
    %c0_36 = arith.constant 0 : index
    %c0_37 = arith.constant 0 : index
    %c0_38 = arith.constant 0 : index
    %75 = vector.load %arg16[%c0_35, %c0_36, %c0_37, %c0_38] : memref<2x4x14x14xf32, #tpu.memory_space<vmem>>, vector<2x1x14x14xf32>
    %76 = vector.shape_cast %75 : vector<2x1x14x14xf32> to vector<2x14x14xf32>
    %77 = vector.shape_cast %74 : vector<2x14x14xf32> to vector<2x1x14x14xf32>
    tpu.vector_store %arg16[%c0_35, %c0_36, %c0_37, %c0_38], %77 {strides = array<i32>} : memref<2x4x14x14xf32, #tpu.memory_space<vmem>>, vector<2x1x14x14xf32>,
    %c9 = arith.constant 9 : index
    %78 = memref.load %arg1[%c9] : memref<36xf32, #tpu.memory_space<smem>>
    %79 = vector.broadcast %78 : f32 to vector<2x14x14xf32>
    %80 = arith.mulf %79, %0 : vector<2x14x14xf32>
    %c10 = arith.constant 10 : index
    %81 = memref.load %arg1[%c10] : memref<36xf32, #tpu.memory_space<smem>>
    %82 = vector.broadcast %81 : f32 to vector<2x14x14xf32>
    %83 = arith.mulf %82, %1 : vector<2x14x14xf32>
    %84 = arith.addf %80, %83 : vector<2x14x14xf32>
    %c11 = arith.constant 11 : index
    %85 = memref.load %arg1[%c11] : memref<36xf32, #tpu.memory_space<smem>>
    %86 = vector.broadcast %85 : f32 to vector<2x14x14xf32>
    %87 = arith.mulf %86, %2 : vector<2x14x14xf32>
    %88 = arith.addf %84, %87 : vector<2x14x14xf32>
    %c12 = arith.constant 12 : index
    %89 = memref.load %arg1[%c12] : memref<36xf32, #tpu.memory_space<smem>>
    %90 = vector.broadcast %89 : f32 to vector<2x14x14xf32>
    %91 = arith.mulf %90, %3 : vector<2x14x14xf32>
    %92 = arith.addf %88, %91 : vector<2x14x14xf32>
    %c13 = arith.constant 13 : index
    %93 = memref.load %arg1[%c13] : memref<36xf32, #tpu.memory_space<smem>>
    %94 = vector.broadcast %93 : f32 to vector<2x14x14xf32>
    %95 = arith.mulf %94, %4 : vector<2x14x14xf32>
    %96 = arith.addf %92, %95 : vector<2x14x14xf32>
    %c14 = arith.constant 14 : index
    %97 = memref.load %arg1[%c14] : memref<36xf32, #tpu.memory_space<smem>>
    %98 = vector.broadcast %97 : f32 to vector<2x14x14xf32>
    %99 = arith.mulf %98, %5 : vector<2x14x14xf32>
    %100 = arith.addf %96, %99 : vector<2x14x14xf32>
    %c15 = arith.constant 15 : index
    %101 = memref.load %arg1[%c15] : memref<36xf32, #tpu.memory_space<smem>>
    %102 = vector.broadcast %101 : f32 to vector<2x14x14xf32>
    %103 = arith.mulf %102, %6 : vector<2x14x14xf32>
    %104 = arith.addf %100, %103 : vector<2x14x14xf32>
    %c16 = arith.constant 16 : index
    %105 = memref.load %arg1[%c16] : memref<36xf32, #tpu.memory_space<smem>>
    %106 = vector.broadcast %105 : f32 to vector<2x14x14xf32>
    %107 = arith.mulf %106, %7 : vector<2x14x14xf32>
    %108 = arith.addf %104, %107 : vector<2x14x14xf32>
    %c17 = arith.constant 17 : index
    %109 = memref.load %arg1[%c17] : memref<36xf32, #tpu.memory_space<smem>>
    %110 = vector.broadcast %109 : f32 to vector<2x14x14xf32>
    %111 = arith.mulf %110, %8 : vector<2x14x14xf32>
    %112 = arith.addf %108, %111 : vector<2x14x14xf32>
    %113 = vector.shape_cast %112 : vector<2x14x14xf32> to vector<1x2x14x14xf32>
    %cst_39 = arith.constant dense<0.000000e+00> : vector<1xf32>
    %114 = vector.multi_reduction <add>, %113, %cst_39 [1, 2, 3] : vector<1x2x14x14xf32> to vector<1xf32>
    %115 = vector.shape_cast %114 : vector<1xf32> to vector<1x1x1x1xf32>
    %116 = vector.extract %115[0, 0, 0, 0] : f32 from vector<1x1x1x1xf32>
    %cst_40 = arith.constant 3.920000e+02 : f32
    %117 = arith.divf %116, %cst_40 : f32
    %118 = vector.broadcast %117 : f32 to vector<2x14x14xf32>
    %119 = arith.subf %112, %118 : vector<2x14x14xf32>
    %120 = arith.mulf %119, %119 : vector<2x14x14xf32>
    %121 = vector.shape_cast %120 : vector<2x14x14xf32> to vector<1x2x14x14xf32>
    %cst_41 = arith.constant dense<0.000000e+00> : vector<1xf32>
    %122 = vector.multi_reduction <add>, %121, %cst_41 [1, 2, 3] : vector<1x2x14x14xf32> to vector<1xf32>
    %123 = vector.shape_cast %122 : vector<1xf32> to vector<1x1x1x1xf32>
    %124 = vector.extract %123[0, 0, 0, 0] : f32 from vector<1x1x1x1xf32>
    %cst_42 = arith.constant 3.920000e+02 : f32
    %125 = arith.divf %124, %cst_42 : f32
    %c1_43 = arith.constant 1 : index
    %126 = memref.load %arg2[%c1_43] : memref<4xf32, #tpu.memory_space<smem>>
    %127 = vector.broadcast %117 : f32 to vector<2x14x14xf32>
    %128 = arith.subf %112, %127 : vector<2x14x14xf32>
    %129 = vector.broadcast %126 : f32 to vector<2x14x14xf32>
    %130 = arith.mulf %129, %128 : vector<2x14x14xf32>
    %cst_44 = arith.constant 9.99999974E-6 : f32
    %131 = arith.addf %125, %cst_44 : f32
    %132 = math.rsqrt %131 : f32
    %133 = vector.broadcast %132 : f32 to vector<2x14x14xf32>
    %134 = arith.mulf %130, %133 : vector<2x14x14xf32>
    %c1_45 = arith.constant 1 : index
    %135 = memref.load %arg3[%c1_45] : memref<4xf32, #tpu.memory_space<smem>>
    %136 = vector.broadcast %135 : f32 to vector<2x14x14xf32>
    %137 = arith.addf %134, %136 : vector<2x14x14xf32>
    %cst_46 = arith.constant 5.000000e-01 : f32
    %138 = vector.broadcast %cst_46 : f32 to vector<2x14x14xf32>
    %139 = arith.mulf %137, %138 : vector<2x14x14xf32>
    %cst_47 = arith.constant 1.000000e+00 : f32
    %140 = vector.broadcast %cst_47 : f32 to vector<2x14x14xf32>
    %141 = arith.cmpf oge, %139, %140 : vector<2x14x14xf32>
    %142 = arith.extui %141 : vector<2x14x14xi1> to vector<2x14x14xi32>
    %143 = arith.sitofp %142 : vector<2x14x14xi32> to vector<2x14x14xf32>
    %c0_48 = arith.constant 0 : index
    %c1_49 = arith.constant 1 : index
    %c0_50 = arith.constant 0 : index
    %c0_51 = arith.constant 0 : index
    %144 = vector.load %arg16[%c0_48, %c1_49, %c0_50, %c0_51] : memref<2x4x14x14xf32, #tpu.memory_space<vmem>>, vector<2x1x14x14xf32>
    %145 = vector.shape_cast %144 : vector<2x1x14x14xf32> to vector<2x14x14xf32>
    %146 = vector.shape_cast %143 : vector<2x14x14xf32> to vector<2x1x14x14xf32>
    tpu.vector_store %arg16[%c0_48, %c1_49, %c0_50, %c0_51], %146 {strides = array<i32>} : memref<2x4x14x14xf32, #tpu.memory_space<vmem>>, vector<2x1x14x14xf32>,
    %c18 = arith.constant 18 : index
    %147 = memref.load %arg1[%c18] : memref<36xf32, #tpu.memory_space<smem>>
    %148 = vector.broadcast %147 : f32 to vector<2x14x14xf32>
    %149 = arith.mulf %148, %0 : vector<2x14x14xf32>
    %c19 = arith.constant 19 : index
    %150 = memref.load %arg1[%c19] : memref<36xf32, #tpu.memory_space<smem>>
    %151 = vector.broadcast %150 : f32 to vector<2x14x14xf32>
    %152 = arith.mulf %151, %1 : vector<2x14x14xf32>
    %153 = arith.addf %149, %152 : vector<2x14x14xf32>
    %c20 = arith.constant 20 : index
    %154 = memref.load %arg1[%c20] : memref<36xf32, #tpu.memory_space<smem>>
    %155 = vector.broadcast %154 : f32 to vector<2x14x14xf32>
    %156 = arith.mulf %155, %2 : vector<2x14x14xf32>
    %157 = arith.addf %153, %156 : vector<2x14x14xf32>
    %c21 = arith.constant 21 : index
    %158 = memref.load %arg1[%c21] : memref<36xf32, #tpu.memory_space<smem>>
    %159 = vector.broadcast %158 : f32 to vector<2x14x14xf32>
    %160 = arith.mulf %159, %3 : vector<2x14x14xf32>
    %161 = arith.addf %157, %160 : vector<2x14x14xf32>
    %c22 = arith.constant 22 : index
    %162 = memref.load %arg1[%c22] : memref<36xf32, #tpu.memory_space<smem>>
    %163 = vector.broadcast %162 : f32 to vector<2x14x14xf32>
    %164 = arith.mulf %163, %4 : vector<2x14x14xf32>
    %165 = arith.addf %161, %164 : vector<2x14x14xf32>
    %c23 = arith.constant 23 : index
    %166 = memref.load %arg1[%c23] : memref<36xf32, #tpu.memory_space<smem>>
    %167 = vector.broadcast %166 : f32 to vector<2x14x14xf32>
    %168 = arith.mulf %167, %5 : vector<2x14x14xf32>
    %169 = arith.addf %165, %168 : vector<2x14x14xf32>
    %c24 = arith.constant 24 : index
    %170 = memref.load %arg1[%c24] : memref<36xf32, #tpu.memory_space<smem>>
    %171 = vector.broadcast %170 : f32 to vector<2x14x14xf32>
    %172 = arith.mulf %171, %6 : vector<2x14x14xf32>
    %173 = arith.addf %169, %172 : vector<2x14x14xf32>
    %c25 = arith.constant 25 : index
    %174 = memref.load %arg1[%c25] : memref<36xf32, #tpu.memory_space<smem>>
    %175 = vector.broadcast %174 : f32 to vector<2x14x14xf32>
    %176 = arith.mulf %175, %7 : vector<2x14x14xf32>
    %177 = arith.addf %173, %176 : vector<2x14x14xf32>
    %c26 = arith.constant 26 : index
    %178 = memref.load %arg1[%c26] : memref<36xf32, #tpu.memory_space<smem>>
    %179 = vector.broadcast %178 : f32 to vector<2x14x14xf32>
    %180 = arith.mulf %179, %8 : vector<2x14x14xf32>
    %181 = arith.addf %177, %180 : vector<2x14x14xf32>
    %182 = vector.shape_cast %181 : vector<2x14x14xf32> to vector<1x2x14x14xf32>
    %cst_52 = arith.constant dense<0.000000e+00> : vector<1xf32>
    %183 = vector.multi_reduction <add>, %182, %cst_52 [1, 2, 3] : vector<1x2x14x14xf32> to vector<1xf32>
    %184 = vector.shape_cast %183 : vector<1xf32> to vector<1x1x1x1xf32>
    %185 = vector.extract %184[0, 0, 0, 0] : f32 from vector<1x1x1x1xf32>
    %cst_53 = arith.constant 3.920000e+02 : f32
    %186 = arith.divf %185, %cst_53 : f32
    %187 = vector.broadcast %186 : f32 to vector<2x14x14xf32>
    %188 = arith.subf %181, %187 : vector<2x14x14xf32>
    %189 = arith.mulf %188, %188 : vector<2x14x14xf32>
    %190 = vector.shape_cast %189 : vector<2x14x14xf32> to vector<1x2x14x14xf32>
    %cst_54 = arith.constant dense<0.000000e+00> : vector<1xf32>
    %191 = vector.multi_reduction <add>, %190, %cst_54 [1, 2, 3] : vector<1x2x14x14xf32> to vector<1xf32>
    %192 = vector.shape_cast %191 : vector<1xf32> to vector<1x1x1x1xf32>
    %193 = vector.extract %192[0, 0, 0, 0] : f32 from vector<1x1x1x1xf32>
    %cst_55 = arith.constant 3.920000e+02 : f32
    %194 = arith.divf %193, %cst_55 : f32
    %c2_56 = arith.constant 2 : index
    %195 = memref.load %arg2[%c2_56] : memref<4xf32, #tpu.memory_space<smem>>
    %196 = vector.broadcast %186 : f32 to vector<2x14x14xf32>
    %197 = arith.subf %181, %196 : vector<2x14x14xf32>
    %198 = vector.broadcast %195 : f32 to vector<2x14x14xf32>
    %199 = arith.mulf %198, %197 : vector<2x14x14xf32>
    %cst_57 = arith.constant 9.99999974E-6 : f32
    %200 = arith.addf %194, %cst_57 : f32
    %201 = math.rsqrt %200 : f32
    %202 = vector.broadcast %201 : f32 to vector<2x14x14xf32>
    %203 = arith.mulf %199, %202 : vector<2x14x14xf32>
    %c2_58 = arith.constant 2 : index
    %204 = memref.load %arg3[%c2_58] : memref<4xf32, #tpu.memory_space<smem>>
    %205 = vector.broadcast %204 : f32 to vector<2x14x14xf32>
    %206 = arith.addf %203, %205 : vector<2x14x14xf32>
    %cst_59 = arith.constant 5.000000e-01 : f32
    %207 = vector.broadcast %cst_59 : f32 to vector<2x14x14xf32>
    %208 = arith.mulf %206, %207 : vector<2x14x14xf32>
    %cst_60 = arith.constant 1.000000e+00 : f32
    %209 = vector.broadcast %cst_60 : f32 to vector<2x14x14xf32>
    %210 = arith.cmpf oge, %208, %209 : vector<2x14x14xf32>
    %211 = arith.extui %210 : vector<2x14x14xi1> to vector<2x14x14xi32>
    %212 = arith.sitofp %211 : vector<2x14x14xi32> to vector<2x14x14xf32>
    %c0_61 = arith.constant 0 : index
    %c2_62 = arith.constant 2 : index
    %c0_63 = arith.constant 0 : index
    %c0_64 = arith.constant 0 : index
    %213 = vector.load %arg16[%c0_61, %c2_62, %c0_63, %c0_64] : memref<2x4x14x14xf32, #tpu.memory_space<vmem>>, vector<2x1x14x14xf32>
    %214 = vector.shape_cast %213 : vector<2x1x14x14xf32> to vector<2x14x14xf32>
    %215 = vector.shape_cast %212 : vector<2x14x14xf32> to vector<2x1x14x14xf32>
    tpu.vector_store %arg16[%c0_61, %c2_62, %c0_63, %c0_64], %215 {strides = array<i32>} : memref<2x4x14x14xf32, #tpu.memory_space<vmem>>, vector<2x1x14x14xf32>,
    %c27 = arith.constant 27 : index
    %216 = memref.load %arg1[%c27] : memref<36xf32, #tpu.memory_space<smem>>
    %217 = vector.broadcast %216 : f32 to vector<2x14x14xf32>
    %218 = arith.mulf %217, %0 : vector<2x14x14xf32>
    %c28 = arith.constant 28 : index
    %219 = memref.load %arg1[%c28] : memref<36xf32, #tpu.memory_space<smem>>
    %220 = vector.broadcast %219 : f32 to vector<2x14x14xf32>
    %221 = arith.mulf %220, %1 : vector<2x14x14xf32>
    %222 = arith.addf %218, %221 : vector<2x14x14xf32>
    %c29 = arith.constant 29 : index
    %223 = memref.load %arg1[%c29] : memref<36xf32, #tpu.memory_space<smem>>
    %224 = vector.broadcast %223 : f32 to vector<2x14x14xf32>
    %225 = arith.mulf %224, %2 : vector<2x14x14xf32>
    %226 = arith.addf %222, %225 : vector<2x14x14xf32>
    %c30 = arith.constant 30 : index
    %227 = memref.load %arg1[%c30] : memref<36xf32, #tpu.memory_space<smem>>
    %228 = vector.broadcast %227 : f32 to vector<2x14x14xf32>
    %229 = arith.mulf %228, %3 : vector<2x14x14xf32>
    %230 = arith.addf %226, %229 : vector<2x14x14xf32>
    %c31 = arith.constant 31 : index
    %231 = memref.load %arg1[%c31] : memref<36xf32, #tpu.memory_space<smem>>
    %232 = vector.broadcast %231 : f32 to vector<2x14x14xf32>
    %233 = arith.mulf %232, %4 : vector<2x14x14xf32>
    %234 = arith.addf %230, %233 : vector<2x14x14xf32>
    %c32 = arith.constant 32 : index
    %235 = memref.load %arg1[%c32] : memref<36xf32, #tpu.memory_space<smem>>
    %236 = vector.broadcast %235 : f32 to vector<2x14x14xf32>
    %237 = arith.mulf %236, %5 : vector<2x14x14xf32>
    %238 = arith.addf %234, %237 : vector<2x14x14xf32>
    %c33 = arith.constant 33 : index
    %239 = memref.load %arg1[%c33] : memref<36xf32, #tpu.memory_space<smem>>
    %240 = vector.broadcast %239 : f32 to vector<2x14x14xf32>
    %241 = arith.mulf %240, %6 : vector<2x14x14xf32>
    %242 = arith.addf %238, %241 : vector<2x14x14xf32>
    %c34 = arith.constant 34 : index
    %243 = memref.load %arg1[%c34] : memref<36xf32, #tpu.memory_space<smem>>
    %244 = vector.broadcast %243 : f32 to vector<2x14x14xf32>
    %245 = arith.mulf %244, %7 : vector<2x14x14xf32>
    %246 = arith.addf %242, %245 : vector<2x14x14xf32>
    %c35 = arith.constant 35 : index
    %247 = memref.load %arg1[%c35] : memref<36xf32, #tpu.memory_space<smem>>
    %248 = vector.broadcast %247 : f32 to vector<2x14x14xf32>
    %249 = arith.mulf %248, %8 : vector<2x14x14xf32>
    %250 = arith.addf %246, %249 : vector<2x14x14xf32>
    %251 = vector.shape_cast %250 : vector<2x14x14xf32> to vector<1x2x14x14xf32>
    %cst_65 = arith.constant dense<0.000000e+00> : vector<1xf32>
    %252 = vector.multi_reduction <add>, %251, %cst_65 [1, 2, 3] : vector<1x2x14x14xf32> to vector<1xf32>
    %253 = vector.shape_cast %252 : vector<1xf32> to vector<1x1x1x1xf32>
    %254 = vector.extract %253[0, 0, 0, 0] : f32 from vector<1x1x1x1xf32>
    %cst_66 = arith.constant 3.920000e+02 : f32
    %255 = arith.divf %254, %cst_66 : f32
    %256 = vector.broadcast %255 : f32 to vector<2x14x14xf32>
    %257 = arith.subf %250, %256 : vector<2x14x14xf32>
    %258 = arith.mulf %257, %257 : vector<2x14x14xf32>
    %259 = vector.shape_cast %258 : vector<2x14x14xf32> to vector<1x2x14x14xf32>
    %cst_67 = arith.constant dense<0.000000e+00> : vector<1xf32>
    %260 = vector.multi_reduction <add>, %259, %cst_67 [1, 2, 3] : vector<1x2x14x14xf32> to vector<1xf32>
    %261 = vector.shape_cast %260 : vector<1xf32> to vector<1x1x1x1xf32>
    %262 = vector.extract %261[0, 0, 0, 0] : f32 from vector<1x1x1x1xf32>
    %cst_68 = arith.constant 3.920000e+02 : f32
    %263 = arith.divf %262, %cst_68 : f32
    %c3_69 = arith.constant 3 : index
    %264 = memref.load %arg2[%c3_69] : memref<4xf32, #tpu.memory_space<smem>>
    %265 = vector.broadcast %255 : f32 to vector<2x14x14xf32>
    %266 = arith.subf %250, %265 : vector<2x14x14xf32>
    %267 = vector.broadcast %264 : f32 to vector<2x14x14xf32>
    %268 = arith.mulf %267, %266 : vector<2x14x14xf32>
    %cst_70 = arith.constant 9.99999974E-6 : f32
    %269 = arith.addf %263, %cst_70 : f32
    %270 = math.rsqrt %269 : f32
    %271 = vector.broadcast %270 : f32 to vector<2x14x14xf32>
    %272 = arith.mulf %268, %271 : vector<2x14x14xf32>
    %c3_71 = arith.constant 3 : index
    %273 = memref.load %arg3[%c3_71] : memref<4xf32, #tpu.memory_space<smem>>
    %274 = vector.broadcast %273 : f32 to vector<2x14x14xf32>
    %275 = arith.addf %272, %274 : vector<2x14x14xf32>
    %cst_72 = arith.constant 5.000000e-01 : f32
    %276 = vector.broadcast %cst_72 : f32 to vector<2x14x14xf32>
    %277 = arith.mulf %275, %276 : vector<2x14x14xf32>
    %cst_73 = arith.constant 1.000000e+00 : f32
    %278 = vector.broadcast %cst_73 : f32 to vector<2x14x14xf32>
    %279 = arith.cmpf oge, %277, %278 : vector<2x14x14xf32>
    %280 = arith.extui %279 : vector<2x14x14xi1> to vector<2x14x14xi32>
    %281 = arith.sitofp %280 : vector<2x14x14xi32> to vector<2x14x14xf32>
    %c0_74 = arith.constant 0 : index
    %c3_75 = arith.constant 3 : index
    %c0_76 = arith.constant 0 : index
    %c0_77 = arith.constant 0 : index
    %282 = vector.load %arg16[%c0_74, %c3_75, %c0_76, %c0_77] : memref<2x4x14x14xf32, #tpu.memory_space<vmem>>, vector<2x1x14x14xf32>
    %283 = vector.shape_cast %282 : vector<2x1x14x14xf32> to vector<2x14x14xf32>
    %284 = vector.shape_cast %281 : vector<2x14x14xf32> to vector<2x1x14x14xf32>
    tpu.vector_store %arg16[%c0_74, %c3_75, %c0_76, %c0_77], %284 {strides = array<i32>} : memref<2x4x14x14xf32, #tpu.memory_space<vmem>>, vector<2x1x14x14xf32>,
    %c0_78 = arith.constant 0 : index
    %c0_79 = arith.constant 0 : index
    %c0_80 = arith.constant 0 : index
    %c0_81 = arith.constant 0 : index
    %285 = vector.load %arg16[%c0_78, %c0_79, %c0_80, %c0_81] : memref<2x4x14x14xf32, #tpu.memory_space<vmem>>, vector<2x4x14x14xf32>
    %c0_82 = arith.constant 0 : index
    %c0_83 = arith.constant 0 : index
    %286 = vector.load %arg4[%c0_82, %c0_83] : memref<14x7xf32, #tpu.memory_space<vmem>>, vector<14x7xf32>
    %287 = vector.shape_cast %285 : vector<2x4x14x14xf32> to vector<112x14xf32>
    %cst_84 = arith.constant dense<0.000000e+00> : vector<112x7xf32>
    %288 = tpu.matmul %287, %286, %cst_84 {dimension_numbers = #tpu.dot_dimension_numbers<[1], [0], [0], [1], [0, 0, 1, 1], [], []>} : vector<112x14xf32>, vector<14x7xf32>, vector<112x7xf32> -> vector<112x7xf32>
    %289 = vector.shape_cast %288 : vector<112x7xf32> to vector<2x4x14x7xf32>
    %290 = tpu.transpose %289, [0, 1, 3, 2] : vector<2x4x14x7xf32> -> vector<2x4x7x14xf32>
    %291 = vector.shape_cast %290 : vector<2x4x7x14xf32> to vector<56x14xf32>
    %cst_85 = arith.constant dense<0.000000e+00> : vector<56x7xf32>
    %292 = tpu.matmul %291, %286, %cst_85 {dimension_numbers = #tpu.dot_dimension_numbers<[1], [0], [0], [1], [0, 0, 1, 1], [], []>} : vector<56x14xf32>, vector<14x7xf32>, vector<56x7xf32> -> vector<56x7xf32>
    %293 = vector.shape_cast %292 : vector<56x7xf32> to vector<2x4x7x7xf32>
    %294 = tpu.transpose %293, [0, 1, 3, 2] : vector<2x4x7x7xf32> -> vector<2x4x7x7xf32>
    %cst_86 = arith.constant 0.111111112 : f32
    %295 = vector.broadcast %cst_86 : f32 to vector<2x4x7x7xf32>
    %296 = arith.mulf %294, %295 : vector<2x4x7x7xf32>
    %297 = vector.extract_strided_slice %296 {offsets = [0, 0, 0, 0], sizes = [2, 1, 1, 7], strides = [1, 1, 1, 1]} : vector<2x4x7x7xf32> to vector<2x1x1x7xf32>
    %298 = vector.shape_cast %297 : vector<2x1x1x7xf32> to vector<2x7xf32>
    %c0_87 = arith.constant 0 : index
    %c0_88 = arith.constant 0 : index
    %299 = vector.load %arg17[%c0_87, %c0_88] : memref<2x196xf32, #tpu.memory_space<vmem>>, vector<2x7xf32>
    tpu.vector_store %arg17[%c0_87, %c0_88], %298 {strides = array<i32>} : memref<2x196xf32, #tpu.memory_space<vmem>>, vector<2x7xf32>,
    %300 = vector.extract_strided_slice %296 {offsets = [0, 0, 1, 0], sizes = [2, 1, 1, 7], strides = [1, 1, 1, 1]} : vector<2x4x7x7xf32> to vector<2x1x1x7xf32>
    %301 = vector.shape_cast %300 : vector<2x1x1x7xf32> to vector<2x7xf32>
    %c0_89 = arith.constant 0 : index
    %c7_90 = arith.constant 7 : index
    %302 = vector.load %arg17[%c0_89, %c7_90] : memref<2x196xf32, #tpu.memory_space<vmem>>, vector<2x7xf32>
    tpu.vector_store %arg17[%c0_89, %c7_90], %301 {strides = array<i32>} : memref<2x196xf32, #tpu.memory_space<vmem>>, vector<2x7xf32>,
    %303 = vector.extract_strided_slice %296 {offsets = [0, 0, 2, 0], sizes = [2, 1, 1, 7], strides = [1, 1, 1, 1]} : vector<2x4x7x7xf32> to vector<2x1x1x7xf32>
    %304 = vector.shape_cast %303 : vector<2x1x1x7xf32> to vector<2x7xf32>
    %c0_91 = arith.constant 0 : index
    %c14_92 = arith.constant 14 : index
    %305 = vector.load %arg17[%c0_91, %c14_92] : memref<2x196xf32, #tpu.memory_space<vmem>>, vector<2x7xf32>
    tpu.vector_store %arg17[%c0_91, %c14_92], %304 {strides = array<i32>} : memref<2x196xf32, #tpu.memory_space<vmem>>, vector<2x7xf32>,
    %306 = vector.extract_strided_slice %296 {offsets = [0, 0, 3, 0], sizes = [2, 1, 1, 7], strides = [1, 1, 1, 1]} : vector<2x4x7x7xf32> to vector<2x1x1x7xf32>
    %307 = vector.shape_cast %306 : vector<2x1x1x7xf32> to vector<2x7xf32>
    %c0_93 = arith.constant 0 : index
    %c21_94 = arith.constant 21 : index
    %308 = vector.load %arg17[%c0_93, %c21_94] : memref<2x196xf32, #tpu.memory_space<vmem>>, vector<2x7xf32>
    tpu.vector_store %arg17[%c0_93, %c21_94], %307 {strides = array<i32>} : memref<2x196xf32, #tpu.memory_space<vmem>>, vector<2x7xf32>,
    %309 = vector.extract_strided_slice %296 {offsets = [0, 0, 4, 0], sizes = [2, 1, 1, 7], strides = [1, 1, 1, 1]} : vector<2x4x7x7xf32> to vector<2x1x1x7xf32>
    %310 = vector.shape_cast %309 : vector<2x1x1x7xf32> to vector<2x7xf32>
    %c0_95 = arith.constant 0 : index
    %c28_96 = arith.constant 28 : index
    %311 = vector.load %arg17[%c0_95, %c28_96] : memref<2x196xf32, #tpu.memory_space<vmem>>, vector<2x7xf32>
    tpu.vector_store %arg17[%c0_95, %c28_96], %310 {strides = array<i32>} : memref<2x196xf32, #tpu.memory_space<vmem>>, vector<2x7xf32>,
    %312 = vector.extract_strided_slice %296 {offsets = [0, 0, 5, 0], sizes = [2, 1, 1, 7], strides = [1, 1, 1, 1]} : vector<2x4x7x7xf32> to vector<2x1x1x7xf32>
    %313 = vector.shape_cast %312 : vector<2x1x1x7xf32> to vector<2x7xf32>
    %c0_97 = arith.constant 0 : index
    %c35_98 = arith.constant 35 : index
    %314 = vector.load %arg17[%c0_97, %c35_98] : memref<2x196xf32, #tpu.memory_space<vmem>>, vector<2x7xf32>
    tpu.vector_store %arg17[%c0_97, %c35_98], %313 {strides = array<i32>} : memref<2x196xf32, #tpu.memory_space<vmem>>, vector<2x7xf32>,
    %315 = vector.extract_strided_slice %296 {offsets = [0, 0, 6, 0], sizes = [2, 1, 1, 7], strides = [1, 1, 1, 1]} : vector<2x4x7x7xf32> to vector<2x1x1x7xf32>
    %316 = vector.shape_cast %315 : vector<2x1x1x7xf32> to vector<2x7xf32>
    %c0_99 = arith.constant 0 : index
    %c42 = arith.constant 42 : index
    %317 = vector.load %arg17[%c0_99, %c42] : memref<2x196xf32, #tpu.memory_space<vmem>>, vector<2x7xf32>
    tpu.vector_store %arg17[%c0_99, %c42], %316 {strides = array<i32>} : memref<2x196xf32, #tpu.memory_space<vmem>>, vector<2x7xf32>,
    %318 = vector.extract_strided_slice %296 {offsets = [0, 1, 0, 0], sizes = [2, 1, 1, 7], strides = [1, 1, 1, 1]} : vector<2x4x7x7xf32> to vector<2x1x1x7xf32>
    %319 = vector.shape_cast %318 : vector<2x1x1x7xf32> to vector<2x7xf32>
    %c0_100 = arith.constant 0 : index
    %c49 = arith.constant 49 : index
    %320 = vector.load %arg17[%c0_100, %c49] : memref<2x196xf32, #tpu.memory_space<vmem>>, vector<2x7xf32>
    tpu.vector_store %arg17[%c0_100, %c49], %319 {strides = array<i32>} : memref<2x196xf32, #tpu.memory_space<vmem>>, vector<2x7xf32>,
    %321 = vector.extract_strided_slice %296 {offsets = [0, 1, 1, 0], sizes = [2, 1, 1, 7], strides = [1, 1, 1, 1]} : vector<2x4x7x7xf32> to vector<2x1x1x7xf32>
    %322 = vector.shape_cast %321 : vector<2x1x1x7xf32> to vector<2x7xf32>
    %c0_101 = arith.constant 0 : index
    %c56 = arith.constant 56 : index
    %323 = vector.load %arg17[%c0_101, %c56] : memref<2x196xf32, #tpu.memory_space<vmem>>, vector<2x7xf32>
    tpu.vector_store %arg17[%c0_101, %c56], %322 {strides = array<i32>} : memref<2x196xf32, #tpu.memory_space<vmem>>, vector<2x7xf32>,
    %324 = vector.extract_strided_slice %296 {offsets = [0, 1, 2, 0], sizes = [2, 1, 1, 7], strides = [1, 1, 1, 1]} : vector<2x4x7x7xf32> to vector<2x1x1x7xf32>
    %325 = vector.shape_cast %324 : vector<2x1x1x7xf32> to vector<2x7xf32>
    %c0_102 = arith.constant 0 : index
    %c63 = arith.constant 63 : index
    %326 = vector.load %arg17[%c0_102, %c63] : memref<2x196xf32, #tpu.memory_space<vmem>>, vector<2x7xf32>
    tpu.vector_store %arg17[%c0_102, %c63], %325 {strides = array<i32>} : memref<2x196xf32, #tpu.memory_space<vmem>>, vector<2x7xf32>,
    %327 = vector.extract_strided_slice %296 {offsets = [0, 1, 3, 0], sizes = [2, 1, 1, 7], strides = [1, 1, 1, 1]} : vector<2x4x7x7xf32> to vector<2x1x1x7xf32>
    %328 = vector.shape_cast %327 : vector<2x1x1x7xf32> to vector<2x7xf32>
    %c0_103 = arith.constant 0 : index
    %c70 = arith.constant 70 : index
    %329 = vector.load %arg17[%c0_103, %c70] : memref<2x196xf32, #tpu.memory_space<vmem>>, vector<2x7xf32>
    tpu.vector_store %arg17[%c0_103, %c70], %328 {strides = array<i32>} : memref<2x196xf32, #tpu.memory_space<vmem>>, vector<2x7xf32>,
    %330 = vector.extract_strided_slice %296 {offsets = [0, 1, 4, 0], sizes = [2, 1, 1, 7], strides = [1, 1, 1, 1]} : vector<2x4x7x7xf32> to vector<2x1x1x7xf32>
    %331 = vector.shape_cast %330 : vector<2x1x1x7xf32> to vector<2x7xf32>
    %c0_104 = arith.constant 0 : index
    %c77 = arith.constant 77 : index
    %332 = vector.load %arg17[%c0_104, %c77] : memref<2x196xf32, #tpu.memory_space<vmem>>, vector<2x7xf32>
    tpu.vector_store %arg17[%c0_104, %c77], %331 {strides = array<i32>} : memref<2x196xf32, #tpu.memory_space<vmem>>, vector<2x7xf32>,
    %333 = vector.extract_strided_slice %296 {offsets = [0, 1, 5, 0], sizes = [2, 1, 1, 7], strides = [1, 1, 1, 1]} : vector<2x4x7x7xf32> to vector<2x1x1x7xf32>
    %334 = vector.shape_cast %333 : vector<2x1x1x7xf32> to vector<2x7xf32>
    %c0_105 = arith.constant 0 : index
    %c84 = arith.constant 84 : index
    %335 = vector.load %arg17[%c0_105, %c84] : memref<2x196xf32, #tpu.memory_space<vmem>>, vector<2x7xf32>
    tpu.vector_store %arg17[%c0_105, %c84], %334 {strides = array<i32>} : memref<2x196xf32, #tpu.memory_space<vmem>>, vector<2x7xf32>,
    %336 = vector.extract_strided_slice %296 {offsets = [0, 1, 6, 0], sizes = [2, 1, 1, 7], strides = [1, 1, 1, 1]} : vector<2x4x7x7xf32> to vector<2x1x1x7xf32>
    %337 = vector.shape_cast %336 : vector<2x1x1x7xf32> to vector<2x7xf32>
    %c0_106 = arith.constant 0 : index
    %c91 = arith.constant 91 : index
    %338 = vector.load %arg17[%c0_106, %c91] : memref<2x196xf32, #tpu.memory_space<vmem>>, vector<2x7xf32>
    tpu.vector_store %arg17[%c0_106, %c91], %337 {strides = array<i32>} : memref<2x196xf32, #tpu.memory_space<vmem>>, vector<2x7xf32>,
    %339 = vector.extract_strided_slice %296 {offsets = [0, 2, 0, 0], sizes = [2, 1, 1, 7], strides = [1, 1, 1, 1]} : vector<2x4x7x7xf32> to vector<2x1x1x7xf32>
    %340 = vector.shape_cast %339 : vector<2x1x1x7xf32> to vector<2x7xf32>
    %c0_107 = arith.constant 0 : index
    %c98 = arith.constant 98 : index
    %341 = vector.load %arg17[%c0_107, %c98] : memref<2x196xf32, #tpu.memory_space<vmem>>, vector<2x7xf32>
    tpu.vector_store %arg17[%c0_107, %c98], %340 {strides = array<i32>} : memref<2x196xf32, #tpu.memory_space<vmem>>, vector<2x7xf32>,
    %342 = vector.extract_strided_slice %296 {offsets = [0, 2, 1, 0], sizes = [2, 1, 1, 7], strides = [1, 1, 1, 1]} : vector<2x4x7x7xf32> to vector<2x1x1x7xf32>
    %343 = vector.shape_cast %342 : vector<2x1x1x7xf32> to vector<2x7xf32>
    %c0_108 = arith.constant 0 : index
    %c105 = arith.constant 105 : index
    %344 = vector.load %arg17[%c0_108, %c105] : memref<2x196xf32, #tpu.memory_space<vmem>>, vector<2x7xf32>
    tpu.vector_store %arg17[%c0_108, %c105], %343 {strides = array<i32>} : memref<2x196xf32, #tpu.memory_space<vmem>>, vector<2x7xf32>,
    %345 = vector.extract_strided_slice %296 {offsets = [0, 2, 2, 0], sizes = [2, 1, 1, 7], strides = [1, 1, 1, 1]} : vector<2x4x7x7xf32> to vector<2x1x1x7xf32>
    %346 = vector.shape_cast %345 : vector<2x1x1x7xf32> to vector<2x7xf32>
    %c0_109 = arith.constant 0 : index
    %c112 = arith.constant 112 : index
    %347 = vector.load %arg17[%c0_109, %c112] : memref<2x196xf32, #tpu.memory_space<vmem>>, vector<2x7xf32>
    tpu.vector_store %arg17[%c0_109, %c112], %346 {strides = array<i32>} : memref<2x196xf32, #tpu.memory_space<vmem>>, vector<2x7xf32>,
    %348 = vector.extract_strided_slice %296 {offsets = [0, 2, 3, 0], sizes = [2, 1, 1, 7], strides = [1, 1, 1, 1]} : vector<2x4x7x7xf32> to vector<2x1x1x7xf32>
    %349 = vector.shape_cast %348 : vector<2x1x1x7xf32> to vector<2x7xf32>
    %c0_110 = arith.constant 0 : index
    %c119 = arith.constant 119 : index
    %350 = vector.load %arg17[%c0_110, %c119] : memref<2x196xf32, #tpu.memory_space<vmem>>, vector<2x7xf32>
    tpu.vector_store %arg17[%c0_110, %c119], %349 {strides = array<i32>} : memref<2x196xf32, #tpu.memory_space<vmem>>, vector<2x7xf32>,
    %351 = vector.extract_strided_slice %296 {offsets = [0, 2, 4, 0], sizes = [2, 1, 1, 7], strides = [1, 1, 1, 1]} : vector<2x4x7x7xf32> to vector<2x1x1x7xf32>
    %352 = vector.shape_cast %351 : vector<2x1x1x7xf32> to vector<2x7xf32>
    %c0_111 = arith.constant 0 : index
    %c126 = arith.constant 126 : index
    %353 = vector.load %arg17[%c0_111, %c126] : memref<2x196xf32, #tpu.memory_space<vmem>>, vector<2x7xf32>
    tpu.vector_store %arg17[%c0_111, %c126], %352 {strides = array<i32>} : memref<2x196xf32, #tpu.memory_space<vmem>>, vector<2x7xf32>,
    %354 = vector.extract_strided_slice %296 {offsets = [0, 2, 5, 0], sizes = [2, 1, 1, 7], strides = [1, 1, 1, 1]} : vector<2x4x7x7xf32> to vector<2x1x1x7xf32>
    %355 = vector.shape_cast %354 : vector<2x1x1x7xf32> to vector<2x7xf32>
    %c0_112 = arith.constant 0 : index
    %c133 = arith.constant 133 : index
    %356 = vector.load %arg17[%c0_112, %c133] : memref<2x196xf32, #tpu.memory_space<vmem>>, vector<2x7xf32>
    tpu.vector_store %arg17[%c0_112, %c133], %355 {strides = array<i32>} : memref<2x196xf32, #tpu.memory_space<vmem>>, vector<2x7xf32>,
    %357 = vector.extract_strided_slice %296 {offsets = [0, 2, 6, 0], sizes = [2, 1, 1, 7], strides = [1, 1, 1, 1]} : vector<2x4x7x7xf32> to vector<2x1x1x7xf32>
    %358 = vector.shape_cast %357 : vector<2x1x1x7xf32> to vector<2x7xf32>
    %c0_113 = arith.constant 0 : index
    %c140 = arith.constant 140 : index
    %359 = vector.load %arg17[%c0_113, %c140] : memref<2x196xf32, #tpu.memory_space<vmem>>, vector<2x7xf32>
    tpu.vector_store %arg17[%c0_113, %c140], %358 {strides = array<i32>} : memref<2x196xf32, #tpu.memory_space<vmem>>, vector<2x7xf32>,
    %360 = vector.extract_strided_slice %296 {offsets = [0, 3, 0, 0], sizes = [2, 1, 1, 7], strides = [1, 1, 1, 1]} : vector<2x4x7x7xf32> to vector<2x1x1x7xf32>
    %361 = vector.shape_cast %360 : vector<2x1x1x7xf32> to vector<2x7xf32>
    %c0_114 = arith.constant 0 : index
    %c147 = arith.constant 147 : index
    %362 = vector.load %arg17[%c0_114, %c147] : memref<2x196xf32, #tpu.memory_space<vmem>>, vector<2x7xf32>
    tpu.vector_store %arg17[%c0_114, %c147], %361 {strides = array<i32>} : memref<2x196xf32, #tpu.memory_space<vmem>>, vector<2x7xf32>,
    %363 = vector.extract_strided_slice %296 {offsets = [0, 3, 1, 0], sizes = [2, 1, 1, 7], strides = [1, 1, 1, 1]} : vector<2x4x7x7xf32> to vector<2x1x1x7xf32>
    %364 = vector.shape_cast %363 : vector<2x1x1x7xf32> to vector<2x7xf32>
    %c0_115 = arith.constant 0 : index
    %c154 = arith.constant 154 : index
    %365 = vector.load %arg17[%c0_115, %c154] : memref<2x196xf32, #tpu.memory_space<vmem>>, vector<2x7xf32>
    tpu.vector_store %arg17[%c0_115, %c154], %364 {strides = array<i32>} : memref<2x196xf32, #tpu.memory_space<vmem>>, vector<2x7xf32>,
    %366 = vector.extract_strided_slice %296 {offsets = [0, 3, 2, 0], sizes = [2, 1, 1, 7], strides = [1, 1, 1, 1]} : vector<2x4x7x7xf32> to vector<2x1x1x7xf32>
    %367 = vector.shape_cast %366 : vector<2x1x1x7xf32> to vector<2x7xf32>
    %c0_116 = arith.constant 0 : index
    %c161 = arith.constant 161 : index
    %368 = vector.load %arg17[%c0_116, %c161] : memref<2x196xf32, #tpu.memory_space<vmem>>, vector<2x7xf32>
    tpu.vector_store %arg17[%c0_116, %c161], %367 {strides = array<i32>} : memref<2x196xf32, #tpu.memory_space<vmem>>, vector<2x7xf32>,
    %369 = vector.extract_strided_slice %296 {offsets = [0, 3, 3, 0], sizes = [2, 1, 1, 7], strides = [1, 1, 1, 1]} : vector<2x4x7x7xf32> to vector<2x1x1x7xf32>
    %370 = vector.shape_cast %369 : vector<2x1x1x7xf32> to vector<2x7xf32>
    %c0_117 = arith.constant 0 : index
    %c168 = arith.constant 168 : index
    %371 = vector.load %arg17[%c0_117, %c168] : memref<2x196xf32, #tpu.memory_space<vmem>>, vector<2x7xf32>
    tpu.vector_store %arg17[%c0_117, %c168], %370 {strides = array<i32>} : memref<2x196xf32, #tpu.memory_space<vmem>>, vector<2x7xf32>,
    %372 = vector.extract_strided_slice %296 {offsets = [0, 3, 4, 0], sizes = [2, 1, 1, 7], strides = [1, 1, 1, 1]} : vector<2x4x7x7xf32> to vector<2x1x1x7xf32>
    %373 = vector.shape_cast %372 : vector<2x1x1x7xf32> to vector<2x7xf32>
    %c0_118 = arith.constant 0 : index
    %c175 = arith.constant 175 : index
    %374 = vector.load %arg17[%c0_118, %c175] : memref<2x196xf32, #tpu.memory_space<vmem>>, vector<2x7xf32>
    tpu.vector_store %arg17[%c0_118, %c175], %373 {strides = array<i32>} : memref<2x196xf32, #tpu.memory_space<vmem>>, vector<2x7xf32>,
    %375 = vector.extract_strided_slice %296 {offsets = [0, 3, 5, 0], sizes = [2, 1, 1, 7], strides = [1, 1, 1, 1]} : vector<2x4x7x7xf32> to vector<2x1x1x7xf32>
    %376 = vector.shape_cast %375 : vector<2x1x1x7xf32> to vector<2x7xf32>
    %c0_119 = arith.constant 0 : index
    %c182 = arith.constant 182 : index
    %377 = vector.load %arg17[%c0_119, %c182] : memref<2x196xf32, #tpu.memory_space<vmem>>, vector<2x7xf32>
    tpu.vector_store %arg17[%c0_119, %c182], %376 {strides = array<i32>} : memref<2x196xf32, #tpu.memory_space<vmem>>, vector<2x7xf32>,
    %378 = vector.extract_strided_slice %296 {offsets = [0, 3, 6, 0], sizes = [2, 1, 1, 7], strides = [1, 1, 1, 1]} : vector<2x4x7x7xf32> to vector<2x1x1x7xf32>
    %379 = vector.shape_cast %378 : vector<2x1x1x7xf32> to vector<2x7xf32>
    %c0_120 = arith.constant 0 : index
    %c189 = arith.constant 189 : index
    %380 = vector.load %arg17[%c0_120, %c189] : memref<2x196xf32, #tpu.memory_space<vmem>>, vector<2x7xf32>
    tpu.vector_store %arg17[%c0_120, %c189], %379 {strides = array<i32>} : memref<2x196xf32, #tpu.memory_space<vmem>>, vector<2x7xf32>,
    %c0_121 = arith.constant 0 : index
    %c0_122 = arith.constant 0 : index
    %381 = vector.load %arg17[%c0_121, %c0_122] : memref<2x196xf32, #tpu.memory_space<vmem>>, vector<2x196xf32>
    %c0_123 = arith.constant 0 : index
    %c0_124 = arith.constant 0 : index
    %c0_125 = arith.constant 0 : index
    %382 = vector.load %arg5[%c0_123, %c0_124, %c0_125] : memref<3x196x196xf32, #tpu.memory_space<vmem>>, vector<1x196x196xf32>
    %383 = vector.shape_cast %382 : vector<1x196x196xf32> to vector<196x196xf32>
    %cst_126 = arith.constant dense<0.000000e+00> : vector<2x196xf32>
    %384 = tpu.matmul %381, %383, %cst_126 {dimension_numbers = #tpu.dot_dimension_numbers<[1], [0], [0], [1], [0, 0, 1, 1], [], []>} : vector<2x196xf32>, vector<196x196xf32>, vector<2x196xf32> -> vector<2x196xf32>
    %c0_127 = arith.constant 0 : index
    %c0_128 = arith.constant 0 : index
    %c0_129 = arith.constant 0 : index
    %385 = vector.load %arg6[%c0_127, %c0_128, %c0_129] : memref<3x1x196xf32, #tpu.memory_space<vmem>>, vector<1x1x196xf32>
    %386 = vector.shape_cast %385 : vector<1x1x196xf32> to vector<1x196xf32>
    %387 = vector.broadcast %386 : vector<1x196xf32> to vector<2x196xf32>
    %388 = arith.addf %384, %387 : vector<2x196xf32>
    %c0_130 = arith.constant 0 : index
    %c0_131 = arith.constant 0 : index
    %389 = vector.load %arg18[%c0_130, %c0_131] : memref<2x196xf32, #tpu.memory_space<vmem>>, vector<2x196xf32>
    tpu.vector_store %arg18[%c0_130, %c0_131], %388 {strides = array<i32>} : memref<2x196xf32, #tpu.memory_space<vmem>>, vector<2x196xf32>,
    %c0_132 = arith.constant 0 : index
    %c0_133 = arith.constant 0 : index
    %390 = vector.load %arg18[%c0_132, %c0_133] : memref<2x196xf32, #tpu.memory_space<vmem>>, vector<2x49xf32>
    %391 = vector.shape_cast %390 : vector<2x49xf32> to vector<1x2x49xf32>
    %cst_134 = arith.constant dense<0.000000e+00> : vector<1xf32>
    %392 = vector.multi_reduction <add>, %391, %cst_134 [1, 2] : vector<1x2x49xf32> to vector<1xf32>
    %393 = vector.shape_cast %392 : vector<1xf32> to vector<1x1x1xf32>
    %394 = vector.extract %393[0, 0, 0] : f32 from vector<1x1x1xf32>
    %cst_135 = arith.constant 9.800000e+01 : f32
    %395 = arith.divf %394, %cst_135 : f32
    %396 = vector.broadcast %395 : f32 to vector<2x49xf32>
    %397 = arith.subf %390, %396 : vector<2x49xf32>
    %398 = arith.mulf %397, %397 : vector<2x49xf32>
    %399 = vector.shape_cast %398 : vector<2x49xf32> to vector<1x2x49xf32>
    %cst_136 = arith.constant dense<0.000000e+00> : vector<1xf32>
    %400 = vector.multi_reduction <add>, %399, %cst_136 [1, 2] : vector<1x2x49xf32> to vector<1xf32>
    %401 = vector.shape_cast %400 : vector<1xf32> to vector<1x1x1xf32>
    %402 = vector.extract %401[0, 0, 0] : f32 from vector<1x1x1xf32>
    %cst_137 = arith.constant 9.800000e+01 : f32
    %403 = arith.divf %402, %cst_137 : f32
    %c0_138 = arith.constant 0 : index
    %c0_139 = arith.constant 0 : index
    %404 = memref.load %arg7[%c0_138, %c0_139] : memref<3x4xf32, #tpu.memory_space<smem>>
    %405 = vector.broadcast %395 : f32 to vector<2x49xf32>
    %406 = arith.subf %390, %405 : vector<2x49xf32>
    %407 = vector.broadcast %404 : f32 to vector<2x49xf32>
    %408 = arith.mulf %407, %406 : vector<2x49xf32>
    %cst_140 = arith.constant 9.99999974E-6 : f32
    %409 = arith.addf %403, %cst_140 : f32
    %410 = math.rsqrt %409 : f32
    %411 = vector.broadcast %410 : f32 to vector<2x49xf32>
    %412 = arith.mulf %408, %411 : vector<2x49xf32>
    %c0_141 = arith.constant 0 : index
    %c0_142 = arith.constant 0 : index
    %413 = memref.load %arg8[%c0_141, %c0_142] : memref<3x4xf32, #tpu.memory_space<smem>>
    %414 = vector.broadcast %413 : f32 to vector<2x49xf32>
    %415 = arith.addf %412, %414 : vector<2x49xf32>
    %cst_143 = arith.constant 5.000000e-01 : f32
    %416 = vector.broadcast %cst_143 : f32 to vector<2x49xf32>
    %417 = arith.mulf %415, %416 : vector<2x49xf32>
    %cst_144 = arith.constant 1.000000e+00 : f32
    %418 = vector.broadcast %cst_144 : f32 to vector<2x49xf32>
    %419 = arith.cmpf oge, %417, %418 : vector<2x49xf32>
    %420 = arith.extui %419 : vector<2x49xi1> to vector<2x49xi32>
    %421 = arith.sitofp %420 : vector<2x49xi32> to vector<2x49xf32>
    %c0_145 = arith.constant 0 : index
    %c0_146 = arith.constant 0 : index
    %c0_147 = arith.constant 0 : index
    %c0_148 = arith.constant 0 : index
    %422 = vector.load %arg19[%c0_145, %c0_146, %c0_147, %c0_148] : memref<3x2x4x49xf32, #tpu.memory_space<vmem>>, vector<1x2x1x49xf32>
    %423 = vector.shape_cast %422 : vector<1x2x1x49xf32> to vector<2x49xf32>
    %424 = vector.shape_cast %421 : vector<2x49xf32> to vector<1x2x1x49xf32>
    tpu.vector_store %arg19[%c0_145, %c0_146, %c0_147, %c0_148], %424 {strides = array<i32>} : memref<3x2x4x49xf32, #tpu.memory_space<vmem>>, vector<1x2x1x49xf32>,
    %c0_149 = arith.constant 0 : index
    %c49_150 = arith.constant 49 : index
    %425 = vector.load %arg18[%c0_149, %c49_150] : memref<2x196xf32, #tpu.memory_space<vmem>>, vector<2x49xf32>
    %426 = vector.shape_cast %425 : vector<2x49xf32> to vector<1x2x49xf32>
    %cst_151 = arith.constant dense<0.000000e+00> : vector<1xf32>
    %427 = vector.multi_reduction <add>, %426, %cst_151 [1, 2] : vector<1x2x49xf32> to vector<1xf32>
    %428 = vector.shape_cast %427 : vector<1xf32> to vector<1x1x1xf32>
    %429 = vector.extract %428[0, 0, 0] : f32 from vector<1x1x1xf32>
    %cst_152 = arith.constant 9.800000e+01 : f32
    %430 = arith.divf %429, %cst_152 : f32
    %431 = vector.broadcast %430 : f32 to vector<2x49xf32>
    %432 = arith.subf %425, %431 : vector<2x49xf32>
    %433 = arith.mulf %432, %432 : vector<2x49xf32>
    %434 = vector.shape_cast %433 : vector<2x49xf32> to vector<1x2x49xf32>
    %cst_153 = arith.constant dense<0.000000e+00> : vector<1xf32>
    %435 = vector.multi_reduction <add>, %434, %cst_153 [1, 2] : vector<1x2x49xf32> to vector<1xf32>
    %436 = vector.shape_cast %435 : vector<1xf32> to vector<1x1x1xf32>
    %437 = vector.extract %436[0, 0, 0] : f32 from vector<1x1x1xf32>
    %cst_154 = arith.constant 9.800000e+01 : f32
    %438 = arith.divf %437, %cst_154 : f32
    %c0_155 = arith.constant 0 : index
    %c1_156 = arith.constant 1 : index
    %439 = memref.load %arg7[%c0_155, %c1_156] : memref<3x4xf32, #tpu.memory_space<smem>>
    %440 = vector.broadcast %430 : f32 to vector<2x49xf32>
    %441 = arith.subf %425, %440 : vector<2x49xf32>
    %442 = vector.broadcast %439 : f32 to vector<2x49xf32>
    %443 = arith.mulf %442, %441 : vector<2x49xf32>
    %cst_157 = arith.constant 9.99999974E-6 : f32
    %444 = arith.addf %438, %cst_157 : f32
    %445 = math.rsqrt %444 : f32
    %446 = vector.broadcast %445 : f32 to vector<2x49xf32>
    %447 = arith.mulf %443, %446 : vector<2x49xf32>
    %c0_158 = arith.constant 0 : index
    %c1_159 = arith.constant 1 : index
    %448 = memref.load %arg8[%c0_158, %c1_159] : memref<3x4xf32, #tpu.memory_space<smem>>
    %449 = vector.broadcast %448 : f32 to vector<2x49xf32>
    %450 = arith.addf %447, %449 : vector<2x49xf32>
    %cst_160 = arith.constant 5.000000e-01 : f32
    %451 = vector.broadcast %cst_160 : f32 to vector<2x49xf32>
    %452 = arith.mulf %450, %451 : vector<2x49xf32>
    %cst_161 = arith.constant 1.000000e+00 : f32
    %453 = vector.broadcast %cst_161 : f32 to vector<2x49xf32>
    %454 = arith.cmpf oge, %452, %453 : vector<2x49xf32>
    %455 = arith.extui %454 : vector<2x49xi1> to vector<2x49xi32>
    %456 = arith.sitofp %455 : vector<2x49xi32> to vector<2x49xf32>
    %c0_162 = arith.constant 0 : index
    %c0_163 = arith.constant 0 : index
    %c1_164 = arith.constant 1 : index
    %c0_165 = arith.constant 0 : index
    %457 = vector.load %arg19[%c0_162, %c0_163, %c1_164, %c0_165] : memref<3x2x4x49xf32, #tpu.memory_space<vmem>>, vector<1x2x1x49xf32>
    %458 = vector.shape_cast %457 : vector<1x2x1x49xf32> to vector<2x49xf32>
    %459 = vector.shape_cast %456 : vector<2x49xf32> to vector<1x2x1x49xf32>
    tpu.vector_store %arg19[%c0_162, %c0_163, %c1_164, %c0_165], %459 {strides = array<i32>} : memref<3x2x4x49xf32, #tpu.memory_space<vmem>>, vector<1x2x1x49xf32>,
    %c0_166 = arith.constant 0 : index
    %c98_167 = arith.constant 98 : index
    %460 = vector.load %arg18[%c0_166, %c98_167] : memref<2x196xf32, #tpu.memory_space<vmem>>, vector<2x49xf32>
    %461 = vector.shape_cast %460 : vector<2x49xf32> to vector<1x2x49xf32>
    %cst_168 = arith.constant dense<0.000000e+00> : vector<1xf32>
    %462 = vector.multi_reduction <add>, %461, %cst_168 [1, 2] : vector<1x2x49xf32> to vector<1xf32>
    %463 = vector.shape_cast %462 : vector<1xf32> to vector<1x1x1xf32>
    %464 = vector.extract %463[0, 0, 0] : f32 from vector<1x1x1xf32>
    %cst_169 = arith.constant 9.800000e+01 : f32
    %465 = arith.divf %464, %cst_169 : f32
    %466 = vector.broadcast %465 : f32 to vector<2x49xf32>
    %467 = arith.subf %460, %466 : vector<2x49xf32>
    %468 = arith.mulf %467, %467 : vector<2x49xf32>
    %469 = vector.shape_cast %468 : vector<2x49xf32> to vector<1x2x49xf32>
    %cst_170 = arith.constant dense<0.000000e+00> : vector<1xf32>
    %470 = vector.multi_reduction <add>, %469, %cst_170 [1, 2] : vector<1x2x49xf32> to vector<1xf32>
    %471 = vector.shape_cast %470 : vector<1xf32> to vector<1x1x1xf32>
    %472 = vector.extract %471[0, 0, 0] : f32 from vector<1x1x1xf32>
    %cst_171 = arith.constant 9.800000e+01 : f32
    %473 = arith.divf %472, %cst_171 : f32
    %c0_172 = arith.constant 0 : index
    %c2_173 = arith.constant 2 : index
    %474 = memref.load %arg7[%c0_172, %c2_173] : memref<3x4xf32, #tpu.memory_space<smem>>
    %475 = vector.broadcast %465 : f32 to vector<2x49xf32>
    %476 = arith.subf %460, %475 : vector<2x49xf32>
    %477 = vector.broadcast %474 : f32 to vector<2x49xf32>
    %478 = arith.mulf %477, %476 : vector<2x49xf32>
    %cst_174 = arith.constant 9.99999974E-6 : f32
    %479 = arith.addf %473, %cst_174 : f32
    %480 = math.rsqrt %479 : f32
    %481 = vector.broadcast %480 : f32 to vector<2x49xf32>
    %482 = arith.mulf %478, %481 : vector<2x49xf32>
    %c0_175 = arith.constant 0 : index
    %c2_176 = arith.constant 2 : index
    %483 = memref.load %arg8[%c0_175, %c2_176] : memref<3x4xf32, #tpu.memory_space<smem>>
    %484 = vector.broadcast %483 : f32 to vector<2x49xf32>
    %485 = arith.addf %482, %484 : vector<2x49xf32>
    %cst_177 = arith.constant 5.000000e-01 : f32
    %486 = vector.broadcast %cst_177 : f32 to vector<2x49xf32>
    %487 = arith.mulf %485, %486 : vector<2x49xf32>
    %cst_178 = arith.constant 1.000000e+00 : f32
    %488 = vector.broadcast %cst_178 : f32 to vector<2x49xf32>
    %489 = arith.cmpf oge, %487, %488 : vector<2x49xf32>
    %490 = arith.extui %489 : vector<2x49xi1> to vector<2x49xi32>
    %491 = arith.sitofp %490 : vector<2x49xi32> to vector<2x49xf32>
    %c0_179 = arith.constant 0 : index
    %c0_180 = arith.constant 0 : index
    %c2_181 = arith.constant 2 : index
    %c0_182 = arith.constant 0 : index
    %492 = vector.load %arg19[%c0_179, %c0_180, %c2_181, %c0_182] : memref<3x2x4x49xf32, #tpu.memory_space<vmem>>, vector<1x2x1x49xf32>
    %493 = vector.shape_cast %492 : vector<1x2x1x49xf32> to vector<2x49xf32>
    %494 = vector.shape_cast %491 : vector<2x49xf32> to vector<1x2x1x49xf32>
    tpu.vector_store %arg19[%c0_179, %c0_180, %c2_181, %c0_182], %494 {strides = array<i32>} : memref<3x2x4x49xf32, #tpu.memory_space<vmem>>, vector<1x2x1x49xf32>,
    %c0_183 = arith.constant 0 : index
    %c147_184 = arith.constant 147 : index
    %495 = vector.load %arg18[%c0_183, %c147_184] : memref<2x196xf32, #tpu.memory_space<vmem>>, vector<2x49xf32>
    %496 = vector.shape_cast %495 : vector<2x49xf32> to vector<1x2x49xf32>
    %cst_185 = arith.constant dense<0.000000e+00> : vector<1xf32>
    %497 = vector.multi_reduction <add>, %496, %cst_185 [1, 2] : vector<1x2x49xf32> to vector<1xf32>
    %498 = vector.shape_cast %497 : vector<1xf32> to vector<1x1x1xf32>
    %499 = vector.extract %498[0, 0, 0] : f32 from vector<1x1x1xf32>
    %cst_186 = arith.constant 9.800000e+01 : f32
    %500 = arith.divf %499, %cst_186 : f32
    %501 = vector.broadcast %500 : f32 to vector<2x49xf32>
    %502 = arith.subf %495, %501 : vector<2x49xf32>
    %503 = arith.mulf %502, %502 : vector<2x49xf32>
    %504 = vector.shape_cast %503 : vector<2x49xf32> to vector<1x2x49xf32>
    %cst_187 = arith.constant dense<0.000000e+00> : vector<1xf32>
    %505 = vector.multi_reduction <add>, %504, %cst_187 [1, 2] : vector<1x2x49xf32> to vector<1xf32>
    %506 = vector.shape_cast %505 : vector<1xf32> to vector<1x1x1xf32>
    %507 = vector.extract %506[0, 0, 0] : f32 from vector<1x1x1xf32>
    %cst_188 = arith.constant 9.800000e+01 : f32
    %508 = arith.divf %507, %cst_188 : f32
    %c0_189 = arith.constant 0 : index
    %c3_190 = arith.constant 3 : index
    %509 = memref.load %arg7[%c0_189, %c3_190] : memref<3x4xf32, #tpu.memory_space<smem>>
    %510 = vector.broadcast %500 : f32 to vector<2x49xf32>
    %511 = arith.subf %495, %510 : vector<2x49xf32>
    %512 = vector.broadcast %509 : f32 to vector<2x49xf32>
    %513 = arith.mulf %512, %511 : vector<2x49xf32>
    %cst_191 = arith.constant 9.99999974E-6 : f32
    %514 = arith.addf %508, %cst_191 : f32
    %515 = math.rsqrt %514 : f32
    %516 = vector.broadcast %515 : f32 to vector<2x49xf32>
    %517 = arith.mulf %513, %516 : vector<2x49xf32>
    %c0_192 = arith.constant 0 : index
    %c3_193 = arith.constant 3 : index
    %518 = memref.load %arg8[%c0_192, %c3_193] : memref<3x4xf32, #tpu.memory_space<smem>>
    %519 = vector.broadcast %518 : f32 to vector<2x49xf32>
    %520 = arith.addf %517, %519 : vector<2x49xf32>
    %cst_194 = arith.constant 5.000000e-01 : f32
    %521 = vector.broadcast %cst_194 : f32 to vector<2x49xf32>
    %522 = arith.mulf %520, %521 : vector<2x49xf32>
    %cst_195 = arith.constant 1.000000e+00 : f32
    %523 = vector.broadcast %cst_195 : f32 to vector<2x49xf32>
    %524 = arith.cmpf oge, %522, %523 : vector<2x49xf32>
    %525 = arith.extui %524 : vector<2x49xi1> to vector<2x49xi32>
    %526 = arith.sitofp %525 : vector<2x49xi32> to vector<2x49xf32>
    %c0_196 = arith.constant 0 : index
    %c0_197 = arith.constant 0 : index
    %c3_198 = arith.constant 3 : index
    %c0_199 = arith.constant 0 : index
    %527 = vector.load %arg19[%c0_196, %c0_197, %c3_198, %c0_199] : memref<3x2x4x49xf32, #tpu.memory_space<vmem>>, vector<1x2x1x49xf32>
    %528 = vector.shape_cast %527 : vector<1x2x1x49xf32> to vector<2x49xf32>
    %529 = vector.shape_cast %526 : vector<2x49xf32> to vector<1x2x1x49xf32>
    tpu.vector_store %arg19[%c0_196, %c0_197, %c3_198, %c0_199], %529 {strides = array<i32>} : memref<3x2x4x49xf32, #tpu.memory_space<vmem>>, vector<1x2x1x49xf32>,
    %c1_200 = arith.constant 1 : index
    %c0_201 = arith.constant 0 : index
    %c0_202 = arith.constant 0 : index
    %530 = vector.load %arg5[%c1_200, %c0_201, %c0_202] : memref<3x196x196xf32, #tpu.memory_space<vmem>>, vector<1x196x196xf32>
    %531 = vector.shape_cast %530 : vector<1x196x196xf32> to vector<196x196xf32>
    %cst_203 = arith.constant dense<0.000000e+00> : vector<2x196xf32>
    %532 = tpu.matmul %381, %531, %cst_203 {dimension_numbers = #tpu.dot_dimension_numbers<[1], [0], [0], [1], [0, 0, 1, 1], [], []>} : vector<2x196xf32>, vector<196x196xf32>, vector<2x196xf32> -> vector<2x196xf32>
    %c1_204 = arith.constant 1 : index
    %c0_205 = arith.constant 0 : index
    %c0_206 = arith.constant 0 : index
    %533 = vector.load %arg6[%c1_204, %c0_205, %c0_206] : memref<3x1x196xf32, #tpu.memory_space<vmem>>, vector<1x1x196xf32>
    %534 = vector.shape_cast %533 : vector<1x1x196xf32> to vector<1x196xf32>
    %535 = vector.broadcast %534 : vector<1x196xf32> to vector<2x196xf32>
    %536 = arith.addf %532, %535 : vector<2x196xf32>
    %c0_207 = arith.constant 0 : index
    %c0_208 = arith.constant 0 : index
    %537 = vector.load %arg18[%c0_207, %c0_208] : memref<2x196xf32, #tpu.memory_space<vmem>>, vector<2x196xf32>
    tpu.vector_store %arg18[%c0_207, %c0_208], %536 {strides = array<i32>} : memref<2x196xf32, #tpu.memory_space<vmem>>, vector<2x196xf32>,
    %c0_209 = arith.constant 0 : index
    %c0_210 = arith.constant 0 : index
    %538 = vector.load %arg18[%c0_209, %c0_210] : memref<2x196xf32, #tpu.memory_space<vmem>>, vector<2x49xf32>
    %539 = vector.shape_cast %538 : vector<2x49xf32> to vector<1x2x49xf32>
    %cst_211 = arith.constant dense<0.000000e+00> : vector<1xf32>
    %540 = vector.multi_reduction <add>, %539, %cst_211 [1, 2] : vector<1x2x49xf32> to vector<1xf32>
    %541 = vector.shape_cast %540 : vector<1xf32> to vector<1x1x1xf32>
    %542 = vector.extract %541[0, 0, 0] : f32 from vector<1x1x1xf32>
    %cst_212 = arith.constant 9.800000e+01 : f32
    %543 = arith.divf %542, %cst_212 : f32
    %544 = vector.broadcast %543 : f32 to vector<2x49xf32>
    %545 = arith.subf %538, %544 : vector<2x49xf32>
    %546 = arith.mulf %545, %545 : vector<2x49xf32>
    %547 = vector.shape_cast %546 : vector<2x49xf32> to vector<1x2x49xf32>
    %cst_213 = arith.constant dense<0.000000e+00> : vector<1xf32>
    %548 = vector.multi_reduction <add>, %547, %cst_213 [1, 2] : vector<1x2x49xf32> to vector<1xf32>
    %549 = vector.shape_cast %548 : vector<1xf32> to vector<1x1x1xf32>
    %550 = vector.extract %549[0, 0, 0] : f32 from vector<1x1x1xf32>
    %cst_214 = arith.constant 9.800000e+01 : f32
    %551 = arith.divf %550, %cst_214 : f32
    %c1_215 = arith.constant 1 : index
    %c0_216 = arith.constant 0 : index
    %552 = memref.load %arg7[%c1_215, %c0_216] : memref<3x4xf32, #tpu.memory_space<smem>>
    %553 = vector.broadcast %543 : f32 to vector<2x49xf32>
    %554 = arith.subf %538, %553 : vector<2x49xf32>
    %555 = vector.broadcast %552 : f32 to vector<2x49xf32>
    %556 = arith.mulf %555, %554 : vector<2x49xf32>
    %cst_217 = arith.constant 9.99999974E-6 : f32
    %557 = arith.addf %551, %cst_217 : f32
    %558 = math.rsqrt %557 : f32
    %559 = vector.broadcast %558 : f32 to vector<2x49xf32>
    %560 = arith.mulf %556, %559 : vector<2x49xf32>
    %c1_218 = arith.constant 1 : index
    %c0_219 = arith.constant 0 : index
    %561 = memref.load %arg8[%c1_218, %c0_219] : memref<3x4xf32, #tpu.memory_space<smem>>
    %562 = vector.broadcast %561 : f32 to vector<2x49xf32>
    %563 = arith.addf %560, %562 : vector<2x49xf32>
    %cst_220 = arith.constant 5.000000e-01 : f32
    %564 = vector.broadcast %cst_220 : f32 to vector<2x49xf32>
    %565 = arith.mulf %563, %564 : vector<2x49xf32>
    %cst_221 = arith.constant 1.000000e+00 : f32
    %566 = vector.broadcast %cst_221 : f32 to vector<2x49xf32>
    %567 = arith.cmpf oge, %565, %566 : vector<2x49xf32>
    %568 = arith.extui %567 : vector<2x49xi1> to vector<2x49xi32>
    %569 = arith.sitofp %568 : vector<2x49xi32> to vector<2x49xf32>
    %c1_222 = arith.constant 1 : index
    %c0_223 = arith.constant 0 : index
    %c0_224 = arith.constant 0 : index
    %c0_225 = arith.constant 0 : index
    %570 = vector.load %arg19[%c1_222, %c0_223, %c0_224, %c0_225] : memref<3x2x4x49xf32, #tpu.memory_space<vmem>>, vector<1x2x1x49xf32>
    %571 = vector.shape_cast %570 : vector<1x2x1x49xf32> to vector<2x49xf32>
    %572 = vector.shape_cast %569 : vector<2x49xf32> to vector<1x2x1x49xf32>
    tpu.vector_store %arg19[%c1_222, %c0_223, %c0_224, %c0_225], %572 {strides = array<i32>} : memref<3x2x4x49xf32, #tpu.memory_space<vmem>>, vector<1x2x1x49xf32>,
    %c0_226 = arith.constant 0 : index
    %c49_227 = arith.constant 49 : index
    %573 = vector.load %arg18[%c0_226, %c49_227] : memref<2x196xf32, #tpu.memory_space<vmem>>, vector<2x49xf32>
    %574 = vector.shape_cast %573 : vector<2x49xf32> to vector<1x2x49xf32>
    %cst_228 = arith.constant dense<0.000000e+00> : vector<1xf32>
    %575 = vector.multi_reduction <add>, %574, %cst_228 [1, 2] : vector<1x2x49xf32> to vector<1xf32>
    %576 = vector.shape_cast %575 : vector<1xf32> to vector<1x1x1xf32>
    %577 = vector.extract %576[0, 0, 0] : f32 from vector<1x1x1xf32>
    %cst_229 = arith.constant 9.800000e+01 : f32
    %578 = arith.divf %577, %cst_229 : f32
    %579 = vector.broadcast %578 : f32 to vector<2x49xf32>
    %580 = arith.subf %573, %579 : vector<2x49xf32>
    %581 = arith.mulf %580, %580 : vector<2x49xf32>
    %582 = vector.shape_cast %581 : vector<2x49xf32> to vector<1x2x49xf32>
    %cst_230 = arith.constant dense<0.000000e+00> : vector<1xf32>
    %583 = vector.multi_reduction <add>, %582, %cst_230 [1, 2] : vector<1x2x49xf32> to vector<1xf32>
    %584 = vector.shape_cast %583 : vector<1xf32> to vector<1x1x1xf32>
    %585 = vector.extract %584[0, 0, 0] : f32 from vector<1x1x1xf32>
    %cst_231 = arith.constant 9.800000e+01 : f32
    %586 = arith.divf %585, %cst_231 : f32
    %c1_232 = arith.constant 1 : index
    %c1_233 = arith.constant 1 : index
    %587 = memref.load %arg7[%c1_232, %c1_233] : memref<3x4xf32, #tpu.memory_space<smem>>
    %588 = vector.broadcast %578 : f32 to vector<2x49xf32>
    %589 = arith.subf %573, %588 : vector<2x49xf32>
    %590 = vector.broadcast %587 : f32 to vector<2x49xf32>
    %591 = arith.mulf %590, %589 : vector<2x49xf32>
    %cst_234 = arith.constant 9.99999974E-6 : f32
    %592 = arith.addf %586, %cst_234 : f32
    %593 = math.rsqrt %592 : f32
    %594 = vector.broadcast %593 : f32 to vector<2x49xf32>
    %595 = arith.mulf %591, %594 : vector<2x49xf32>
    %c1_235 = arith.constant 1 : index
    %c1_236 = arith.constant 1 : index
    %596 = memref.load %arg8[%c1_235, %c1_236] : memref<3x4xf32, #tpu.memory_space<smem>>
    %597 = vector.broadcast %596 : f32 to vector<2x49xf32>
    %598 = arith.addf %595, %597 : vector<2x49xf32>
    %cst_237 = arith.constant 5.000000e-01 : f32
    %599 = vector.broadcast %cst_237 : f32 to vector<2x49xf32>
    %600 = arith.mulf %598, %599 : vector<2x49xf32>
    %cst_238 = arith.constant 1.000000e+00 : f32
    %601 = vector.broadcast %cst_238 : f32 to vector<2x49xf32>
    %602 = arith.cmpf oge, %600, %601 : vector<2x49xf32>
    %603 = arith.extui %602 : vector<2x49xi1> to vector<2x49xi32>
    %604 = arith.sitofp %603 : vector<2x49xi32> to vector<2x49xf32>
    %c1_239 = arith.constant 1 : index
    %c0_240 = arith.constant 0 : index
    %c1_241 = arith.constant 1 : index
    %c0_242 = arith.constant 0 : index
    %605 = vector.load %arg19[%c1_239, %c0_240, %c1_241, %c0_242] : memref<3x2x4x49xf32, #tpu.memory_space<vmem>>, vector<1x2x1x49xf32>
    %606 = vector.shape_cast %605 : vector<1x2x1x49xf32> to vector<2x49xf32>
    %607 = vector.shape_cast %604 : vector<2x49xf32> to vector<1x2x1x49xf32>
    tpu.vector_store %arg19[%c1_239, %c0_240, %c1_241, %c0_242], %607 {strides = array<i32>} : memref<3x2x4x49xf32, #tpu.memory_space<vmem>>, vector<1x2x1x49xf32>,
    %c0_243 = arith.constant 0 : index
    %c98_244 = arith.constant 98 : index
    %608 = vector.load %arg18[%c0_243, %c98_244] : memref<2x196xf32, #tpu.memory_space<vmem>>, vector<2x49xf32>
    %609 = vector.shape_cast %608 : vector<2x49xf32> to vector<1x2x49xf32>
    %cst_245 = arith.constant dense<0.000000e+00> : vector<1xf32>
    %610 = vector.multi_reduction <add>, %609, %cst_245 [1, 2] : vector<1x2x49xf32> to vector<1xf32>
    %611 = vector.shape_cast %610 : vector<1xf32> to vector<1x1x1xf32>
    %612 = vector.extract %611[0, 0, 0] : f32 from vector<1x1x1xf32>
    %cst_246 = arith.constant 9.800000e+01 : f32
    %613 = arith.divf %612, %cst_246 : f32
    %614 = vector.broadcast %613 : f32 to vector<2x49xf32>
    %615 = arith.subf %608, %614 : vector<2x49xf32>
    %616 = arith.mulf %615, %615 : vector<2x49xf32>
    %617 = vector.shape_cast %616 : vector<2x49xf32> to vector<1x2x49xf32>
    %cst_247 = arith.constant dense<0.000000e+00> : vector<1xf32>
    %618 = vector.multi_reduction <add>, %617, %cst_247 [1, 2] : vector<1x2x49xf32> to vector<1xf32>
    %619 = vector.shape_cast %618 : vector<1xf32> to vector<1x1x1xf32>
    %620 = vector.extract %619[0, 0, 0] : f32 from vector<1x1x1xf32>
    %cst_248 = arith.constant 9.800000e+01 : f32
    %621 = arith.divf %620, %cst_248 : f32
    %c1_249 = arith.constant 1 : index
    %c2_250 = arith.constant 2 : index
    %622 = memref.load %arg7[%c1_249, %c2_250] : memref<3x4xf32, #tpu.memory_space<smem>>
    %623 = vector.broadcast %613 : f32 to vector<2x49xf32>
    %624 = arith.subf %608, %623 : vector<2x49xf32>
    %625 = vector.broadcast %622 : f32 to vector<2x49xf32>
    %626 = arith.mulf %625, %624 : vector<2x49xf32>
    %cst_251 = arith.constant 9.99999974E-6 : f32
    %627 = arith.addf %621, %cst_251 : f32
    %628 = math.rsqrt %627 : f32
    %629 = vector.broadcast %628 : f32 to vector<2x49xf32>
    %630 = arith.mulf %626, %629 : vector<2x49xf32>
    %c1_252 = arith.constant 1 : index
    %c2_253 = arith.constant 2 : index
    %631 = memref.load %arg8[%c1_252, %c2_253] : memref<3x4xf32, #tpu.memory_space<smem>>
    %632 = vector.broadcast %631 : f32 to vector<2x49xf32>
    %633 = arith.addf %630, %632 : vector<2x49xf32>
    %cst_254 = arith.constant 5.000000e-01 : f32
    %634 = vector.broadcast %cst_254 : f32 to vector<2x49xf32>
    %635 = arith.mulf %633, %634 : vector<2x49xf32>
    %cst_255 = arith.constant 1.000000e+00 : f32
    %636 = vector.broadcast %cst_255 : f32 to vector<2x49xf32>
    %637 = arith.cmpf oge, %635, %636 : vector<2x49xf32>
    %638 = arith.extui %637 : vector<2x49xi1> to vector<2x49xi32>
    %639 = arith.sitofp %638 : vector<2x49xi32> to vector<2x49xf32>
    %c1_256 = arith.constant 1 : index
    %c0_257 = arith.constant 0 : index
    %c2_258 = arith.constant 2 : index
    %c0_259 = arith.constant 0 : index
    %640 = vector.load %arg19[%c1_256, %c0_257, %c2_258, %c0_259] : memref<3x2x4x49xf32, #tpu.memory_space<vmem>>, vector<1x2x1x49xf32>
    %641 = vector.shape_cast %640 : vector<1x2x1x49xf32> to vector<2x49xf32>
    %642 = vector.shape_cast %639 : vector<2x49xf32> to vector<1x2x1x49xf32>
    tpu.vector_store %arg19[%c1_256, %c0_257, %c2_258, %c0_259], %642 {strides = array<i32>} : memref<3x2x4x49xf32, #tpu.memory_space<vmem>>, vector<1x2x1x49xf32>,
    %c0_260 = arith.constant 0 : index
    %c147_261 = arith.constant 147 : index
    %643 = vector.load %arg18[%c0_260, %c147_261] : memref<2x196xf32, #tpu.memory_space<vmem>>, vector<2x49xf32>
    %644 = vector.shape_cast %643 : vector<2x49xf32> to vector<1x2x49xf32>
    %cst_262 = arith.constant dense<0.000000e+00> : vector<1xf32>
    %645 = vector.multi_reduction <add>, %644, %cst_262 [1, 2] : vector<1x2x49xf32> to vector<1xf32>
    %646 = vector.shape_cast %645 : vector<1xf32> to vector<1x1x1xf32>
    %647 = vector.extract %646[0, 0, 0] : f32 from vector<1x1x1xf32>
    %cst_263 = arith.constant 9.800000e+01 : f32
    %648 = arith.divf %647, %cst_263 : f32
    %649 = vector.broadcast %648 : f32 to vector<2x49xf32>
    %650 = arith.subf %643, %649 : vector<2x49xf32>
    %651 = arith.mulf %650, %650 : vector<2x49xf32>
    %652 = vector.shape_cast %651 : vector<2x49xf32> to vector<1x2x49xf32>
    %cst_264 = arith.constant dense<0.000000e+00> : vector<1xf32>
    %653 = vector.multi_reduction <add>, %652, %cst_264 [1, 2] : vector<1x2x49xf32> to vector<1xf32>
    %654 = vector.shape_cast %653 : vector<1xf32> to vector<1x1x1xf32>
    %655 = vector.extract %654[0, 0, 0] : f32 from vector<1x1x1xf32>
    %cst_265 = arith.constant 9.800000e+01 : f32
    %656 = arith.divf %655, %cst_265 : f32
    %c1_266 = arith.constant 1 : index
    %c3_267 = arith.constant 3 : index
    %657 = memref.load %arg7[%c1_266, %c3_267] : memref<3x4xf32, #tpu.memory_space<smem>>
    %658 = vector.broadcast %648 : f32 to vector<2x49xf32>
    %659 = arith.subf %643, %658 : vector<2x49xf32>
    %660 = vector.broadcast %657 : f32 to vector<2x49xf32>
    %661 = arith.mulf %660, %659 : vector<2x49xf32>
    %cst_268 = arith.constant 9.99999974E-6 : f32
    %662 = arith.addf %656, %cst_268 : f32
    %663 = math.rsqrt %662 : f32
    %664 = vector.broadcast %663 : f32 to vector<2x49xf32>
    %665 = arith.mulf %661, %664 : vector<2x49xf32>
    %c1_269 = arith.constant 1 : index
    %c3_270 = arith.constant 3 : index
    %666 = memref.load %arg8[%c1_269, %c3_270] : memref<3x4xf32, #tpu.memory_space<smem>>
    %667 = vector.broadcast %666 : f32 to vector<2x49xf32>
    %668 = arith.addf %665, %667 : vector<2x49xf32>
    %cst_271 = arith.constant 5.000000e-01 : f32
    %669 = vector.broadcast %cst_271 : f32 to vector<2x49xf32>
    %670 = arith.mulf %668, %669 : vector<2x49xf32>
    %cst_272 = arith.constant 1.000000e+00 : f32
    %671 = vector.broadcast %cst_272 : f32 to vector<2x49xf32>
    %672 = arith.cmpf oge, %670, %671 : vector<2x49xf32>
    %673 = arith.extui %672 : vector<2x49xi1> to vector<2x49xi32>
    %674 = arith.sitofp %673 : vector<2x49xi32> to vector<2x49xf32>
    %c1_273 = arith.constant 1 : index
    %c0_274 = arith.constant 0 : index
    %c3_275 = arith.constant 3 : index
    %c0_276 = arith.constant 0 : index
    %675 = vector.load %arg19[%c1_273, %c0_274, %c3_275, %c0_276] : memref<3x2x4x49xf32, #tpu.memory_space<vmem>>, vector<1x2x1x49xf32>
    %676 = vector.shape_cast %675 : vector<1x2x1x49xf32> to vector<2x49xf32>
    %677 = vector.shape_cast %674 : vector<2x49xf32> to vector<1x2x1x49xf32>
    tpu.vector_store %arg19[%c1_273, %c0_274, %c3_275, %c0_276], %677 {strides = array<i32>} : memref<3x2x4x49xf32, #tpu.memory_space<vmem>>, vector<1x2x1x49xf32>,
    %c2_277 = arith.constant 2 : index
    %c0_278 = arith.constant 0 : index
    %c0_279 = arith.constant 0 : index
    %678 = vector.load %arg5[%c2_277, %c0_278, %c0_279] : memref<3x196x196xf32, #tpu.memory_space<vmem>>, vector<1x196x196xf32>
    %679 = vector.shape_cast %678 : vector<1x196x196xf32> to vector<196x196xf32>
    %cst_280 = arith.constant dense<0.000000e+00> : vector<2x196xf32>
    %680 = tpu.matmul %381, %679, %cst_280 {dimension_numbers = #tpu.dot_dimension_numbers<[1], [0], [0], [1], [0, 0, 1, 1], [], []>} : vector<2x196xf32>, vector<196x196xf32>, vector<2x196xf32> -> vector<2x196xf32>
    %c2_281 = arith.constant 2 : index
    %c0_282 = arith.constant 0 : index
    %c0_283 = arith.constant 0 : index
    %681 = vector.load %arg6[%c2_281, %c0_282, %c0_283] : memref<3x1x196xf32, #tpu.memory_space<vmem>>, vector<1x1x196xf32>
    %682 = vector.shape_cast %681 : vector<1x1x196xf32> to vector<1x196xf32>
    %683 = vector.broadcast %682 : vector<1x196xf32> to vector<2x196xf32>
    %684 = arith.addf %680, %683 : vector<2x196xf32>
    %c0_284 = arith.constant 0 : index
    %c0_285 = arith.constant 0 : index
    %685 = vector.load %arg18[%c0_284, %c0_285] : memref<2x196xf32, #tpu.memory_space<vmem>>, vector<2x196xf32>
    tpu.vector_store %arg18[%c0_284, %c0_285], %684 {strides = array<i32>} : memref<2x196xf32, #tpu.memory_space<vmem>>, vector<2x196xf32>,
    %c0_286 = arith.constant 0 : index
    %c0_287 = arith.constant 0 : index
    %686 = vector.load %arg18[%c0_286, %c0_287] : memref<2x196xf32, #tpu.memory_space<vmem>>, vector<2x49xf32>
    %687 = vector.shape_cast %686 : vector<2x49xf32> to vector<1x2x49xf32>
    %cst_288 = arith.constant dense<0.000000e+00> : vector<1xf32>
    %688 = vector.multi_reduction <add>, %687, %cst_288 [1, 2] : vector<1x2x49xf32> to vector<1xf32>
    %689 = vector.shape_cast %688 : vector<1xf32> to vector<1x1x1xf32>
    %690 = vector.extract %689[0, 0, 0] : f32 from vector<1x1x1xf32>
    %cst_289 = arith.constant 9.800000e+01 : f32
    %691 = arith.divf %690, %cst_289 : f32
    %692 = vector.broadcast %691 : f32 to vector<2x49xf32>
    %693 = arith.subf %686, %692 : vector<2x49xf32>
    %694 = arith.mulf %693, %693 : vector<2x49xf32>
    %695 = vector.shape_cast %694 : vector<2x49xf32> to vector<1x2x49xf32>
    %cst_290 = arith.constant dense<0.000000e+00> : vector<1xf32>
    %696 = vector.multi_reduction <add>, %695, %cst_290 [1, 2] : vector<1x2x49xf32> to vector<1xf32>
    %697 = vector.shape_cast %696 : vector<1xf32> to vector<1x1x1xf32>
    %698 = vector.extract %697[0, 0, 0] : f32 from vector<1x1x1xf32>
    %cst_291 = arith.constant 9.800000e+01 : f32
    %699 = arith.divf %698, %cst_291 : f32
    %c2_292 = arith.constant 2 : index
    %c0_293 = arith.constant 0 : index
    %700 = memref.load %arg7[%c2_292, %c0_293] : memref<3x4xf32, #tpu.memory_space<smem>>
    %701 = vector.broadcast %691 : f32 to vector<2x49xf32>
    %702 = arith.subf %686, %701 : vector<2x49xf32>
    %703 = vector.broadcast %700 : f32 to vector<2x49xf32>
    %704 = arith.mulf %703, %702 : vector<2x49xf32>
    %cst_294 = arith.constant 9.99999974E-6 : f32
    %705 = arith.addf %699, %cst_294 : f32
    %706 = math.rsqrt %705 : f32
    %707 = vector.broadcast %706 : f32 to vector<2x49xf32>
    %708 = arith.mulf %704, %707 : vector<2x49xf32>
    %c2_295 = arith.constant 2 : index
    %c0_296 = arith.constant 0 : index
    %709 = memref.load %arg8[%c2_295, %c0_296] : memref<3x4xf32, #tpu.memory_space<smem>>
    %710 = vector.broadcast %709 : f32 to vector<2x49xf32>
    %711 = arith.addf %708, %710 : vector<2x49xf32>
    %cst_297 = arith.constant 5.000000e-01 : f32
    %712 = vector.broadcast %cst_297 : f32 to vector<2x49xf32>
    %713 = arith.mulf %711, %712 : vector<2x49xf32>
    %cst_298 = arith.constant 1.000000e+00 : f32
    %714 = vector.broadcast %cst_298 : f32 to vector<2x49xf32>
    %715 = arith.cmpf oge, %713, %714 : vector<2x49xf32>
    %716 = arith.extui %715 : vector<2x49xi1> to vector<2x49xi32>
    %717 = arith.sitofp %716 : vector<2x49xi32> to vector<2x49xf32>
    %c2_299 = arith.constant 2 : index
    %c0_300 = arith.constant 0 : index
    %c0_301 = arith.constant 0 : index
    %c0_302 = arith.constant 0 : index
    %718 = vector.load %arg19[%c2_299, %c0_300, %c0_301, %c0_302] : memref<3x2x4x49xf32, #tpu.memory_space<vmem>>, vector<1x2x1x49xf32>
    %719 = vector.shape_cast %718 : vector<1x2x1x49xf32> to vector<2x49xf32>
    %720 = vector.shape_cast %717 : vector<2x49xf32> to vector<1x2x1x49xf32>
    tpu.vector_store %arg19[%c2_299, %c0_300, %c0_301, %c0_302], %720 {strides = array<i32>} : memref<3x2x4x49xf32, #tpu.memory_space<vmem>>, vector<1x2x1x49xf32>,
    %c0_303 = arith.constant 0 : index
    %c49_304 = arith.constant 49 : index
    %721 = vector.load %arg18[%c0_303, %c49_304] : memref<2x196xf32, #tpu.memory_space<vmem>>, vector<2x49xf32>
    %722 = vector.shape_cast %721 : vector<2x49xf32> to vector<1x2x49xf32>
    %cst_305 = arith.constant dense<0.000000e+00> : vector<1xf32>
    %723 = vector.multi_reduction <add>, %722, %cst_305 [1, 2] : vector<1x2x49xf32> to vector<1xf32>
    %724 = vector.shape_cast %723 : vector<1xf32> to vector<1x1x1xf32>
    %725 = vector.extract %724[0, 0, 0] : f32 from vector<1x1x1xf32>
    %cst_306 = arith.constant 9.800000e+01 : f32
    %726 = arith.divf %725, %cst_306 : f32
    %727 = vector.broadcast %726 : f32 to vector<2x49xf32>
    %728 = arith.subf %721, %727 : vector<2x49xf32>
    %729 = arith.mulf %728, %728 : vector<2x49xf32>
    %730 = vector.shape_cast %729 : vector<2x49xf32> to vector<1x2x49xf32>
    %cst_307 = arith.constant dense<0.000000e+00> : vector<1xf32>
    %731 = vector.multi_reduction <add>, %730, %cst_307 [1, 2] : vector<1x2x49xf32> to vector<1xf32>
    %732 = vector.shape_cast %731 : vector<1xf32> to vector<1x1x1xf32>
    %733 = vector.extract %732[0, 0, 0] : f32 from vector<1x1x1xf32>
    %cst_308 = arith.constant 9.800000e+01 : f32
    %734 = arith.divf %733, %cst_308 : f32
    %c2_309 = arith.constant 2 : index
    %c1_310 = arith.constant 1 : index
    %735 = memref.load %arg7[%c2_309, %c1_310] : memref<3x4xf32, #tpu.memory_space<smem>>
    %736 = vector.broadcast %726 : f32 to vector<2x49xf32>
    %737 = arith.subf %721, %736 : vector<2x49xf32>
    %738 = vector.broadcast %735 : f32 to vector<2x49xf32>
    %739 = arith.mulf %738, %737 : vector<2x49xf32>
    %cst_311 = arith.constant 9.99999974E-6 : f32
    %740 = arith.addf %734, %cst_311 : f32
    %741 = math.rsqrt %740 : f32
    %742 = vector.broadcast %741 : f32 to vector<2x49xf32>
    %743 = arith.mulf %739, %742 : vector<2x49xf32>
    %c2_312 = arith.constant 2 : index
    %c1_313 = arith.constant 1 : index
    %744 = memref.load %arg8[%c2_312, %c1_313] : memref<3x4xf32, #tpu.memory_space<smem>>
    %745 = vector.broadcast %744 : f32 to vector<2x49xf32>
    %746 = arith.addf %743, %745 : vector<2x49xf32>
    %cst_314 = arith.constant 5.000000e-01 : f32
    %747 = vector.broadcast %cst_314 : f32 to vector<2x49xf32>
    %748 = arith.mulf %746, %747 : vector<2x49xf32>
    %cst_315 = arith.constant 1.000000e+00 : f32
    %749 = vector.broadcast %cst_315 : f32 to vector<2x49xf32>
    %750 = arith.cmpf oge, %748, %749 : vector<2x49xf32>
    %751 = arith.extui %750 : vector<2x49xi1> to vector<2x49xi32>
    %752 = arith.sitofp %751 : vector<2x49xi32> to vector<2x49xf32>
    %c2_316 = arith.constant 2 : index
    %c0_317 = arith.constant 0 : index
    %c1_318 = arith.constant 1 : index
    %c0_319 = arith.constant 0 : index
    %753 = vector.load %arg19[%c2_316, %c0_317, %c1_318, %c0_319] : memref<3x2x4x49xf32, #tpu.memory_space<vmem>>, vector<1x2x1x49xf32>
    %754 = vector.shape_cast %753 : vector<1x2x1x49xf32> to vector<2x49xf32>
    %755 = vector.shape_cast %752 : vector<2x49xf32> to vector<1x2x1x49xf32>
    tpu.vector_store %arg19[%c2_316, %c0_317, %c1_318, %c0_319], %755 {strides = array<i32>} : memref<3x2x4x49xf32, #tpu.memory_space<vmem>>, vector<1x2x1x49xf32>,
    %c0_320 = arith.constant 0 : index
    %c98_321 = arith.constant 98 : index
    %756 = vector.load %arg18[%c0_320, %c98_321] : memref<2x196xf32, #tpu.memory_space<vmem>>, vector<2x49xf32>
    %757 = vector.shape_cast %756 : vector<2x49xf32> to vector<1x2x49xf32>
    %cst_322 = arith.constant dense<0.000000e+00> : vector<1xf32>
    %758 = vector.multi_reduction <add>, %757, %cst_322 [1, 2] : vector<1x2x49xf32> to vector<1xf32>
    %759 = vector.shape_cast %758 : vector<1xf32> to vector<1x1x1xf32>
    %760 = vector.extract %759[0, 0, 0] : f32 from vector<1x1x1xf32>
    %cst_323 = arith.constant 9.800000e+01 : f32
    %761 = arith.divf %760, %cst_323 : f32
    %762 = vector.broadcast %761 : f32 to vector<2x49xf32>
    %763 = arith.subf %756, %762 : vector<2x49xf32>
    %764 = arith.mulf %763, %763 : vector<2x49xf32>
    %765 = vector.shape_cast %764 : vector<2x49xf32> to vector<1x2x49xf32>
    %cst_324 = arith.constant dense<0.000000e+00> : vector<1xf32>
    %766 = vector.multi_reduction <add>, %765, %cst_324 [1, 2] : vector<1x2x49xf32> to vector<1xf32>
    %767 = vector.shape_cast %766 : vector<1xf32> to vector<1x1x1xf32>
    %768 = vector.extract %767[0, 0, 0] : f32 from vector<1x1x1xf32>
    %cst_325 = arith.constant 9.800000e+01 : f32
    %769 = arith.divf %768, %cst_325 : f32
    %c2_326 = arith.constant 2 : index
    %c2_327 = arith.constant 2 : index
    %770 = memref.load %arg7[%c2_326, %c2_327] : memref<3x4xf32, #tpu.memory_space<smem>>
    %771 = vector.broadcast %761 : f32 to vector<2x49xf32>
    %772 = arith.subf %756, %771 : vector<2x49xf32>
    %773 = vector.broadcast %770 : f32 to vector<2x49xf32>
    %774 = arith.mulf %773, %772 : vector<2x49xf32>
    %cst_328 = arith.constant 9.99999974E-6 : f32
    %775 = arith.addf %769, %cst_328 : f32
    %776 = math.rsqrt %775 : f32
    %777 = vector.broadcast %776 : f32 to vector<2x49xf32>
    %778 = arith.mulf %774, %777 : vector<2x49xf32>
    %c2_329 = arith.constant 2 : index
    %c2_330 = arith.constant 2 : index
    %779 = memref.load %arg8[%c2_329, %c2_330] : memref<3x4xf32, #tpu.memory_space<smem>>
    %780 = vector.broadcast %779 : f32 to vector<2x49xf32>
    %781 = arith.addf %778, %780 : vector<2x49xf32>
    %cst_331 = arith.constant 5.000000e-01 : f32
    %782 = vector.broadcast %cst_331 : f32 to vector<2x49xf32>
    %783 = arith.mulf %781, %782 : vector<2x49xf32>
    %cst_332 = arith.constant 1.000000e+00 : f32
    %784 = vector.broadcast %cst_332 : f32 to vector<2x49xf32>
    %785 = arith.cmpf oge, %783, %784 : vector<2x49xf32>
    %786 = arith.extui %785 : vector<2x49xi1> to vector<2x49xi32>
    %787 = arith.sitofp %786 : vector<2x49xi32> to vector<2x49xf32>
    %c2_333 = arith.constant 2 : index
    %c0_334 = arith.constant 0 : index
    %c2_335 = arith.constant 2 : index
    %c0_336 = arith.constant 0 : index
    %788 = vector.load %arg19[%c2_333, %c0_334, %c2_335, %c0_336] : memref<3x2x4x49xf32, #tpu.memory_space<vmem>>, vector<1x2x1x49xf32>
    %789 = vector.shape_cast %788 : vector<1x2x1x49xf32> to vector<2x49xf32>
    %790 = vector.shape_cast %787 : vector<2x49xf32> to vector<1x2x1x49xf32>
    tpu.vector_store %arg19[%c2_333, %c0_334, %c2_335, %c0_336], %790 {strides = array<i32>} : memref<3x2x4x49xf32, #tpu.memory_space<vmem>>, vector<1x2x1x49xf32>,
    %c0_337 = arith.constant 0 : index
    %c147_338 = arith.constant 147 : index
    %791 = vector.load %arg18[%c0_337, %c147_338] : memref<2x196xf32, #tpu.memory_space<vmem>>, vector<2x49xf32>
    %792 = vector.shape_cast %791 : vector<2x49xf32> to vector<1x2x49xf32>
    %cst_339 = arith.constant dense<0.000000e+00> : vector<1xf32>
    %793 = vector.multi_reduction <add>, %792, %cst_339 [1, 2] : vector<1x2x49xf32> to vector<1xf32>
    %794 = vector.shape_cast %793 : vector<1xf32> to vector<1x1x1xf32>
    %795 = vector.extract %794[0, 0, 0] : f32 from vector<1x1x1xf32>
    %cst_340 = arith.constant 9.800000e+01 : f32
    %796 = arith.divf %795, %cst_340 : f32
    %797 = vector.broadcast %796 : f32 to vector<2x49xf32>
    %798 = arith.subf %791, %797 : vector<2x49xf32>
    %799 = arith.mulf %798, %798 : vector<2x49xf32>
    %800 = vector.shape_cast %799 : vector<2x49xf32> to vector<1x2x49xf32>
    %cst_341 = arith.constant dense<0.000000e+00> : vector<1xf32>
    %801 = vector.multi_reduction <add>, %800, %cst_341 [1, 2] : vector<1x2x49xf32> to vector<1xf32>
    %802 = vector.shape_cast %801 : vector<1xf32> to vector<1x1x1xf32>
    %803 = vector.extract %802[0, 0, 0] : f32 from vector<1x1x1xf32>
    %cst_342 = arith.constant 9.800000e+01 : f32
    %804 = arith.divf %803, %cst_342 : f32
    %c2_343 = arith.constant 2 : index
    %c3_344 = arith.constant 3 : index
    %805 = memref.load %arg7[%c2_343, %c3_344] : memref<3x4xf32, #tpu.memory_space<smem>>
    %806 = vector.broadcast %796 : f32 to vector<2x49xf32>
    %807 = arith.subf %791, %806 : vector<2x49xf32>
    %808 = vector.broadcast %805 : f32 to vector<2x49xf32>
    %809 = arith.mulf %808, %807 : vector<2x49xf32>
    %cst_345 = arith.constant 9.99999974E-6 : f32
    %810 = arith.addf %804, %cst_345 : f32
    %811 = math.rsqrt %810 : f32
    %812 = vector.broadcast %811 : f32 to vector<2x49xf32>
    %813 = arith.mulf %809, %812 : vector<2x49xf32>
    %c2_346 = arith.constant 2 : index
    %c3_347 = arith.constant 3 : index
    %814 = memref.load %arg8[%c2_346, %c3_347] : memref<3x4xf32, #tpu.memory_space<smem>>
    %815 = vector.broadcast %814 : f32 to vector<2x49xf32>
    %816 = arith.addf %813, %815 : vector<2x49xf32>
    %cst_348 = arith.constant 5.000000e-01 : f32
    %817 = vector.broadcast %cst_348 : f32 to vector<2x49xf32>
    %818 = arith.mulf %816, %817 : vector<2x49xf32>
    %cst_349 = arith.constant 1.000000e+00 : f32
    %819 = vector.broadcast %cst_349 : f32 to vector<2x49xf32>
    %820 = arith.cmpf oge, %818, %819 : vector<2x49xf32>
    %821 = arith.extui %820 : vector<2x49xi1> to vector<2x49xi32>
    %822 = arith.sitofp %821 : vector<2x49xi32> to vector<2x49xf32>
    %c2_350 = arith.constant 2 : index
    %c0_351 = arith.constant 0 : index
    %c3_352 = arith.constant 3 : index
    %c0_353 = arith.constant 0 : index
    %823 = vector.load %arg19[%c2_350, %c0_351, %c3_352, %c0_353] : memref<3x2x4x49xf32, #tpu.memory_space<vmem>>, vector<1x2x1x49xf32>
    %824 = vector.shape_cast %823 : vector<1x2x1x49xf32> to vector<2x49xf32>
    %825 = vector.shape_cast %822 : vector<2x49xf32> to vector<1x2x1x49xf32>
    tpu.vector_store %arg19[%c2_350, %c0_351, %c3_352, %c0_353], %825 {strides = array<i32>} : memref<3x2x4x49xf32, #tpu.memory_space<vmem>>, vector<1x2x1x49xf32>,
    %c0_354 = arith.constant 0 : index
    %c0_355 = arith.constant 0 : index
    %c0_356 = arith.constant 0 : index
    %c0_357 = arith.constant 0 : index
    %826 = vector.load %arg19[%c0_354, %c0_355, %c0_356, %c0_357] : memref<3x2x4x49xf32, #tpu.memory_space<vmem>>, vector<1x2x4x49xf32>
    %827 = vector.shape_cast %826 : vector<1x2x4x49xf32> to vector<2x4x49xf32>
    %828 = tpu.transpose %827, [0, 2, 1] : vector<2x4x49xf32> -> vector<2x49x4xf32>
    %c1_358 = arith.constant 1 : index
    %c0_359 = arith.constant 0 : index
    %c0_360 = arith.constant 0 : index
    %c0_361 = arith.constant 0 : index
    %829 = vector.load %arg19[%c1_358, %c0_359, %c0_360, %c0_361] : memref<3x2x4x49xf32, #tpu.memory_space<vmem>>, vector<1x2x4x49xf32>
    %830 = vector.shape_cast %829 : vector<1x2x4x49xf32> to vector<2x4x49xf32>
    %831 = tpu.transpose %830, [0, 2, 1] : vector<2x4x49xf32> -> vector<2x49x4xf32>
    %c2_362 = arith.constant 2 : index
    %c0_363 = arith.constant 0 : index
    %c0_364 = arith.constant 0 : index
    %c0_365 = arith.constant 0 : index
    %832 = vector.load %arg19[%c2_362, %c0_363, %c0_364, %c0_365] : memref<3x2x4x49xf32, #tpu.memory_space<vmem>>, vector<1x2x4x49xf32>
    %833 = vector.shape_cast %832 : vector<1x2x4x49xf32> to vector<2x4x49xf32>
    %834 = tpu.transpose %833, [0, 2, 1] : vector<2x4x49xf32> -> vector<2x49x4xf32>
    "tpu.trace_start"() <{level = 10 : i32, message = "bnc,bmc->bnm"}> : () -> ()
    %cst_366 = arith.constant dense<0.000000e+00> : vector<2x49x49xf32>
    %835 = tpu.matmul %828, %831, %cst_366 {dimension_numbers = #tpu.dot_dimension_numbers<[2], [2], [1], [1], [0, 0, 0, 1, 1, 1], [0], [0]>} : vector<2x49x4xf32>, vector<2x49x4xf32>, vector<2x49x49xf32> -> vector<2x49x49xf32>
    "tpu.trace_stop"() : () -> ()
    %cst_367 = arith.constant 1.250000e-01 : f32
    %836 = vector.broadcast %cst_367 : f32 to vector<2x49x49xf32>
    %837 = arith.mulf %835, %836 : vector<2x49x49xf32>
    "tpu.trace_start"() <{level = 10 : i32, message = "bnm,bmc->bnc"}> : () -> ()
    %cst_368 = arith.constant dense<0.000000e+00> : vector<2x49x4xf32>
    %838 = tpu.matmul %837, %834, %cst_368 {dimension_numbers = #tpu.dot_dimension_numbers<[2], [1], [1], [2], [0, 0, 0, 1, 1, 2], [0], [0]>} : vector<2x49x49xf32>, vector<2x49x4xf32>, vector<2x49x4xf32> -> vector<2x49x4xf32>
    "tpu.trace_stop"() : () -> ()
    %cst_369 = arith.constant 5.000000e-01 : f32
    %839 = vector.broadcast %cst_369 : f32 to vector<2x49x4xf32>
    %840 = arith.mulf %838, %839 : vector<2x49x4xf32>
    %cst_370 = arith.constant 5.000000e-01 : f32
    %841 = vector.broadcast %cst_370 : f32 to vector<2x49x4xf32>
    %842 = arith.cmpf oge, %840, %841 : vector<2x49x4xf32>
    %843 = arith.extui %842 : vector<2x49x4xi1> to vector<2x49x4xi32>
    %844 = arith.sitofp %843 : vector<2x49x4xi32> to vector<2x49x4xf32>
    %845 = vector.shape_cast %844 : vector<2x49x4xf32> to vector<98x4xf32>
    %c0_371 = arith.constant 0 : index
    %c0_372 = arith.constant 0 : index
    %846 = vector.load %arg9[%c0_371, %c0_372] : memref<4x4xf32, #tpu.memory_space<vmem>>, vector<4x4xf32>
    %cst_373 = arith.constant dense<0.000000e+00> : vector<98x4xf32>
    %847 = tpu.matmul %845, %846, %cst_373 {dimension_numbers = #tpu.dot_dimension_numbers<[1], [0], [0], [1], [0, 0, 1, 1], [], []>} : vector<98x4xf32>, vector<4x4xf32>, vector<98x4xf32> -> vector<98x4xf32>
    %c0_374 = arith.constant 0 : index
    %c0_375 = arith.constant 0 : index
    %848 = vector.load %arg10[%c0_374, %c0_375] : memref<1x4xf32, #tpu.memory_space<vmem>>, vector<1x4xf32>
    %849 = vector.broadcast %848 : vector<1x4xf32> to vector<98x4xf32>
    %850 = arith.addf %847, %849 : vector<98x4xf32>
    %cst_376 = arith.constant dense<0.000000e+00> : vector<4xf32>
    %851 = vector.multi_reduction <add>, %850, %cst_376 [0] : vector<98x4xf32> to vector<4xf32>
    %852 = vector.shape_cast %851 : vector<4xf32> to vector<1x4xf32>
    %cst_377 = arith.constant 9.800000e+01 : f32
    %853 = vector.broadcast %cst_377 : f32 to vector<1x4xf32>
    %854 = arith.divf %852, %853 : vector<1x4xf32>
    %855 = vector.broadcast %854 : vector<1x4xf32> to vector<98x4xf32>
    %856 = arith.subf %850, %855 : vector<98x4xf32>
    %857 = arith.mulf %856, %856 : vector<98x4xf32>
    %cst_378 = arith.constant dense<0.000000e+00> : vector<4xf32>
    %858 = vector.multi_reduction <add>, %857, %cst_378 [0] : vector<98x4xf32> to vector<4xf32>
    %859 = vector.shape_cast %858 : vector<4xf32> to vector<1x4xf32>
    %cst_379 = arith.constant 9.800000e+01 : f32
    %860 = vector.broadcast %cst_379 : f32 to vector<1x4xf32>
    %861 = arith.divf %859, %860 : vector<1x4xf32>
    %c0_380 = arith.constant 0 : index
    %c0_381 = arith.constant 0 : index
    %862 = vector.load %arg11[%c0_380, %c0_381] : memref<1x4xf32, #tpu.memory_space<vmem>>, vector<1x4xf32>
    %863 = vector.broadcast %854 : vector<1x4xf32> to vector<98x4xf32>
    %864 = arith.subf %850, %863 : vector<98x4xf32>
    %865 = vector.broadcast %862 : vector<1x4xf32> to vector<98x4xf32>
    %866 = arith.mulf %865, %864 : vector<98x4xf32>
    %cst_382 = arith.constant 9.99999974E-6 : f32
    %867 = vector.broadcast %cst_382 : f32 to vector<1x4xf32>
    %868 = arith.addf %861, %867 : vector<1x4xf32>
    %869 = math.rsqrt %868 : vector<1x4xf32>
    %870 = vector.broadcast %869 : vector<1x4xf32> to vector<98x4xf32>
    %871 = arith.mulf %866, %870 : vector<98x4xf32>
    %c0_383 = arith.constant 0 : index
    %c0_384 = arith.constant 0 : index
    %872 = vector.load %arg12[%c0_383, %c0_384] : memref<1x4xf32, #tpu.memory_space<vmem>>, vector<1x4xf32>
    %873 = vector.broadcast %872 : vector<1x4xf32> to vector<98x4xf32>
    %874 = arith.addf %871, %873 : vector<98x4xf32>
    %cst_385 = arith.constant 5.000000e-01 : f32
    %875 = vector.broadcast %cst_385 : f32 to vector<98x4xf32>
    %876 = arith.mulf %874, %875 : vector<98x4xf32>
    %cst_386 = arith.constant 1.000000e+00 : f32
    %877 = vector.broadcast %cst_386 : f32 to vector<98x4xf32>
    %878 = arith.cmpf oge, %876, %877 : vector<98x4xf32>
    %879 = arith.extui %878 : vector<98x4xi1> to vector<98x4xi32>
    %880 = arith.sitofp %879 : vector<98x4xi32> to vector<98x4xf32>
    %881 = vector.shape_cast %880 : vector<98x4xf32> to vector<2x49x4xf32>
    %882 = tpu.transpose %881, [0, 2, 1] : vector<2x49x4xf32> -> vector<2x4x49xf32>
    %883 = vector.extract_strided_slice %882 {offsets = [0, 0, 0], sizes = [2, 1, 49], strides = [1, 1, 1]} : vector<2x4x49xf32> to vector<2x1x49xf32>
    %884 = vector.shape_cast %883 : vector<2x1x49xf32> to vector<2x49xf32>
    %c0_387 = arith.constant 0 : index
    %c0_388 = arith.constant 0 : index
    %c0_389 = arith.constant 0 : index
    %885 = vector.load %arg13[%c0_387, %c0_388, %c0_389] : memref<4x49x10xf32, #tpu.memory_space<vmem>>, vector<1x49x10xf32>
    %886 = vector.shape_cast %885 : vector<1x49x10xf32> to vector<49x10xf32>
    %cst_390 = arith.constant dense<0.000000e+00> : vector<2x10xf32>
    %887 = tpu.matmul %884, %886, %cst_390 {dimension_numbers = #tpu.dot_dimension_numbers<[1], [0], [0], [1], [0, 0, 1, 1], [], []>} : vector<2x49xf32>, vector<49x10xf32>, vector<2x10xf32> -> vector<2x10xf32>
    %888 = vector.extract_strided_slice %882 {offsets = [0, 1, 0], sizes = [2, 1, 49], strides = [1, 1, 1]} : vector<2x4x49xf32> to vector<2x1x49xf32>
    %889 = vector.shape_cast %888 : vector<2x1x49xf32> to vector<2x49xf32>
    %c1_391 = arith.constant 1 : index
    %c0_392 = arith.constant 0 : index
    %c0_393 = arith.constant 0 : index
    %890 = vector.load %arg13[%c1_391, %c0_392, %c0_393] : memref<4x49x10xf32, #tpu.memory_space<vmem>>, vector<1x49x10xf32>
    %891 = vector.shape_cast %890 : vector<1x49x10xf32> to vector<49x10xf32>
    %cst_394 = arith.constant dense<0.000000e+00> : vector<2x10xf32>
    %892 = tpu.matmul %889, %891, %cst_394 {dimension_numbers = #tpu.dot_dimension_numbers<[1], [0], [0], [1], [0, 0, 1, 1], [], []>} : vector<2x49xf32>, vector<49x10xf32>, vector<2x10xf32> -> vector<2x10xf32>
    %893 = arith.addf %887, %892 : vector<2x10xf32>
    %894 = vector.extract_strided_slice %882 {offsets = [0, 2, 0], sizes = [2, 1, 49], strides = [1, 1, 1]} : vector<2x4x49xf32> to vector<2x1x49xf32>
    %895 = vector.shape_cast %894 : vector<2x1x49xf32> to vector<2x49xf32>
    %c2_395 = arith.constant 2 : index
    %c0_396 = arith.constant 0 : index
    %c0_397 = arith.constant 0 : index
    %896 = vector.load %arg13[%c2_395, %c0_396, %c0_397] : memref<4x49x10xf32, #tpu.memory_space<vmem>>, vector<1x49x10xf32>
    %897 = vector.shape_cast %896 : vector<1x49x10xf32> to vector<49x10xf32>
    %cst_398 = arith.constant dense<0.000000e+00> : vector<2x10xf32>
    %898 = tpu.matmul %895, %897, %cst_398 {dimension_numbers = #tpu.dot_dimension_numbers<[1], [0], [0], [1], [0, 0, 1, 1], [], []>} : vector<2x49xf32>, vector<49x10xf32>, vector<2x10xf32> -> vector<2x10xf32>
    %899 = arith.addf %893, %898 : vector<2x10xf32>
    %900 = vector.extract_strided_slice %882 {offsets = [0, 3, 0], sizes = [2, 1, 49], strides = [1, 1, 1]} : vector<2x4x49xf32> to vector<2x1x49xf32>
    %901 = vector.shape_cast %900 : vector<2x1x49xf32> to vector<2x49xf32>
    %c3_399 = arith.constant 3 : index
    %c0_400 = arith.constant 0 : index
    %c0_401 = arith.constant 0 : index
    %902 = vector.load %arg13[%c3_399, %c0_400, %c0_401] : memref<4x49x10xf32, #tpu.memory_space<vmem>>, vector<1x49x10xf32>
    %903 = vector.shape_cast %902 : vector<1x49x10xf32> to vector<49x10xf32>
    %cst_402 = arith.constant dense<0.000000e+00> : vector<2x10xf32>
    %904 = tpu.matmul %901, %903, %cst_402 {dimension_numbers = #tpu.dot_dimension_numbers<[1], [0], [0], [1], [0, 0, 1, 1], [], []>} : vector<2x49xf32>, vector<49x10xf32>, vector<2x10xf32> -> vector<2x10xf32>
    %905 = arith.addf %899, %904 : vector<2x10xf32>
    %cst_403 = arith.constant 1.000000e+00 : f32
    %906 = vector.broadcast %cst_403 : f32 to vector<2x10xf32>
    %907 = arith.mulf %905, %906 : vector<2x10xf32>
    %c0_404 = arith.constant 0 : index
    %c0_405 = arith.constant 0 : index
    %908 = vector.load %arg14[%c0_404, %c0_405] : memref<1x10xf32, #tpu.memory_space<vmem>>, vector<1x10xf32>
    %909 = vector.broadcast %908 : vector<1x10xf32> to vector<2x10xf32>
    %910 = arith.addf %907, %909 : vector<2x10xf32>
    %c0_406 = arith.constant 0 : index
    %c0_407 = arith.constant 0 : index
    %911 = vector.load %arg15[%c0_406, %c0_407] : memref<2x10xf32, #tpu.memory_space<vmem>>, vector<2x10xf32>
    tpu.vector_store %arg15[%c0_406, %c0_407], %910 {strides = array<i32>} : memref<2x10xf32, #tpu.memory_space<vmem>>, vector<2x10xf32>,
    return
  }
}

</mosaic_0001>

<bundles_post_ra>
// kernel: _lambda_.1
= control target key start
LH: loop header
LB: loop body
LE: loop exit
PB: predicated region body
PF: predicated region fallthrough
CT: control target
= control target key end

     0   :  { %20 = vsyncpa [#allocation9], 0  ;;  %s14179_s0 = inlined_call_operand.vmem [shape: f32[2,16,16], index: 0, kind: input, shape index: {}]   ;;  %s14180_s1 = inlined_call_operand.vmem [shape: f32[36], index: 1, kind: input, shape index: {}]   ;;  %s14181_s2 = inlined_call_operand.vmem [shape: f32[4], index: 2, kind: input, shape index: {}]   ;;  %s14182_s3 = inlined_call_operand.vmem [shape: f32[4], index: 3, kind: input, shape index: {}]   ;;  %s14183_s4 = inlined_call_operand.vmem [shape: f32[14,7], index: 4, kind: input, shape index: {}]   ;;  %s14184_s5 = inlined_call_operand.hbm [shape: f32[3,196,196], index: 5, kind: input, shape index: {}]   ;;  %s14185_s6 = inlined_call_operand.vmem [shape: f32[3,1,196], index: 6, kind: input, shape index: {}]   ;;  %s14186_s7 = inlined_call_operand.vmem [shape: f32[3,4], index: 7, kind: input, shape index: {}]   ;;  %s14187_s8 = inlined_call_operand.vmem [shape: f32[3,4], index: 8, kind: input, shape index: {}]   ;;  %s14188_s9 = inlined_call_operand.vmem [shape: f32[4,4], index: 9, kind: input, shape index: {}]   ;;  %s14189_s10 = inlined_call_operand.vmem [shape: f32[1,4], index: 10, kind: input, shape index: {}]   ;;  %s14190_s11 = inlined_call_operand.vmem [shape: f32[1,4], index: 11, kind: input, shape index: {}]   ;;  %s14191_s12 = inlined_call_operand.vmem [shape: f32[1,4], index: 12, kind: input, shape index: {}]   ;;  %s14192_s13 = inlined_call_operand.hbm [shape: f32[4,49,10], index: 13, kind: input, shape index: {}]   ;;  %s14193_s14 = inlined_call_operand.vmem [shape: f32[1,10], index: 14, kind: input, shape index: {}]   ;;  %s14194_s15 = inlined_call_operand.hbm [shape: f32[2,10], index: 15, kind: output, shape index: {}]  }
   0x1   :  { %21 = vsyncpa [#allocation11], 0 }
   0x2   :  { %22 = vsyncpa [#allocation7], 0 }
   0x3   :  { %23 = vsyncpa [#allocation15], 0 }
   0x4   :  { %24 = vsyncpa [#allocation18], 0  ;;  %s44_s20 = sshll.u32 %s14181_s2, 4  ;;  %s45_s20 = int_to_ptr.vmem [resolvable:$true] %s44_s20 }
   0x5   :  { %25 = vsyncpa [#allocation8], 0  ;;  %s80_s23 = sshll.u32 %s14186_s7, 4  ;;  %s11376_s24 = scalar_lea.vmem %s45_s20, 16  ;;  %s81_s23 = int_to_ptr.vmem [resolvable:$true] %s80_s23 }
   0x6   :  { %p11377_p0 = scmp.ne.s32.totalorder %s45_s20, %s11376_s24  ;;  %p11381_p1 = scmp.lt.s32.totalorder %s45_s20, %s45_s20 }
   0x7   :  { %p11382_p2 = scmp.lt.s32.totalorder %s11376_s24, %s11376_s24 }
   0x9   :  { %p11383_p3 = por %p11382_p2, %p11381_p1 }
   0xb   :  { %p11384_p4 = pnand %p11383_p3, %p11377_p0 }
   0xd   :  { %11387 = shalt.err (!%p11384_p4)
}
   0xe   :  { %s11508_s25 = smov [#allocation10]   ;;  %s11388_s26 = scalar_lea.vmem %s81_s23, 64 }
   0xf   :  { %47 = dma.vmem_to_smem %s45_s20, 16, %s11508_s25, [#allocation11]  }
  0x10   :  { %p11389_p5 = scmp.ne.s32.totalorder %s81_s23, %s11388_s26  ;;  %p11393_p6 = scmp.lt.s32.totalorder %s81_s23, %s81_s23 }
  0x11   :  { %p11394_p7 = scmp.lt.s32.totalorder %s11388_s26, %s11388_s26 }
  0x13   :  { %p11395_p8 = por %p11394_p7, %p11393_p6 }
  0x15   :  { %p11396_p9 = pnand %p11395_p8, %p11389_p5 }
  0x17   :  { %11399 = shalt.err (!%p11396_p9)
}
  0x18   :  { %s11509_s2 = smov [#allocation14]   ;;  %s34_s28 = sshll.u32 %s14180_s1, 4  ;;  %s35_s28 = int_to_ptr.vmem [resolvable:$true] %s34_s28 }
  0x19   :  { %83 = dma.vmem_to_smem %s81_s23, 64, %s11509_s2, [#allocation15]  }
  0x1a   :  { %s54_s16 = sshll.u32 %s14182_s3, 4  ;;  %s11400_s17 = scalar_lea.vmem %s35_s28, 16  ;;  %s55_s16 = int_to_ptr.vmem [resolvable:$true] %s54_s16 }
  0x1b   :  { %p11401_p10 = scmp.ne.s32.totalorder %s35_s28, %s11400_s17  ;;  %p11405_p11 = scmp.lt.s32.totalorder %s35_s28, %s35_s28 }
  0x1c   :  { %p11406_p12 = scmp.lt.s32.totalorder %s11400_s17, %s11400_s17 }
  0x1e   :  { %p11407_p13 = por %p11406_p12, %p11405_p11 }
  0x20   :  { %p11408_p0 = pnand %p11407_p13, %p11401_p10 }
  0x22   :  { %11411 = shalt.err (!%p11408_p0)
}
  0x23   :  { %s11510_s18 = smov [#allocation6]   ;;  %s11412_s19 = scalar_lea.vmem %s55_s16, 16 }
  0x24   :  { %37 = dma.vmem_to_smem %s35_s28, 16, %s11510_s18, [#allocation9]  }
  0x25   :  { %p11413_p1 = scmp.ne.s32.totalorder %s55_s16, %s11412_s19  ;;  %p11417_p2 = scmp.lt.s32.totalorder %s55_s16, %s55_s16 }
  0x26   :  { %p11418_p3 = scmp.lt.s32.totalorder %s11412_s19, %s11412_s19 }
  0x28   :  { %p11419_p4 = por %p11418_p3, %p11417_p2 }
  0x2a   :  { %p11420_p5 = pnand %p11419_p4, %p11413_p1 }
  0x2c   :  { %11423 = shalt.err (!%p11420_p5)
}
  0x2d   :  { %s11511_s1 = smov [#allocation12]   ;;  %s11512_s3 = smov [#allocation13]  }
  0x2e   :  { %57 = dma.vmem_to_smem %s55_s16, 16, %s11511_s1, [#allocation11]  }
  0x2f   :  { %s65_s20 = sshll.u32 %s11512_s3, 4  ;;  %s90_s23 = sshll.u32 %s14187_s8, 4  ;;  %s66_s20 = int_to_ptr.vmem [resolvable:$true] %s65_s20  ;;  %s91_s23 = int_to_ptr.vmem [resolvable:$true] %s90_s23 }
  0x30   :  { %s11432_s24 = scalar_lea.vmem %s66_s20, 19200  ;;  %p11437_p7 = scmp.lt.s32.totalorder %s66_s20, %s66_s20 }
  0x31   :  { %p11433_p6 = scmp.ne.s32.totalorder %s66_s20, %s11432_s24  ;;  %p11438_p8 = scmp.lt.s32.totalorder %s11432_s24, %s11432_s24 }
  0x33   :  { %p11439_p9 = por %p11438_p8, %p11437_p7 }
  0x35   :  { %p11440_p10 = pnand %p11439_p9, %p11433_p6 }
  0x37   :  { %11443 = shalt.err (!%p11440_p10)
}
  0x38   :  { %s11513_s25 = smov 256   ;;  %s11514_s26 = smov 16  }
  0x39   :  { %71 = dma.hbm_to_vmem [thread:$0]  %s14184_s5, 19200, %s66_s20, [#allocation7], %s11513_s25, %s11513_s25, %s11514_s26  }
  0x3a   :  { %s11444_s27 = scalar_lea.vmem %s91_s23, 64  ;;  %p11449_p12 = scmp.lt.s32.totalorder %s91_s23, %s91_s23 }
  0x3b   :  { %p11445_p11 = scmp.ne.s32.totalorder %s91_s23, %s11444_s27  ;;  %p11450_p13 = scmp.lt.s32.totalorder %s11444_s27, %s11444_s27 }
  0x3d   :  { %p11451_p0 = por %p11450_p13, %p11449_p12 }
  0x3f   :  { %p11452_p1 = pnand %p11451_p0, %p11445_p11 }
  0x41   :  { %11455 = shalt.err (!%p11452_p1)
}
  0x42   :  { %s11515_s8 = smov [#allocation16]   ;;  %s11516_s28 = smov [#allocation17]  }
  0x43   :  { %93 = dma.vmem_to_smem %s91_s23, 64, %s11515_s8, [#allocation15]  }
  0x44   :  { %s107_s29 = sshll.u32 %s11516_s28, 4  ;;  %s108_s29 = int_to_ptr.vmem [resolvable:$true] %s107_s29 }
  0x45   :  { %s11464_s30 = scalar_lea.vmem %s108_s29, 3584  ;;  %p11469_p3 = scmp.lt.s32.totalorder %s108_s29, %s108_s29 }
  0x46   :  { %p11465_p2 = scmp.ne.s32.totalorder %s108_s29, %s11464_s30  ;;  %p11470_p4 = scmp.lt.s32.totalorder %s11464_s30, %s11464_s30 }
  0x48   :  { %p11471_p5 = por %p11470_p4, %p11469_p3 }
  0x4a   :  { %p11472_p6 = pnand %p11471_p5, %p11465_p2 }
  0x4c   :  { %11475 = shalt.err (!%p11472_p6)
}
  0x4d   :  { %s11517_s5 = smov 128   ;;  %s11518_s16 = smov 8  }
  0x4e   :  { %113 = dma.hbm_to_vmem [thread:$0]  %s14192_s13, 3584, %s108_s29, [#allocation18], %s11517_s5, %s11517_s5, %s11518_s16  }
  0x4f   :  { %11496 = dma.done.wait [#allocation9], 16  }
  0x50   :  { %11497 = vsyncadd [#allocation9], 4294967280 }
  0x51   :  { %11498 = dma.done.wait [#allocation11], 32  }
  0x52   :  { %11499 = vsyncadd [#allocation11], 4294967264 }
  0x53   :  { %11500 = dma.done.wait [#allocation7], 19200  }
  0x54   :  { %11501 = vsyncadd [#allocation7], 4294948096 }
  0x55   :  { %11502 = dma.done.wait [#allocation15], 128  }
  0x56   :  { %11503 = vsyncadd [#allocation15], 4294967168 }
  0x57   :  { %11504 = dma.done.wait [#allocation18], 3584  }
  0x58   :  { %11505 = vsyncadd [#allocation18], 4294963712 }
  0x59   :  { %137 = sfence }
  0x5a   :  { %s10559_s19 = sld [smem:[#allocation6 + $0x1]]  ;;  %v11659_v0 = vld [vmem:[%s14179_s0 + $0x10] sm:$0xff]  ;;  %v11664_v1 = vld [vmem:[%s14179_s0] sm:$0xff]  ;;  %v11669_v3 = vld [vmem:[%s14179_s0 + $0x8] sm:$0x3f]  ;;  %s11519_s24 = smov 127  }
  0x5b   :  { %s10560_s1 = sld [smem:[#allocation6 + $0x2]]  ;;  %v11680_v9 = vld [vmem:[%s14179_s0 + $0x18] sm:$0x3f]  ;;  %s11520_s7 = smov 126   ;;  %v11693_v14 = vld [vmem:[%s14179_s0 + $0x9] sm:$0x3f] }
  0x5c   :  { %s10562_s2 = sld [smem:[#allocation6 + $0x4]]  ;;  %v11698_v16 = vld [vmem:[%s14179_s0 + $0x1] sm:$0xff]  ;;  %v11707_v20 = vld [vmem:[%s14179_s0 + $0x11] sm:$0xff]  ;;  %v11716_v23 = vld [vmem:[%s14179_s0 + $0x19] sm:$0x3f]  ;;  %vm334_vm0 = vcmask 111616  }
  0x5d   :  { %s10563_s27 = sld [smem:[#allocation6 + $0x5]]  ;;  %v11729_v28 = vld [vmem:[%s14179_s0 + $0xa] sm:$0x3f]  ;;  %v11734_v30 = vld [vmem:[%s14179_s0 + $0x2] sm:$0xff]  ;;  %v11743_v34 = vld [vmem:[%s14179_s0 + $0x12] sm:$0xff]  ;;  %vm332_vm1 = vcmask 113664  }
  0x5e   :  { %v11752_v37 = vld [vmem:[%s14179_s0 + $0x1a] sm:$0x3f]  ;;  %s10575_s8 = sld [smem:[#allocation6 + $0xd]]  ;;  %vm1799_vm6 = vcmask 1045504  }
  0x5f   :  { %s10576_s28 = sld [smem:[#allocation6 + $0xe]] }
  0x60   :  { %v157_v2 = vstv %s10559_s19  ;;  %s10565_s19 = sld [smem:[#allocation6 + $0x7]] }
  0x61   :  { %v160_v4 = vmul.f32 %v157_v2, %v11659_v0  ;;  %v158_v5 = vmul.f32 %v157_v2, %v11664_v1  ;;  %v183_v6 = vstv %s10560_s1  ;;  %v159_v8 = vmul.f32 %v157_v2, %v11669_v3  ;;  %s10566_s1 = sld [smem:[#allocation6 + $0x8]] }
  0x62   :  { %v184_v7 = vmul.f32 %v183_v6, %v11664_v1  ;;  %v161_v10 = vmul.f32 %v157_v2, %v11680_v9  ;;  %v185_v11 = vmul.f32 %v183_v6, %v11669_v3  ;;  %v187_v12 = vmul.f32 %v183_v6, %v11680_v9  ;;  %s150_s29 = sld [smem:[#allocation6]] }
  0x63   :  { %170 = vrot.lane.b32.xlu1 %v160_v4, %s11519_s24  ;;  %166 = vrot.lane.b32.xlu0 %v158_v5, %s11519_s24  ;;  %v186_v13 = vmul.f32 %v183_v6, %v11659_v0  ;;  %v219_v15 = vstv %s10562_s2  ;;  %v245_v19 = vstv %s10563_s27  ;;  %s10572_s2 = sld [smem:[#allocation6 + $0xa]] }
  0x64   :  { %v221_v17 = vmul.f32 %v219_v15, %v11693_v14  ;;  %v220_v18 = vmul.f32 %v219_v15, %v11698_v16  ;;  %v246_v21 = vmul.f32 %v245_v19, %v11698_v16  ;;  %v222_v22 = vmul.f32 %v219_v15, %v11707_v20  ;;  %s10573_s27 = sld [smem:[#allocation6 + $0xb]] }
  0x65   :  { %v223_v24 = vmul.f32 %v219_v15, %v11716_v23  ;;  %v247_v25 = vmul.f32 %v245_v19, %v11693_v14  ;;  %v249_v26 = vmul.f32 %v245_v19, %v11716_v23  ;;  %v248_v27 = vmul.f32 %v245_v19, %v11707_v20  ;;  %s10561_s30 = sld [smem:[#allocation6 + $0x3]] }
  0x66   :  { %v281_v29 = vstv %s10565_s19  ;;  %v11779_v52 = vstv %s10575_s8  ;;  %v11787_v55 = vstv %s10576_s28  ;;  %s10564_s5 = sld [smem:[#allocation6 + $0x6]] }
  0x67   :  { %192 = vrot.lane.b32.xlu1 %v184_v7, %s11520_s7  ;;  %168 = vrot.lane.b32.xlu0 %v159_v8, %s11519_s24  ;;  %v283_v31 = vmul.f32 %v281_v29, %v11729_v28  ;;  %v282_v32 = vmul.f32 %v281_v29, %v11734_v30  ;;  %v307_v33 = vstv %s10566_s1  ;;  %v284_v36 = vmul.f32 %v281_v29, %v11743_v34  ;;  %s10578_s16 = sld [smem:[#allocation6 + $0x10]] }
  0x68   :  { %v308_v35 = vmul.f32 %v307_v33, %v11734_v30  ;;  %v285_v38 = vmul.f32 %v281_v29, %v11752_v37  ;;  %v309_v39 = vmul.f32 %v307_v33, %v11729_v28  ;;  %v311_v40 = vmul.f32 %v307_v33, %v11752_v37  ;;  %s10579_s17 = sld [smem:[#allocation6 + $0x11]] }
  0x69   :  { %v310_v41 = vmul.f32 %v307_v33, %v11743_v34  ;;  %v429_v42 = vstv %s10572_s2  ;;  %v493_v53 = vmul.f32 %v11779_v52, %v11693_v14  ;;  %v494_v54 = vmul.f32 %v11779_v52, %v11707_v20  ;;  %s10587_s1 = sld [smem:[#allocation6 + $0x13]] }
  0x6a   :  { %v430_v43 = vmul.f32 %v429_v42, %v11664_v1  ;;  %v431_v44 = vmul.f32 %v429_v42, %v11669_v3  ;;  %v432_v45 = vmul.f32 %v429_v42, %v11659_v0  ;;  %v455_v46 = vstv %s10573_s27  ;;  %s10571_s3 = sld [smem:[#allocation6 + $0x9]] }
  0x6b   :  { %172 = vrot.lane.b32.xlu1 %v161_v10, %s11519_s24  ;;  %194 = vrot.lane.b32.xlu0 %v185_v11, %s11520_s7  ;;  %v456_v47 = vmul.f32 %v455_v46, %v11664_v1  ;;  %v457_v48 = vmul.f32 %v455_v46, %v11669_v3  ;;  %v433_v49 = vmul.f32 %v429_v42, %v11680_v9  ;;  %v151_v4 = vstv %s150_s29  ;;  %s10574_s20 = sld [smem:[#allocation6 + $0xc]] }
  0x6c   :  { %v458_v50 = vmul.f32 %v455_v46, %v11659_v0  ;;  %v459_v51 = vmul.f32 %v455_v46, %v11680_v9  ;;  %v518_v56 = vmul.f32 %v11787_v55, %v11698_v16  ;;  %v152_v7 = vmul.f32 %v151_v4, %v11664_v1  ;;  %s10577_s21 = sld [smem:[#allocation6 + $0xf]] }
  0x6d   :  { %v153_v8 = vmul.f32 %v151_v4, %v11669_v3  ;;  %v154_v15 = vmul.f32 %v151_v4, %v11659_v0  ;;  %s10588_s13 = sld [smem:[#allocation6 + $0x14]] }
  0x6e   :  { %s10590_s22 = sld [smem:[#allocation6 + $0x16]] }
  0x6f   :  { %198 = vrot.lane.b32.xlu1 %v187_v12, %s11520_s7  ;;  %196 = vrot.lane.b32.xlu0 %v186_v13, %s11520_s7  ;;  %v155_v12 = vmul.f32 %v151_v4, %v11680_v9  ;;  %v209_v13 = vstv %s10561_s30  ;;  %s10591_s23 = sld [smem:[#allocation6 + $0x17]] }
  0x70   :  { %v211_v19 = vmul.f32 %v209_v13, %v11693_v14  ;;  %s10593_s25 = sld [smem:[#allocation6 + $0x19]] }
  0x71   :  { %s10594_s26 = sld [smem:[#allocation6 + $0x1a]] }
  0x72   :  { %s381_s28 = sld [smem:[#allocation10]] }
  0x73   :  { %230 = vrot.lane.b32.xlu1 %v221_v17, %s11519_s24  ;;  %228 = vrot.lane.b32.xlu0 %v220_v18, %s11519_s24  ;;  %s396_s29 = sld [smem:[#allocation12]] }
  0x77   :  { %254 = vrot.lane.b32.xlu1 %v246_v21, %s11520_s7  ;;  %232 = vrot.lane.b32.xlu0 %v222_v22, %s11519_s24 }
  0x7b   :  { %234 = vrot.lane.b32.xlu1 %v223_v24, %s11519_s24  ;;  %256 = vrot.lane.b32.xlu0 %v247_v25, %s11520_s7 }
  0x7f   :  { %260 = vrot.lane.b32.xlu1 %v249_v26, %s11520_s7  ;;  %258 = vrot.lane.b32.xlu0 %v248_v27, %s11520_s7  ;;  %v210_v27 = vmul.f32 %v209_v13, %v11698_v16 }
  0x83   :  { %292 = vrot.lane.b32.xlu1 %v283_v31, %s11519_s24  ;;  %290 = vrot.lane.b32.xlu0 %v282_v32, %s11519_s24  ;;  %v212_v31 = vmul.f32 %v209_v13, %v11707_v20  ;;  %v213_v32 = vmul.f32 %v209_v13, %v11716_v23 }
  0x87   :  { %316 = vrot.lane.b32.xlu1 %v308_v35, %s11520_s7  ;;  %294 = vrot.lane.b32.xlu0 %v284_v36, %s11519_s24  ;;  %v271_v36 = vstv %s10564_s5 }
  0x88   :  { %v272_v46 = vmul.f32 %v271_v36, %v11734_v30 }
  0x8b   :  { %296 = vrot.lane.b32.xlu1 %v285_v38, %s11519_s24  ;;  %318 = vrot.lane.b32.xlu0 %v309_v39, %s11520_s7 }
  0x8f   :  { %322 = vrot.lane.b32.xlu1 %v311_v40, %s11520_s7  ;;  %320 = vrot.lane.b32.xlu0 %v310_v41, %s11520_s7 }
  0x93   :  { %438 = vrot.lane.b32.xlu1 %v430_v43, %s11519_s24 }
  0x97   :  { %440 = vrot.lane.b32.xlu1 %v431_v44, %s11519_s24  ;;  %v273_v44 = vmul.f32 %v271_v36, %v11729_v28 }
  0x9b   :  { %442 = vrot.lane.b32.xlu1 %v432_v45, %s11519_s24 }
  0x9f   :  { %464 = vrot.lane.b32.xlu1 %v456_v47, %s11520_s7 }
  0xa3   :  { %466 = vrot.lane.b32.xlu1 %v457_v48, %s11520_s7 }
  0xa7   :  { %444 = vrot.lane.b32.xlu1 %v433_v49, %s11519_s24 }
  0xab   :  { %468 = vrot.lane.b32.xlu1 %v458_v50, %s11520_s7 }
  0xaf   :  { %470 = vrot.lane.b32.xlu1 %v459_v51, %s11520_s7 }
  0xb3   :  { %502 = vrot.lane.b32.xlu1 %v493_v53, %s11519_s24 }
  0xb7   :  { %504 = vrot.lane.b32.xlu1 %v494_v54, %s11519_s24 }
  0xbb   :  { %526 = vrot.lane.b32.xlu1 %v518_v56, %s11520_s7 }
  0xd5   :  { %v171_v57 = vpop.permute.xlu1 %170  ;;  %v167_v58 = vpop.permute.xlu0 %166 }
  0xd6   :  { %v178_v17 = vadd.f32 %v167_v58, %v152_v7  ;;  %v180_v29 = vadd.f32 %v171_v57, %v154_v15  ;;  %v274_v57 = vmul.f32 %v271_v36, %v11743_v34 }
  0xd9   :  { %v193_v59 = vpop.permute.xlu1 %192  ;;  %v169_v60 = vpop.permute.xlu0 %168 }
  0xda   :  { %v179_v18 = vadd.f32 %v169_v60, %v153_v8  ;;  %v204_v24 = vadd.f32 %v193_v59, %v178_v17  ;;  %v275_v59 = vmul.f32 %v271_v36, %v11752_v37  ;;  %v492_v36 = vmul.f32 %v11779_v52, %v11698_v16 }
  0xdc   :  { %v214_v41 = vadd.f32 %v210_v27, %v204_v24 }
  0xdd   :  { %v173_v61 = vpop.permute.xlu1 %172  ;;  %v195_v62 = vpop.permute.xlu0 %194 }
  0xde   :  { %v181_v25 = vadd.f32 %v173_v61, %v155_v12  ;;  %v205_v26 = vadd.f32 %v195_v62, %v179_v18 }
  0xe0   :  { %v215_v40 = vadd.f32 %v211_v19, %v205_v26 }
  0xe1   :  { %v199_v63 = vpop.permute.xlu1 %198  ;;  %v197_v2 = vpop.permute.xlu0 %196 }
  0xe2   :  { %v207_v38 = vadd.f32 %v199_v63, %v181_v25  ;;  %v206_v39 = vadd.f32 %v197_v2, %v180_v29 }
  0xe4   :  { %v216_v49 = vadd.f32 %v212_v31, %v206_v39  ;;  %v217_v50 = vadd.f32 %v213_v32, %v207_v38  ;;  %v519_v31 = vmul.f32 %v11787_v55, %v11693_v14  ;;  %v495_v32 = vmul.f32 %v11779_v52, %v11716_v23 }
  0xe5   :  { %v231_v5 = vpop.permute.xlu1 %230  ;;  %v229_v6 = vpop.permute.xlu0 %228  ;;  %v553_v38 = vstv %s10578_s16 }
  0xe6   :  { %v241_v42 = vadd.f32 %v231_v5, %v215_v40  ;;  %v240_v43 = vadd.f32 %v229_v6, %v214_v41  ;;  %528 = vrot.lane.b32.xlu1 %v519_v31, %s11520_s7  ;;  %v554_v39 = vmul.f32 %v553_v38, %v11734_v30  ;;  %v555_v40 = vmul.f32 %v553_v38, %v11729_v28 }
  0xe7   :  { %v556_v41 = vmul.f32 %v553_v38, %v11743_v34  ;;  %v11860_v31 = vstv %s10587_s1  ;;  %s10592_s1 = sld [smem:[#allocation6 + $0x18]] }
  0xe9   :  { %v255_v10 = vpop.permute.xlu1 %254  ;;  %v233_v11 = vpop.permute.xlu0 %232 }
  0xea   :  { %v266_v48 = vadd.f32 %v255_v10, %v240_v43  ;;  %v242_v53 = vadd.f32 %v233_v11, %v216_v49  ;;  %506 = vrot.lane.b32.xlu1 %v495_v32, %s11519_s24  ;;  %v557_v43 = vmul.f32 %v553_v38, %v11752_v37  ;;  %v701_v32 = vmul.f32 %v11860_v31, %v11664_v1 }
  0xec   :  { %v276_v63 = vadd.f32 %v272_v46, %v266_v48 }
  0xed   :  { %v235_v21 = vpop.permute.xlu1 %234  ;;  %v257_v22 = vpop.permute.xlu0 %256 }
  0xee   :  { %v267_v51 = vadd.f32 %v257_v22, %v241_v42  ;;  %v243_v54 = vadd.f32 %v235_v21, %v217_v50 }
  0xf0   :  { %v277_v62 = vadd.f32 %v273_v44, %v267_v51 }
  0xf1   :  { %v261_v33 = vpop.permute.xlu1 %260  ;;  %v259_v35 = vpop.permute.xlu0 %258 }
  0xf2   :  { %v269_v60 = vadd.f32 %v261_v33, %v243_v54  ;;  %v268_v61 = vadd.f32 %v259_v35, %v242_v53  ;;  %v520_v33 = vmul.f32 %v11787_v55, %v11707_v20  ;;  %v521_v35 = vmul.f32 %v11787_v55, %v11716_v23 }
  0xf3   :  { %v579_v55 = vstv %s10579_s17  ;;  %s10602_s17 = sld [smem:[#allocation6 + $0x1c]] }
  0xf4   :  { %v278_v8 = vadd.f32 %v274_v57, %v268_v61  ;;  %v279_v10 = vadd.f32 %v275_v59, %v269_v60  ;;  %530 = vrot.lane.b32.xlu1 %v520_v33, %s11520_s7  ;;  %v580_v52 = vmul.f32 %v579_v55, %v11734_v30  ;;  %v581_v42 = vmul.f32 %v579_v55, %v11729_v28 }
  0xf5   :  { %v293_v45 = vpop.permute.xlu1 %292  ;;  %v291_v47 = vpop.permute.xlu0 %290  ;;  %v583_v44 = vmul.f32 %v579_v55, %v11752_v37 }
  0xf6   :  { %v303_v2 = vadd.f32 %v293_v45, %v277_v62  ;;  %v302_v4 = vadd.f32 %v291_v47, %v276_v63 }
  0xf8   :  { %532 = vrot.lane.b32.xlu1 %v521_v35, %s11520_s7  ;;  %v702_v35 = vmul.f32 %v11860_v31, %v11669_v3 }
  0xf9   :  { %v317_v56 = vpop.permute.xlu1 %316  ;;  %v295_v58 = vpop.permute.xlu0 %294 }
  0xfa   :  { %v328_v7 = vadd.f32 %v317_v56, %v302_v4  ;;  %v304_v12 = vadd.f32 %v295_v58, %v278_v8 }
  0xfc   :  { %v333_v19 = vsel %vm332_vm1, %v328_v7, 0.0  ;;  %562 = vrot.lane.b32.xlu1 %v554_v39, %s11519_s24 }
  0xfd   :  { %v297_v5 = vpop.permute.xlu1 %296  ;;  %v319_v6 = vpop.permute.xlu0 %318 }
  0xfe   :  { %v329_v11 = vadd.f32 %v319_v6, %v303_v2  ;;  %v305_v13 = vadd.f32 %v297_v5, %v279_v10 }
 0x100   :  { %v335_v15 = vsel %vm334_vm0, %v329_v11, 0.0  ;;  %564 = vrot.lane.b32.xlu1 %v555_v40, %s11519_s24 }
 0x101   :  { %v323_v17 = vpop.permute.xlu1 %322  ;;  %v321_v18 = vpop.permute.xlu0 %320  ;;  %v336_v24 = vadd.f32 %v335_v15, %v333_v19 }
 0x102   :  { %v331_v21 = vadd.f32 %v323_v17, %v305_v13  ;;  %v330_v22 = vadd.f32 %v321_v18, %v304_v12 }
 0x104   :  { %v337_v25 = vsel %vm332_vm1, %v330_v22, 0.0  ;;  %v339_v27 = vsel %vm334_vm0, %v331_v21, 0.0  ;;  %566 = vrot.lane.b32.xlu1 %v556_v41, %s11519_s24 }
 0x105   :  { %v338_v26 = vadd.f32 %v337_v25, %v336_v24  ;;  %v439_v10 = vpop.permute.xlu1 %438 }
 0x107   :  { %v340_v29 = vadd.f32 %v339_v27, %v338_v26 }
 0x108   :  { %588 = vrot.lane.b32.xlu1 %v580_v52, %s11520_s7  ;;  %v481_v52 = vstv %s10574_s20 }
 0x109   :  { %341 = vadd.xlane.f32.xlu0 %v340_v29  ;;  %v441_v12 = vpop.permute.xlu1 %440 }
 0x10c   :  { %590 = vrot.lane.b32.xlu1 %v581_v42, %s11520_s7 }
 0x10d   :  { %v443_v13 = vpop.permute.xlu1 %442 }
 0x110   :  { %568 = vrot.lane.b32.xlu1 %v557_v43, %s11519_s24 }
 0x111   :  { %v465_v15 = vpop.permute.xlu1 %464 }
 0x114   :  { %594 = vrot.lane.b32.xlu1 %v583_v44, %s11520_s7 }
 0x115   :  { %v467_v17 = vpop.permute.xlu1 %466 }
 0x119   :  { %v445_v18 = vpop.permute.xlu1 %444 }
 0x11d   :  { %v469_v19 = vpop.permute.xlu1 %468 }
 0x11f   :  { %500 = vrot.lane.b32.xlu0 %v492_v36, %s11519_s24  ;;  %v423_v36 = vstv %s10571_s3  ;;  %s10603_s3 = sld [smem:[#allocation6 + $0x1d]] }
 0x120   :  { %v424_v38 = vmul.f32 %v423_v36, %v11664_v1  ;;  %v425_v39 = vmul.f32 %v423_v36, %v11669_v3  ;;  %v427_v42 = vmul.f32 %v423_v36, %v11680_v9  ;;  %v426_v43 = vmul.f32 %v423_v36, %v11659_v0 }
 0x122   :  { %v450_v41 = vadd.f32 %v439_v10, %v424_v38 }
 0x192   :  { %v342_v45 = vpop.xlane.xlu0 %341 }
 0x193   :  { %v343_v46 = vrot.slane %v342_v45, 4 }
 0x195   :  { %v344_v47 = vadd.f32 %v343_v46, %v342_v45  ;;  %v476_v45 = vadd.f32 %v465_v15, %v450_v41 }
 0x197   :  { %v345_v48 = vrot.slane %v344_v47, 2 }
 0x199   :  { %v346_v49 = vadd.f32 %v345_v48, %v344_v47  ;;  %v483_v47 = vmul.f32 %v481_v52, %v11693_v14  ;;  %v482_v48 = vmul.f32 %v481_v52, %v11698_v16 }
 0x19b   :  { %v347_v50 = vrot.slane %v346_v49, 1 }
 0x19d   :  { %v348_v51 = vadd.f32 %v347_v50, %v346_v49  ;;  %v453_v49 = vadd.f32 %v445_v18, %v427_v42  ;;  %v452_v50 = vadd.f32 %v443_v13, %v426_v43 }
 0x19f   :  { %11158 = vpush %v348_v51 }
 0x1d0   :  { %s11159_s18 = spop %11158 }
 0x1d1   :  { %s352_s19 = smul.f32 0.0025510204, %s11159_s18  ;;  %s10586_s18 = sld [smem:[#allocation6 + $0x12]] }
 0x1d3   :  { %v353_v53 = vstv %s352_s19  ;;  %s10589_s19 = sld [smem:[#allocation6 + $0x15]] }
 0x1d4   :  { %v11838_v54 = vsub.f32 %v328_v7, %v353_v53  ;;  %v11840_v56 = vsub.f32 %v329_v11, %v353_v53  ;;  %v11842_v57 = vsub.f32 %v330_v22, %v353_v53  ;;  %v11844_v58 = vsub.f32 %v331_v21, %v353_v53  ;;  %v471_v21 = vpop.permute.xlu1 %470 }
 0x1d5   :  { %v582_v11 = vmul.f32 %v579_v55, %v11743_v34  ;;  %v451_v55 = vadd.f32 %v441_v12, %v425_v39  ;;  %v486_v53 = vadd.f32 %v482_v48, %v476_v45 }
 0x1d6   :  { %v358_v59 = vmul.f32 %v11838_v54, %v11838_v54  ;;  %v359_v60 = vmul.f32 %v11840_v56, %v11840_v56  ;;  %v360_v61 = vmul.f32 %v11842_v57, %v11842_v57  ;;  %v361_v62 = vmul.f32 %v11844_v58, %v11844_v58 }
 0x1d7   :  { %v477_v46 = vadd.f32 %v467_v17, %v451_v55 }
 0x1d8   :  { %v362_v63 = vsel %vm332_vm1, %v358_v59, 0.0  ;;  %v363_v2 = vsel %vm334_vm0, %v359_v60, 0.0  ;;  %v365_v5 = vsel %vm332_vm1, %v360_v61, 0.0  ;;  %v367_v7 = vsel %vm334_vm0, %v361_v62, 0.0  ;;  %v503_v22 = vpop.permute.xlu1 %502  ;;  %v501_v60 = vpop.permute.xlu0 %500 }
 0x1d9   :  { %v364_v4 = vadd.f32 %v363_v2, %v362_v63  ;;  %v487_v51 = vadd.f32 %v483_v47, %v477_v46  ;;  %v479_v61 = vadd.f32 %v471_v21, %v453_v49  ;;  %v485_v62 = vmul.f32 %v481_v52, %v11716_v23 }
 0x1da   :  { %v478_v63 = vadd.f32 %v469_v19, %v452_v50 }
 0x1db   :  { %v366_v6 = vadd.f32 %v365_v5, %v364_v4  ;;  %v513_v2 = vadd.f32 %v503_v22, %v487_v51  ;;  %v484_v4 = vmul.f32 %v481_v52, %v11707_v20  ;;  %v543_v5 = vstv %s10577_s21 }
 0x1dc   :  { %v505_v24 = vpop.permute.xlu1 %504  ;;  %v544_v15 = vmul.f32 %v543_v5, %v11734_v30  ;;  %v547_v22 = vmul.f32 %v543_v5, %v11752_v37  ;;  %v546_v39 = vmul.f32 %v543_v5, %v11743_v34  ;;  %v703_v51 = vmul.f32 %v11860_v31, %v11659_v0 }
 0x1dd   :  { %v368_v8 = vadd.f32 %v367_v7, %v366_v6  ;;  %v512_v6 = vadd.f32 %v501_v60, %v486_v53  ;;  %v489_v7 = vadd.f32 %v485_v62, %v479_v61 }
 0x1df   :  { %369 = vadd.xlane.f32.xlu0 %v368_v8  ;;  %v545_v8 = vmul.f32 %v543_v5, %v11729_v28 }
 0x1e0   :  { %v527_v25 = vpop.permute.xlu1 %526 }
 0x1e1   :  { %v538_v13 = vadd.f32 %v527_v25, %v512_v6 }
 0x1e4   :  { %v529_v26 = vpop.permute.xlu1 %528 }
 0x1e5   :  { %v539_v12 = vadd.f32 %v529_v26, %v513_v2 }
 0x1e7   :  { %v549_v21 = vadd.f32 %v545_v8, %v539_v12 }
 0x1e8   :  { %v507_v27 = vpop.permute.xlu1 %506 }
 0x1e9   :  { %v515_v17 = vadd.f32 %v507_v27, %v489_v7  ;;  %v11521_v7 = vmov 0.0  }
 0x1ea   :  { %10932 = vmatprep.subr.mxu1 %v11521_v7 }
 0x1ec   :  { %v531_v29 = vpop.permute.xlu1 %530 }
 0x1f0   :  { %v533_v33 = vpop.permute.xlu1 %532 }
 0x1f1   :  { %v541_v19 = vadd.f32 %v533_v33, %v515_v17 }
 0x1f3   :  { %v551_v52 = vadd.f32 %v547_v22, %v541_v19  ;;  %v824_v22 = vstv %s10593_s25 }
 0x1f4   :  { %v563_v40 = vpop.permute.xlu1 %562 }
 0x1f5   :  { %592 = vrot.lane.b32.xlu0 %v582_v11, %s11520_s7  ;;  %v488_v11 = vadd.f32 %v484_v4, %v478_v63  ;;  %v726_v63 = vstv %s10588_s13  ;;  %s10595_s13 = sld [smem:[#allocation10 + $0x2]] }
 0x1f6   :  { %v727_v4 = vmul.f32 %v726_v63, %v11664_v1  ;;  %v728_v6 = vmul.f32 %v726_v63, %v11669_v3  ;;  %v729_v8 = vmul.f32 %v726_v63, %v11659_v0 }
 0x1f7   :  { %v514_v18 = vadd.f32 %v505_v24, %v488_v11  ;;  %v762_v11 = vstv %s10590_s22  ;;  %s10596_s22 = sld [smem:[#allocation12 + $0x2]] }
 0x1f8   :  { %v565_v44 = vpop.permute.xlu1 %564  ;;  %v763_v12 = vmul.f32 %v762_v11, %v11698_v16  ;;  %v765_v17 = vmul.f32 %v762_v11, %v11707_v20 }
 0x1f9   :  { %709 = vrot.lane.b32.xlu0 %v701_v32, %s11519_s24  ;;  %v548_v32 = vadd.f32 %v544_v15, %v538_v13  ;;  %v540_v36 = vadd.f32 %v531_v29, %v514_v18  ;;  %v575_v38 = vadd.f32 %v565_v44, %v549_v21  ;;  %v704_v13 = vmul.f32 %v11860_v31, %v11680_v9 }
 0x1fa   :  { %v764_v15 = vmul.f32 %v762_v11, %v11693_v14  ;;  %v788_v18 = vstv %s10591_s23  ;;  %v766_v31 = vmul.f32 %v762_v11, %v11716_v23  ;;  %s10609_s23 = sld [smem:[#allocation6 + $0x23]] }
 0x1fb   :  { %v574_v41 = vadd.f32 %v563_v40, %v548_v32  ;;  %v550_v42 = vadd.f32 %v546_v39, %v540_v36  ;;  %v790_v21 = vmul.f32 %v788_v18, %v11693_v14  ;;  %v789_v32 = vmul.f32 %v788_v18, %v11698_v16 }
 0x1fc   :  { %v567_v59 = vpop.permute.xlu1 %566  ;;  %v792_v19 = vmul.f32 %v788_v18, %v11716_v23  ;;  %v825_v36 = vmul.f32 %v824_v22, %v11734_v30  ;;  %v827_v39 = vmul.f32 %v824_v22, %v11743_v34 }
 0x1fd   :  { %711 = vrot.lane.b32.xlu0 %v702_v35, %s11519_s24  ;;  %v576_v46 = vadd.f32 %v567_v59, %v550_v42  ;;  %v828_v42 = vmul.f32 %v824_v22, %v11752_v37 }
 0x200   :  { %v589_v10 = vpop.permute.xlu1 %588 }
 0x201   :  { %v11880_v26 = vadd.f32 %v589_v10, %v574_v41  ;;  %713 = vrot.lane.b32.xlu0 %v703_v51, %s11519_s24  ;;  %v730_v10 = vmul.f32 %v726_v63, %v11680_v9  ;;  %v11932_v41 = vstv %s10594_s26  ;;  %s10605_s26 = sld [smem:[#allocation6 + $0x1f]] }
 0x203   :  { %v604_v33 = vsel %vm332_vm1, %v11880_v26, 0.0 }
 0x204   :  { %v591_v35 = vpop.permute.xlu1 %590 }
 0x205   :  { %v11882_v25 = vadd.f32 %v591_v35, %v575_v38  ;;  %735 = vrot.lane.b32.xlu0 %v727_v4, %s11520_s7  ;;  %v791_v35 = vmul.f32 %v788_v18, %v11707_v20  ;;  %v826_v38 = vmul.f32 %v824_v22, %v11729_v28 }
 0x207   :  { %v605_v29 = vsel %vm334_vm0, %v11882_v25, 0.0 }
 0x208   :  { %v569_v55 = vpop.permute.xlu1 %568  ;;  %v606_v50 = vadd.f32 %v605_v29, %v604_v33 }
 0x209   :  { %v577_v24 = vadd.f32 %v569_v55, %v551_v52  ;;  %737 = vrot.lane.b32.xlu0 %v728_v6, %s11520_s7  ;;  %v851_v55 = vmul.f32 %v11932_v41, %v11734_v30  ;;  %v852_v52 = vmul.f32 %v11932_v41, %v11729_v28 }
 0x20c   :  { %v595_v45 = vpop.permute.xlu1 %594 }
 0x20d   :  { %v11888_v47 = vadd.f32 %v595_v45, %v577_v24  ;;  %739 = vrot.lane.b32.xlu0 %v729_v8, %s11520_s7  ;;  %v854_v24 = vmul.f32 %v11932_v41, %v11752_v37  ;;  %v382_v45 = vstv %s381_s28 }
 0x20e   :  { %v384_v33 = vmul.f32 %v382_v45, %v11840_v56  ;;  %v385_v29 = vmul.f32 %v382_v45, %v11842_v57 }
 0x20f   :  { %v609_v61 = vsel %vm334_vm0, %v11888_v47, 0.0 }
 0x211   :  { %741 = vrot.lane.b32.xlu0 %v730_v10, %s11520_s7 }
 0x215   :  { %771 = vrot.lane.b32.xlu0 %v763_v12, %s11519_s24 }
 0x219   :  { %773 = vrot.lane.b32.xlu0 %v764_v15, %s11519_s24 }
 0x21d   :  { %797 = vrot.lane.b32.xlu0 %v789_v32, %s11520_s7 }
 0x221   :  { %777 = vrot.lane.b32.xlu0 %v766_v31, %s11519_s24 }
 0x268   :  { %v370_v27 = vpop.xlane.xlu0 %369 }
 0x269   :  { %v371_v43 = vrot.slane %v370_v27, 4 }
 0x26b   :  { %v372_v44 = vadd.f32 %v371_v43, %v370_v27 }
 0x26c   :  { %v593_v40 = vpop.permute.xlu0 %592 }
 0x26d   :  { %v11890_v48 = vadd.f32 %v593_v40, %v576_v46  ;;  %v373_v49 = vrot.slane %v372_v44, 2  ;;  %v383_v46 = vmul.f32 %v382_v45, %v11838_v54  ;;  %v1273_v54 = vlaneseq }
 0x26f   :  { %v607_v53 = vsel %vm332_vm1, %v11890_v48, 0.0  ;;  %v374_v59 = vadd.f32 %v373_v49, %v372_v44  ;;  %v386_v44 = vmul.f32 %v382_v45, %v11844_v58  ;;  %v397_v49 = vstv %s396_s29 }
 0x270   :  { %v608_v60 = vadd.f32 %v607_v53, %v606_v50 }
 0x271   :  { %v375_v62 = vrot.slane %v374_v59, 1 }
 0x272   :  { %v610_v2 = vadd.f32 %v609_v61, %v608_v60 }
 0x273   :  { %v376_v5 = vadd.f32 %v375_v62, %v374_v59 }
 0x274   :  { %611 = vadd.xlane.f32.xlu1 %v610_v2  ;;  %v11522_v2 = vmov 1983009808  }
 0x275   :  { %11160 = vpush %v376_v5  ;;  %v1271_v4 = vunpack.c.l.s4 %v11522_v2 }
 0x277   :  { %v1272_v12 = vunpack.c.0.s8 %v1271_v4 }
 0x285   :  { %715 = vrot.lane.b32.xlu1 %v704_v13, %s11519_s24  ;;  %v11958_v13 = vshrl.u32 %v1273_v54, 7 }
 0x287   :  { %v11961_v15 = vsub.s32 %v1272_v12, %v11958_v13 }
 0x289   :  { %775 = vrot.lane.b32.xlu1 %v765_v17, %s11519_s24 }
 0x28d   :  { %799 = vrot.lane.b32.xlu1 %v790_v21, %s11520_s7 }
 0x291   :  { %801 = vrot.lane.b32.xlu1 %v791_v35, %s11520_s7 }
 0x295   :  { %803 = vrot.lane.b32.xlu1 %v792_v19, %s11520_s7 }
 0x299   :  { %833 = vrot.lane.b32.xlu1 %v825_v36, %s11519_s24 }
 0x29d   :  { %835 = vrot.lane.b32.xlu1 %v826_v38, %s11519_s24 }
 0x2a1   :  { %837 = vrot.lane.b32.xlu1 %v827_v39, %s11519_s24 }
 0x2a5   :  { %859 = vrot.lane.b32.xlu1 %v851_v55, %s11520_s7 }
 0x2a6   :  { %s11161_s2 = spop %11160 }
 0x2a7   :  { %s380_s27 = smul.f32 0.0025510204, %s11161_s2  ;;  %s10606_s2 = sld [smem:[#allocation6 + $0x20]] }
 0x2a9   :  { %s387_s8 = sadd.f32 1e-05, %s380_s27  ;;  %861 = vrot.lane.b32.xlu1 %v852_v52, %s11520_s7 }
 0x2ab   :  { %v388_v27 = vstv %s387_s8 }
 0x2ac   :  { %11330 = vrsqrt.f32 %v388_v27 }
 0x2ad   :  { %839 = vrot.lane.b32.xlu1 %v828_v42, %s11519_s24 }
 0x2b1   :  { %865 = vrot.lane.b32.xlu1 %v854_v24, %s11520_s7 }
 0x2b9   :  { %v11331_v43 = vpop.eup %11330 }
 0x2ba   :  { %11162 = vpush %v11331_v43 }
 0x2eb   :  { %s11163_s30 = spop %11162 }
 0x2ec   :  { %v391_v40 = vstv %s11163_s30 }
 0x2ed   :  { %v392_v50 = vmul.f32 %v391_v40, %v383_v46  ;;  %v393_v51 = vmul.f32 %v391_v40, %v384_v33  ;;  %v394_v53 = vmul.f32 %v391_v40, %v385_v29  ;;  %v395_v59 = vmul.f32 %v391_v40, %v386_v44 }
 0x2ef   :  { %v398_v60 = vadd.f32 %v397_v49, %v392_v50  ;;  %v399_v61 = vadd.f32 %v397_v49, %v393_v51  ;;  %v400_v62 = vadd.f32 %v397_v49, %v394_v53  ;;  %v401_v63 = vadd.f32 %v397_v49, %v395_v59 }
 0x2f1   :  { %v402_v5 = vmul.f32 0.5, %v398_v60  ;;  %v403_v56 = vmul.f32 0.5, %v399_v61  ;;  %v404_v6 = vmul.f32 0.5, %v400_v62  ;;  %v405_v57 = vmul.f32 0.5, %v401_v63  ;;  %v710_v63 = vpop.permute.xlu0 %709 }
 0x2f2   :  { %v853_v62 = vmul.f32 %v11932_v41, %v11743_v34 }
 0x2f3   :  { %vm406_vm2 = vcmp.ge.f32.partialorder %v402_v5, 1.0  ;;  %vm407_vm3 = vcmp.ge.f32.partialorder %v403_v56, 1.0  ;;  %vm408_vm4 = vcmp.ge.f32.partialorder %v404_v6, 1.0  ;;  %vm409_vm5 = vcmp.ge.f32.partialorder %v405_v57, 1.0 }
 0x2f4   :  { %v10567_v58 = vsel %vm406_vm2, 1.0, %v11521_v7  ;;  %v10568_v8 = vsel %vm407_vm3, 1.0, %v11521_v7  ;;  %v10569_v10 = vsel %vm408_vm4, 1.0, %v11521_v7  ;;  %v10570_v11 = vsel %vm409_vm5, 1.0, %v11521_v7 }
 0x2f5   :  { %418 = vst.msk [vmem:[#allocation2] sm:$0xff] %vm332_vm1, %v10567_v58  ;;  %420 = vst.msk [vmem:[#allocation2 + $0x40] sm:$0xff] %vm332_vm1, %v10569_v10  ;;  %v712_v2 = vpop.permute.xlu0 %711  ;;  %v11995_v10 = vstv %s10602_s17  ;;  %s10581_s17 = sld [smem:[#allocation12 + $0x1]]  ;;  %vm4604_vm5 = vcmask 1043459  }
 0x2f6   :  { %419 = vst.msk [vmem:[#allocation2 + $0x8] sm:$0x3f] %vm334_vm0, %v10568_v8  ;;  %421 = vst.msk [vmem:[#allocation2 + $0x48] sm:$0x3f] %vm334_vm0, %v10570_v11  ;;  %v972_v11 = vmul.f32 %v11995_v10, %v11664_v1  ;;  %v973_v12 = vmul.f32 %v11995_v10, %v11669_v3 }
 0x2f9   :  { %v714_v54 = vpop.permute.xlu0 %713 }
 0x2fc   :  { %v1235_v17 = vld [vmem:[#allocation2] sm:$0xff] }
 0x2fd   :  { %v612_v18 = vpop.xlane.xlu1 %611  ;;  %v1269_v21 = vcombine.high %v1235_v17, %v1235_v17  ;;  %v1276_v32 = vrot.slane %v1235_v17, %v11961_v15  ;;  %v736_v56 = vpop.permute.xlu0 %735  ;;  %v694_v17 = vstv %s10586_s18  ;;  %s10601_s18 = sld [smem:[#allocation6 + $0x1b]] }
 0x2fe   :  { %v613_v31 = vrot.slane %v612_v18, 4 }
 0x2ff   :  { %v1283_v35 = vrot.slane %v1269_v21, %v11961_v15  ;;  %v1284_v19 = vcombine.high %v1276_v32, %v1276_v32  ;;  %v695_v21 = vmul.f32 %v694_v17, %v11664_v1 }
 0x300   :  { %v614_v22 = vadd.f32 %v613_v31, %v612_v18 }
 0x301   :  { %v1285_v36 = vcombine.high %v1283_v35, %v1283_v35  ;;  %v1533_v38 = vcombine.low %v1276_v32, %v1284_v19  ;;  %v716_v4 = vpop.permute.xlu1 %715  ;;  %v738_v57 = vpop.permute.xlu0 %737  ;;  %v696_v32 = vmul.f32 %v694_v17, %v11669_v3  ;;  %v721_v19 = vadd.f32 %v710_v63, %v695_v21 }
 0x302   :  { %v615_v39 = vrot.slane %v614_v22, 2 }
 0x303   :  { %v1534_v55 = vcombine.low %v1283_v35, %v1285_v36  ;;  %v1541_v42 = vrot.slane %v1533_v38, %v11961_v15  ;;  %v752_v36 = vstv %s10589_s19  ;;  %v698_v38 = vmul.f32 %v694_v17, %v11680_v9  ;;  %s10604_s19 = sld [smem:[#allocation6 + $0x1e]] }
 0x304   :  { %v616_v52 = vadd.f32 %v615_v39, %v614_v22  ;;  %v722_v22 = vadd.f32 %v712_v2, %v696_v32  ;;  %v697_v39 = vmul.f32 %v694_v17, %v11659_v0  ;;  %v754_v1 = vmul.f32 %v752_v36, %v11693_v14 }
 0x305   :  { %v1548_v27 = vrot.slane %v1534_v55, %v11961_v15  ;;  %v776_v5 = vpop.permute.xlu1 %775  ;;  %v740_v8 = vpop.permute.xlu0 %739  ;;  %v755_v9 = vmul.f32 %v752_v36, %v11707_v20 }
 0x306   :  { %v617_v24 = vrot.slane %v616_v52, 1 }
 0x307   :  { %v1549_v43 = vcombine.low %v1541_v42, %v1548_v27  ;;  %v748_v42 = vadd.f32 %v738_v57, %v722_v22  ;;  %v753_v27 = vmul.f32 %v752_v36, %v11698_v16 }
 0x308   :  { %v618_v45 = vadd.f32 %v617_v24, %v616_v52  ;;  %v747_v52 = vadd.f32 %v736_v56, %v721_v19  ;;  %v724_v24 = vadd.f32 %v716_v4, %v698_v38 }
 0x309   :  { %10911 = vmatprep.mubr.msk.f32.mxu0 %vm332_vm1, %v1549_v43  ;;  %v800_v6 = vpop.permute.xlu1 %799  ;;  %v742_v18 = vpop.permute.xlu0 %741  ;;  %v723_v43 = vadd.f32 %v714_v54, %v697_v39 }
 0x30a   :  { %11164 = vpush %v618_v45  ;;  %v757_v45 = vadd.f32 %v753_v27, %v747_v52 }
 0x30d   :  { %v802_v58 = vpop.permute.xlu1 %801  ;;  %v772_v35 = vpop.permute.xlu0 %771 }
 0x311   :  { %v804_v41 = vpop.permute.xlu1 %803  ;;  %v774_v3 = vpop.permute.xlu0 %773 }
 0x315   :  { %v834_v31 = vpop.permute.xlu1 %833  ;;  %v798_v0 = vpop.permute.xlu0 %797 }
 0x319   :  { %v836_v55 = vpop.permute.xlu1 %835 }
 0x33b   :  { %s11165_s5 = spop %11164 }
 0x33c   :  { %s622_s16 = smul.f32 0.0025510204, %s11165_s5  ;;  %s11525_s5 = smov 7  }
 0x33e   :  { %v623_v46 = vstv %s622_s16  ;;  %s10580_s16 = sld [smem:[#allocation10 + $0x1]] }
 0x33f   :  { %v11969_v33 = vsub.f32 %v11880_v26, %v623_v46  ;;  %v11972_v29 = vsub.f32 %v11882_v25, %v623_v46  ;;  %v11975_v44 = vsub.f32 %v11890_v48, %v623_v46  ;;  %v11978_v40 = vsub.f32 %v11888_v47, %v623_v46 }
 0x340   :  { %v758_v46 = vadd.f32 %v754_v1, %v748_v42 }
 0x341   :  { %v628_v49 = vmul.f32 %v11969_v33, %v11969_v33  ;;  %v629_v50 = vmul.f32 %v11972_v29, %v11972_v29  ;;  %v630_v51 = vmul.f32 %v11975_v44, %v11975_v44  ;;  %v631_v26 = vmul.f32 %v11978_v40, %v11978_v40 }
 0x343   :  { %v632_v25 = vsel %vm332_vm1, %v628_v49, 0.0  ;;  %v633_v48 = vsel %vm334_vm0, %v629_v50, 0.0  ;;  %v635_v47 = vsel %vm332_vm1, %v630_v51, 0.0  ;;  %v637_v60 = vsel %vm334_vm0, %v631_v26, 0.0  ;;  %v838_v49 = vpop.permute.xlu1 %837 }
 0x344   :  { %v634_v53 = vadd.f32 %v633_v48, %v632_v25  ;;  %v750_v50 = vadd.f32 %v742_v18, %v724_v24  ;;  %v756_v51 = vmul.f32 %v752_v36, %v11716_v23  ;;  %v749_v26 = vadd.f32 %v740_v8, %v723_v43 }
 0x345   :  { %v783_v25 = vadd.f32 %v772_v35, %v757_v45  ;;  %v784_v48 = vadd.f32 %v774_v3, %v758_v46  ;;  %v997_v43 = vstv %s10603_s3  ;;  %v12042_v46 = vld [vmem:[%s14179_s0] sm:$0xff]  ;;  %s10608_s3 = sld [smem:[#allocation6 + $0x22]] }
 0x346   :  { %v636_v59 = vadd.f32 %v635_v47, %v634_v53  ;;  %v814_v53 = vstv %s10592_s1  ;;  %v760_v16 = vadd.f32 %v756_v51, %v750_v50  ;;  %v12049_v51 = vld [vmem:[%s14179_s0 + $0x8] sm:$0x3f]  ;;  %s10607_s1 = sld [smem:[#allocation6 + $0x21]] }
 0x347   :  { %v815_v14 = vmul.f32 %v814_v53, %v11734_v30  ;;  %v860_v47 = vpop.permute.xlu1 %859  ;;  %v816_v63 = vmul.f32 %v814_v53, %v11729_v28  ;;  %v818_v57 = vmul.f32 %v814_v53, %v11752_v37  ;;  %v817_v8 = vmul.f32 %v814_v53, %v11743_v34  ;;  %v1252_v53 = vld [vmem:[%s14183_s4 + $0x8] sm:$0x3f] }
 0x348   :  { %v638_v61 = vadd.f32 %v637_v60, %v636_v59  ;;  %v778_v59 = vpop.permute.xlu0 %777  ;;  %v759_v60 = vadd.f32 %v755_v9, %v749_v26  ;;  %v999_v9 = vmul.f32 %v12049_v51, %v997_v43  ;;  %v12058_v26 = vld [vmem:[%s14179_s0 + $0x18] sm:$0x3f]  ;;  %10907 = vmatprep.subr.msk.mxu0 %vm1799_vm6, %v1252_v53  ;;  %10933 = vmatpush3.msk.msra.mxu1 %vm1799_vm6, %v1252_v53 }
 0x349   :  { %v786_v2 = vadd.f32 %v778_v59, %v760_v16  ;;  %v1251_v16 = vld [vmem:[%s14183_s4] sm:$0xff]  ;;  %v975_v59 = vmul.f32 %v12058_v26, %v11995_v10  ;;  %10908 = vmatpush3.msk.msra.mxu0 %vm1799_vm6, %v1252_v53  ;;  %10934 = vmatprep.subr.mxu1 %v11521_v7  ;;  %vm4606_vm6 = vcmask 1045509  }
 0x34a   :  { %639 = vadd.xlane.f32.xlu0 %v638_v61  ;;  %v810_v61 = vadd.f32 %v800_v6, %v784_v48  ;;  %v785_v4 = vadd.f32 %v776_v5, %v759_v60  ;;  %v1033_v48 = vstv %s10605_s26  ;;  %10909 = vmatprep.subr.mxu0 %v1251_v16  ;;  %v12082_v60 = vld [vmem:[%s14179_s0 + $0x11] sm:$0xff] }
 0x34b   :  { %v862_v20 = vpop.permute.xlu1 %861  ;;  %v812_v56 = vadd.f32 %v804_v41, %v786_v2  ;;  %10935 = vmatpush3.msra.mxu1 %v1251_v16  ;;  %10910 = vmatpush3.msra.mxu0 %v1251_v16 }
 0x34c   :  { %v820_v54 = vadd.f32 %v816_v63, %v810_v61  ;;  %v1036_v61 = vmul.f32 %v12082_v60, %v1033_v48  ;;  %v1059_v63 = vstv %s10606_s2 }
 0x34d   :  { %v822_v18 = vadd.f32 %v818_v57, %v812_v56  ;;  %v1095_v57 = vstv %s10608_s3 }
 0x34e   :  { %v846_v30 = vadd.f32 %v836_v55, %v820_v54  ;;  %v12030_v55 = vld [vmem:[%s14179_s0 + $0x10] sm:$0xff] }
 0x34f   :  { %v840_v17 = vpop.permute.xlu1 %839  ;;  %v974_v52 = vmul.f32 %v12030_v55, %v11995_v10  ;;  %v12088_v10 = vld [vmem:[%s14179_s0 + $0x9] sm:$0x3f] }
 0x350   :  { %v12017_v32 = vadd.f32 %v862_v20, %v846_v30  ;;  %v848_v5 = vadd.f32 %v840_v17, %v822_v18  ;;  %v1061_v2 = vmul.f32 %v12088_v10, %v1059_v63  ;;  %v1062_v20 = vmul.f32 %v12082_v60, %v1059_v63  ;;  %v12125_v17 = vld [vmem:[%s14179_s0 + $0x12] sm:$0xff] }
 0x351   :  { %v1098_v18 = vmul.f32 %v12125_v17, %v1095_v57 }
 0x352   :  { %v876_v34 = vsel %vm334_vm0, %v12017_v32, 0.0 }
 0x353   :  { %v866_v19 = vpop.permute.xlu1 %865 }
 0x360   :  { %863 = vrot.lane.b32.xlu0 %v853_v62, %s11520_s7  ;;  %v809_v62 = vadd.f32 %v798_v0, %v783_v25  ;;  %v1000_v0 = vmul.f32 %v12030_v55, %v997_v43  ;;  %v1001_v25 = vmul.f32 %v12058_v26, %v997_v43 }
 0x362   :  { %v819_v23 = vadd.f32 %v815_v14, %v809_v62  ;;  %v12071_v14 = vld [vmem:[%s14179_s0 + $0x1] sm:$0xff]  ;;  %v1035_v62 = vmul.f32 %v12088_v10, %v1033_v48 }
 0x364   :  { %980 = vrot.lane.b32.xlu0 %v972_v11, %s11519_s24  ;;  %v811_v11 = vadd.f32 %v802_v58, %v785_v4  ;;  %v1060_v4 = vmul.f32 %v12071_v14, %v1059_v63 }
 0x366   :  { %v821_v21 = vadd.f32 %v817_v8, %v811_v11  ;;  %v12111_v8 = vld [vmem:[%s14179_s0 + $0x2] sm:$0xff] }
 0x367   :  { %v1096_v11 = vmul.f32 %v12111_v8, %v1095_v57 }
 0x368   :  { %982 = vrot.lane.b32.xlu0 %v973_v12, %s11519_s24  ;;  %v845_v12 = vadd.f32 %v834_v31, %v819_v23  ;;  %v847_v22 = vadd.f32 %v838_v49, %v821_v21  ;;  %v12023_v31 = vadd.f32 %v866_v19, %v848_v5  ;;  %v998_v49 = vmul.f32 %v12042_v46, %v997_v43  ;;  %v12099_v23 = vld [vmem:[%s14179_s0 + $0x19] sm:$0x3f] }
 0x369   :  { %v1037_v54 = vmul.f32 %v12099_v23, %v1033_v48  ;;  %v1063_v56 = vmul.f32 %v12099_v23, %v1059_v63  ;;  %v12128_v21 = vstv %s10609_s23 }
 0x36a   :  { %v12015_v6 = vadd.f32 %v860_v47, %v845_v12  ;;  %v880_v3 = vsel %vm334_vm0, %v12023_v31, 0.0  ;;  %v1034_v47 = vmul.f32 %v12071_v14, %v1033_v48  ;;  %v12118_v12 = vld [vmem:[%s14179_s0 + $0xa] sm:$0x3f] }
 0x36b   :  { %v1097_v30 = vmul.f32 %v12118_v12, %v1095_v57  ;;  %v1123_v5 = vmul.f32 %v12118_v12, %v12128_v21 }
 0x36c   :  { %v875_v37 = vsel %vm332_vm1, %v12015_v6, 0.0  ;;  %984 = vrot.lane.b32.xlu0 %v974_v52, %s11519_s24 }
 0x36d   :  { %v877_v39 = vadd.f32 %v876_v34, %v875_v37 }
 0x370   :  { %1006 = vrot.lane.b32.xlu0 %v998_v49, %s11520_s7 }
 0x374   :  { %1008 = vrot.lane.b32.xlu0 %v999_v9, %s11520_s7 }
 0x378   :  { %1010 = vrot.lane.b32.xlu0 %v1000_v0, %s11520_s7  ;;  %v1236_v0 = vld [vmem:[#allocation2 + $0x8] sm:$0x3f] }
 0x37c   :  { %1012 = vrot.lane.b32.xlu0 %v1001_v25, %s11520_s7 }
 0x380   :  { %1042 = vrot.lane.b32.xlu0 %v1034_v47, %s11519_s24 }
 0x384   :  { %1044 = vrot.lane.b32.xlu0 %v1035_v62, %s11519_s24 }
 0x388   :  { %1068 = vrot.lane.b32.xlu0 %v1060_v4, %s11520_s7 }
 0x38c   :  { %1048 = vrot.lane.b32.xlu0 %v1037_v54, %s11519_s24 }
 0x3d3   :  { %v640_v28 = vpop.xlane.xlu0 %639 }
 0x3d4   :  { %v641_v35 = vrot.slane %v640_v28, 4 }
 0x3d6   :  { %v642_v58 = vadd.f32 %v641_v35, %v640_v28  ;;  %v1122_v28 = vmul.f32 %v12111_v8, %v12128_v21  ;;  %v12140_v35 = vld [vmem:[%s14179_s0 + $0x1a] sm:$0x3f] }
 0x3d7   :  { %v864_v41 = vpop.permute.xlu0 %863  ;;  %v1099_v19 = vmul.f32 %v12140_v35, %v1095_v57  ;;  %v1125_v37 = vmul.f32 %v12140_v35, %v12128_v21 }
 0x3d8   :  { %v12025_v36 = vadd.f32 %v864_v41, %v847_v22  ;;  %v643_v38 = vrot.slane %v642_v58, 2 }
 0x3da   :  { %v878_v42 = vsel %vm332_vm1, %v12025_v36, 0.0  ;;  %v644_v27 = vadd.f32 %v643_v38, %v642_v58  ;;  %v652_v58 = vstv %s10580_s16  ;;  %s11526_s16 = smov 21  }
 0x3db   :  { %v879_v1 = vadd.f32 %v878_v42, %v877_v39  ;;  %v653_v41 = vmul.f32 %v652_v58, %v11969_v33  ;;  %v654_v38 = vmul.f32 %v652_v58, %v11972_v29  ;;  %v655_v39 = vmul.f32 %v652_v58, %v11975_v44 }
 0x3dc   :  { %v645_v24 = vrot.slane %v644_v27, 1  ;;  %v656_v52 = vmul.f32 %v652_v58, %v11978_v40  ;;  %v1293_v44 = vrot.slane %v1236_v0, %v11961_v15 }
 0x3dd   :  { %v881_v45 = vadd.f32 %v880_v3, %v879_v1 }
 0x3de   :  { %v646_v50 = vadd.f32 %v645_v24, %v644_v27  ;;  %v667_v27 = vstv %s10581_s17  ;;  %s11527_s17 = smov 56  }
 0x3df   :  { %882 = vadd.xlane.f32.xlu1 %v881_v45 }
 0x3e0   :  { %11166 = vpush %v646_v50 }
 0x3f0   :  { %986 = vrot.lane.b32.xlu1 %v975_v59, %s11519_s24  ;;  %v1286_v59 = vcombine.high %v1236_v0, %v1236_v0 }
 0x3f2   :  { %v1300_v63 = vrot.slane %v1286_v59, %v11961_v15  ;;  %v1124_v59 = vmul.f32 %v12125_v17, %v12128_v21 }
 0x3f4   :  { %1046 = vrot.lane.b32.xlu1 %v1036_v61, %s11519_s24  ;;  %v1301_v61 = vcombine.high %v1293_v44, %v1293_v44 }
 0x3f8   :  { %1070 = vrot.lane.b32.xlu1 %v1061_v2, %s11520_s7  ;;  %v1550_v2 = vcombine.low %v1293_v44, %v1301_v61  ;;  %v981_v61 = vpop.permute.xlu0 %980 }
 0x3fc   :  { %1072 = vrot.lane.b32.xlu1 %v1062_v20, %s11520_s7 }
 0x400   :  { %1074 = vrot.lane.b32.xlu1 %v1063_v56, %s11520_s7 }
 0x404   :  { %1104 = vrot.lane.b32.xlu1 %v1096_v11, %s11519_s24 }
 0x408   :  { %1106 = vrot.lane.b32.xlu1 %v1097_v30, %s11519_s24 }
 0x40c   :  { %1108 = vrot.lane.b32.xlu1 %v1098_v18, %s11519_s24 }
 0x410   :  { %1130 = vrot.lane.b32.xlu1 %v1122_v28, %s11520_s7 }
 0x411   :  { %s11167_s8 = spop %11166 }
 0x412   :  { %s650_s28 = smul.f32 0.0025510204, %s11167_s8 }
 0x414   :  { %s657_s29 = sadd.f32 1e-05, %s650_s28  ;;  %1132 = vrot.lane.b32.xlu1 %v1123_v5, %s11520_s7 }
 0x415   :  { %s10610_s28 = sld [smem:[#allocation10 + $0x3]] }
 0x416   :  { %v658_v22 = vstv %s657_s29  ;;  %s10611_s29 = sld [smem:[#allocation12 + $0x3]] }
 0x417   :  { %11332 = vrsqrt.f32 %v658_v22 }
 0x418   :  { %1110 = vrot.lane.b32.xlu1 %v1099_v19, %s11519_s24 }
 0x41c   :  { %1136 = vrot.lane.b32.xlu1 %v1125_v37, %s11520_s7 }
 0x424   :  { %v11333_v34 = vpop.eup %11332 }
 0x425   :  { %11168 = vpush %v11333_v34  ;;  %v1558_v34 = vrot.slane %v1550_v2, %v11961_v15 }
 0x456   :  { %s11169_s0 = spop %11168 }
 0x457   :  { %v661_v42 = vstv %s11169_s0  ;;  %s11528_s0 = smov 35  }
 0x458   :  { %v662_v1 = vmul.f32 %v661_v42, %v653_v41  ;;  %v663_v3 = vmul.f32 %v661_v42, %v654_v38  ;;  %v664_v24 = vmul.f32 %v661_v42, %v655_v39  ;;  %v665_v43 = vmul.f32 %v661_v42, %v656_v52 }
 0x45a   :  { %v668_v45 = vadd.f32 %v667_v27, %v662_v1  ;;  %v669_v49 = vadd.f32 %v667_v27, %v663_v3  ;;  %v670_v50 = vadd.f32 %v667_v27, %v664_v24  ;;  %v671_v9 = vadd.f32 %v667_v27, %v665_v43 }
 0x45c   :  { %v672_v25 = vmul.f32 0.5, %v668_v45  ;;  %v673_v33 = vmul.f32 0.5, %v669_v49  ;;  %v674_v48 = vmul.f32 0.5, %v670_v50  ;;  %v675_v29 = vmul.f32 0.5, %v671_v9 }
 0x45e   :  { %vm676_vm7 = vcmp.ge.f32.partialorder %v672_v25, 1.0  ;;  %vm677_vm8 = vcmp.ge.f32.partialorder %v673_v33, 1.0  ;;  %vm678_vm9 = vcmp.ge.f32.partialorder %v674_v48, 1.0  ;;  %vm679_vm10 = vcmp.ge.f32.partialorder %v675_v29, 1.0 }
 0x45f   :  { %v10582_v40 = vsel %vm676_vm7, 1.0, %v11521_v7  ;;  %v10583_v53 = vsel %vm677_vm8, 1.0, %v11521_v7  ;;  %v10584_v16 = vsel %vm678_vm9, 1.0, %v11521_v7  ;;  %v10585_v47 = vsel %vm679_vm10, 1.0, %v11521_v7 }
 0x460   :  { %689 = vst.msk [vmem:[#allocation2 + $0x10] sm:$0xff] %vm332_vm1, %v10582_v40  ;;  %691 = vst.msk [vmem:[#allocation2 + $0x50] sm:$0xff] %vm332_vm1, %v10584_v16  ;;  %vm4608_vm7 = vcmask 1047559   ;;  %vm4611_vm8 = vcmask 50176   ;;  %vm5146_vm9 = vcmask 1043456   ;;  %vm4623_vm10 = vcmask 107576  }
 0x461   :  { %690 = vst.msk [vmem:[#allocation2 + $0x18] sm:$0x3f] %vm334_vm0, %v10583_v53  ;;  %692 = vst.msk [vmem:[#allocation2 + $0x58] sm:$0x3f] %vm334_vm0, %v10585_v47 }
 0x467   :  { %v1237_v62 = vld [vmem:[#allocation2 + $0x10] sm:$0xff] }
 0x468   :  { %v1238_v4 = vld [vmem:[#allocation2 + $0x18] sm:$0x3f]  ;;  %v883_v54 = vpop.xlane.xlu1 %882  ;;  %v1309_v20 = vrot.slane %v1237_v62, %v11961_v15  ;;  %v1302_v56 = vcombine.high %v1237_v62, %v1237_v62  ;;  %v983_v62 = vpop.permute.xlu0 %982 }
 0x469   :  { %v1326_v57 = vrot.slane %v1238_v4, %v11961_v15  ;;  %v1319_v11 = vcombine.high %v1238_v4, %v1238_v4  ;;  %v884_v30 = vrot.slane %v883_v54, 4 }
 0x46a   :  { %v1551_v18 = vcombine.low %v1300_v63, %v1309_v20  ;;  %v1316_v28 = vrot.slane %v1302_v56, %v11961_v15  ;;  %v1317_v5 = vcombine.high %v1309_v20, %v1309_v20 }
 0x46b   :  { %v885_v19 = vadd.f32 %v884_v30, %v883_v54  ;;  %v1333_v22 = vrot.slane %v1319_v11, %v11961_v15  ;;  %v1334_v37 = vcombine.high %v1326_v57, %v1326_v57 }
 0x46c   :  { %v1565_v58 = vrot.slane %v1551_v18, %v11961_v15  ;;  %v1318_v41 = vcombine.high %v1316_v28, %v1316_v28  ;;  %v1567_v38 = vcombine.low %v1317_v5, %v1316_v28  ;;  %v987_v63 = vpop.permute.xlu1 %986  ;;  %v985_v2 = vpop.permute.xlu0 %984  ;;  %v965_v18 = vstv %s10601_s18  ;;  %s11531_s18 = smov 70  }
 0x46d   :  { %v886_v39 = vrot.slane %v885_v19, 2  ;;  %v12167_v52 = vcombine.low %v1334_v37, %v1333_v22  ;;  %v966_v5 = vmul.f32 %v12042_v46, %v965_v18  ;;  %v967_v21 = vmul.f32 %v12049_v51, %v965_v18 }
 0x46e   :  { %v1566_v42 = vcombine.low %v1558_v34, %v1565_v58  ;;  %v1568_v27 = vcombine.low %v1318_v41, %v1326_v57  ;;  %v1575_v3 = vrot.slane %v1567_v38, %v11961_v15  ;;  %v1023_v58 = vstv %s10604_s19  ;;  %s11532_s19 = smov 28  }
 0x46f   :  { %v887_v1 = vadd.f32 %v886_v39, %v885_v19  ;;  %v992_v37 = vadd.f32 %v981_v61, %v966_v5  ;;  %v993_v34 = vadd.f32 %v983_v62, %v967_v21  ;;  %v969_v41 = vmul.f32 %v12058_v26, %v965_v18 }
 0x470   :  { %10912 = vmatmul.mubr.msk.f32.vlgmr.msra.gmra.mxu0 %vm332_vm1, %v1566_v42  ;;  %v1582_v24 = vrot.slane %v1568_v27, %v11961_v15  ;;  %v1047_v4 = vpop.permute.xlu1 %1046  ;;  %v1007_v54 = vpop.permute.xlu0 %1006  ;;  %v968_v38 = vmul.f32 %v12030_v55, %v965_v18  ;;  %v1026_v26 = vmul.f32 %v12082_v60, %v1023_v58 }
 0x471   :  { %v888_v43 = vrot.slane %v887_v1, 1  ;;  %v1018_v42 = vadd.f32 %v1007_v54, %v992_v37 }
 0x472   :  { %v1583_v45 = vcombine.low %v1575_v3, %v1582_v24  ;;  %v1025_v3 = vmul.f32 %v12088_v10, %v1023_v58  ;;  %v995_v24 = vadd.f32 %v987_v63, %v969_v41  ;;  %v994_v51 = vadd.f32 %v985_v2, %v968_v38 }
 0x473   :  { %v889_v49 = vadd.f32 %v888_v43, %v887_v1  ;;  %v1024_v1 = vmul.f32 %v12071_v14, %v1023_v58 }
 0x474   :  { %10914 = vmatprep.mubr.msk.f32.mxu0 %vm332_vm1, %v1583_v45  ;;  %v1071_v20 = vpop.permute.xlu1 %1070  ;;  %v1009_v56 = vpop.permute.xlu0 %1008 }
 0x475   :  { %11170 = vpush %v889_v49  ;;  %v1019_v27 = vadd.f32 %v1009_v56, %v993_v34  ;;  %v1028_v43 = vadd.f32 %v1024_v1, %v1018_v42 }
 0x477   :  { %v1029_v45 = vadd.f32 %v1025_v3, %v1019_v27 }
 0x478   :  { %v1073_v57 = vpop.permute.xlu1 %1072  ;;  %v1011_v11 = vpop.permute.xlu0 %1010 }
 0x47c   :  { %v1075_v30 = vpop.permute.xlu1 %1074  ;;  %v1013_v28 = vpop.permute.xlu0 %1012 }
 0x480   :  { %v1105_v19 = vpop.permute.xlu1 %1104  ;;  %v1043_v22 = vpop.permute.xlu0 %1042 }
 0x484   :  { %v1107_v39 = vpop.permute.xlu1 %1106  ;;  %v1045_v46 = vpop.permute.xlu0 %1044 }
 0x488   :  { %v1109_v49 = vpop.permute.xlu1 %1108  ;;  %v1069_v55 = vpop.permute.xlu0 %1068 }
 0x4a6   :  { %s11171_s24 = spop %11170 }
 0x4a7   :  { %s893_s4 = smul.f32 0.0025510204, %s11171_s24  ;;  %s11529_s24 = smov 42  }
 0x4a9   :  { %v894_v50 = vstv %s893_s4  ;;  %s11530_s4 = smov 14  }
 0x4aa   :  { %v12174_v9 = vsub.f32 %v12015_v6, %v894_v50  ;;  %v12177_v0 = vsub.f32 %v12017_v32, %v894_v50  ;;  %v12180_v25 = vsub.f32 %v12025_v36, %v894_v50  ;;  %v12183_v33 = vsub.f32 %v12023_v31, %v894_v50 }
 0x4ab   :  { %v1021_v50 = vadd.f32 %v1013_v28, %v995_v24 }
 0x4ac   :  { %v899_v48 = vmul.f32 %v12174_v9, %v12174_v9  ;;  %v900_v29 = vmul.f32 %v12177_v0, %v12177_v0  ;;  %v901_v44 = vmul.f32 %v12180_v25, %v12180_v25  ;;  %v902_v6 = vmul.f32 %v12183_v33, %v12183_v33 }
 0x4ae   :  { %v903_v32 = vsel %vm332_vm1, %v899_v48, 0.0  ;;  %v904_v36 = vsel %vm334_vm0, %v900_v29, 0.0  ;;  %v906_v31 = vsel %vm332_vm1, %v901_v44, 0.0  ;;  %v908_v16 = vsel %vm334_vm0, %v902_v6, 0.0 }
 0x4af   :  { %v905_v40 = vadd.f32 %v904_v36, %v903_v32  ;;  %v1027_v48 = vmul.f32 %v12099_v23, %v1023_v58  ;;  %v1020_v29 = vadd.f32 %v1011_v11, %v994_v51  ;;  %v1054_v44 = vadd.f32 %v1043_v22, %v1028_v43  ;;  %v1131_v36 = vpop.permute.xlu1 %1130 }
 0x4b0   :  { %v1055_v6 = vadd.f32 %v1045_v46, %v1029_v45  ;;  %v1085_v32 = vstv %s10607_s1  ;;  %s11533_s1 = smov 84  }
 0x4b1   :  { %v907_v53 = vadd.f32 %v906_v31, %v905_v40  ;;  %v1031_v14 = vadd.f32 %v1027_v48, %v1021_v50  ;;  %v1086_v10 = vmul.f32 %v12111_v8, %v1085_v32  ;;  %v1049_v40 = vpop.permute.xlu0 %1048  ;;  %v1030_v31 = vadd.f32 %v1026_v26, %v1020_v29 }
 0x4b2   :  { %v1089_v2 = vmul.f32 %v12140_v35, %v1085_v32  ;;  %v1088_v54 = vmul.f32 %v12125_v17, %v1085_v32 }
 0x4b3   :  { %v909_v47 = vadd.f32 %v908_v16, %v907_v53  ;;  %v1081_v53 = vadd.f32 %v1071_v20, %v1055_v6  ;;  %v1080_v16 = vadd.f32 %v1069_v55, %v1054_v44  ;;  %v1056_v61 = vadd.f32 %v1047_v4, %v1030_v31  ;;  %v1133_v60 = vpop.permute.xlu1 %1132 }
 0x4b5   :  { %910 = vadd.xlane.f32.xlu0 %v909_v47  ;;  %v1087_v47 = vmul.f32 %v12118_v12, %v1085_v32  ;;  %v1090_v23 = vadd.f32 %v1086_v10, %v1080_v16  ;;  %v1082_v56 = vadd.f32 %v1073_v57, %v1056_v61 }
 0x4b7   :  { %v1091_v62 = vadd.f32 %v1087_v47, %v1081_v53  ;;  %v1116_v11 = vadd.f32 %v1105_v19, %v1090_v23  ;;  %v1111_v18 = vpop.permute.xlu1 %1110  ;;  %v1092_v5 = vadd.f32 %v1088_v54, %v1082_v56  ;;  %v923_v23 = vstv %s10595_s13  ;;  %s11537_s13 = smov 119  }
 0x4b8   :  { %v938_v56 = vstv %s10596_s22  ;;  %s11538_s22 = smov 63  }
 0x4b9   :  { %v1117_v8 = vadd.f32 %v1107_v39, %v1091_v62  ;;  %v12212_v20 = vadd.f32 %v1131_v36, %v1116_v11  ;;  %v1118_v34 = vadd.f32 %v1109_v49, %v1092_v5  ;;  %v924_v62 = vmul.f32 %v923_v23, %v12174_v9 }
 0x4bb   :  { %v12214_v21 = vadd.f32 %v1133_v60, %v1117_v8  ;;  %v1137_v37 = vpop.permute.xlu1 %1136  ;;  %v1146_v35 = vsel %vm332_vm1, %v12212_v20, 0.0  ;;  %v925_v60 = vmul.f32 %v923_v23, %v12177_v0 }
 0x4bd   :  { %v1147_v17 = vsel %vm334_vm0, %v12214_v21, 0.0 }
 0x4be   :  { %v1148_v38 = vadd.f32 %v1147_v17, %v1146_v35 }
 0x4cb   :  { %1134 = vrot.lane.b32.xlu0 %v1124_v59, %s11520_s7  ;;  %v1057_v59 = vadd.f32 %v1049_v40, %v1031_v14 }
 0x4cd   :  { %v1083_v63 = vadd.f32 %v1075_v30, %v1057_v59 }
 0x4cf   :  { %v1093_v28 = vadd.f32 %v1089_v2, %v1083_v63  ;;  %v926_v63 = vmul.f32 %v923_v23, %v12180_v25  ;;  %v927_v2 = vmul.f32 %v923_v23, %v12183_v33 }
 0x4d1   :  { %v1119_v4 = vadd.f32 %v1111_v18, %v1093_v28 }
 0x4d3   :  { %v12220_v19 = vadd.f32 %v1137_v37, %v1119_v4 }
 0x4d5   :  { %v1151_v1 = vsel %vm334_vm0, %v12220_v19, 0.0 }
 0x530   :  { %v10913_v51 = vpop.f32.mrf.mxu0 }
 0x531   :  { %v1976_v48 = vrot.slane %v10913_v51, %v11961_v15  ;;  %v1969_v6 = vcombine.high %v10913_v51, %v10913_v51 }
 0x532   :  { %v1869_v43 = vpop.f32.mrf.mxu0 }
 0x533   :  { %v1952_v45 = vcombine.high %v1869_v43, %v1869_v43  ;;  %v1959_v50 = vrot.slane %v1869_v43, %v11961_v15  ;;  %v1984_v29 = vcombine.high %v1976_v48, %v1976_v48  ;;  %v12233_v36 = vrot.slane %v1969_v6, %v11961_v15 }
 0x535   :  { %v1966_v49 = vrot.slane %v1952_v45, %v11961_v15  ;;  %v1967_v55 = vcombine.high %v1959_v50, %v1959_v50  ;;  %v2207_v14 = vcombine.low %v1976_v48, %v1984_v29  ;;  %v2221_v16 = vrot.slane %v12233_v36, %v11961_v15 }
 0x537   :  { %v1968_v26 = vcombine.high %v1966_v49, %v1966_v49  ;;  %v2190_v32 = vcombine.low %v1959_v50, %v1967_v55  ;;  %v2214_v31 = vrot.slane %v2207_v14, %v11961_v15  ;;  %v1592_v50 = vrot.slane %v12167_v52, %v11961_v15 }
 0x539   :  { %v2191_v44 = vcombine.low %v1966_v49, %v1968_v26  ;;  %v2198_v40 = vrot.slane %v2190_v32, %v11961_v15  ;;  %v2222_v47 = vcombine.low %v2214_v31, %v2221_v16 }
 0x53b   :  { %v2205_v10 = vrot.slane %v2191_v44, %v11961_v15 }
 0x53d   :  { %v2206_v53 = vcombine.low %v2198_v40, %v2205_v10 }
 0x53e   :  { %v911_v12 = vpop.xlane.xlu0 %910 }
 0x53f   :  { %v912_v22 = vrot.slane %v911_v12, 4 }
 0x541   :  { %v913_v57 = vadd.f32 %v912_v22, %v911_v12 }
 0x542   :  { %v1135_v30 = vpop.permute.xlu0 %1134 }
 0x543   :  { %v12222_v58 = vadd.f32 %v1135_v30, %v1118_v34  ;;  %v914_v41 = vrot.slane %v913_v57, 2 }
 0x545   :  { %v1149_v39 = vsel %vm332_vm1, %v12222_v58, 0.0  ;;  %v915_v42 = vadd.f32 %v914_v41, %v913_v57 }
 0x546   :  { %v1150_v27 = vadd.f32 %v1149_v39, %v1148_v38 }
 0x547   :  { %v916_v3 = vrot.slane %v915_v42, 1 }
 0x548   :  { %v1152_v46 = vadd.f32 %v1151_v1, %v1150_v27 }
 0x549   :  { %v917_v24 = vadd.f32 %v916_v3, %v915_v42 }
 0x54a   :  { %1153 = vadd.xlane.f32.xlu1 %v1152_v46 }
 0x54b   :  { %11172 = vpush %v917_v24 }
 0x57c   :  { %s11173_s3 = spop %11172 }
 0x57d   :  { %s921_s20 = smul.f32 0.0025510204, %s11173_s3  ;;  %2470 = vxpose.xlu1.b32.start [1/2] (short) (narrow) %v2206_v53, 8  ;;  %s11534_s3 = smov 49  }
 0x57f   :  { %s928_s21 = sadd.f32 1e-05, %s921_s20  ;;  %s11535_s20 = smov 98  }
 0x581   :  { %v929_v59 = vstv %s928_s21  ;;  %2471 = vxpose.xlu1.b32.end [2/2] (short) (narrow) %v2222_v47, 8  ;;  %s11536_s21 = smov 105  }
 0x582   :  { %11334 = vrsqrt.f32 %v929_v59 }
 0x58f   :  { %v11335_v61 = vpop.eup %11334 }
 0x590   :  { %11174 = vpush %v11335_v61 }
 0x5c1   :  { %s11175_s23 = spop %11174 }
 0x5c2   :  { %v932_v54 = vstv %s11175_s23  ;;  %s11540_s23 = smov 26  }
 0x5c3   :  { %v933_v11 = vmul.f32 %v932_v54, %v924_v62  ;;  %v934_v8 = vmul.f32 %v932_v54, %v925_v60  ;;  %v935_v18 = vmul.f32 %v932_v54, %v926_v63  ;;  %v936_v28 = vmul.f32 %v932_v54, %v927_v2 }
 0x5c5   :  { %v939_v5 = vadd.f32 %v938_v56, %v933_v11  ;;  %v940_v12 = vadd.f32 %v938_v56, %v934_v8  ;;  %v941_v4 = vadd.f32 %v938_v56, %v935_v18  ;;  %v942_v22 = vadd.f32 %v938_v56, %v936_v28 }
 0x5c6   :  { %v1985_v8 = vcombine.high %v12233_v36, %v12233_v36 }
 0x5c7   :  { %v943_v37 = vmul.f32 0.5, %v939_v5  ;;  %v944_v34 = vmul.f32 0.5, %v940_v12  ;;  %v945_v9 = vmul.f32 0.5, %v941_v4  ;;  %v946_v35 = vmul.f32 0.5, %v942_v22 }
 0x5c9   :  { %vm947_vm11 = vcmp.ge.f32.partialorder %v943_v37, 1.0  ;;  %vm948_vm12 = vcmp.ge.f32.partialorder %v944_v34, 1.0  ;;  %vm949_vm13 = vcmp.ge.f32.partialorder %v945_v9, 1.0  ;;  %vm950_vm14 = vcmp.ge.f32.partialorder %v946_v35, 1.0 }
 0x5ca   :  { %v10597_v0 = vsel %vm947_vm11, 1.0, %v11521_v7  ;;  %v10598_v25 = vsel %vm948_vm12, 1.0, %v11521_v7  ;;  %v10599_v33 = vsel %vm949_vm13, 1.0, %v11521_v7  ;;  %v10600_v17 = vsel %vm950_vm14, 1.0, %v11521_v7 }
 0x5cb   :  { %960 = vst.msk [vmem:[#allocation2 + $0x20] sm:$0xff] %vm332_vm1, %v10597_v0  ;;  %962 = vst.msk [vmem:[#allocation2 + $0x60] sm:$0xff] %vm332_vm1, %v10599_v33  ;;  %vm4637_vm11 = vcmask 164976   ;;  %vm4649_vm12 = vcmask 222376   ;;  %vm4677_vm13 = vcmask 279776   ;;  %vm4689_vm14 = vcmask 337176  }
 0x5cc   :  { %961 = vst.msk [vmem:[#allocation2 + $0x28] sm:$0x3f] %vm334_vm0, %v10598_v25  ;;  %963 = vst.msk [vmem:[#allocation2 + $0x68] sm:$0x3f] %vm334_vm0, %v10600_v17 }
 0x5d2   :  { %v1239_v57 = vld [vmem:[#allocation2 + $0x20] sm:$0xff] }
 0x5d3   :  { %v12251_v30 = vld [vmem:[#allocation2 + $0x28] sm:$0x3f]  ;;  %v1154_v41 = vpop.xlane.xlu1 %1153  ;;  %v1342_v38 = vrot.slane %v1239_v57, %v11961_v15  ;;  %v1335_v39 = vcombine.high %v1239_v57, %v1239_v57 }
 0x5d4   :  { %v1359_v42 = vrot.slane %v12251_v30, %v11961_v15  ;;  %v1155_v27 = vrot.slane %v1154_v41, 4 }
 0x5d5   :  { %v1350_v1 = vcombine.high %v1342_v38, %v1342_v38  ;;  %v1349_v3 = vrot.slane %v1335_v39, %v11961_v15 }
 0x5d6   :  { %v1367_v46 = vcombine.high %v1359_v42, %v1359_v42  ;;  %v1156_v24 = vadd.f32 %v1155_v27, %v1154_v41 }
 0x5d7   :  { %v1585_v51 = vcombine.low %v1342_v38, %v1350_v1  ;;  %v1351_v43 = vcombine.high %v1349_v3, %v1349_v3 }
 0x5d8   :  { %v1602_v45 = vcombine.low %v1359_v42, %v1367_v46  ;;  %v1157_v49 = vrot.slane %v1156_v24, 2  ;;  %v1194_v46 = vstv %s10610_s28  ;;  %s11546_s28 = smov 54  }
 0x5d9   :  { %v1599_v48 = vrot.slane %v1585_v51, %v11961_v15  ;;  %v1601_v26 = vcombine.low %v1349_v3, %v1351_v43 }
 0x5da   :  { %v1158_v55 = vadd.f32 %v1157_v49, %v1156_v24  ;;  %v1616_v6 = vrot.slane %v1602_v45, %v11961_v15  ;;  %v1243_v49 = vld [vmem:[#allocation2 + $0x40] sm:$0xff] }
 0x5db   :  { %v1600_v29 = vcombine.low %v1592_v50, %v1599_v48  ;;  %v1609_v44 = vrot.slane %v1601_v26, %v11961_v15  ;;  %v1209_v48 = vstv %s10611_s29  ;;  %s11547_s29 = smov 19  }
 0x5dc   :  { %v1159_v32 = vrot.slane %v1158_v55, 1 }
 0x5dd   :  { %10915 = vmatmul.mubr.msk.f32.gmra.mxu0 %vm332_vm1, %v1600_v29  ;;  %v1617_v14 = vcombine.low %v1609_v44, %v1616_v6  ;;  %v1401_v6 = vcombine.high %v1243_v49, %v1243_v49 }
 0x5de   :  { %v1160_v10 = vadd.f32 %v1159_v32, %v1158_v55  ;;  %v1408_v32 = vrot.slane %v1243_v49, %v11961_v15  ;;  %v1248_v49 = vld [vmem:[#allocation2 + $0x68] sm:$0x3f] }
 0x5df   :  { %10917 = vmatprep.mubr.msk.f32.mxu0 %vm332_vm1, %v1617_v14 }
 0x5e0   :  { %11176 = vpush %v1160_v10 }
 0x611   :  { %s11177_s25 = spop %11176 }
 0x612   :  { %s1164_s26 = smul.f32 0.0025510204, %s11177_s25  ;;  %s11541_s25 = smov 5  }
 0x614   :  { %v1165_v52 = vstv %s1164_s26  ;;  %s11542_s26 = smov 12  }
 0x615   :  { %v1166_v40 = vsub.f32 %v12212_v20, %v1165_v52  ;;  %v1167_v31 = vsub.f32 %v12214_v21, %v1165_v52  ;;  %v1168_v53 = vsub.f32 %v12222_v58, %v1165_v52  ;;  %v1169_v16 = vsub.f32 %v12220_v19, %v1165_v52 }
 0x617   :  { %v1170_v47 = vmul.f32 %v1166_v40, %v1166_v40  ;;  %v1171_v59 = vmul.f32 %v1167_v31, %v1167_v31  ;;  %v1172_v61 = vmul.f32 %v1168_v53, %v1168_v53  ;;  %v1173_v23 = vmul.f32 %v1169_v16, %v1169_v16 }
 0x618   :  { %v1195_v24 = vmul.f32 %v1194_v46, %v1166_v40  ;;  %v1196_v51 = vmul.f32 %v1194_v46, %v1167_v31  ;;  %v1197_v43 = vmul.f32 %v1194_v46, %v1168_v53  ;;  %v1198_v45 = vmul.f32 %v1194_v46, %v1169_v16 }
 0x619   :  { %v1174_v62 = vsel %vm332_vm1, %v1170_v47, 0.0  ;;  %v1175_v60 = vsel %vm334_vm0, %v1171_v59, 0.0  ;;  %v1177_v2 = vsel %vm332_vm1, %v1172_v61, 0.0  ;;  %v1179_v20 = vsel %vm334_vm0, %v1173_v23, 0.0  ;;  %v1244_v23 = vld [vmem:[#allocation2 + $0x48] sm:$0x3f] }
 0x61a   :  { %v1176_v63 = vadd.f32 %v1175_v60, %v1174_v62  ;;  %v1415_v16 = vrot.slane %v1401_v6, %v11961_v15  ;;  %v1416_v61 = vcombine.high %v1408_v32, %v1408_v32 }
 0x61c   :  { %v1178_v54 = vadd.f32 %v1177_v2, %v1176_v63 }
 0x61e   :  { %v1180_v56 = vadd.f32 %v1179_v20, %v1178_v54  ;;  %v1245_v54 = vld [vmem:[#allocation2 + $0x50] sm:$0xff]  ;;  %v1417_v20 = vcombine.high %v1415_v16, %v1415_v16 }
 0x620   :  { %1181 = vadd.xlane.f32.xlu0 %v1180_v56  ;;  %v1418_v56 = vcombine.high %v1244_v23, %v1244_v23 }
 0x69d   :  { %v12272_v21 = vpop.f32.mrf.mxu0 }
 0x69e   :  { %v2010_v18 = vrot.slane %v12272_v21, %v11961_v15 }
 0x69f   :  { %v1879_v58 = vpop.f32.mrf.mxu0 }
 0x6a0   :  { %v1986_v19 = vcombine.high %v1879_v58, %v1879_v58  ;;  %v1993_v11 = vrot.slane %v1879_v58, %v11961_v15  ;;  %v2018_v37 = vcombine.high %v2010_v18, %v2010_v18  ;;  %v1425_v58 = vrot.slane %v1244_v23, %v11961_v15 }
 0x6a2   :  { %v2000_v28 = vrot.slane %v1986_v19, %v11961_v15  ;;  %v2001_v5 = vcombine.high %v1993_v11, %v1993_v11  ;;  %v2223_v12 = vcombine.low %v1985_v8, %v1993_v11  ;;  %v2254_v36 = vrot.slane %v2018_v37, %v11961_v15  ;;  %v1246_v37 = vld [vmem:[#allocation2 + $0x58] sm:$0x3f] }
 0x6a3   :  { %v12295_v19 = vcombine.low %v1408_v32, %v1416_v61  ;;  %v1352_v11 = vcombine.high %v12251_v30, %v12251_v30  ;;  %v1441_v8 = vrot.slane %v1245_v54, %v11961_v15 }
 0x6a4   :  { %v2002_v4 = vcombine.high %v2000_v28, %v2000_v28  ;;  %v2224_v22 = vcombine.low %v2001_v5, %v2000_v28  ;;  %v2231_v9 = vrot.slane %v2223_v12, %v11961_v15  ;;  %v1247_v28 = vld [vmem:[#allocation2 + $0x60] sm:$0xff]  ;;  %v12300_v5 = vcombine.low %v1415_v16, %v1417_v20 }
 0x6a5   :  { %v1432_v12 = vrot.slane %v1418_v56, %v11961_v15  ;;  %v1449_v6 = vcombine.high %v1441_v8, %v1441_v8  ;;  %v1484_v20 = vcombine.high %v1248_v49, %v1248_v49 }
 0x6a6   :  { %v2240_v34 = vcombine.low %v2002_v4, %v2010_v18  ;;  %v2238_v35 = vrot.slane %v2224_v22, %v11961_v15  ;;  %v1434_v18 = vcombine.high %v1245_v54, %v1245_v54  ;;  %v1433_v4 = vcombine.high %v1425_v58, %v1425_v58 }
 0x6a7   :  { %v1660_v22 = vrot.slane %v12295_v19, %v11961_v15 }
 0x6a8   :  { %v2239_v0 = vcombine.low %v2231_v9, %v2238_v35  ;;  %v2247_v25 = vrot.slane %v2240_v34, %v11961_v15  ;;  %v1366_v9 = vrot.slane %v1352_v11, %v11961_v15  ;;  %v1448_v30 = vrot.slane %v1434_v18, %v11961_v15 }
 0x6a9   :  { %v1182_v33 = vpop.xlane.xlu0 %1181 }
 0x6aa   :  { %v1183_v17 = vrot.slane %v1182_v33, 4  ;;  %2502 = vxpose.xlu0.b32.start [1/2] (short) (narrow) %v2239_v0, 8  ;;  %v2255_v41 = vcombine.low %v2247_v25, %v2254_v36  ;;  %v1670_v0 = vcombine.low %v1432_v12, %v1441_v8  ;;  %v1467_v25 = vcombine.high %v1247_v28, %v1247_v28 }
 0x6ac   :  { %v1184_v57 = vadd.f32 %v1183_v17, %v1182_v33 }
 0x6ae   :  { %2503 = vxpose.xlu0.b32.end [2/2] (short) (narrow) %v2255_v41, 8  ;;  %v1185_v38 = vrot.slane %v1184_v57, 2  ;;  %v1667_v41 = vrot.slane %v12300_v5, %v11961_v15 }
 0x6b0   :  { %v1186_v39 = vadd.f32 %v1185_v38, %v1184_v57  ;;  %v1669_v38 = vcombine.low %v1425_v58, %v1433_v4  ;;  %v1668_v5 = vcombine.low %v1660_v22, %v1667_v41 }
 0x6b2   :  { %v1187_v42 = vrot.slane %v1186_v39, 1  ;;  %v1677_v18 = vrot.slane %v1669_v38, %v11961_v15 }
 0x6b4   :  { %v1188_v27 = vadd.f32 %v1187_v42, %v1186_v39  ;;  %v1458_v39 = vrot.slane %v1246_v37, %v11961_v15  ;;  %v1474_v42 = vrot.slane %v1247_v28, %v11961_v15 }
 0x6b6   :  { %11178 = vpush %v1188_v27  ;;  %v1482_v32 = vcombine.high %v1474_v42, %v1474_v42 }
 0x6b8   :  { %v1704_v54 = vcombine.low %v1474_v42, %v1482_v32 }
 0x6e7   :  { %s11179_s2 = spop %11178 }
 0x6e8   :  { %s1192_s27 = smul.f32 0.0025510204, %s11179_s2  ;;  %s11543_s2 = smov 91  }
 0x6ea   :  { %s1199_s8 = sadd.f32 1e-05, %s1192_s27  ;;  %s11544_s27 = smov 40  }
 0x6ec   :  { %v1200_v1 = vstv %s1199_s8  ;;  %s11545_s8 = smov 112  }
 0x6ed   :  { %11336 = vrsqrt.f32 %v1200_v1 }
 0x6fa   :  { %v11337_v3 = vpop.eup %11336 }
 0x6fb   :  { %11180 = vpush %v11337_v3 }
 0x72c   :  { %s11181_s30 = spop %11180 }
 0x72d   :  { %v1203_v50 = vstv %s11181_s30  ;;  %s11548_s30 = smov 33  }
 0x72e   :  { %v1204_v26 = vmul.f32 %v1203_v50, %v1195_v24  ;;  %v1205_v55 = vmul.f32 %v1203_v50, %v1196_v51  ;;  %v1206_v29 = vmul.f32 %v1203_v50, %v1197_v43  ;;  %v1207_v44 = vmul.f32 %v1203_v50, %v1198_v45 }
 0x72f   :  { %v1450_v43 = vcombine.high %v1448_v30, %v1448_v30  ;;  %v1451_v45 = vcombine.high %v1246_v37, %v1246_v37  ;;  %v1481_v50 = vrot.slane %v1467_v25, %v11961_v15 }
 0x730   :  { %v1210_v14 = vadd.f32 %v1209_v48, %v1204_v26  ;;  %v1211_v10 = vadd.f32 %v1209_v48, %v1205_v55  ;;  %v1212_v52 = vadd.f32 %v1209_v48, %v1206_v29  ;;  %v1213_v47 = vadd.f32 %v1209_v48, %v1207_v44 }
 0x731   :  { %v1684_v55 = vrot.slane %v1670_v0, %v11961_v15  ;;  %v1483_v16 = vcombine.high %v1481_v50, %v1481_v50 }
 0x732   :  { %v1214_v59 = vmul.f32 0.5, %v1210_v14  ;;  %v1215_v40 = vmul.f32 0.5, %v1211_v10  ;;  %v1216_v31 = vmul.f32 0.5, %v1212_v52  ;;  %v1217_v53 = vmul.f32 0.5, %v1213_v47 }
 0x733   :  { %v1720_v4 = vcombine.low %v1481_v50, %v1483_v16 }
 0x734   :  { %vm1218_vm15 = vcmp.ge.f32.partialorder %v1214_v59, 1.0  ;;  %vm1219_vm2 = vcmp.ge.f32.partialorder %v1215_v40, 1.0  ;;  %vm1220_vm3 = vcmp.ge.f32.partialorder %v1216_v31, 1.0  ;;  %vm1221_vm4 = vcmp.ge.f32.partialorder %v1217_v53, 1.0 }
 0x735   :  { %v10612_v62 = vsel %vm1218_vm15, 1.0, %v11521_v7  ;;  %v10613_v60 = vsel %vm1219_vm2, 1.0, %v11521_v7  ;;  %v10614_v63 = vsel %vm1220_vm3, 1.0, %v11521_v7  ;;  %v10615_v2 = vsel %vm1221_vm4, 1.0, %v11521_v7 }
 0x736   :  { %1231 = vst.msk [vmem:[#allocation2 + $0x30] sm:$0xff] %vm332_vm1, %v10612_v62  ;;  %1233 = vst.msk [vmem:[#allocation2 + $0x70] sm:$0xff] %vm332_vm1, %v10614_v63  ;;  %v1491_v59 = vrot.slane %v1248_v49, %v11961_v15  ;;  %v1687_v40 = vcombine.low %v1450_v43, %v1458_v39  ;;  %v1465_v31 = vrot.slane %v1451_v45, %v11961_v15  ;;  %v11523_v49 = vmov 1966171168  }
 0x737   :  { %1232 = vst.msk [vmem:[#allocation2 + $0x38] sm:$0x3f] %vm334_vm0, %v10613_v60  ;;  %1234 = vst.msk [vmem:[#allocation2 + $0x78] sm:$0x3f] %vm334_vm0, %v10615_v2  ;;  %v1466_v53 = vcombine.high %v1458_v39, %v1458_v39  ;;  %v1686_v2 = vcombine.low %v1449_v6, %v1448_v30  ;;  %v1728_v41 = vrot.slane %v1720_v4, %v11961_v15  ;;  %v2736_v50 = vunpack.c.l.s4 %v11523_v49 }
 0x738   :  { %v1499_v19 = vcombine.high %v1491_v59, %v1491_v59  ;;  %v1701_v12 = vrot.slane %v1687_v40, %v11961_v15  ;;  %vm11524_vm0 = vmmov 0   ;;  %vm4703_vm15 = vcmask 394576  }
 0x739   :  { %v1703_v28 = vcombine.low %v1466_v53, %v1465_v31  ;;  %v1694_v30 = vrot.slane %v1686_v2, %v11961_v15  ;;  %10936 = vmatprep.mubr.msk.f32.mxu1 %vm11524_vm0, %v11521_v7  ;;  %vm4731_vm2 = vcmask 451976   ;;  %vm4743_vm3 = vcmask 509376  }
 0x73a   :  { %v1721_v25 = vcombine.low %v1491_v59, %v1499_v19  ;;  %vm4757_vm4 = vcmask 566776  }
 0x73b   :  { %v1711_v22 = vrot.slane %v1703_v28, %v11961_v15 }
 0x73d   :  { %v1241_v34 = vld [vmem:[#allocation2 + $0x30] sm:$0xff] }
 0x73e   :  { %v1242_v35 = vld [vmem:[#allocation2 + $0x38] sm:$0x3f]  ;;  %v1368_v33 = vcombine.high %v1241_v34, %v1241_v34  ;;  %v1375_v36 = vrot.slane %v1241_v34, %v11961_v15  ;;  %v1249_v27 = vld [vmem:[#allocation2 + $0x70] sm:$0xff]  ;;  %v1685_v34 = vcombine.low %v1677_v18, %v1684_v55  ;;  %v2518_v55 = vpop.trf.xlu0 }
 0x73f   :  { %v1385_v17 = vcombine.high %v1242_v35, %v1242_v35  ;;  %v1392_v57 = vrot.slane %v1242_v35, %v11961_v15  ;;  %v1500_v29 = vcombine.high %v1249_v27, %v1249_v27  ;;  %v1507_v14 = vrot.slane %v1249_v27, %v11961_v15  ;;  %v1250_v61 = vld [vmem:[#allocation2 + $0x78] sm:$0x3f] }
 0x740   :  { %v1382_v1 = vrot.slane %v1368_v33, %v11961_v15  ;;  %v1383_v3 = vcombine.high %v1375_v36, %v1375_v36  ;;  %v1618_v46 = vcombine.low %v1366_v9, %v1375_v36  ;;  %v1517_v11 = vcombine.high %v1250_v61, %v1250_v61 }
 0x741   :  { %v1399_v24 = vrot.slane %v1385_v17, %v11961_v15  ;;  %v1400_v51 = vcombine.high %v1392_v57, %v1392_v57  ;;  %v1514_v63 = vrot.slane %v1500_v29, %v11961_v15  ;;  %v1515_v56 = vcombine.high %v1507_v14, %v1507_v14 }
 0x742   :  { %v1619_v48 = vcombine.low %v1383_v3, %v1382_v1  ;;  %v1384_v26 = vcombine.high %v1382_v1, %v1382_v1  ;;  %v1626_v10 = vrot.slane %v1618_v46, %v11961_v15  ;;  %v1524_v8 = vrot.slane %v1250_v61, %v11961_v15 }
 0x743   :  { %v1636_v44 = vcombine.low %v1400_v51, %v1399_v24  ;;  %v1516_v37 = vcombine.high %v1514_v63, %v1514_v63  ;;  %v1718_v9 = vrot.slane %v1704_v54, %v11961_v15  ;;  %v1498_v35 = vrot.slane %v1484_v20, %v11961_v15 }
 0x744   :  { %v1633_v52 = vrot.slane %v1619_v48, %v11961_v15  ;;  %v1635_v47 = vcombine.low %v1384_v26, %v1392_v57  ;;  %v1738_v0 = vcombine.low %v1515_v56, %v1514_v63  ;;  %v1531_v33 = vrot.slane %v1517_v11, %v11961_v15 }
 0x745   :  { %v1650_v60 = vrot.slane %v1636_v44, %v11961_v15  ;;  %v1532_v36 = vcombine.high %v1524_v8, %v1524_v8  ;;  %v1737_v17 = vcombine.low %v1498_v35, %v1507_v14  ;;  %v1702_v57 = vcombine.low %v1694_v30, %v1701_v12 }
 0x746   :  { %v1634_v23 = vcombine.low %v1626_v10, %v1633_v52  ;;  %v1643_v62 = vrot.slane %v1635_v47, %v11961_v15  ;;  %v1754_v38 = vcombine.low %v1516_v37, %v1524_v8  ;;  %v1719_v39 = vcombine.low %v1711_v22, %v1718_v9  ;;  %v2486_v52 = vpop.trf.xlu1 }
 0x747   :  { %v1752_v42 = vrot.slane %v1738_v0, %v11961_v15  ;;  %v1735_v27 = vrot.slane %v1721_v25, %v11961_v15  ;;  %v1755_v1 = vcombine.low %v1532_v36, %v1531_v33  ;;  %v1745_v3 = vrot.slane %v1737_v17, %v11961_v15 }
 0x748   :  { %10918 = vmatmul.mubr.msk.f32.gmra.mxu0 %vm332_vm1, %v1634_v23  ;;  %v1651_v58 = vcombine.low %v1643_v62, %v1650_v60  ;;  %v1762_v24 = vrot.slane %v1754_v38, %v11961_v15  ;;  %v2737_v48 = vunpack.c.0.s8 %v2736_v50  ;;  %v2003_v47 = vcombine.high %v12272_v21, %v12272_v21 }
 0x749   :  { %v1736_v46 = vcombine.low %v1728_v41, %v1735_v27  ;;  %v1753_v51 = vcombine.low %v1745_v3, %v1752_v42  ;;  %v1769_v43 = vrot.slane %v1755_v1, %v11961_v15  ;;  %v2734_v59 = vcombine.high %v2486_v52, %v2486_v52 }
 0x74a   :  { %10920 = vmatprep.mubr.msk.f32.mxu0 %vm332_vm1, %v1651_v58  ;;  %v12349_v26 = vsub.s32 %v2737_v48, %v11958_v13  ;;  %v2017_v31 = vrot.slane %v2003_v47, %v11961_v15  ;;  %v2782_v60 = vcombine.high %v2518_v55, %v2518_v55 }
 0x74b   :  { %v1770_v45 = vcombine.low %v1762_v24, %v1769_v43 }
 0x74c   :  { %10921 = vmatmul.mubr.msk.f32.gmra.mxu0 %vm332_vm1, %v1668_v5  ;;  %v2789_v29 = vrot.slane %v2518_v55, %v12349_v26  ;;  %v2741_v40 = vrot.slane %v2486_v52, %v12349_v26  ;;  %v2748_v53 = vrot.slane %v2734_v59, %v12349_v26  ;;  %v2019_v61 = vcombine.high %v2017_v31, %v2017_v31 }
 0x74d   :  { %10923 = vmatprep.mubr.msk.f32.mxu0 %vm332_vm1, %v1685_v34  ;;  %v12369_v8 = vrot.slane %v2782_v60, %v12349_v26 }
 0x74e   :  { %v2797_v44 = vcombine.high %v2789_v29, %v2789_v29  ;;  %v2805_v6 = vrot.slane %v2789_v29, %v12349_v26  ;;  %v2749_v16 = vcombine.high %v2741_v40, %v2741_v40  ;;  %v2750_v23 = vcombine.high %v2748_v53, %v2748_v53 }
 0x74f   :  { %v2764_v62 = vrot.slane %v2748_v53, %v12349_v26  ;;  %v2757_v21 = vrot.slane %v2741_v40, %v12349_v26  ;;  %v2256_v56 = vcombine.low %v2017_v31, %v2019_v61  ;;  %v12379_v36 = vrot.slane %v12369_v8, %v12349_v26 }
 0x750   :  { %10924 = vmatmul.mubr.msk.f32.gmra.mxu0 %vm332_vm1, %v1702_v57  ;;  %v2819_v32 = vrot.slane %v2797_v44, %v12349_v26  ;;  %v2827_v14 = vcombine.high %v2805_v6, %v2805_v6  ;;  %v2771_v20 = vrot.slane %v2749_v16, %v12349_v26  ;;  %v2778_v19 = vrot.slane %v2750_v23, %v12349_v26 }
 0x751   :  { %10926 = vmatprep.mubr.msk.f32.mxu0 %vm332_vm1, %v1719_v39  ;;  %v2780_v11 = vcombine.high %v2764_v62, %v2764_v62  ;;  %v2264_v25 = vrot.slane %v2256_v56, %v11961_v15 }
 0x752   :  { %v12354_v10 = vcombine.low %v2819_v32, %v2827_v14  ;;  %v3118_v37 = vcombine.low %v2757_v21, %v2771_v20  ;;  %v10631_v34 = vcombine.high %v2757_v21, %v2771_v20  ;;  %v3120_v33 = vcombine.low %v2764_v62, %v2778_v19 }
 0x753   :  { %v2829_v22 = vcombine.high %v2819_v32, %v2819_v32  ;;  %v12381_v17 = vcombine.low %v2780_v11, %v2805_v6 }
 0x754   :  { %10927 = vmatmul.mubr.msk.f32.gmra.mxu0 %vm332_vm1, %v1736_v46  ;;  %v12386_v3 = vrot.slane %v3118_v37, %v12349_v26  ;;  %v12389_v46 = vrot.slane %v10631_v34, %v12349_v26  ;;  %v12394_v48 = vrot.slane %v3120_v33, %v12349_v26  ;;  %v3177_v29 = vrot.slane %v12354_v10, %v12349_v26 }
 0x755   :  { %10929 = vmatprep.mubr.msk.f32.mxu0 %vm332_vm1, %v1753_v51  ;;  %v12397_v55 = vcombine.low %v2829_v22, %v12379_v36  ;;  %v3149_v52 = vrot.slane %v12381_v17, %v12349_v26 }
 0x758   :  { %10930 = vmatmul.mubr.msk.f32.gmra.mxu0 %vm332_vm1, %v1770_v45 }
 0x808   :  { %v10919_v63 = vpop.f32.mrf.mxu0 }
 0x809   :  { %v2037_v2 = vcombine.high %v10919_v63, %v10919_v63  ;;  %v12363_v54 = vrot.slane %v10919_v63, %v11961_v15 }
 0x80a   :  { %v1889_v58 = vpop.f32.mrf.mxu0 }
 0x80b   :  { %v2051_v18 = vrot.slane %v2037_v2, %v11961_v15  ;;  %v2020_v28 = vcombine.high %v1889_v58, %v1889_v58  ;;  %v2027_v5 = vrot.slane %v1889_v58, %v11961_v15  ;;  %v2052_v4 = vcombine.high %v12363_v54, %v12363_v54 }
 0x80c   :  { %v10922_v12 = vpop.f32.mrf.mxu0 }
 0x80d   :  { %v2035_v9 = vcombine.high %v2027_v5, %v2027_v5  ;;  %v2071_v35 = vcombine.high %v10922_v12, %v10922_v12  ;;  %v2078_v0 = vrot.slane %v10922_v12, %v11961_v15  ;;  %v2034_v57 = vrot.slane %v2020_v28, %v11961_v15 }
 0x80e   :  { %v1899_v30 = vpop.f32.mrf.mxu0  ;;  %v2053_v38 = vcombine.high %v2051_v18, %v2051_v18  ;;  %v2289_v1 = vcombine.low %v2052_v4, %v2051_v18  ;;  %v2287_v18 = vrot.slane %v12363_v54, %v11961_v15  ;;  %v3184_v12 = vrot.slane %v12397_v55, %v12349_v26 }
 0x80f   :  { %v2257_v41 = vcombine.low %v2027_v5, %v2035_v9  ;;  %v2061_v39 = vrot.slane %v1899_v30, %v11961_v15  ;;  %v2054_v27 = vcombine.high %v1899_v30, %v1899_v30  ;;  %v2085_v51 = vrot.slane %v2071_v35, %v11961_v15 }
 0x810   :  { %v10925_v42 = vpop.f32.mrf.mxu0  ;;  %v2086_v43 = vcombine.high %v2078_v0, %v2078_v0  ;;  %v2036_v44 = vcombine.high %v2034_v57, %v2034_v57  ;;  %v2297_v31 = vrot.slane %v2289_v1, %v11961_v15 }
 0x811   :  { %v2271_v24 = vrot.slane %v2257_v41, %v11961_v15  ;;  %v2290_v45 = vcombine.low %v2053_v38, %v2061_v39  ;;  %v2105_v50 = vcombine.high %v10925_v42, %v10925_v42  ;;  %v2068_v47 = vrot.slane %v2054_v27, %v11961_v15 }
 0x812   :  { %v1909_v49 = vpop.f32.mrf.mxu0  ;;  %v2069_v59 = vcombine.high %v2061_v39, %v2061_v39  ;;  %v2087_v53 = vcombine.high %v2085_v51, %v2085_v51  ;;  %v2322_v16 = vcombine.low %v2078_v0, %v2086_v43  ;;  %v2112_v61 = vrot.slane %v10925_v42, %v11961_v15 }
 0x813   :  { %v2088_v6 = vcombine.high %v1909_v49, %v1909_v49  ;;  %v2095_v32 = vrot.slane %v1909_v49, %v11961_v15  ;;  %v2272_v40 = vcombine.low %v2264_v25, %v2271_v24  ;;  %v2304_v62 = vrot.slane %v2290_v45, %v11961_v15 }
 0x814   :  { %v10928_v14 = vpop.f32.mrf.mxu0  ;;  %v2119_v60 = vrot.slane %v2105_v50, %v11961_v15  ;;  %v2273_v20 = vcombine.low %v2034_v57, %v2036_v44  ;;  %v2306_v28 = vcombine.low %v2069_v59, %v2068_v47  ;;  %v2323_v4 = vcombine.low %v2085_v51, %v2087_v53 }
 0x815   :  { %v2139_v63 = vcombine.high %v10928_v14, %v10928_v14  ;;  %v2146_v2 = vrot.slane %v10928_v14, %v11961_v15  ;;  %2534 = vxpose.xlu1.b32.start [1/2] (short) (narrow) %v2272_v40, 8  ;;  %v12411_v56 = vrot.slane %v2088_v6, %v11961_v15  ;;  %v2103_v58 = vcombine.high %v2095_v32, %v2095_v32 }
 0x816   :  { %v1919_v23 = vpop.f32.mrf.mxu0  ;;  %v2305_v19 = vcombine.low %v2297_v31, %v2304_v62  ;;  %v2330_v37 = vrot.slane %v2322_v16, %v11961_v15  ;;  %v2070_v34 = vcombine.high %v2068_v47, %v2068_v47  ;;  %v2120_v0 = vcombine.high %v2112_v61, %v2112_v61 }
 0x817   :  { %v2122_v21 = vcombine.high %v1919_v23, %v1919_v23  ;;  %v2129_v5 = vrot.slane %v1919_v23, %v11961_v15  ;;  %v2153_v30 = vrot.slane %v2139_v63, %v11961_v15  ;;  %v2154_v25 = vcombine.high %v2146_v2, %v2146_v2 }
 0x818   :  { %v10931_v11 = vpop.f32.mrf.mxu0  ;;  %2566 = vxpose.xlu0.b32.start [1/2] (short) (narrow) %v2305_v19, 8  ;;  %v2121_v33 = vcombine.high %v2119_v60, %v2119_v60  ;;  %v2104_v54 = vcombine.high %v12411_v56, %v12411_v56  ;;  %v2339_v22 = vcombine.low %v2095_v32, %v2103_v58  ;;  %v2353_v57 = vrot.slane %v12411_v56, %v11961_v15 }
 0x819   :  { %v2136_v9 = vrot.slane %v2122_v21, %v11961_v15  ;;  %v2280_v41 = vrot.slane %v2273_v20, %v11961_v15  ;;  %v2137_v38 = vcombine.high %v2129_v5, %v2129_v5  ;;  %v2313_v27 = vrot.slane %v2306_v28, %v11961_v15 }
 0x81a   :  { %v1929_v35 = vpop.f32.mrf.mxu0  ;;  %v2372_v24 = vcombine.low %v2121_v33, %v2129_v5  ;;  %v2320_v43 = vrot.slane %v2070_v34, %v11961_v15  ;;  %v2173_v45 = vcombine.high %v10931_v11, %v10931_v11  ;;  %v2180_v49 = vrot.slane %v10931_v11, %v11961_v15 }
 0x81b   :  { %v2156_v39 = vcombine.high %v1929_v35, %v1929_v35  ;;  %v12427_v42 = vrot.slane %v1929_v35, %v11961_v15  ;;  %v2138_v1 = vcombine.high %v2136_v9, %v2136_v9  ;;  %v2288_v51 = vcombine.low %v2280_v41, %v2287_v18 }
 0x81c   :  { %v2337_v55 = vrot.slane %v2323_v4, %v11961_v15  ;;  %v2321_v6 = vcombine.low %v2313_v27, %v2320_v43  ;;  %v2355_v32 = vcombine.low %v2104_v54, %v2112_v61  ;;  %v2356_v14 = vcombine.low %v2120_v0, %v2119_v60 }
 0x81d   :  { %v2170_v50 = vrot.slane %v2156_v39, %v11961_v15  ;;  %2535 = vxpose.xlu1.b32.end [2/2] (short) (narrow) %v2288_v51, 8  ;;  %v2171_v44 = vcombine.high %v12427_v42, %v12427_v42  ;;  %v2346_v47 = vrot.slane %v2339_v22, %v11961_v15  ;;  %v2155_v59 = vcombine.high %v2153_v30, %v2153_v30 }
 0x81e   :  { %v2389_v40 = vcombine.low %v2146_v2, %v2154_v25  ;;  %v2388_v53 = vcombine.low %v2136_v9, %v2138_v1  ;;  %2567 = vxpose.xlu0.b32.end [2/2] (short) (narrow) %v2321_v6, 8  ;;  %v2338_v16 = vcombine.low %v2330_v37, %v2337_v55  ;;  %v2363_v23 = vrot.slane %v2355_v32, %v11961_v15 }
 0x81f   :  { %v2172_v31 = vcombine.high %v2170_v50, %v2170_v50  ;;  %v2370_v62 = vrot.slane %v2356_v14, %v11961_v15  ;;  %v2379_v63 = vrot.slane %v2372_v24, %v11961_v15  ;;  %v2386_v21 = vrot.slane %v2137_v38, %v11961_v15 }
 0x820   :  { %v2187_v20 = vrot.slane %v2173_v45, %v11961_v15  ;;  %v2188_v60 = vcombine.high %v2180_v49, %v2180_v49  ;;  %v2421_v58 = vcombine.low %v2171_v44, %v2170_v50  ;;  %v2405_v2 = vcombine.low %v2153_v30, %v2155_v59 }
 0x821   :  { %v2422_v61 = vcombine.low %v2172_v31, %v2180_v49  ;;  %2598 = vxpose.xlu1.b32.start [1/2] (short) (narrow) %v2338_v16, 8  ;;  %v2371_v56 = vcombine.low %v2363_v23, %v2370_v62  ;;  %v3150_v19 = vcombine.low %v12386_v3, %v12389_v46  ;;  %v3151_v11 = vcombine.low %v12394_v48, %v3149_v52 }
 0x822   :  { %v2354_v18 = vcombine.low %v2346_v47, %v2353_v57  ;;  %v2396_v28 = vrot.slane %v2388_v53, %v11961_v15  ;;  %v12455_v4 = vcombine.low %v3177_v29, %v3184_v12  ;;  %v2403_v37 = vrot.slane %v2389_v40, %v11961_v15 }
 0x823   :  { %2630 = vxpose.xlu0.b32.start [1/2] (short) (narrow) %v2371_v56, 8  ;;  %v2436_v5 = vrot.slane %v2422_v61, %v11961_v15  ;;  %v3158_v3 = vrot.slane %v3150_v19, %v12349_v26  ;;  %v3165_v46 = vrot.slane %v3151_v11, %v12349_v26  ;;  %v2189_v17 = vcombine.high %v2187_v20, %v2187_v20 }
 0x824   :  { %v2438_v34 = vcombine.low %v2188_v60, %v2187_v20  ;;  %v2387_v48 = vcombine.low %v2379_v63, %v2386_v21  ;;  %v2429_v52 = vrot.slane %v2421_v58, %v11961_v15  ;;  %v2419_v35 = vrot.slane %v12427_v42, %v11961_v15 }
 0x825   :  { %2599 = vxpose.xlu1.b32.end [2/2] (short) (narrow) %v2354_v18, 8  ;;  %v3166_v9 = vcombine.low %v3158_v3, %v3165_v46  ;;  %v2404_v10 = vcombine.low %v2396_v28, %v2403_v37  ;;  %v2412_v12 = vrot.slane %v2405_v2, %v11961_v15  ;;  %v2452_v30 = vrot.slane %v2189_v17, %v11961_v15 }
 0x826   :  { %v2437_v29 = vcombine.low %v2429_v52, %v2436_v5  ;;  %v2445_v0 = vrot.slane %v2438_v34, %v11961_v15  ;;  %v2798_v54 = vcombine.high %v12369_v8, %v12369_v8  ;;  %v2828_v57 = vcombine.high %v12379_v36, %v12379_v36 }
 0x827   :  { %2631 = vxpose.xlu0.b32.end [2/2] (short) (narrow) %v2387_v48, 8  ;;  %10937 = vmatmul.mubr.msk.f32.vlgmr.msra.gmra.mxu1 %vm332_vm1, %v3166_v9  ;;  %v2420_v25 = vcombine.low %v2412_v12, %v2419_v35  ;;  %v3207_v20 = vrot.slane %v12455_v4, %v12349_v26 }
 0x828   :  { %10939 = vmatprep.mubr.msk.f32.mxu1 %vm11524_vm0, %v11521_v7  ;;  %v2453_v33 = vcombine.low %v2445_v0, %v2452_v30  ;;  %v2826_v22 = vrot.slane %v2798_v54, %v12349_v26 }
 0x829   :  { %2662 = vxpose.xlu1.b32.start [1/2] (short) (narrow) %v2404_v10, 8 }
 0x82a   :  { %v3169_v42 = vcombine.low %v2826_v22, %v2828_v57 }
 0x82b   :  { %2694 = vxpose.xlu0.b32.start [1/2] (short) (narrow) %v2437_v29, 8 }
 0x82c   :  { %v3191_v6 = vrot.slane %v3169_v42, %v12349_v26 }
 0x82d   :  { %2663 = vxpose.xlu1.b32.end [2/2] (short) (narrow) %v2420_v25, 8 }
 0x82f   :  { %2695 = vxpose.xlu0.b32.end [2/2] (short) (narrow) %v2453_v33, 8 }
 0x895   :  { %v2550_v41 = vpop.trf.xlu1 }
 0x896   :  { %v2830_v38 = vcombine.high %v2550_v41, %v2550_v41  ;;  %v2837_v39 = vrot.slane %v2550_v41, %v12349_v26  ;;  %v2582_v27 = vpop.trf.xlu0 }
 0x897   :  { %v2878_v51 = vcombine.high %v2582_v27, %v2582_v27  ;;  %v2885_v45 = vrot.slane %v2582_v27, %v12349_v26 }
 0x898   :  { %v2844_v1 = vrot.slane %v2830_v38, %v12349_v26  ;;  %v2845_v24 = vcombine.high %v2837_v39, %v2837_v39  ;;  %v2853_v43 = vrot.slane %v2837_v39, %v12349_v26 }
 0x899   :  { %v2892_v36 = vrot.slane %v2878_v51, %v12349_v26  ;;  %v2893_v55 = vcombine.high %v2885_v45, %v2885_v45  ;;  %v2901_v44 = vrot.slane %v2885_v45, %v12349_v26 }
 0x89a   :  { %v2846_v8 = vcombine.high %v2844_v1, %v2844_v1  ;;  %v2860_v49 = vrot.slane %v2844_v1, %v12349_v26  ;;  %v2867_v50 = vrot.slane %v2845_v24, %v12349_v26 }
 0x89b   :  { %v2894_v40 = vcombine.high %v2892_v36, %v2892_v36  ;;  %v2908_v31 = vrot.slane %v2892_v36, %v12349_v26  ;;  %v2915_v53 = vrot.slane %v2893_v55, %v12349_v26  ;;  %v2923_v16 = vcombine.high %v2901_v44, %v2901_v44 }
 0x89c   :  { %v2874_v32 = vrot.slane %v2846_v8, %v12349_v26  ;;  %v3170_v14 = vcombine.low %v2853_v43, %v2867_v50  ;;  %v10632_v47 = vcombine.high %v2853_v43, %v2867_v50  ;;  %v2876_v59 = vcombine.high %v2860_v49, %v2860_v49 }
 0x89d   :  { %v2614_v23 = vpop.trf.xlu1  ;;  %v2922_v61 = vrot.slane %v2894_v40, %v12349_v26  ;;  %v2924_v60 = vcombine.high %v2908_v31, %v2908_v31  ;;  %v2925_v56 = vcombine.high %v2915_v53, %v2915_v53  ;;  %v3219_v58 = vcombine.low %v2915_v53, %v2923_v16 }
 0x89e   :  { %v3198_v62 = vrot.slane %v3170_v14, %v12349_v26  ;;  %v3217_v63 = vcombine.low %v2860_v49, %v2874_v32  ;;  %v3218_v21 = vcombine.low %v2876_v59, %v2901_v44  ;;  %v12491_v19 = vrot.slane %v10632_v47, %v12349_v26 }
 0x89f   :  { %v2646_v2 = vpop.trf.xlu0  ;;  %v2926_v18 = vcombine.high %v2614_v23, %v2614_v23  ;;  %v2933_v28 = vrot.slane %v2614_v23, %v12349_v26  ;;  %v3247_v37 = vrot.slane %v3219_v58, %v12349_v26  ;;  %v3265_v4 = vcombine.low %v2925_v56, %v2908_v31 }
 0x8a0   :  { %v3240_v11 = vrot.slane %v3218_v21, %v12349_v26  ;;  %v12496_v5 = vrot.slane %v3217_v63, %v12349_v26  ;;  %v2974_v3 = vcombine.high %v2646_v2, %v2646_v2  ;;  %v2981_v48 = vrot.slane %v2646_v2, %v12349_v26 }
 0x8a1   :  { %v2940_v46 = vrot.slane %v2926_v18, %v12349_v26  ;;  %v2941_v17 = vcombine.high %v2933_v28, %v2933_v28  ;;  %v2949_v34 = vrot.slane %v2933_v28, %v12349_v26  ;;  %v3266_v9 = vcombine.low %v2922_v61, %v2924_v60 }
 0x8a2   :  { %v12502_v52 = vcombine.low %v3240_v11, %v3247_v37  ;;  %v3275_v35 = vrot.slane %v3265_v4, %v12349_v26  ;;  %v2988_v10 = vrot.slane %v2974_v3, %v12349_v26  ;;  %v2989_v30 = vcombine.high %v2981_v48, %v2981_v48 }
 0x8a3   :  { %v2942_v29 = vcombine.high %v2940_v46, %v2940_v46  ;;  %v2956_v12 = vrot.slane %v2940_v46, %v12349_v26  ;;  %v2963_v0 = vrot.slane %v2941_v17, %v12349_v26  ;;  %v2997_v33 = vrot.slane %v2981_v48, %v12349_v26 }
 0x8a4   :  { %v2990_v25 = vcombine.high %v2988_v10, %v2988_v10  ;;  %v3004_v54 = vrot.slane %v2988_v10, %v12349_v26  ;;  %v3200_v22 = vcombine.low %v3191_v6, %v3198_v62  ;;  %v3011_v27 = vrot.slane %v2989_v30, %v12349_v26 }
 0x8a5   :  { %v2970_v57 = vrot.slane %v2942_v29, %v12349_v26  ;;  %v3267_v41 = vcombine.low %v2949_v34, %v2963_v0  ;;  %v10633_v38 = vcombine.high %v2949_v34, %v2963_v0  ;;  %v2972_v39 = vcombine.high %v2956_v12, %v2956_v12  ;;  %v2678_v42 = vpop.trf.xlu1 }
 0x8a6   :  { %v3018_v1 = vrot.slane %v2990_v25, %v12349_v26  ;;  %v3019_v24 = vcombine.high %v2997_v33, %v2997_v33  ;;  %v3020_v51 = vcombine.high %v3004_v54, %v3004_v54  ;;  %v3282_v43 = vrot.slane %v3266_v9, %v12349_v26 }
 0x8a7   :  { %v12515_v45 = vrot.slane %v3267_v41, %v12349_v26  ;;  %v3314_v8 = vcombine.low %v2956_v12, %v2970_v57  ;;  %v3315_v49 = vcombine.low %v2972_v39, %v2997_v33  ;;  %v3296_v50 = vrot.slane %v10633_v38, %v12349_v26  ;;  %v2710_v59 = vpop.trf.xlu0 }
 0x8a8   :  { %v3021_v36 = vcombine.high %v3011_v27, %v3011_v27  ;;  %v3316_v55 = vcombine.low %v3011_v27, %v3019_v24  ;;  %v3022_v44 = vcombine.high %v2678_v42, %v2678_v42  ;;  %v3029_v14 = vrot.slane %v2678_v42, %v12349_v26 }
 0x8a9   :  { %v3324_v6 = vrot.slane %v3314_v8, %v12349_v26  ;;  %v3331_v32 = vrot.slane %v3315_v49, %v12349_v26  ;;  %v3214_v47 = vrot.slane %v3200_v22, %v12349_v26  ;;  %v3363_v53 = vcombine.low %v3018_v1, %v3020_v51 }
 0x8aa   :  { %v3317_v40 = vcombine.low %v3021_v36, %v3004_v54  ;;  %v3338_v31 = vrot.slane %v3316_v55, %v12349_v26  ;;  %v3036_v16 = vrot.slane %v3022_v44, %v12349_v26  ;;  %v3037_v62 = vcombine.high %v3029_v14, %v3029_v14 }
 0x8ab   :  { %v3346_v23 = vcombine.low %v3324_v6, %v3331_v32  ;;  %v3045_v63 = vrot.slane %v3029_v14, %v12349_v26  ;;  %v3215_v21 = vcombine.low %v3207_v20, %v3214_v47  ;;  %v3070_v58 = vcombine.high %v2710_v59, %v2710_v59 }
 0x8ac   :  { %v3345_v61 = vrot.slane %v3317_v40, %v12349_v26  ;;  %v3038_v60 = vcombine.high %v3036_v16, %v3036_v16  ;;  %v3052_v56 = vrot.slane %v3036_v16, %v12349_v26  ;;  %v3059_v2 = vrot.slane %v3037_v62, %v12349_v26 }
 0x8ad   :  { %10940 = vmatmul.mubr.msk.f32.gmra.mxu1 %vm332_vm1, %v3215_v21  ;;  %v3077_v11 = vrot.slane %v2710_v59, %v12349_v26  ;;  %v3248_v18 = vcombine.low %v12491_v19, %v12496_v5  ;;  %v3263_v28 = vrot.slane %v12502_v52, %v12349_v26  ;;  %v3084_v4 = vrot.slane %v3070_v58, %v12349_v26 }
 0x8ae   :  { %v3066_v20 = vrot.slane %v3038_v60, %v12349_v26  ;;  %v3068_v37 = vcombine.high %v3052_v56, %v3052_v56  ;;  %10942 = vmatprep.mubr.msk.f32.mxu1 %vm11524_vm0, %v11521_v7  ;;  %v3297_v3 = vcombine.low %v3275_v35, %v3282_v43  ;;  %v3364_v46 = vcombine.low %v3045_v63, %v3059_v2 }
 0x8af   :  { %v10634_v17 = vcombine.high %v3045_v63, %v3059_v2  ;;  %v3085_v34 = vcombine.high %v3077_v11, %v3077_v11  ;;  %v3093_v48 = vrot.slane %v3077_v11, %v12349_v26  ;;  %v3086_v10 = vcombine.high %v3084_v4, %v3084_v4 }
 0x8b0   :  { %v3366_v9 = vcombine.low %v3052_v56, %v3066_v20  ;;  %v3100_v19 = vrot.slane %v3084_v4, %v12349_v26  ;;  %v3256_v5 = vrot.slane %v3248_v18, %v12349_v26  ;;  %v3380_v52 = vrot.slane %v3364_v46, %v12349_v26 }
 0x8b1   :  { %v3387_v29 = vrot.slane %v10634_v17, %v12349_v26  ;;  %v3107_v12 = vrot.slane %v3085_v34, %v12349_v26  ;;  %v3115_v0 = vcombine.high %v3093_v48, %v3093_v48  ;;  %v3114_v30 = vrot.slane %v3086_v10, %v12349_v26 }
 0x8b2   :  { %v3394_v35 = vrot.slane %v3366_v9, %v12349_v26  ;;  %v3116_v25 = vcombine.high %v3100_v19, %v3100_v19  ;;  %v3412_v33 = vcombine.low %v3068_v37, %v3093_v48  ;;  %v3264_v57 = vcombine.low %v3256_v5, %v3263_v28 }
 0x8b3   :  { %v3117_v54 = vcombine.high %v3107_v12, %v3107_v12  ;;  %v3413_v22 = vcombine.low %v3107_v12, %v3115_v0  ;;  %v3298_v41 = vcombine.low %v12515_v45, %v3296_v50  ;;  %v3373_v38 = vrot.slane %v3363_v53, %v12349_v26 }
 0x8b4   :  { %v3415_v39 = vcombine.low %v3114_v30, %v3116_v25  ;;  %v3422_v42 = vrot.slane %v3412_v33, %v12349_v26  ;;  %v3347_v27 = vcombine.low %v3338_v31, %v3345_v61  ;;  %10943 = vmatmul.mubr.msk.f32.gmra.mxu1 %vm332_vm1, %v3264_v57  ;;  %v3305_v51 = vrot.slane %v3297_v3, %v12349_v26 }
 0x8b5   :  { %v3414_v1 = vcombine.low %v3117_v54, %v3100_v19  ;;  %v3429_v24 = vrot.slane %v3413_v22, %v12349_v26  ;;  %v3312_v43 = vrot.slane %v3298_v41, %v12349_v26  ;;  %10945 = vmatprep.mubr.msk.f32.mxu1 %vm11524_vm0, %v11521_v7  ;;  %v3396_v49 = vcombine.low %v3387_v29, %v3394_v35 }
 0x8b6   :  { %v3443_v8 = vrot.slane %v3415_v39, %v12349_v26  ;;  %v3361_v45 = vrot.slane %v3347_v27, %v12349_v26  ;;  %v3354_v55 = vrot.slane %v3346_v23, %v12349_v26  ;;  %v3395_v44 = vcombine.low %v3373_v38, %v3380_v52 }
 0x8b7   :  { %v3436_v50 = vrot.slane %v3414_v1, %v12349_v26  ;;  %v3313_v36 = vcombine.low %v3305_v51, %v3312_v43  ;;  %v3444_v6 = vcombine.low %v3422_v42, %v3429_v24  ;;  %v3410_v14 = vrot.slane %v3396_v49, %v12349_v26 }
 0x8b8   :  { %v3362_v32 = vcombine.low %v3354_v55, %v3361_v45  ;;  %v3403_v59 = vrot.slane %v3395_v44, %v12349_v26 }
 0x8b9   :  { %10946 = vmatmul.mubr.msk.f32.gmra.mxu1 %vm332_vm1, %v3313_v36  ;;  %v3445_v47 = vcombine.low %v3436_v50, %v3443_v8  ;;  %v3452_v31 = vrot.slane %v3444_v6, %v12349_v26 }
 0x8ba   :  { %10948 = vmatprep.mubr.msk.f32.mxu1 %vm11524_vm0, %v11521_v7  ;;  %v3411_v40 = vcombine.low %v3403_v59, %v3410_v14 }
 0x8bb   :  { %v3459_v53 = vrot.slane %v3445_v47, %v12349_v26 }
 0x8bd   :  { %10949 = vmatmul.mubr.msk.f32.gmra.mxu1 %vm332_vm1, %v3362_v32  ;;  %v3460_v16 = vcombine.low %v3452_v31, %v3459_v53 }
 0x8be   :  { %10951 = vmatprep.mubr.msk.f32.mxu1 %vm11524_vm0, %v11521_v7 }
 0x8c1   :  { %10952 = vmatmul.mubr.msk.f32.gmra.mxu1 %vm332_vm1, %v3411_v40 }
 0x8c2   :  { %10954 = vmatprep.mubr.msk.f32.mxu1 %vm11524_vm0, %v11521_v7 }
 0x8c5   :  { %10955 = vmatmul.mubr.msk.f32.gmra.mxu1 %vm332_vm1, %v3460_v16  ;;  %vm4602_vm1 = vcmask 1041409  }
 0x8e7   :  { %v3541_v23 = vpop.f32.mrf.mxu1 }
 0x8e8   :  { %v3582_v62 = vcombine.high %v3541_v23, %v3541_v23  ;;  %v3589_v63 = vrot.slane %v3541_v23, %v12349_v26 }
 0x8e9   :  { %v10938_v21 = vpop.f32.mrf.mxu1 }
 0x8ea   :  { %v3596_v61 = vrot.slane %v3582_v62, %v12349_v26  ;;  %v3597_v60 = vcombine.high %v3589_v63, %v3589_v63  ;;  %v3605_v56 = vrot.slane %v3589_v63, %v12349_v26 }
 0x8ec   :  { %v3598_v58 = vcombine.high %v3596_v61, %v3596_v61  ;;  %v3612_v2 = vrot.slane %v3596_v61, %v12349_v26  ;;  %v3619_v11 = vrot.slane %v3597_v60, %v12349_v26 }
 0x8ee   :  { %v3626_v18 = vrot.slane %v3598_v58, %v12349_v26  ;;  %v3628_v28 = vcombine.high %v3612_v2, %v3612_v2  ;;  %v3925_v20 = vcombine.low %v3605_v56, %v3619_v11  ;;  %v10643_v37 = vcombine.high %v3605_v56, %v3619_v11 }
 0x8f0   :  { %v3927_v4 = vcombine.low %v3612_v2, %v3626_v18  ;;  %v3934_v3 = vrot.slane %v3925_v20, %v12349_v26  ;;  %v3941_v46 = vrot.slane %v10643_v37, %v12349_v26  ;;  %v3955_v17 = vrot.slane %v3628_v28, %v12349_v26 }
 0x8f1   :  { %v3630_v33 = vcombine.high %v3626_v18, %v3626_v18 }
 0x8f2   :  { %v3948_v34 = vrot.slane %v3927_v4, %v12349_v26  ;;  %v3956_v48 = vcombine.low %v3934_v3, %v3941_v46 }
 0x8f4   :  { %v3957_v9 = vcombine.low %v3948_v34, %v3955_v17  ;;  %v3964_v10 = vrot.slane %v3956_v48, %v12349_v26 }
 0x8f6   :  { %v3971_v19 = vrot.slane %v3957_v9, %v12349_v26 }
 0x8f8   :  { %v3972_v5 = vcombine.low %v3964_v10, %v3971_v19 }
 0x8fa   :  { %4317 = vxpose.xlu1.b32.start.end [1/1] (short) (narrow) %v3972_v5, 8 }
 0x96d   :  { %v3546_v52 = vpop.f32.mrf.mxu1 }
 0x96e   :  { %v3631_v29 = vcombine.high %v3546_v52, %v3546_v52  ;;  %v3638_v12 = vrot.slane %v3546_v52, %v12349_v26 }
 0x96f   :  { %v10941_v0 = vpop.f32.mrf.mxu1 }
 0x970   :  { %v3645_v35 = vrot.slane %v3631_v29, %v12349_v26  ;;  %v3646_v30 = vcombine.high %v3638_v12, %v3638_v12  ;;  %v3654_v25 = vrot.slane %v3638_v12, %v12349_v26 }
 0x972   :  { %v3647_v54 = vcombine.high %v3645_v35, %v3645_v35  ;;  %v3668_v22 = vrot.slane %v3646_v30, %v12349_v26  ;;  %v3676_v57 = vcombine.high %v3654_v25, %v3654_v25  ;;  %v3661_v41 = vrot.slane %v3645_v35, %v12349_v26 }
 0x973   :  { %v3973_v42 = vcombine.low %v3630_v33, %v3654_v25 }
 0x974   :  { %v3675_v38 = vrot.slane %v3647_v54, %v12349_v26  ;;  %v3678_v39 = vcombine.high %v3668_v22, %v3668_v22  ;;  %v3974_v27 = vcombine.low %v3668_v22, %v3676_v57  ;;  %v3551_v1 = vpop.f32.mrf.mxu1 }
 0x975   :  { %v3680_v8 = vcombine.high %v3551_v1, %v3551_v1  ;;  %v3687_v45 = vrot.slane %v3551_v1, %v12349_v26  ;;  %v3982_v50 = vrot.slane %v3973_v42, %v12349_v26 }
 0x976   :  { %v3975_v24 = vcombine.low %v3678_v39, %v3661_v41  ;;  %v3989_v51 = vrot.slane %v3974_v27, %v12349_v26  ;;  %v10644_v43 = vcombine.high %v3661_v41, %v3675_v38  ;;  %v10944_v49 = vpop.f32.mrf.mxu1  ;;  %v4003_v55 = vrot.slane %v3675_v38, %v12349_v26 }
 0x977   :  { %v3694_v6 = vrot.slane %v3680_v8, %v12349_v26  ;;  %v3695_v32 = vcombine.high %v3687_v45, %v3687_v45  ;;  %v3703_v16 = vrot.slane %v3687_v45, %v12349_v26 }
 0x978   :  { %v3996_v36 = vrot.slane %v3975_v24, %v12349_v26  ;;  %v12597_v44 = vrot.slane %v10644_v43, %v12349_v26  ;;  %v4004_v40 = vcombine.low %v3982_v50, %v3989_v51 }
 0x979   :  { %v3556_v14 = vpop.f32.mrf.mxu1  ;;  %v3696_v53 = vcombine.high %v3694_v6, %v3694_v6  ;;  %v12603_v23 = vrot.slane %v3694_v6, %v12349_v26  ;;  %v3717_v62 = vrot.slane %v3695_v32, %v12349_v26 }
 0x97a   :  { %v3729_v47 = vcombine.high %v3556_v14, %v3556_v14  ;;  %v3736_v59 = vrot.slane %v3556_v14, %v12349_v26  ;;  %v4005_v31 = vcombine.low %v3996_v36, %v4003_v55  ;;  %v4012_v3 = vrot.slane %v4004_v40, %v12349_v26 }
 0x97b   :  { %v10947_v63 = vpop.f32.mrf.mxu1  ;;  %v3724_v58 = vrot.slane %v3696_v53, %v12349_v26  ;;  %v3726_v2 = vcombine.high %v12603_v23, %v12603_v23  ;;  %v4022_v11 = vcombine.low %v3703_v16, %v3717_v62  ;;  %v10645_v18 = vcombine.high %v3703_v16, %v3717_v62 }
 0x97c   :  { %v3743_v21 = vrot.slane %v3729_v47, %v12349_v26  ;;  %v3744_v61 = vcombine.high %v3736_v59, %v3736_v59  ;;  %v3752_v60 = vrot.slane %v3736_v59, %v12349_v26  ;;  %v4019_v56 = vrot.slane %v4005_v31, %v12349_v26 }
 0x97d   :  { %v3561_v28 = vpop.f32.mrf.mxu1  ;;  %v4051_v20 = vrot.slane %v12603_v23, %v12349_v26  ;;  %v4037_v46 = vrot.slane %v4022_v11, %v12349_v26  ;;  %v4044_v17 = vrot.slane %v10645_v18, %v12349_v26  ;;  %v3728_v34 = vcombine.high %v3724_v58, %v3724_v58 }
 0x97e   :  { %v3745_v37 = vcombine.high %v3743_v21, %v3743_v21  ;;  %v3766_v4 = vrot.slane %v3744_v61, %v12349_v26  ;;  %v3759_v48 = vrot.slane %v3743_v21, %v12349_v26  ;;  %v3774_v19 = vcombine.high %v3752_v60, %v3752_v60 }
 0x97f   :  { %v10950_v9 = vpop.f32.mrf.mxu1  ;;  %v3778_v52 = vcombine.high %v3561_v28, %v3561_v28  ;;  %v12620_v29 = vcombine.low %v3724_v58, %v3726_v2  ;;  %v12622_v12 = vcombine.low %v3728_v34, %v3752_v60  ;;  %v3785_v0 = vrot.slane %v3561_v28, %v12349_v26 }
 0x980   :  { %v3773_v10 = vrot.slane %v3745_v37, %v12349_v26  ;;  %v3776_v5 = vcombine.high %v3766_v4, %v3766_v4  ;;  %v4020_v30 = vcombine.low %v4012_v3, %v4019_v56  ;;  %v4071_v25 = vcombine.low %v3766_v4, %v3774_v19 }
 0x981   :  { %v3566_v35 = vpop.f32.mrf.mxu1  ;;  %v4052_v22 = vcombine.low %v12597_v44, %v4037_v46  ;;  %v3792_v41 = vrot.slane %v3778_v52, %v12349_v26  ;;  %v3793_v38 = vcombine.high %v3785_v0, %v3785_v0  ;;  %v3801_v39 = vrot.slane %v3785_v0, %v12349_v26 }
 0x982   :  { %v4099_v33 = vrot.slane %v3776_v5, %v12349_v26  ;;  %v4117_v54 = vcombine.low %v3759_v48, %v3773_v10  ;;  %v10646_v57 = vcombine.high %v3759_v48, %v3773_v10  ;;  %4349 = vxpose.xlu1.b32.start.end [1/1] (short) (narrow) %v4020_v30, 8  ;;  %v4085_v27 = vrot.slane %v12622_v12, %v12349_v26 }
 0x983   :  { %v10953_v42 = vpop.f32.mrf.mxu1  ;;  %v4092_v1 = vrot.slane %v4071_v25, %v12349_v26  ;;  %v3827_v51 = vcombine.high %v3566_v35, %v3566_v35  ;;  %v3794_v43 = vcombine.high %v3792_v41, %v3792_v41  ;;  %v3808_v8 = vrot.slane %v3792_v41, %v12349_v26 }
 0x984   :  { %v12633_v24 = vrot.slane %v4117_v54, %v12349_v26  ;;  %v3815_v45 = vrot.slane %v3793_v38, %v12349_v26  ;;  %v3823_v49 = vcombine.high %v3801_v39, %v3801_v39  ;;  %v3834_v36 = vrot.slane %v3566_v35, %v12349_v26 }
 0x985   :  { %v3571_v50 = vpop.f32.mrf.mxu1  ;;  %v3841_v55 = vrot.slane %v3827_v51, %v12349_v26  ;;  %v4133_v32 = vrot.slane %v10646_v57, %v12349_v26  ;;  %v3822_v14 = vrot.slane %v3794_v43, %v12349_v26  ;;  %v3824_v31 = vcombine.high %v3808_v8, %v3808_v8 }
 0x986   :  { %v3876_v44 = vcombine.high %v3571_v50, %v3571_v50  ;;  %v3883_v6 = vrot.slane %v3571_v50, %v12349_v26  ;;  %v3825_v47 = vcombine.high %v3815_v45, %v3815_v45  ;;  %v4119_v59 = vcombine.low %v3801_v39, %v3815_v45 }
 0x987   :  { %v10956_v40 = vpop.f32.mrf.mxu1  ;;  %v3842_v53 = vcombine.high %v3834_v36, %v3834_v36  ;;  %v3843_v16 = vcombine.high %v3841_v55, %v3841_v55  ;;  %v3850_v23 = vrot.slane %v3834_v36, %v12349_v26  ;;  %v4147_v63 = vrot.slane %v3823_v49, %v12349_v26 }
 0x988   :  { %v4140_v62 = vrot.slane %v4119_v59, %v12349_v26  ;;  %v3826_v21 = vcombine.high %v3822_v14, %v3822_v14  ;;  %v3857_v61 = vrot.slane %v3841_v55, %v12349_v26  ;;  %v3890_v58 = vrot.slane %v3876_v44, %v12349_v26 }
 0x989   :  { %v3864_v60 = vrot.slane %v3842_v53, %v12349_v26  ;;  %v3871_v56 = vrot.slane %v3843_v16, %v12349_v26  ;;  %v3891_v2 = vcombine.high %v3883_v6, %v3883_v6  ;;  %v4165_v11 = vcombine.low %v3825_v47, %v3808_v8 }
 0x98a   :  { %v4167_v18 = vcombine.low %v3826_v21, %v3850_v23  ;;  %v3899_v28 = vrot.slane %v3883_v6, %v12349_v26  ;;  %v4053_v37 = vcombine.low %v4044_v17, %v4051_v20  ;;  %v3892_v46 = vcombine.high %v3890_v58, %v3890_v58 }
 0x98b   :  { %v10647_v4 = vcombine.high %v3850_v23, %v3864_v60  ;;  %v4214_v3 = vcombine.low %v3857_v61, %v3871_v56  ;;  %v4060_v34 = vrot.slane %v4052_v22, %v12349_v26  ;;  %v10648_v48 = vcombine.high %v3857_v61, %v3871_v56 }
 0x98c   :  { %v3906_v9 = vrot.slane %v3890_v58, %v12349_v26  ;;  %v3913_v10 = vrot.slane %v3891_v2, %v12349_v26  ;;  %v3921_v19 = vcombine.high %v3899_v28, %v3899_v28  ;;  %v3920_v5 = vrot.slane %v3892_v46, %v12349_v26 }
 0x98d   :  { %v4067_v52 = vrot.slane %v4053_v37, %v12349_v26  ;;  %v4078_v12 = vrot.slane %v12620_v29, %v12349_v26  ;;  %v4101_v0 = vcombine.low %v4092_v1, %v4099_v33  ;;  %v4243_v35 = vrot.slane %v3899_v28, %v12349_v26 }
 0x98e   :  { %v3922_v20 = vcombine.high %v3906_v9, %v3906_v9  ;;  %v3923_v17 = vcombine.high %v3913_v10, %v3913_v10  ;;  %v4261_v30 = vcombine.low %v3913_v10, %v3921_v19  ;;  %v4148_v57 = vcombine.low %v12633_v24, %v4133_v32 }
 0x98f   :  { %v4068_v25 = vcombine.low %v4060_v34, %v4067_v52  ;;  %v4100_v54 = vcombine.low %v4078_v12, %v4085_v27  ;;  %v4115_v22 = vrot.slane %v4101_v0, %v12349_v26  ;;  %v3924_v41 = vcombine.high %v3920_v5, %v3920_v5 }
 0x990   :  { %v4262_v38 = vcombine.low %v3923_v17, %v3906_v9  ;;  %v4263_v39 = vcombine.low %v3920_v5, %v3922_v20  ;;  %v4149_v42 = vcombine.low %v4140_v62, %v4147_v63  ;;  %v4270_v51 = vrot.slane %v4261_v30, %v12349_v26 }
 0x991   :  { %4381 = vxpose.xlu1.b32.start.end [1/1] (short) (narrow) %v4068_v25, 8  ;;  %v4108_v29 = vrot.slane %v4100_v54, %v12349_v26  ;;  %v4166_v33 = vcombine.low %v3822_v14, %v3824_v31  ;;  %v4174_v1 = vrot.slane %v4165_v11, %v12349_v26  ;;  %v4188_v8 = vrot.slane %v4167_v18, %v12349_v26  ;;  %v4333_v11 = vpop.trf.xlu1 }
 0x992   :  { %v4277_v43 = vrot.slane %v4262_v38, %v12349_v26  ;;  %v4163_v27 = vrot.slane %v4149_v42, %v12349_v26  ;;  %v4195_v24 = vrot.slane %v3864_v60, %v12349_v26  ;;  %v4222_v50 = vrot.slane %v10647_v4, %v12349_v26 }
 0x993   :  { %v4116_v45 = vcombine.low %v4108_v29, %v4115_v22  ;;  %v4181_v49 = vrot.slane %v4166_v33, %v12349_v26  ;;  %v4229_v36 = vrot.slane %v4214_v3, %v12349_v26  ;;  %v4156_v55 = vrot.slane %v4148_v57, %v12349_v26 }
 0x994   :  { %v4197_v44 = vcombine.low %v4188_v8, %v4195_v24  ;;  %v4236_v6 = vrot.slane %v10648_v48, %v12349_v26  ;;  %v4284_v32 = vrot.slane %v4263_v39, %v12349_v26  ;;  %v4291_v59 = vrot.slane %v3924_v41, %v12349_v26 }
 0x995   :  { %4413 = vxpose.xlu1.b32.start.end [1/1] (short) (narrow) %v4116_v45, 8  ;;  %v4196_v14 = vcombine.low %v4174_v1, %v4181_v49  ;;  %v4244_v47 = vcombine.low %v4222_v50, %v4229_v36  ;;  %v4164_v40 = vcombine.low %v4156_v55, %v4163_v27  ;;  %v4292_v62 = vcombine.low %v4270_v51, %v4277_v43 }
 0x996   :  { %v4211_v31 = vrot.slane %v4197_v44, %v12349_v26  ;;  %v4245_v53 = vcombine.low %v4236_v6, %v4243_v35  ;;  %v4293_v63 = vcombine.low %v4284_v32, %v4291_v59  ;;  %v4573_v28 = vmul.f32 0.11111111, %v4333_v11 }
 0x997   :  { %v4204_v16 = vrot.slane %v4196_v14, %v12349_v26  ;;  %v4252_v23 = vrot.slane %v4244_v47, %v12349_v26  ;;  %v4300_v56 = vrot.slane %v4292_v62, %v12349_v26 }
 0x998   :  { %v4259_v21 = vrot.slane %v4245_v53, %v12349_v26  ;;  %v4307_v58 = vrot.slane %v4293_v63, %v12349_v26  ;;  %v12681_v4 = vrot.slane %v4573_v28, %v11961_v15  ;;  %v4651_v34 = vcombine.high %v4573_v28, %v4573_v28 }
 0x999   :  { %4445 = vxpose.xlu1.b32.start.end [1/1] (short) (narrow) %v4164_v40, 8  ;;  %v4212_v61 = vcombine.low %v4204_v16, %v4211_v31 }
 0x99a   :  { %v4260_v60 = vcombine.low %v4252_v23, %v4259_v21  ;;  %v4308_v2 = vcombine.low %v4300_v56, %v4307_v58  ;;  %v4625_v48 = vcombine.high %v12681_v4, %v12681_v4  ;;  %v4613_v5 = vrot.slane %v12681_v4, 1 }
 0x99b   :  { %4477 = vxpose.xlu0.b32.start.end [1/1] (short) (narrow) %v4212_v61, 8  ;;  %v12692_v52 = vrot.slane %v4651_v34, %v11961_v15  ;;  %v5102_v34 = vld [vmem:[#allocation13 + $0xf8] sm:$0xff] }
 0x99c   :  { %v4639_v30 = vrot.slane %v4625_v48, 1  ;;  %5153 = vmatprep.subr.mxu0 %v5102_v34 }
 0x99d   :  { %v4679_v41 = vrot.slane %v12692_v52, 1  ;;  %v4691_v44 = vcombine.high %v12692_v52, %v12692_v52 }
 0x99f   :  { %4509 = vxpose.xlu0.b32.start.end [1/1] (short) (narrow) %v4260_v60, 8 }
 0x9a3   :  { %4541 = vxpose.xlu0.b32.start.end [1/1] (short) (narrow) %v4308_v2, 8 }
 0x9fe   :  { %v4365_v18 = vpop.trf.xlu1 }
 0x9ff   :  { %v4574_v46 = vmul.f32 0.11111111, %v4365_v18 }
 0xa01   :  { %v12688_v10 = vrot.slane %v4574_v46, %v11961_v15  ;;  %v4771_v0 = vcombine.high %v4574_v46, %v4574_v46 }
 0xa03   :  { %v4733_v25 = vrot.slane %v12688_v10, 1  ;;  %v12707_v38 = vcombine.high %v12688_v10, %v12688_v10  ;;  %v12714_v29 = vrot.slane %v4771_v0, %v11961_v15  ;;  %v5634_v0 = vld [vmem:[#allocation13 + $0x288] sm:$0xff] }
 0xa04   :  { %5672 = vmatprep.subr.mxu1 %v5634_v0 }
 0xa05   :  { %v4759_v47 = vrot.slane %v12707_v38, 1  ;;  %v4799_v63 = vrot.slane %v12714_v29, 1 }
 0xa0d   :  { %v4397_v37 = vpop.trf.xlu1 }
 0xa0e   :  { %v12726_v49 = vmul.f32 0.11111111, %v4397_v37 }
 0xa10   :  { %v4833_v21 = vrot.slane %v12726_v49, %v11961_v15 }
 0xa11   :  { %v12683_v3 = vpop.trf.xlu1 }
 0xa15   :  { %v4461_v9 = vpop.trf.xlu1 }
 0xa16   :  { %v4577_v19 = vmul.f32 0.11111111, %v4461_v9  ;;  %v5101_v9 = vld [vmem:[#allocation13 + $0xf0] sm:$0xff] }
 0xa17   :  { %v4493_v12 = vpop.trf.xlu0  ;;  %5154 = vmatpush1.msra.mxu0 %v5101_v9 }
 0xa18   :  { %v12695_v20 = vrot.slane %v4577_v19, %v11961_v15  ;;  %v4659_v17 = vcombine.high %v4577_v19, %v4577_v19  ;;  %v4578_v35 = vmul.f32 0.11111111, %v4493_v12 }
 0xa1a   :  { %v4666_v54 = vrot.slane %v4659_v17, %v11961_v15  ;;  %v12700_v22 = vrot.slane %v4578_v35, %v11961_v15  ;;  %v4616_v57 = vsel %vm4602_vm1, %v12695_v20, %v4613_v5  ;;  %v4626_v51 = vcombine.high %v12695_v20, %v12695_v20 }
 0xa1b   :  { %v4525_v39 = vpop.trf.xlu0  ;;  %v4617_v42 = vsel %vm4604_vm5, %v12695_v20, %v4616_v57  ;;  %v4779_v33 = vcombine.high %v4578_v35, %v4578_v35 }
 0xa1c   :  { %v4618_v1 = vsel %vm4606_vm6, %v12695_v20, %v4617_v42  ;;  %v4736_v43 = vsel %vm4602_vm1, %v12700_v22, %v4733_v25  ;;  %v4642_v8 = vsel %vm4602_vm1, %v4626_v51, %v4639_v30  ;;  %v4682_v45 = vsel %vm4602_vm1, %v4666_v54, %v4679_v41  ;;  %v5100_v30 = vld [vmem:[#allocation13 + $0xe8] sm:$0xff]  ;;  %v5633_v41 = vld [vmem:[#allocation13 + $0x280] sm:$0xff] }
 0xa1d   :  { %v4619_v27 = vsel %vm4608_vm7, %v12695_v20, %v4618_v1  ;;  %v4737_v24 = vsel %vm4604_vm5, %v12700_v22, %v4736_v43  ;;  %v4579_v50 = vmul.f32 0.11111111, %v4525_v39  ;;  %v4643_v36 = vsel %vm4604_vm5, %v4626_v51, %v4642_v8  ;;  %5155 = vmatprep.subr.mxu0 %v5100_v30  ;;  %v5099_v8 = vld [vmem:[#allocation13 + $0xe0] sm:$0xff]  ;;  %5673 = vmatpush1.msra.mxu1 %v5633_v41 }
 0xa1e   :  { %4620 = vrot.lane.b32.xlu0 %v4619_v27, %s11525_s5  ;;  %v4738_v55 = vsel %vm4606_vm6, %v12700_v22, %v4737_v24  ;;  %v4644_v6 = vsel %vm4606_vm6, %v4626_v51, %v4643_v36  ;;  %v4683_v32 = vsel %vm4604_vm5, %v4666_v54, %v4682_v45  ;;  %v4692_v14 = vcombine.high %v4666_v54, %v4666_v54  ;;  %s11549_s5 = smov 47  }
 0xa1f   :  { %v12737_v59 = vrot.slane %v4779_v33, %v11961_v15  ;;  %v4645_v40 = vsel %vm4608_vm7, %v4626_v51, %v4644_v6  ;;  %v4739_v31 = vsel %vm4608_vm7, %v12700_v22, %v4738_v55  ;;  %v4684_v53 = vsel %vm4606_vm6, %v4666_v54, %v4683_v32  ;;  %v5632_v55 = vld [vmem:[#allocation13 + $0x278] sm:$0xff]  ;;  %5156 = vmatpush1.msra.mxu0 %v5099_v8 }
 0xa20   :  { %4646 = vrot.lane.b32.xlu1 %v4645_v40, %s11526_s16  ;;  %v4695_v16 = vrot.slane %v4692_v14, 7  ;;  %v4629_v23 = vrot.slane %v4626_v51, 7  ;;  %v4746_v62 = vcombine.high %v12700_v22, %v12700_v22  ;;  %v12749_v61 = vrot.slane %v4579_v50, %v11961_v15  ;;  %5674 = vmatprep.subr.mxu1 %v5632_v55  ;;  %s11550_s16 = smov 61  }
 0xa21   :  { %v4669_v60 = vrot.slane %v4666_v54, 7  ;;  %v4899_v56 = vcombine.high %v4579_v50, %v4579_v50  ;;  %v4685_v18 = vsel %vm4608_vm7, %v4666_v54, %v4684_v53  ;;  %v4802_v12 = vsel %vm4602_vm1, %v12737_v59, %v4799_v63  ;;  %v4557_v50 = vpop.trf.xlu0 }
 0xa22   :  { %4740 = vrot.lane.b32.xlu0 %v4739_v31, %s11527_s17  ;;  %v4696_v58 = vsel %vm4602_vm1, %v4695_v16, %v4691_v44  ;;  %v4630_v2 = vsel %vm4602_vm1, %v4629_v23, %v4625_v48  ;;  %v4762_v11 = vsel %vm4602_vm1, %v4746_v62, %v4759_v47  ;;  %v12766_v25 = vcombine.high %v4833_v21, %v4833_v21  ;;  %s11553_s17 = smov 109  }
 0xa23   :  { %v4697_v28 = vsel %vm4604_vm5, %v4695_v16, %v4696_v58  ;;  %v4631_v37 = vsel %vm4604_vm5, %v4629_v23, %v4630_v2  ;;  %v4763_v46 = vsel %vm4604_vm5, %v4746_v62, %v4762_v11  ;;  %v4670_v48 = vsel %vm4602_vm1, %v4669_v60, %v12692_v52  ;;  %v5097_v11 = vld [vmem:[#allocation13 + $0xd0] sm:$0xff] }
 0xa24   :  { %4686 = vrot.lane.b32.xlu1 %v4685_v18, %s11528_s0  ;;  %v4698_v19 = vsel %vm4606_vm6, %v4695_v16, %v4697_v28  ;;  %v4632_v5 = vsel %vm4606_vm6, %v4629_v23, %v4631_v37  ;;  %v4671_v35 = vsel %vm4604_vm5, %v4669_v60, %v4670_v48  ;;  %v4764_v54 = vsel %vm4606_vm6, %v4746_v62, %v4763_v46  ;;  %v5630_v18 = vld [vmem:[#allocation13 + $0x268] sm:$0xff]  ;;  %v5095_v48 = vld [vmem:[#allocation13 + $0xc0] sm:$0xff] }
 0xa25   :  { %v4699_v17 = vsel %vm4608_vm7, %v4695_v16, %v4698_v19  ;;  %v4723_v57 = vrot.slane %v12700_v22, 7  ;;  %v12771_v52 = vrot.slane %v12749_v61, 7  ;;  %v12774_v39 = vrot.slane %v4899_v56, %v11961_v15  ;;  %v5096_v46 = vld [vmem:[#allocation13 + $0xc8] sm:$0xff] }
 0xa26   :  { %4700 = vrot.lane.b32.xlu0 %v4699_v17, %s11529_s24  ;;  %v4633_v42 = vsel %vm4608_vm7, %v4629_v23, %v4632_v5  ;;  %v4672_v51 = vsel %vm4606_vm6, %v4669_v60, %v4671_v35  ;;  %v4803_v33 = vsel %vm4604_vm5, %v12737_v59, %v4802_v12  ;;  %v4853_v1 = vrot.slane %v4833_v21, 1  ;;  %v5631_v23 = vld [vmem:[#allocation13 + $0x270] sm:$0xff]  ;;  %v5629_v5 = vld [vmem:[#allocation13 + $0x260] sm:$0xff]  ;;  %v5628_v17 = vld [vmem:[#allocation13 + $0x258] sm:$0xff] }
 0xa27   :  { %v4724_v22 = vsel %vm4602_vm1, %v4723_v57, %v12688_v10  ;;  %v4844_v43 = vsel %vm4602_vm1, %v12771_v52, %v4833_v21  ;;  %v12786_v27 = vcombine.high %v12749_v61, %v12749_v61  ;;  %v4891_v24 = vcombine.high %v12726_v49, %v12726_v49  ;;  %5675 = vmatpush1.msra.mxu1 %v5631_v23 }
 0xa28   :  { %4634 = vrot.lane.b32.xlu1 %v4633_v42, %s11530_s4  ;;  %v12791_v45 = vmul.f32 0.11111111, %v12683_v3  ;;  %v4765_v36 = vsel %vm4608_vm7, %v4746_v62, %v4764_v54  ;;  %v4725_v10 = vsel %vm4604_vm5, %v4723_v57, %v4724_v22  ;;  %v4879_v44 = vrot.slane %v12766_v25, 1  ;;  %v5098_v3 = vld [vmem:[#allocation13 + $0xd8] sm:$0xff]  ;;  %5676 = vmatprep.subr.mxu1 %v5630_v18 }
 0xa29   :  { %v4804_v6 = vsel %vm4606_vm6, %v12737_v59, %v4803_v33  ;;  %v4856_v49 = vsel %vm4602_vm1, %v12749_v61, %v4853_v1  ;;  %v12800_v32 = vrot.slane %v4746_v62, 7  ;;  %v4673_v14 = vsel %vm4608_vm7, %v4669_v60, %v4672_v51  ;;  %5157 = vmatprep.subr.mxu0 %v5098_v3  ;;  %5677 = vmatpush1.msra.mxu1 %v5629_v5  ;;  %v5089_v5 = vld [vmem:[#allocation13 + $0x90] sm:$0xff] }
 0xa2a   :  { %4766 = vrot.lane.b32.xlu0 %v4765_v36, %s11531_s18  ;;  %v4845_v47 = vsel %vm4604_vm5, %v12771_v52, %v4844_v43  ;;  %v12805_v40 = vmul.f32 0.11111111, %v4557_v50  ;;  %v4726_v31 = vsel %vm4606_vm6, %v4723_v57, %v4725_v10  ;;  %v4882_v53 = vsel %vm4602_vm1, %v12786_v27, %v4879_v44  ;;  %5158 = vmatpush1.msra.mxu0 %v5097_v11  ;;  %v5093_v36 = vld [vmem:[#allocation13 + $0xb0] sm:$0xff]  ;;  %s11551_s18 = smov 79  }
 0xa2b   :  { %v12811_v16 = vrot.slane %v12774_v39, 7  ;;  %v12814_v62 = vrot.slane %v4891_v24, %v11961_v15  ;;  %v4805_v63 = vsel %vm4608_vm7, %v12737_v59, %v4804_v6  ;;  %v4857_v21 = vsel %vm4604_vm5, %v12749_v61, %v4856_v49  ;;  %5159 = vmatprep.subr.mxu0 %v5096_v46  ;;  %5678 = vmatprep.subr.mxu1 %v5628_v17  ;;  %v5626_v6 = vld [vmem:[#allocation13 + $0x248] sm:$0xff] }
 0xa2c   :  { %4674 = vrot.lane.b32.xlu1 %v4673_v14, %s11532_s19  ;;  %v12822_v60 = vrot.slane %v12791_v45, %v11961_v15  ;;  %v4846_v56 = vsel %vm4606_vm6, %v12771_v52, %v4845_v47  ;;  %v4750_v58 = vsel %vm4602_vm1, %v12800_v32, %v12707_v38  ;;  %v12830_v2 = vrot.slane %v12737_v59, 7  ;;  %5160 = vmatpush1.msra.mxu0 %v5095_v48  ;;  %s10657_s19 = sld [smem:[#allocation14 + $0x2]] }
 0xa2d   :  { %v4727_v28 = vsel %vm4608_vm7, %v4723_v57, %v4726_v31  ;;  %v4883_v37 = vsel %vm4604_vm5, %v12786_v27, %v4882_v53  ;;  %v12837_v34 = vrot.slane %v12805_v40, %v11961_v15  ;;  %v4858_v38 = vsel %vm4606_vm6, %v12749_v61, %v4857_v21  ;;  %v5625_v53 = vld [vmem:[#allocation13 + $0x240] sm:$0xff] }
 0xa2e   :  { %4806 = vrot.lane.b32.xlu0 %v4805_v63, %s11533_s1  ;;  %v4910_v9 = vsel %vm4602_vm1, %v12811_v16, %v12814_v62  ;;  %v4937_v19 = vcombine.high %v12774_v39, %v12774_v39  ;;  %v4847_v12 = vsel %vm4608_vm7, %v12771_v52, %v4846_v56  ;;  %v4751_v0 = vsel %vm4604_vm5, %v12800_v32, %v4750_v58  ;;  %v5094_v52 = vld [vmem:[#allocation13 + $0xb8] sm:$0xff]  ;;  %v5091_v21 = vld [vmem:[#allocation13 + $0xa0] sm:$0xff] }
 0xa2f   :  { %v4978_v35 = vrot.slane %v12822_v60, 1  ;;  %v4884_v30 = vsel %vm4606_vm6, %v12786_v27, %v4883_v37  ;;  %v4790_v54 = vsel %vm4602_vm1, %v12830_v2, %v12714_v29  ;;  %v4812_v57 = vcombine.high %v12737_v59, %v12737_v59  ;;  %5161 = vmatprep.subr.mxu0 %v5094_v52 }
 0xa30   :  { %4728 = vrot.lane.b32.xlu1 %v4727_v28, %s11534_s3  ;;  %v4924_v41 = vrot.slane %v12814_v62, 1  ;;  %v4859_v42 = vsel %vm4608_vm7, %v12749_v61, %v4858_v38  ;;  %v4911_v51 = vsel %vm4604_vm5, %v12811_v16, %v4910_v9  ;;  %v4936_v33 = vcombine.high %v12814_v62, %v12814_v62  ;;  %v5627_v61 = vld [vmem:[#allocation13 + $0x250] sm:$0xff]  ;;  %5162 = vmatpush1.msra.mxu0 %v5093_v36  ;;  %v5090_v28 = vld [vmem:[#allocation13 + $0x98] sm:$0xff] }
 0xa31   :  { %v4752_v59 = vsel %vm4606_vm6, %v12800_v32, %v4751_v0  ;;  %v4981_v1 = vsel %vm4602_vm1, %v12837_v34, %v4978_v35  ;;  %v12869_v22 = vrot.slane %v4937_v19, 7  ;;  %v12873_v43 = vcombine.high %v12822_v60, %v12822_v60  ;;  %5679 = vmatpush1.msra.mxu1 %v5627_v61  ;;  %v5623_v9 = vld [vmem:[#allocation13 + $0x230] sm:$0xff]  ;;  %v5088_v35 = vld [vmem:[#allocation13 + $0x88] sm:$0xff] }
 0xa32   :  { %4848 = vrot.lane.b32.xlu0 %v4847_v12, %s11535_s20  ;;  %v5016_v8 = vcombine.high %v12791_v45, %v12791_v45  ;;  %v4885_v24 = vsel %vm4608_vm7, %v12786_v27, %v4884_v30  ;;  %v4791_v50 = vsel %vm4604_vm5, %v12830_v2, %v4790_v54  ;;  %v4912_v10 = vsel %vm4606_vm6, %v12811_v16, %v4911_v51  ;;  %v5619_v61 = vld [vmem:[#allocation13 + $0x210] sm:$0xff] }
 0xa33   :  { %v4927_v55 = vsel %vm4602_vm1, %v12774_v39, %v4924_v41  ;;  %v12885_v44 = vrot.slane %v4812_v57, 7  ;;  %v4601_v45 = vrot.slane %v12695_v20, 7  ;;  %v4811_v49 = vcombine.high %v12714_v29, %v12714_v29  ;;  %5680 = vmatprep.subr.mxu1 %v5626_v6  ;;  %v5621_v41 = vld [vmem:[#allocation13 + $0x220] sm:$0xff] }
 0xa34   :  { %4860 = vrot.lane.b32.xlu1 %v4859_v42, %s11536_s21  ;;  %v5024_v3 = vcombine.high %v12805_v40, %v12805_v40  ;;  %v4753_v14 = vsel %vm4608_vm7, %v12800_v32, %v4752_v59  ;;  %v4982_v47 = vsel %vm4604_vm5, %v12837_v34, %v4981_v1  ;;  %v4792_v31 = vsel %vm4606_vm6, %v12830_v2, %v4791_v50  ;;  %v5092_v40 = vld [vmem:[#allocation13 + $0xa8] sm:$0xff]  ;;  %v5087_v42 = vld [vmem:[#allocation13 + $0x80] sm:$0xff]  ;;  %v5620_v59 = vld [vmem:[#allocation13 + $0x218] sm:$0xff] }
 0xa35   :  { %v4941_v20 = vsel %vm4602_vm1, %v12869_v22, %v4936_v33  ;;  %v12902_v29 = vcombine.high %v12837_v34, %v12837_v34  ;;  %v5004_v32 = vrot.slane %v12873_v43, 1  ;;  %v12906_v23 = vrot.slane %v5016_v8, %v11961_v15  ;;  %5163 = vmatprep.subr.mxu0 %v5092_v40  ;;  %5681 = vmatpush1.msra.mxu1 %v5625_v53  ;;  %v5086_v1 = vld [vmem:[#allocation13 + $0x78] sm:$0xff] }
 0xa36   :  { %4886 = vrot.lane.b32.xlu0 %v4885_v24, %s11537_s13  ;;  %v4913_v62 = vsel %vm4608_vm7, %v12811_v16, %v4912_v10  ;;  %v4928_v63 = vsel %vm4604_vm5, %v12774_v39, %v4927_v55  ;;  %v4983_v56 = vsel %vm4606_vm6, %v12837_v34, %v4982_v47  ;;  %v4816_v58 = vsel %vm4602_vm1, %v12885_v44, %v4811_v49  ;;  %v5624_v16 = vld [vmem:[#allocation13 + $0x238] sm:$0xff]  ;;  %v5085_v24 = vld [vmem:[#allocation13 + $0x70] sm:$0xff]  ;;  %v5084_v55 = vld [vmem:[#allocation13 + $0x68] sm:$0xff] }
 0xa37   :  { %v12918_v11 = vrot.slane %v12786_v27, 7  ;;  %v4603_v18 = vsel %vm4602_vm1, %v4601_v45, %v12681_v4  ;;  %v12923_v37 = vrot.slane %v5024_v3, %v11961_v15  ;;  %v4793_v46 = vsel %vm4608_vm7, %v12830_v2, %v4792_v31  ;;  %5164 = vmatpush1.msra.mxu0 %v5091_v21  ;;  %v5622_v2 = vld [vmem:[#allocation13 + $0x228] sm:$0xff]  ;;  %5682 = vmatprep.subr.mxu1 %v5624_v16  ;;  %v5617_v49 = vld [vmem:[#allocation13 + $0x200] sm:$0xff]  ;;  %v5082_v31 = vld [vmem:[#allocation13 + $0x58] sm:$0xff] }
 0xa38   :  { %4754 = vrot.lane.b32.xlu1 %v4753_v14, %s11538_s22  ;;  %v4942_v38 = vsel %vm4604_vm5, %v12869_v22, %v4941_v20  ;;  %v4929_v27 = vsel %vm4606_vm6, %v12774_v39, %v4928_v63  ;;  %v5007_v4 = vsel %vm4602_vm1, %v12902_v29, %v5004_v32  ;;  %v4605_v19 = vsel %vm4604_vm5, %v4601_v45, %v4603_v18  ;;  %v5083_v3 = vld [vmem:[#allocation13 + $0x60] sm:$0xff]  ;;  %v5616_v14 = vld [vmem:[#allocation13 + $0x1f8] sm:$0xff]  ;;  %v5615_v32 = vld [vmem:[#allocation13 + $0x1f0] sm:$0xff]  ;;  %s5270_s22 = sld [smem:[#allocation14]] }
 0xa39   :  { %v5044_v48 = vrot.slane %v12906_v23, 1  ;;  %v4984_v12 = vsel %vm4608_vm7, %v12837_v34, %v4983_v56  ;;  %v4817_v0 = vsel %vm4604_vm5, %v12885_v44, %v4816_v58  ;;  %v4607_v17 = vsel %vm4606_vm6, %v4601_v45, %v4605_v19  ;;  %5165 = vmatprep.subr.mxu0 %v5090_v28  ;;  %5683 = vmatpush1.msra.mxu1 %v5623_v9  ;;  %v5614_v21 = vld [vmem:[#allocation13 + $0x1e8] sm:$0xff]  ;;  %v5613_v58 = vld [vmem:[#allocation13 + $0x1e0] sm:$0xff]  ;;  %v5078_v9 = vld [vmem:[#allocation13 + $0x38] sm:$0xff] }
 0xa3a   :  { %4914 = vrot.lane.b32.xlu0 %v4913_v62, %s11520_s7  ;;  %s11539_s7 = smov 77   ;;  %v4943_v30 = vsel %vm4606_vm6, %v12869_v22, %v4942_v38  ;;  %v4870_v54 = vsel %vm4602_vm1, %v12918_v11, %v12766_v25  ;;  %v12946_v57 = vrot.slane %v12837_v34, 7  ;;  %v4609_v52 = vsel %vm4608_vm7, %v4601_v45, %v4607_v17  ;;  %5166 = vmatpush1.msra.mxu0 %v5089_v5  ;;  %v5081_v62 = vld [vmem:[#allocation13 + $0x50] sm:$0xff]  ;;  %v5080_v56 = vld [vmem:[#allocation13 + $0x48] sm:$0xff]  ;;  %v5612_v38 = vld [vmem:[#allocation13 + $0x1d8] sm:$0xff] }
 0xa3b   :  { %v4930_v51 = vsel %vm4608_vm7, %v12774_v39, %v4929_v27  ;;  %v5008_v33 = vsel %vm4604_vm5, %v12902_v29, %v5007_v4  ;;  %4612 = vst.msk [vmem:[#allocation3] sm:$0x3] %vm4611_vm8, %v4609_v52  ;;  %5684 = vmatprep.subr.mxu1 %v5622_v2  ;;  %v4818_v25 = vsel %vm4606_vm6, %v12885_v44, %v4817_v0  ;;  %v12968_v10 = vrot.slane %v12902_v29, 7  ;;  %v5611_v27 = vld [vmem:[#allocation13 + $0x1d0] sm:$0xff]  ;;  %v5610_v2 = vld [vmem:[#allocation13 + $0x1c8] sm:$0xff]  ;;  %v5609_v0 = vld [vmem:[#allocation13 + $0x1c0] sm:$0xff] }
 0xa3c   :  { %4794 = vrot.lane.b32.xlu1 %v4793_v46, %s11539_s7  ;;  %v5047_v34 = vsel %vm4602_vm1, %v12923_v37, %v5044_v48  ;;  %5167 = vmatprep.subr.mxu0 %v5088_v35  ;;  %v4944_v39 = vsel %vm4608_vm7, %v12869_v22, %v4943_v30  ;;  %v4871_v8 = vsel %vm4604_vm5, %v12918_v11, %v4870_v54  ;;  %v5618_v22 = vld [vmem:[#allocation13 + $0x208] sm:$0xff]  ;;  %v12986_v53 = vrot.slane %v12923_v37, 7  ;;  %v5077_v4 = vld [vmem:[#allocation13 + $0x30] sm:$0xff]  ;;  %v5608_v35 = vld [vmem:[#allocation13 + $0x1b8] sm:$0xff]  ;;  %s5279_s7 = sld [smem:[#allocation16]] }
 0xa3d   :  { %5685 = vmatpush1.msra.mxu1 %v5621_v41  ;;  %5168 = vmatpush1.msra.mxu0 %v5087_v42  ;;  %v5009_v50 = vsel %vm4606_vm6, %v12902_v29, %v5008_v33  ;;  %v4969_v36 = vsel %vm4602_vm1, %v12946_v57, %v12822_v60  ;;  %v4819_v45 = vsel %vm4608_vm7, %v12885_v44, %v4818_v25  ;;  %v5076_v48 = vld [vmem:[#allocation13 + $0x28] sm:$0xff]  ;;  %v5074_v54 = vld [vmem:[#allocation13 + $0x18] sm:$0xff]  ;;  %v5073_v41 = vld [vmem:[#allocation13 + $0x10] sm:$0xff]  ;;  %vm4823_vm8 = vcmask 796376  }
 0xa3e   :  { %4985 = vrot.lane.b32.xlu0 %v4984_v12, %s11540_s23  ;;  %5686 = vmatprep.subr.mxu1 %v5620_v59  ;;  %v5048_v6 = vsel %vm4604_vm5, %v12923_v37, %v5047_v34  ;;  %v4872_v60 = vsel %vm4606_vm6, %v12918_v11, %v4871_v8  ;;  %v5010_v47 = vsel %vm4608_vm7, %v12902_v29, %v5009_v50  ;;  %v5606_v42 = vld [vmem:[#allocation13 + $0x1a8] sm:$0xff]  ;;  %v5605_v59 = vld [vmem:[#allocation13 + $0x1a0] sm:$0xff]  ;;  %v5603_v8 = vld [vmem:[#allocation13 + $0x190] sm:$0xff] }
 0xa3f   :  { %5169 = vmatprep.subr.mxu0 %v5086_v1  ;;  %5687 = vmatpush1.msra.mxu1 %v5619_v61  ;;  %v4970_v44 = vsel %vm4604_vm5, %v12946_v57, %v4969_v36  ;;  %v5049_v20 = vsel %vm4606_vm6, %v12923_v37, %v5048_v6  ;;  %v4995_v40 = vsel %vm4602_vm1, %v12968_v10, %v12873_v43  ;;  %v5072_v33 = vld [vmem:[#allocation13 + $0x8] sm:$0xff]  ;;  %v5071_v25 = vld [vmem:[#allocation13] sm:$0xff]  ;;  %v5604_v1 = vld [vmem:[#allocation13 + $0x198] sm:$0xff] }
 0xa40   :  { %4931 = vrot.lane.b32.xlu1 %v4930_v51, %s11541_s25  ;;  %5170 = vmatpush1.msra.mxu0 %v5085_v24  ;;  %v5057_v29 = vcombine.high %v12923_v37, %v12923_v37  ;;  %v4873_v63 = vsel %vm4608_vm7, %v12918_v11, %v4872_v60  ;;  %v4971_v43 = vsel %vm4606_vm6, %v12946_v57, %v4970_v44  ;;  %v5079_v11 = vld [vmem:[#allocation13 + $0x40] sm:$0xff]  ;;  %v5120_v61 = vld [vmem:[#allocation13 + $0x188] sm:$0xf]  ;;  %v5652_v50 = vld [vmem:[#allocation13 + $0x318] sm:$0xf] }
 0xa41   :  { %5688 = vmatprep.subr.mxu1 %v5618_v22  ;;  %5171 = vmatprep.subr.mxu0 %v5084_v55  ;;  %v5050_v18 = vsel %vm4608_vm7, %v12923_v37, %v5049_v20  ;;  %v4996_v16 = vsel %vm4604_vm5, %v12968_v10, %v4995_v40  ;;  %v5035_v28 = vsel %vm4602_vm1, %v12986_v53, %v12906_v23  ;;  %v5119_v24 = vld [vmem:[#allocation13 + $0x180] sm:$0xf]  ;;  %v5118_v36 = vld [vmem:[#allocation13 + $0x178] sm:$0xff]  ;;  %v5117_v55 = vld [vmem:[#allocation13 + $0x170] sm:$0xff] }
 0xa42   :  { %4945 = vrot.lane.b32.xlu0 %v4944_v39, %s11542_s26  ;;  %5689 = vmatpush1.msra.mxu1 %v5617_v49  ;;  %v13001_v46 = vrot.slane %v5057_v29, 7  ;;  %v4972_v37 = vsel %vm4608_vm7, %v12946_v57, %v4971_v43  ;;  %v5056_v19 = vcombine.high %v12906_v23, %v12906_v23  ;;  %v4997_v5 = vsel %vm4606_vm6, %v12968_v10, %v4996_v16  ;;  %v5075_v23 = vld [vmem:[#allocation13 + $0x20] sm:$0xff]  ;;  %v5607_v57 = vld [vmem:[#allocation13 + $0x1b0] sm:$0xff]  ;;  %v5116_v6 = vld [vmem:[#allocation13 + $0x168] sm:$0xff] }
 0xa43   :  { %5172 = vmatpush1.msra.mxu0 %v5083_v3  ;;  %5690 = vmatprep.subr.mxu1 %v5616_v14  ;;  %v5036_v12 = vsel %vm4604_vm5, %v12986_v53, %v5035_v28  ;;  %v4998_v30 = vsel %vm4608_vm7, %v12968_v10, %v4997_v5  ;;  %v5651_v10 = vld [vmem:[#allocation13 + $0x310] sm:$0xf]  ;;  %v5649_v49 = vld [vmem:[#allocation13 + $0x300] sm:$0xff]  ;;  %v5648_v3 = vld [vmem:[#allocation13 + $0x2f8] sm:$0xff] }
 0xa44   :  { %4820 = vrot.lane.b32.xlu1 %v4819_v45, %s11543_s2  ;;  %5173 = vmatprep.subr.mxu0 %v5082_v31  ;;  %v5061_v17 = vsel %vm4602_vm1, %v13001_v46, %v5056_v19  ;;  %v5037_v52 = vsel %vm4606_vm6, %v12986_v53, %v5036_v12  ;;  %v5650_v45 = vld [vmem:[#allocation13 + $0x308] sm:$0xff]  ;;  %v5115_v60 = vld [vmem:[#allocation13 + $0x160] sm:$0xff]  ;;  %v5114_v14 = vld [vmem:[#allocation13 + $0x158] sm:$0xff]  ;;  %s11552_s2 = smov 30  }
 0xa45   :  { %5691 = vmatpush1.msra.mxu1 %v5615_v32  ;;  %5174 = vmatpush1.msra.mxu0 %v5081_v62  ;;  %v5062_v51 = vsel %vm4604_vm5, %v13001_v46, %v5061_v17  ;;  %v5038_v34 = vsel %vm4608_vm7, %v12986_v53, %v5037_v52  ;;  %v5113_v44 = vld [vmem:[#allocation13 + $0x150] sm:$0xff]  ;;  %v5646_v31 = vld [vmem:[#allocation13 + $0x2e8] sm:$0xff]  ;;  %v5645_v40 = vld [vmem:[#allocation13 + $0x2e0] sm:$0xff]  ;;  %vm4769_vm5 = vcmask 624176  }
 0xa46   :  { %5011 = vrot.lane.b32.xlu0 %v5010_v47, %s11544_s27  ;;  %5692 = vmatprep.subr.mxu1 %v5614_v21  ;;  %v5063_v39 = vsel %vm4606_vm6, %v13001_v46, %v5062_v51  ;;  %v5647_v47 = vld [vmem:[#allocation13 + $0x2f0] sm:$0xff]  ;;  %v5112_v20 = vld [vmem:[#allocation13 + $0x148] sm:$0xff]  ;;  %v5111_v53 = vld [vmem:[#allocation13 + $0x140] sm:$0xff]  ;;  %vm4797_vm6 = vcmask 681576  }
 0xa47   :  { %5175 = vmatprep.subr.mxu0 %v5080_v56  ;;  %5693 = vmatpush1.msra.mxu1 %v5613_v58  ;;  %v5064_v22 = vsel %vm4608_vm7, %v13001_v46, %v5063_v39  ;;  %v5644_v29 = vld [vmem:[#allocation13 + $0x2d8] sm:$0xff]  ;;  %v5643_v62 = vld [vmem:[#allocation13 + $0x2d0] sm:$0xff]  ;;  %v5642_v21 = vld [vmem:[#allocation13 + $0x2c8] sm:$0xff]  ;;  %vm4809_vm7 = vcmask 738976  }
 0xa48   :  { %4874 = vrot.lane.b32.xlu1 %v4873_v63, %s11545_s8  ;;  %5176 = vmatpush1.msra.mxu0 %v5079_v11  ;;  %v5110_v32 = vld [vmem:[#allocation13 + $0x138] sm:$0xff]  ;;  %v5109_v63 = vld [vmem:[#allocation13 + $0x130] sm:$0xff]  ;;  %v5108_v43 = vld [vmem:[#allocation13 + $0x128] sm:$0xff] }
 0xa49   :  { %5694 = vmatprep.subr.mxu1 %v5612_v38  ;;  %5177 = vmatprep.subr.mxu0 %v5078_v9  ;;  %v5641_v56 = vld [vmem:[#allocation13 + $0x2c0] sm:$0xff]  ;;  %v5106_v16 = vld [vmem:[#allocation13 + $0x118] sm:$0xff]  ;;  %v5639_v11 = vld [vmem:[#allocation13 + $0x2b0] sm:$0xff] }
 0xa4a   :  { %5051 = vrot.lane.b32.xlu0 %v5050_v18, %s11546_s28  ;;  %5695 = vmatpush1.msra.mxu1 %v5611_v27  ;;  %v5107_v58 = vld [vmem:[#allocation13 + $0x120] sm:$0xff]  ;;  %v5640_v18 = vld [vmem:[#allocation13 + $0x2b8] sm:$0xff]  ;;  %v5105_v28 = vld [vmem:[#allocation13 + $0x110] sm:$0xff] }
 0xa4b   :  { %5178 = vmatpush1.msra.mxu0 %v5077_v4  ;;  %5696 = vmatprep.subr.mxu1 %v5610_v2  ;;  %v5638_v46 = vld [vmem:[#allocation13 + $0x2a8] sm:$0xff]  ;;  %v5637_v9 = vld [vmem:[#allocation13 + $0x2a0] sm:$0xff]  ;;  %v5636_v27 = vld [vmem:[#allocation13 + $0x298] sm:$0xff] }
 0xa4c   :  { %4973 = vrot.lane.b32.xlu1 %v4972_v37, %s11547_s29  ;;  %5179 = vmatprep.subr.mxu0 %v5076_v48  ;;  %v5104_v38 = vld [vmem:[#allocation13 + $0x108] sm:$0xff]  ;;  %v5103_v37 = vld [vmem:[#allocation13 + $0x100] sm:$0xff]  ;;  %v5635_v4 = vld [vmem:[#allocation13 + $0x290] sm:$0xff]  ;;  %s10654_s29 = sld [smem:[#allocation14 + $0x1]] }
 0xa4d   :  { %5697 = vmatpush1.msra.mxu1 %v5609_v0  ;;  %5180 = vmatpush1.msra.mxu0 %v5075_v23  ;;  %v6148_v19 = vld [vmem:[#allocation13 + $0x418] sm:$0xff] }
 0xa4e   :  { %5698 = vmatprep.subr.mxu1 %v5608_v35  ;;  %5181 = vmatprep.subr.mxu0 %v5074_v54 }
 0xa4f   :  { %5699 = vmatpush1.msra.mxu1 %v5607_v57  ;;  %5182 = vmatpush1.msra.mxu0 %v5073_v41 }
 0xa50   :  { %4999 = vrot.lane.b32.xlu1 %v4998_v30, %s11548_s30  ;;  %5700 = vmatprep.subr.mxu1 %v5606_v42 }
 0xa51   :  { %5183 = vmatprep.subr.mxu0 %v5072_v33  ;;  %5701 = vmatpush1.msra.mxu1 %v5605_v59 }
 0xa52   :  { %5184 = vmatpush1.msra.mxu0 %v5071_v25  ;;  %5702 = vmatprep.subr.mxu1 %v5604_v1 }
 0xa53   :  { %10650 = vmatprep.subr.msk.mxu0 %vm5146_vm9, %v5120_v61  ;;  %5703 = vmatpush1.msra.mxu1 %v5603_v8 }
 0xa54   :  { %5039 = vrot.lane.b32.xlu1 %v5038_v34, %s11549_s5  ;;  %10651 = vmatpush2.msk.msra.mxu0 %vm5146_vm9, %v5119_v24 }
 0xa55   :  { %10664 = vmatprep.subr.msk.mxu1 %vm5146_vm9, %v5652_v50  ;;  %5201 = vmatprep.subr.mxu0 %v5118_v36 }
 0xa56   :  { %10665 = vmatpush2.msk.msra.mxu1 %vm5146_vm9, %v5651_v10  ;;  %5202 = vmatpush2.msra.mxu0 %v5117_v55 }
 0xa57   :  { %5720 = vmatprep.subr.mxu1 %v5650_v45  ;;  %5203 = vmatprep.subr.mxu0 %v5116_v6 }
 0xa58   :  { %5065 = vrot.lane.b32.xlu1 %v5064_v22, %s11550_s16  ;;  %5721 = vmatpush2.msra.mxu1 %v5649_v49  ;;  %v6147_v49 = vld [vmem:[#allocation13 + $0x410] sm:$0xff] }
 0xa59   :  { %5204 = vmatpush2.msra.mxu0 %v5115_v60  ;;  %5722 = vmatprep.subr.mxu1 %v5648_v3  ;;  %v6146_v60 = vld [vmem:[#allocation13 + $0x408] sm:$0xff]  ;;  %v6145_v3 = vld [vmem:[#allocation13 + $0x400] sm:$0xff] }
 0xa5a   :  { %5205 = vmatprep.subr.mxu0 %v5114_v14  ;;  %5723 = vmatpush2.msra.mxu1 %v5647_v47  ;;  %v6144_v14 = vld [vmem:[#allocation13 + $0x3f8] sm:$0xff]  ;;  %v6143_v47 = vld [vmem:[#allocation13 + $0x3f0] sm:$0xff] }
 0xa5b   :  { %5206 = vmatpush2.msra.mxu0 %v5113_v44  ;;  %5724 = vmatprep.subr.mxu1 %v5646_v31  ;;  %v6142_v44 = vld [vmem:[#allocation13 + $0x3e8] sm:$0xff]  ;;  %v6141_v31 = vld [vmem:[#allocation13 + $0x3e0] sm:$0xff] }
 0xa5c   :  { %5207 = vmatprep.subr.mxu0 %v5112_v20  ;;  %5725 = vmatpush2.msra.mxu1 %v5645_v40  ;;  %v6140_v20 = vld [vmem:[#allocation13 + $0x3d8] sm:$0xff]  ;;  %v6139_v40 = vld [vmem:[#allocation13 + $0x3d0] sm:$0xff] }
 0xa5d   :  { %5208 = vmatpush2.msra.mxu0 %v5111_v53  ;;  %5726 = vmatprep.subr.mxu1 %v5644_v29  ;;  %v6138_v53 = vld [vmem:[#allocation13 + $0x3c8] sm:$0xff]  ;;  %v6137_v29 = vld [vmem:[#allocation13 + $0x3c0] sm:$0xff] }
 0xa5e   :  { %5209 = vmatprep.subr.mxu0 %v5110_v32  ;;  %5727 = vmatpush2.msra.mxu1 %v5643_v62  ;;  %v6136_v32 = vld [vmem:[#allocation13 + $0x3b8] sm:$0xff]  ;;  %v6135_v62 = vld [vmem:[#allocation13 + $0x3b0] sm:$0xff] }
 0xa5f   :  { %5210 = vmatpush2.msra.mxu0 %v5109_v63  ;;  %5728 = vmatprep.subr.mxu1 %v5642_v21  ;;  %v6134_v63 = vld [vmem:[#allocation13 + $0x3a8] sm:$0xff]  ;;  %v6133_v21 = vld [vmem:[#allocation13 + $0x3a0] sm:$0xff] }
 0xa60   :  { %5211 = vmatprep.subr.mxu0 %v5108_v43  ;;  %5729 = vmatpush2.msra.mxu1 %v5641_v56  ;;  %v6132_v43 = vld [vmem:[#allocation13 + $0x398] sm:$0xff]  ;;  %v6131_v56 = vld [vmem:[#allocation13 + $0x390] sm:$0xff] }
 0xa61   :  { %5212 = vmatpush2.msra.mxu0 %v5107_v58  ;;  %5730 = vmatprep.subr.mxu1 %v5640_v18  ;;  %v6130_v58 = vld [vmem:[#allocation13 + $0x388] sm:$0xff]  ;;  %v6129_v18 = vld [vmem:[#allocation13 + $0x380] sm:$0xff] }
 0xa62   :  { %5213 = vmatprep.subr.mxu0 %v5106_v16  ;;  %5731 = vmatpush2.msra.mxu1 %v5639_v11  ;;  %v6128_v16 = vld [vmem:[#allocation13 + $0x378] sm:$0xff]  ;;  %v6127_v11 = vld [vmem:[#allocation13 + $0x370] sm:$0xff] }
 0xa63   :  { %5214 = vmatpush2.msra.mxu0 %v5105_v28  ;;  %5732 = vmatprep.subr.mxu1 %v5638_v46  ;;  %v6126_v28 = vld [vmem:[#allocation13 + $0x368] sm:$0xff]  ;;  %v6125_v46 = vld [vmem:[#allocation13 + $0x360] sm:$0xff] }
 0xa64   :  { %5215 = vmatprep.subr.mxu0 %v5104_v38  ;;  %5733 = vmatpush2.msra.mxu1 %v5637_v9  ;;  %v6124_v38 = vld [vmem:[#allocation13 + $0x358] sm:$0xff]  ;;  %v6123_v9 = vld [vmem:[#allocation13 + $0x350] sm:$0xff] }
 0xa65   :  { %5216 = vmatpush2.msra.mxu0 %v5103_v37  ;;  %5734 = vmatprep.subr.mxu1 %v5636_v27  ;;  %v6122_v37 = vld [vmem:[#allocation13 + $0x348] sm:$0xff]  ;;  %v6121_v27 = vld [vmem:[#allocation13 + $0x340] sm:$0xff] }
 0xa66   :  { %5735 = vmatpush2.msra.mxu1 %v5635_v4  ;;  %6186 = vmatprep.subr.mxu0 %v6148_v19  ;;  %v6120_v4 = vld [vmem:[#allocation13 + $0x338] sm:$0xff]  ;;  %v6119_v19 = vld [vmem:[#allocation13 + $0x330] sm:$0xff] }
 0xa67   :  { %10957 = vmatprep.subr.mxu1 %v11521_v7 }
 0xa90   :  { %v4621_v5 = vpop.permute.xlu0 %4620 }
 0xa91   :  { %4624 = vst.msk [vmem:[#allocation3] sm:$0x3] %vm4623_vm10, %v4621_v5  ;;  %vm4851_vm10 = vcmask 853776   ;;  %v6118_v5 = vld [vmem:[#allocation13 + $0x328] sm:$0xff] }
 0xa92   :  { %v4647_v2 = vpop.permute.xlu1 %4646 }
 0xa94   :  { %v4741_v48 = vpop.permute.xlu0 %4740 }
 0xa96   :  { %v4687_v12 = vpop.permute.xlu1 %4686 }
 0xa98   :  { %v4701_v0 = vpop.permute.xlu0 %4700 }
 0xa9a   :  { %v4635_v17 = vpop.permute.xlu1 %4634 }
 0xa9b   :  { %4638 = vst.msk [vmem:[#allocation3] sm:$0x3] %vm4637_vm11, %v4635_v17  ;;  %vm4863_vm11 = vcmask 911176   ;;  %v6163_v17 = vld [vmem:[#allocation13 + $0x490] sm:$0xff] }
 0xa9c   :  { %v4767_v23 = vpop.permute.xlu0 %4766  ;;  %4650 = vst.msk [vmem:[#allocation3] sm:$0x3] %vm4649_vm12, %v4647_v2  ;;  %vm4920_vm12 = vcmask 1042416   ;;  %v6117_v2 = vld [vmem:[#allocation13 + $0x320] sm:$0xff] }
 0xa9e   :  { %v4675_v35 = vpop.permute.xlu1 %4674 }
 0xa9f   :  { %4678 = vst.msk [vmem:[#allocation3] sm:$0x3] %vm4677_vm13, %v4675_v35  ;;  %vm4921_vm13 = vcmask 35842   ;;  %v6161_v35 = vld [vmem:[#allocation13 + $0x480] sm:$0xff] }
 0xaa0   :  { %4690 = vst.msk [vmem:[#allocation3] sm:$0x3] %vm4689_vm14, %v4687_v12  ;;  %v4807_v30 = vpop.permute.xlu0 %4806  ;;  %vm4877_vm14 = vcmask 968576   ;;  %v6165_v12 = vld [vmem:[#allocation13 + $0x4a0] sm:$0xf] }
 0xaa1   :  { %4704 = vst.msk [vmem:[#allocation3] sm:$0x3] %vm4703_vm15, %v4701_v0  ;;  %vm4917_vm15 = vcmask 1031168   ;;  %v6164_v0 = vld [vmem:[#allocation13 + $0x498] sm:$0xff] }
 0xaa2   :  { %v4729_v54 = vpop.permute.xlu1 %4728 }
 0xaa3   :  { %4732 = vst.msk [vmem:[#allocation3] sm:$0x3] %vm4731_vm2, %v4729_v54  ;;  %vm4889_vm2 = vcmask 1025976   ;;  %v6159_v54 = vld [vmem:[#allocation13 + $0x470] sm:$0xff] }
 0xaa4   :  { %v4849_v57 = vpop.permute.xlu0 %4848  ;;  %4744 = vst.msk [vmem:[#allocation3] sm:$0x3] %vm4743_vm3, %v4741_v48  ;;  %vm4922_vm3 = vmor %vm4921_vm13, %vm4920_vm12  ;;  %vm5054_vm12 = vcmask 492976   ;;  %vm5068_vm13 = vcmask 550376   ;;  %v6166_v48 = vld [vmem:[#allocation13 + $0x4a8] sm:$0xf] }
 0xaa6   :  { %v4861_v52 = vpop.permute.xlu1 %4860 }
 0xaa8   :  { %v4887_v41 = vpop.permute.xlu0 %4886 }
 0xaaa   :  { %v4755_v42 = vpop.permute.xlu1 %4754 }
 0xaab   :  { %4758 = vst.msk [vmem:[#allocation3] sm:$0x3] %vm4757_vm4, %v4755_v42  ;;  %vm4934_vm4 = vcmask 91176   ;;  %v6155_v42 = vld [vmem:[#allocation13 + $0x450] sm:$0xff] }
 0xaac   :  { %4770 = vst.msk [vmem:[#allocation3] sm:$0x3] %vm4769_vm5, %v4767_v23  ;;  %v4915_v33 = vpop.permute.xlu0 %4914  ;;  %vm4948_vm5 = vcmask 148576   ;;  %v6162_v23 = vld [vmem:[#allocation13 + $0x488] sm:$0xff] }
 0xaad   :  { %v4916_v1 = vrot.slane %v4915_v33, 6 }
 0xaae   :  { %v4795_v51 = vpop.permute.xlu1 %4794 }
 0xaaf   :  { %4798 = vst.msk [vmem:[#allocation3] sm:$0x3] %vm4797_vm6, %v4795_v51  ;;  %v4918_v8 = vsel %vm4917_vm15, %v4916_v1, %v4915_v33  ;;  %vm4976_vm6 = vcmask 205976   ;;  %v6154_v51 = vld [vmem:[#allocation13 + $0x448] sm:$0xff]  ;;  %v6153_v33 = vld [vmem:[#allocation13 + $0x440] sm:$0xff]  ;;  %vm5235_vm15 = vcmask 1041408  }
 0xab0   :  { %4810 = vst.msk [vmem:[#allocation3] sm:$0x3] %vm4809_vm7, %v4807_v30  ;;  %v4986_v25 = vpop.permute.xlu0 %4985  ;;  %vm4988_vm7 = vcmask 263376   ;;  %v6160_v30 = vld [vmem:[#allocation13 + $0x478] sm:$0xff]  ;;  %v6149_v1 = vld [vmem:[#allocation13 + $0x420] sm:$0xff] }
 0xab2   :  { %v4932_v59 = vpop.permute.xlu1 %4931 }
 0xab4   :  { %v4946_v39 = vpop.permute.xlu0 %4945 }
 0xab6   :  { %v4821_v34 = vpop.permute.xlu1 %4820 }
 0xab7   :  { %4824 = vst.msk [vmem:[#allocation3] sm:$0x3] %vm4823_vm8, %v4821_v34  ;;  %vm5002_vm8 = vcmask 320776   ;;  %v6150_v34 = vld [vmem:[#allocation13 + $0x428] sm:$0xff] }
 0xab8   :  { %4852 = vst.msk [vmem:[#allocation3] sm:$0x3] %vm4851_vm10, %v4849_v57  ;;  %v5012_v50 = vpop.permute.xlu0 %5011  ;;  %vm5014_vm10 = vcmask 378176   ;;  %v6158_v57 = vld [vmem:[#allocation13 + $0x468] sm:$0xff] }
 0xab9   :  { %4864 = vst.msk [vmem:[#allocation3] sm:$0x3] %vm4863_vm11, %v4861_v52  ;;  %vm5042_vm11 = vcmask 435576   ;;  %v6157_v52 = vld [vmem:[#allocation13 + $0x460] sm:$0xff] }
 0xaba   :  { %v4875_v61 = vpop.permute.xlu1 %4874 }
 0xabb   :  { %4878 = vst.msk [vmem:[#allocation3] sm:$0x3] %vm4877_vm14, %v4875_v61  ;;  %vm5143_vm14 = vcmask 556032   ;;  %v13045_v61 = vsub.s32 0, %v11958_v13 }
 0xabc   :  { %4890 = vst.msk [vmem:[#allocation3] sm:$0x3] %vm4889_vm2, %v4887_v41  ;;  %v5052_v22 = vpop.permute.xlu0 %5051  ;;  %v6156_v41 = vld [vmem:[#allocation13 + $0x458] sm:$0xff]  ;;  %vm5236_vm2 = vcmask 551938  }
 0xabd   :  { %4923 = vst.msk [vmem:[#allocation3] sm:$0xf] %vm4922_vm3, %v4918_v8  ;;  %v5121_v8 = vld [vmem:[%s14185_s6] sm:$0x3]  ;;  %vm13060_vm3 = vmor %vm5236_vm2, %vm5235_vm15 }
 0xabe   :  { %v4974_v24 = vpop.permute.xlu1 %4973  ;;  %4935 = vst.msk [vmem:[#allocation3 + $0x2] sm:$0x3] %vm4934_vm4, %v4932_v59  ;;  %v6152_v59 = vld [vmem:[#allocation13 + $0x438] sm:$0xff]  ;;  %vm5240_vm4 = vcmask 394240  }
 0xabf   :  { %4949 = vst.msk [vmem:[#allocation3 + $0x2] sm:$0x3] %vm4948_vm5, %v4946_v39  ;;  %v13048_v39 = vsub.s32 1, %v11958_v13 }
 0xac0   :  { %4977 = vst.msk [vmem:[#allocation3 + $0x2] sm:$0x3] %vm4976_vm6, %v4974_v24  ;;  %v5126_v24 = vrot.slane %v5121_v8, %v13045_v61  ;;  %vm5297_vm6 = vcmask 393216  }
 0xac1   :  { %4989 = vst.msk [vmem:[#allocation3 + $0x2] sm:$0x3] %vm4988_vm7, %v4986_v25  ;;  %v6151_v25 = vld [vmem:[#allocation13 + $0x430] sm:$0xff]  ;;  %vm5407_vm7 = vcmask 244736  }
 0xac2   :  { %v5000_v36 = vpop.permute.xlu1 %4999 }
 0xac3   :  { %5003 = vst.msk [vmem:[#allocation3 + $0x2] sm:$0x3] %vm5002_vm8, %v5000_v36 }
 0xac4   :  { %5015 = vst.msk [vmem:[#allocation3 + $0x2] sm:$0x3] %vm5014_vm10, %v5012_v50  ;;  %v5130_v50 = vrot.slane %v5121_v8, %v13048_v39 }
 0xac6   :  { %v5040_v10 = vpop.permute.xlu1 %5039 }
 0xac7   :  { %5043 = vst.msk [vmem:[#allocation3 + $0x2] sm:$0x3] %vm5042_vm11, %v5040_v10 }
 0xac8   :  { %5055 = vst.msk [vmem:[#allocation3 + $0x2] sm:$0x3] %vm5054_vm12, %v5052_v22 }
 0xaca   :  { %v5066_v55 = vpop.permute.xlu1 %5065 }
 0xacb   :  { %5069 = vst.msk [vmem:[#allocation3 + $0x2] sm:$0x3] %vm5068_vm13, %v5066_v55 }
 0xad2   :  { %v13030_v45 = vld.sshfl [vmem:[#allocation3] sm:$0x33 pattern:$0x76325410] }
 0xad3   :  { %v5141_v6 = vcombine.high %v13030_v45, %v13030_v45 }
 0xad5   :  { %10652 = vmatprep.mubr.msk.f32.mxu0 %vm5143_vm14, %v5141_v6  ;;  %10666 = vmatprep.mubr.msk.f32.mxu1 %vm5143_vm14, %v5141_v6 }
 0xad6   :  { %5218 = vmatmul.mubr.f32.vlgmr.msra.gmra.mxu0 %v13030_v45  ;;  %5737 = vmatmul.mubr.f32.vlgmr.msra.gmra.mxu1 %v13030_v45 }
 0xad7   :  { %6187 = vmatpush1.msra.mxu0 %v6147_v49  ;;  %10682 = vmatprep.mubr.msk.f32.mxu0 %vm5143_vm14, %v5141_v6 }
 0xad8   :  { %6188 = vmatprep.subr.mxu0 %v6146_v60  ;;  %10959 = vmatprep.mubr.msk.f32.mxu1 %vm11524_vm0, %v11521_v7 }
 0xad9   :  { %6189 = vmatpush1.msra.mxu0 %v6145_v3 }
 0xada   :  { %6190 = vmatprep.subr.mxu0 %v6144_v14 }
 0xadb   :  { %6191 = vmatpush1.msra.mxu0 %v6143_v47 }
 0xadc   :  { %6192 = vmatprep.subr.mxu0 %v6142_v44 }
 0xadd   :  { %6193 = vmatpush1.msra.mxu0 %v6141_v31 }
 0xade   :  { %6194 = vmatprep.subr.mxu0 %v6140_v20 }
 0xadf   :  { %6195 = vmatpush1.msra.mxu0 %v6139_v40 }
 0xae0   :  { %6196 = vmatprep.subr.mxu0 %v6138_v53 }
 0xae1   :  { %6197 = vmatpush1.msra.mxu0 %v6137_v29 }
 0xae2   :  { %6198 = vmatprep.subr.mxu0 %v6136_v32 }
 0xae3   :  { %6199 = vmatpush1.msra.mxu0 %v6135_v62 }
 0xae4   :  { %6200 = vmatprep.subr.mxu0 %v6134_v63 }
 0xae5   :  { %6201 = vmatpush1.msra.mxu0 %v6133_v21 }
 0xae6   :  { %6202 = vmatprep.subr.mxu0 %v6132_v43  ;;  %v10679_v43 = vld [vmem:[%s14185_s6 + $0x4] sm:$0x3] }
 0xae7   :  { %6203 = vmatpush1.msra.mxu0 %v6131_v56  ;;  %v6173_v56 = vrot.slane %v10679_v43, %v13045_v61 }
 0xae8   :  { %6204 = vmatprep.subr.mxu0 %v6130_v58  ;;  %v6177_v58 = vrot.slane %v10679_v43, %v13048_v39 }
 0xae9   :  { %6205 = vmatpush1.msra.mxu0 %v6129_v18 }
 0xaea   :  { %6206 = vmatprep.subr.mxu0 %v6128_v16 }
 0xaeb   :  { %6207 = vmatpush1.msra.mxu0 %v6127_v11 }
 0xaec   :  { %6208 = vmatprep.subr.mxu0 %v6126_v28 }
 0xaed   :  { %6209 = vmatpush1.msra.mxu0 %v6125_v46 }
 0xaee   :  { %6210 = vmatprep.subr.mxu0 %v6124_v38 }
 0xaef   :  { %6211 = vmatpush1.msra.mxu0 %v6123_v9 }
 0xaf0   :  { %6212 = vmatprep.subr.mxu0 %v6122_v37 }
 0xaf1   :  { %6213 = vmatpush1.msra.mxu0 %v6121_v27 }
 0xaf2   :  { %6214 = vmatprep.subr.mxu0 %v6120_v4 }
 0xaf3   :  { %6215 = vmatpush1.msra.mxu0 %v6119_v19 }
 0xaf4   :  { %6216 = vmatprep.subr.mxu0 %v6118_v5 }
 0xaf5   :  { %6217 = vmatpush1.msra.mxu0 %v6117_v2 }
 0xaf6   :  { %10680 = vmatprep.subr.msk.mxu0 %vm5146_vm9, %v6166_v48 }
 0xaf7   :  { %10681 = vmatpush2.msk.msra.mxu0 %vm5146_vm9, %v6165_v12 }
 0xaf8   :  { %6234 = vmatprep.subr.mxu0 %v6164_v0 }
 0xaf9   :  { %6235 = vmatpush2.msra.mxu0 %v6163_v17 }
 0xafa   :  { %6236 = vmatprep.subr.mxu0 %v6162_v23 }
 0xafb   :  { %6237 = vmatpush2.msra.mxu0 %v6161_v35 }
 0xafc   :  { %6238 = vmatprep.subr.mxu0 %v6160_v30 }
 0xafd   :  { %6239 = vmatpush2.msra.mxu0 %v6159_v54 }
 0xafe   :  { %6240 = vmatprep.subr.mxu0 %v6158_v57 }
 0xaff   :  { %6241 = vmatpush2.msra.mxu0 %v6157_v52 }
 0xb00   :  { %6242 = vmatprep.subr.mxu0 %v6156_v41 }
 0xb01   :  { %6243 = vmatpush2.msra.mxu0 %v6155_v42 }
 0xb02   :  { %6244 = vmatprep.subr.mxu0 %v6154_v51 }
 0xb03   :  { %6245 = vmatpush2.msra.mxu0 %v6153_v33 }
 0xb04   :  { %6246 = vmatprep.subr.mxu0 %v6152_v59 }
 0xb05   :  { %6247 = vmatpush2.msra.mxu0 %v6151_v25 }
 0xb06   :  { %6248 = vmatprep.subr.mxu0 %v6150_v34 }
 0xb07   :  { %6249 = vmatpush2.msra.mxu0 %v6149_v1 }
 0xb08   :  { %6251 = vmatmul.mubr.f32.vlgmr.msra.gmra.mxu0 %v13030_v45  ;;  %11003 = vmatprep.subr.mxu0 %v11521_v7  ;;  %v10663_v45 = vld [vmem:[%s14185_s6 + $0x2] sm:$0x3] }
 0xb09   :  { %11005 = vmatprep.mubr.msk.f32.mxu0 %vm11524_vm0, %v11521_v7  ;;  %v5663_v13 = vrot.slane %v10663_v45, %v13048_v39  ;;  %v5659_v3 = vrot.slane %v10663_v45, %v13045_v61 }
 0xb96   :  { %v5219_v36 = vpop.f32.mrf.mxu0  ;;  %v5738_v10 = vpop.f32.mrf.mxu1 }
 0xb97   :  { %v5220_v55 = vadd.f32 %v5219_v36, %v5126_v24  ;;  %v5739_v31 = vadd.f32 %v5738_v10, %v5659_v3 }
 0xb98   :  { %v5221_v22 = vpop.f32.mrf.mxu0  ;;  %v5740_v60 = vpop.f32.mrf.mxu1 }
 0xb99   :  { %v5222_v6 = vadd.f32 %v5221_v22, %v5130_v50  ;;  %v5741_v44 = vadd.f32 %v5740_v60, %v5663_v13  ;;  %v5280_v60 = vstv %s5279_s7 }
 0xb9b   :  { %v5226_v49 = vcombine.low %v5220_v55, %v5222_v6  ;;  %v5745_v20 = vcombine.low %v5739_v31, %v5741_v44  ;;  %v5271_v6 = vstv %s5270_s22  ;;  %s10660_s22 = sld [smem:[#allocation14 + $0x3]] }
 0xb9d   :  { %v5233_v47 = vrot.slane %v5226_v49, %v11961_v15  ;;  %v5752_v40 = vrot.slane %v5745_v20, %v11961_v15 }
 0xb9f   :  { %5238 = vst.msk [vmem:[#allocation4] sm:$0xf] %vm13060_vm3, %v5233_v47 }
 0xba6   :  { %v5239_v53 = vld [vmem:[#allocation4] sm:$0x3]  ;;  %v13073_v63 = vld [vmem:[#allocation4 + $0x2] sm:$0x3] }
 0xba7   :  { %v13068_v29 = vld [vmem:[#allocation4] sm:$0x3]  ;;  %v5241_v62 = vsel %vm5240_vm4, %v5239_v53, 0.0 }
 0xba8   :  { %v13070_v32 = vld [vmem:[#allocation4] sm:$0xf]  ;;  %5242 = vadd.xlane.f32.xlu0 %v5241_v62  ;;  %v5308_v21 = vrot.slane %v13068_v29, %v11961_v15 }
 0xba9   :  { %5754 = vst.msk [vmem:[#allocation4] sm:$0xf] %vm13060_vm3, %v5752_v40  ;;  %v5401_v43 = vrot.slane %v13070_v32, %v11961_v15 }
 0xbb0   :  { %v13086_v9 = vld [vmem:[#allocation4] sm:$0x3]  ;;  %v13092_v4 = vld [vmem:[#allocation4 + $0x2] sm:$0x3] }
 0xbb1   :  { %v13088_v37 = vld [vmem:[#allocation4] sm:$0x3] }
 0xbb2   :  { %v13090_v27 = vld [vmem:[#allocation4] sm:$0xf] }
 0xbbe   :  { %5309 = vrot.lane.b32.xlu0 %v5308_v21, %s11551_s18 }
 0xbc8   :  { %v6252_v18 = vpop.f32.mrf.mxu0 }
 0xbc9   :  { %v6253_v11 = vadd.f32 %v6252_v18, %v6173_v56 }
 0xbca   :  { %v6254_v16 = vpop.f32.mrf.mxu0 }
 0xbcb   :  { %v6255_v28 = vadd.f32 %v6254_v16, %v6177_v58 }
 0xbcd   :  { %v6259_v46 = vcombine.low %v6253_v11, %v6255_v28 }
 0xbcf   :  { %v6266_v38 = vrot.slane %v6259_v46, %v11961_v15 }
 0xbd1   :  { %6268 = vst.msk [vmem:[#allocation4] sm:$0xf] %vm13060_vm3, %v6266_v38 }
 0xc31   :  { %v5243_v19 = vpop.xlane.xlu0 %5242 }
 0xc32   :  { %v5244_v5 = vrot.slane %v5243_v19, 4 }
 0xc34   :  { %v5245_v2 = vadd.f32 %v5244_v5, %v5243_v19 }
 0xc35   :  { %v5310_v57 = vpop.permute.xlu0 %5309 }
 0xc36   :  { %v5246_v48 = vrot.slane %v5245_v2, 2  ;;  %v5312_v52 = vsel %vm5240_vm4, %v5310_v57, 0.0 }
 0xc38   :  { %v5247_v12 = vadd.f32 %v5246_v48, %v5245_v2 }
 0xc3a   :  { %v5248_v0 = vrot.slane %v5247_v12, 1 }
 0xc3c   :  { %v5249_v17 = vadd.f32 %v5248_v0, %v5247_v12 }
 0xc3e   :  { %11182 = vpush %v5249_v17 }
 0xc6f   :  { %s11183_s6 = spop %11182 }
 0xc70   :  { %s5253_s3 = smul.f32 0.010204081, %s11183_s6 }
 0xc72   :  { %v5254_v23 = vstv %s5253_s3 }
 0xc73   :  { %v5255_v35 = vsub.f32 %v5239_v53, %v5254_v23 }
 0xc75   :  { %v5256_v30 = vmul.f32 %v5255_v35, %v5255_v35  ;;  %v5272_v13 = vmul.f32 %v5271_v6, %v5255_v35  ;;  %v5756_v6 = vsel %vm5240_vm4, %v13086_v9, 0.0 }
 0xc77   :  { %v5257_v54 = vsel %vm5240_vm4, %v5256_v30, 0.0 }
 0xc78   :  { %5258 = vadd.xlane.f32.xlu1 %v5257_v54 }
 0xc7c   :  { %5313 = vadd.xlane.f32.xlu1 %v5312_v52 }
 0xd01   :  { %v5259_v41 = vpop.xlane.xlu1 %5258 }
 0xd02   :  { %v5260_v42 = vrot.slane %v5259_v41, 4 }
 0xd04   :  { %v5261_v51 = vadd.f32 %v5260_v42, %v5259_v41  ;;  %v5353_v42 = vstv %s10654_s29  ;;  %s10668_s29 = sld [smem:[#allocation16 + $0x80]] }
 0xd05   :  { %v5314_v1 = vpop.xlane.xlu1 %5313 }
 0xd06   :  { %v5262_v33 = vrot.slane %v5261_v51, 2  ;;  %v5315_v8 = vrot.slane %v5314_v1, 4 }
 0xd08   :  { %v5263_v59 = vadd.f32 %v5262_v33, %v5261_v51  ;;  %v5316_v24 = vadd.f32 %v5315_v8, %v5314_v1 }
 0xd0a   :  { %v5264_v25 = vrot.slane %v5263_v59, 1  ;;  %v5317_v36 = vrot.slane %v5316_v24, 2 }
 0xd0c   :  { %v5265_v34 = vadd.f32 %v5264_v25, %v5263_v59  ;;  %v5318_v10 = vadd.f32 %v5317_v36, %v5316_v24 }
 0xd0e   :  { %11184 = vpush %v5265_v34  ;;  %v5319_v22 = vrot.slane %v5318_v10, 1 }
 0xd10   :  { %v5320_v45 = vadd.f32 %v5319_v22, %v5318_v10 }
 0xd3f   :  { %s11185_s20 = spop %11184 }
 0xd40   :  { %s5269_s21 = smul.f32 0.010204081, %s11185_s20 }
 0xd42   :  { %s5273_s13 = sadd.f32 1e-05, %s5269_s21 }
 0xd44   :  { %v5274_v50 = vstv %s5273_s13 }
 0xd45   :  { %11338 = vrsqrt.f32 %v5274_v50  ;;  %v5517_v50 = vrot.slane %v13073_v63, %v11961_v15 }
 0xd52   :  { %v11339_v55 = vpop.eup %11338 }
 0xd53   :  { %11186 = vpush %v11339_v55 }
 0xd54   :  { %11188 = vpush %v5320_v45 }
 0xd84   :  { %s11187_s23 = spop %11186 }
 0xd85   :  { %v5277_v49 = vstv %s11187_s23  ;;  %s11189_s25 = spop %11188 }
 0xd86   :  { %v5278_v3 = vmul.f32 %v5277_v49, %v5272_v13  ;;  %s5324_s26 = smul.f32 0.010204081, %s11189_s25 }
 0xd88   :  { %v5281_v14 = vadd.f32 %v5280_v60, %v5278_v3  ;;  %v5325_v47 = vstv %s5324_s26 }
 0xd89   :  { %v5326_v44 = vsub.f32 %v13068_v29, %v5325_v47  ;;  %v5402_v29 = vcombine.high %v5401_v43, %v5401_v43 }
 0xd8a   :  { %v5282_v31 = vmul.f32 0.5, %v5281_v14 }
 0xd8b   :  { %v5327_v20 = vmul.f32 %v5326_v44, %v5326_v44  ;;  %v5354_v51 = vmul.f32 %v5353_v42, %v5326_v44 }
 0xd8c   :  { %vm5283_vm5 = vcmp.ge.f32.partialorder %v5282_v31, 1.0 }
 0xd8d   :  { %v10653_v40 = vsel %vm5283_vm5, 1.0, %v11521_v7  ;;  %v5335_v53 = vrot.slane %v5327_v20, %v11961_v15  ;;  %vm6700_vm5 = vcmask 31744  }
 0xd8e   :  { %v5293_v62 = vrot.slane %v10653_v40, %v12349_v26 }
 0xd8f   :  { %5336 = vrot.lane.b32.xlu1 %v5335_v53, %s11551_s18 }
 0xd90   :  { %v5294_v21 = vcombine.high %v5293_v62, %v5293_v62  ;;  %5298 = vst.msk [vmem:[#allocation5] sm:$0x1] %vm5297_vm6, %v5293_v62 }
 0xd92   :  { %5299 = vst.msk [vmem:[#allocation5 + $0x4] sm:$0x1] %vm5297_vm6, %v5294_v21 }
 0xd93   :  { %5403 = vrot.lane.b32.xlu1 %v5401_v43, %s11552_s2 }
 0xd97   :  { %5405 = vrot.lane.b32.xlu1 %v5402_v29, %s11552_s2 }
 0xe01   :  { %v5337_v56 = vpop.permute.xlu1 %5336 }
 0xe02   :  { %v5339_v58 = vsel %vm5240_vm4, %v5337_v56, 0.0 }
 0xe03   :  { %5340 = vadd.xlane.f32.xlu0 %v5339_v58  ;;  %v5455_v58 = vstv %s10657_s19  ;;  %s10670_s19 = sld [smem:[#allocation14 + $0x81]] }
 0xe05   :  { %v5404_v18 = vpop.permute.xlu1 %5403 }
 0xe09   :  { %v5406_v16 = vpop.permute.xlu1 %5405 }
 0xe0a   :  { %v5408_v11 = vsel %vm5407_vm7, %v5404_v18, %v5406_v16 }
 0xe0b   :  { %v5410_v28 = vsel %vm5240_vm4, %v5408_v11, 0.0 }
 0xe0c   :  { %5411 = vadd.xlane.f32.xlu1 %v5410_v28 }
 0xe8c   :  { %v5341_v46 = vpop.xlane.xlu0 %5340 }
 0xe8d   :  { %v5342_v38 = vrot.slane %v5341_v46, 4 }
 0xe8f   :  { %v5343_v19 = vadd.f32 %v5342_v38, %v5341_v46 }
 0xe91   :  { %v5344_v5 = vrot.slane %v5343_v19, 2 }
 0xe93   :  { %v5345_v2 = vadd.f32 %v5344_v5, %v5343_v19 }
 0xe95   :  { %v5346_v48 = vrot.slane %v5345_v2, 1  ;;  %v5412_v0 = vpop.xlane.xlu1 %5411 }
 0xe96   :  { %v5413_v17 = vrot.slane %v5412_v0, 4 }
 0xe97   :  { %v5347_v12 = vadd.f32 %v5346_v48, %v5345_v2 }
 0xe98   :  { %v5414_v23 = vadd.f32 %v5413_v17, %v5412_v0 }
 0xe99   :  { %11190 = vpush %v5347_v12 }
 0xe9a   :  { %v5415_v30 = vrot.slane %v5414_v23, 2 }
 0xe9c   :  { %v5416_v54 = vadd.f32 %v5415_v30, %v5414_v23 }
 0xe9e   :  { %v5417_v57 = vrot.slane %v5416_v54, 1 }
 0xea0   :  { %v5418_v41 = vadd.f32 %v5417_v57, %v5416_v54 }
 0xeca   :  { %s11191_s27 = spop %11190 }
 0xecb   :  { %s5351_s8 = smul.f32 0.010204081, %s11191_s27 }
 0xecd   :  { %s5355_s28 = sadd.f32 1e-05, %s5351_s8 }
 0xecf   :  { %v5356_v35 = vstv %s5355_s28  ;;  %s10667_s28 = sld [smem:[#allocation14 + $0x80]] }
 0xed0   :  { %11340 = vrsqrt.f32 %v5356_v35 }
 0xedd   :  { %v11341_v52 = vpop.eup %11340 }
 0xede   :  { %11192 = vpush %v11341_v52 }
 0xedf   :  { %11194 = vpush %v5418_v41 }
 0xf0f   :  { %s11193_s30 = spop %11192 }
 0xf10   :  { %v5359_v33 = vstv %s11193_s30  ;;  %s11195_s5 = spop %11194 }
 0xf11   :  { %v13112_v59 = vmul.f32 %v5359_v33, %v5354_v51  ;;  %s5422_s16 = smul.f32 0.010204081, %s11195_s5 }
 0xf13   :  { %v5423_v25 = vstv %s5422_s16 }
 0xf14   :  { %v5424_v34 = vsub.f32 %v13070_v32, %v5423_v25 }
 0xf16   :  { %v5425_v1 = vmul.f32 %v5424_v34, %v5424_v34  ;;  %v5456_v18 = vmul.f32 %v5455_v58, %v5424_v34  ;;  %v5562_v34 = vstv %s10660_s22  ;;  %s10673_s22 = sld [smem:[#allocation14 + $0x82]] }
 0xf18   :  { %v5433_v8 = vrot.slane %v5425_v1, %v11961_v15 }
 0xf1a   :  { %5435 = vrot.lane.b32.xlu0 %v5433_v8, %s11552_s2  ;;  %v5434_v24 = vcombine.high %v5433_v8, %v5433_v8 }
 0xf1c   :  { %5437 = vrot.lane.b32.xlu1 %v5434_v24, %s11552_s2 }
 0xf20   :  { %5518 = vrot.lane.b32.xlu1 %v5517_v50, %s11553_s17 }
 0xf8c   :  { %v5436_v36 = vpop.permute.xlu0 %5435 }
 0xf8e   :  { %v5438_v10 = vpop.permute.xlu1 %5437 }
 0xf8f   :  { %v5439_v22 = vsel %vm5407_vm7, %v5436_v36, %v5438_v10 }
 0xf90   :  { %v5441_v32 = vsel %vm5240_vm4, %v5439_v22, 0.0 }
 0xf91   :  { %5442 = vadd.xlane.f32.xlu0 %v5441_v32  ;;  %v5823_v32 = vrot.slane %v13088_v37, %v11961_v15 }
 0xf92   :  { %v5519_v55 = vpop.permute.xlu1 %5518 }
 0xf93   :  { %v5521_v45 = vsel %vm5240_vm4, %v5519_v55, 0.0 }
 0xf94   :  { %5522 = vadd.xlane.f32.xlu1 %v5521_v45 }
 0xf98   :  { %5757 = vadd.xlane.f32.xlu1 %v5756_v6 }
0x101a   :  { %v5443_v13 = vpop.xlane.xlu0 %5442 }
0x101b   :  { %v5444_v49 = vrot.slane %v5443_v13, 4 }
0x101d   :  { %v5445_v60 = vadd.f32 %v5444_v49, %v5443_v13  ;;  %v5523_v31 = vpop.xlane.xlu1 %5522 }
0x101e   :  { %v5524_v20 = vrot.slane %v5523_v31, 4 }
0x101f   :  { %v5446_v3 = vrot.slane %v5445_v60, 2 }
0x1020   :  { %v5525_v40 = vadd.f32 %v5524_v20, %v5523_v31 }
0x1021   :  { %v5447_v14 = vadd.f32 %v5446_v3, %v5445_v60  ;;  %v5758_v54 = vpop.xlane.xlu1 %5757 }
0x1022   :  { %v5526_v62 = vrot.slane %v5525_v40, 2  ;;  %v5759_v57 = vrot.slane %v5758_v54, 4 }
0x1023   :  { %v5448_v47 = vrot.slane %v5447_v14, 1 }
0x1024   :  { %v5527_v21 = vadd.f32 %v5526_v62, %v5525_v40  ;;  %v5786_v40 = vstv %s10667_s28  ;;  %s10676_s28 = sld [smem:[#allocation14 + $0x83]] }
0x1025   :  { %v5449_v44 = vadd.f32 %v5448_v47, %v5447_v14  ;;  %v5916_v47 = vrot.slane %v13090_v27, %v11961_v15 }
0x1026   :  { %v5528_v43 = vrot.slane %v5527_v21, 1 }
0x1027   :  { %11196 = vpush %v5449_v44  ;;  %v5917_v44 = vcombine.high %v5916_v47, %v5916_v47 }
0x1028   :  { %v5529_v56 = vadd.f32 %v5528_v43, %v5527_v21  ;;  %v5795_v21 = vstv %s10668_s29 }
0x1058   :  { %s11197_s0 = spop %11196 }
0x1059   :  { %s5453_s24 = smul.f32 0.010204081, %s11197_s0 }
0x105b   :  { %s5457_s4 = sadd.f32 1e-05, %s5453_s24 }
0x105d   :  { %v5458_v53 = vstv %s5457_s4 }
0x105e   :  { %11342 = vrsqrt.f32 %v5458_v53 }
0x106b   :  { %v11343_v29 = vpop.eup %11342 }
0x106c   :  { %11198 = vpush %v11343_v29 }
0x106d   :  { %11200 = vpush %v5529_v56 }
0x109d   :  { %s11199_s1 = spop %11198 }
0x109e   :  { %v5461_v16 = vstv %s11199_s1  ;;  %s11201_s6 = spop %11200 }
0x109f   :  { %v13126_v11 = vmul.f32 %v5461_v16, %v5456_v18  ;;  %s5533_s3 = smul.f32 0.010204081, %s11201_s6 }
0x10a1   :  { %v5534_v28 = vstv %s5533_s3 }
0x10a2   :  { %v5535_v46 = vsub.f32 %v13073_v63, %v5534_v28  ;;  %v5760_v63 = vadd.f32 %v5759_v57, %v5758_v54 }
0x10a4   :  { %v5536_v38 = vmul.f32 %v5535_v46, %v5535_v46  ;;  %v5761_v41 = vrot.slane %v5760_v63, 2  ;;  %v5563_v1 = vmul.f32 %v5562_v34, %v5535_v46 }
0x10a6   :  { %v5544_v19 = vrot.slane %v5536_v38, %v11961_v15  ;;  %v5762_v42 = vadd.f32 %v5761_v41, %v5760_v63 }
0x10a8   :  { %5545 = vrot.lane.b32.xlu0 %v5544_v19, %s11553_s17  ;;  %v5763_v51 = vrot.slane %v5762_v42, 1 }
0x10aa   :  { %v5764_v25 = vadd.f32 %v5763_v51, %v5762_v42  ;;  %v13157_v51 = vld [vmem:[#allocation4] sm:$0x3] }
0x111a   :  { %v5546_v5 = vpop.permute.xlu0 %5545 }
0x111b   :  { %v5548_v2 = vsel %vm5240_vm4, %v5546_v5, 0.0 }
0x111c   :  { %5549 = vadd.xlane.f32.xlu0 %v5548_v2 }
0x11a5   :  { %v5550_v48 = vpop.xlane.xlu0 %5549 }
0x11a6   :  { %v5551_v12 = vrot.slane %v5550_v48, 4 }
0x11a8   :  { %v5552_v0 = vadd.f32 %v5551_v12, %v5550_v48 }
0x11aa   :  { %v5553_v17 = vrot.slane %v5552_v0, 2 }
0x11ac   :  { %v5554_v23 = vadd.f32 %v5553_v17, %v5552_v0 }
0x11ae   :  { %v5555_v35 = vrot.slane %v5554_v23, 1 }
0x11b0   :  { %v5556_v30 = vadd.f32 %v5555_v35, %v5554_v23  ;;  %v6031_v35 = vrot.slane %v13092_v4, %v11961_v15 }
0x11b2   :  { %11202 = vpush %v5556_v30 }
0x11e3   :  { %s11203_s20 = spop %11202 }
0x11e4   :  { %s5560_s21 = smul.f32 0.010204081, %s11203_s20 }
0x11e6   :  { %s5564_s13 = sadd.f32 1e-05, %s5560_s21 }
0x11e8   :  { %v5565_v52 = vstv %s5564_s13 }
0x11e9   :  { %11344 = vrsqrt.f32 %v5565_v52 }
0x11f6   :  { %v11345_v33 = vpop.eup %11344 }
0x11f7   :  { %11204 = vpush %v11345_v33  ;;  %v6270_v33 = vsel %vm5240_vm4, %v13157_v51, 0.0 }
0x11f8   :  { %11206 = vpush %v5764_v25 }
0x1228   :  { %s11205_s7 = spop %11204 }
0x1229   :  { %v5568_v8 = vstv %s11205_s7  ;;  %s11207_s23 = spop %11206 }
0x122a   :  { %v13132_v24 = vmul.f32 %v5568_v8, %v5563_v1  ;;  %s5768_s25 = smul.f32 0.010204081, %s11207_s23 }
0x122c   :  { %v5769_v50 = vstv %s5768_s25 }
0x122d   :  { %v5770_v36 = vsub.f32 %v13086_v9, %v5769_v50 }
0x122f   :  { %v5771_v10 = vmul.f32 %v5770_v36, %v5770_v36  ;;  %v5787_v53 = vmul.f32 %v5786_v40, %v5770_v36 }
0x1231   :  { %v5772_v22 = vsel %vm5240_vm4, %v5771_v10, 0.0 }
0x1232   :  { %5773 = vadd.xlane.f32.xlu1 %v5772_v22 }
0x1243   :  { %5824 = vrot.lane.b32.xlu1 %v5823_v32, %s11551_s18 }
0x12bb   :  { %v5774_v55 = vpop.xlane.xlu1 %5773 }
0x12bc   :  { %v5775_v45 = vrot.slane %v5774_v55, 4 }
0x12be   :  { %v5776_v6 = vadd.f32 %v5775_v45, %v5774_v55 }
0x12bf   :  { %v5825_v13 = vpop.permute.xlu1 %5824 }
0x12c0   :  { %v5777_v49 = vrot.slane %v5776_v6, 2  ;;  %v5827_v60 = vsel %vm5240_vm4, %v5825_v13, 0.0 }
0x12c1   :  { %5828 = vadd.xlane.f32.xlu1 %v5827_v60 }
0x12c2   :  { %v5778_v3 = vadd.f32 %v5777_v49, %v5776_v6 }
0x12c4   :  { %v5779_v14 = vrot.slane %v5778_v3, 1 }
0x12c6   :  { %v5780_v9 = vadd.f32 %v5779_v14, %v5778_v3  ;;  %v5868_v14 = vstv %s10670_s19  ;;  %s10684_s19 = sld [smem:[#allocation16 + $0x100]] }
0x12c8   :  { %11208 = vpush %v5780_v9 }
0x12d2   :  { %5918 = vrot.lane.b32.xlu1 %v5916_v47, %s11552_s2 }
0x12d6   :  { %5920 = vrot.lane.b32.xlu1 %v5917_v44, %s11552_s2 }
0x12f9   :  { %s11209_s26 = spop %11208 }
0x12fa   :  { %s5784_s27 = smul.f32 0.010204081, %s11209_s26 }
0x12fc   :  { %s5788_s8 = sadd.f32 1e-05, %s5784_s27 }
0x12fe   :  { %v5789_v31 = vstv %s5788_s8 }
0x12ff   :  { %11346 = vrsqrt.f32 %v5789_v31 }
0x130c   :  { %v11347_v20 = vpop.eup %11346 }
0x130d   :  { %11210 = vpush %v11347_v20 }
0x133e   :  { %s11211_s30 = spop %11210 }
0x133f   :  { %v5792_v62 = vstv %s11211_s30 }
0x1340   :  { %v5793_v43 = vmul.f32 %v5792_v62, %v5787_v53 }
0x1342   :  { %v5796_v29 = vadd.f32 %v5795_v21, %v5793_v43 }
0x1344   :  { %v5797_v56 = vmul.f32 0.5, %v5796_v29 }
0x1346   :  { %vm5798_vm8 = vcmp.ge.f32.partialorder %v5797_v56, 1.0 }
0x1347   :  { %v10669_v58 = vsel %vm5798_vm8, 1.0, %v11521_v7 }
0x1348   :  { %v5808_v18 = vrot.slane %v10669_v58, %v12349_v26 }
0x134a   :  { %v5809_v16 = vcombine.high %v5808_v18, %v5808_v18  ;;  %5813 = vst.msk [vmem:[#allocation5 + $0x8] sm:$0x1] %vm5297_vm6, %v5808_v18  ;;  %v5829_v28 = vpop.xlane.xlu1 %5828 }
0x134b   :  { %v5830_v46 = vrot.slane %v5829_v28, 4 }
0x134c   :  { %5814 = vst.msk [vmem:[#allocation5 + $0xc] sm:$0x1] %vm5297_vm6, %v5809_v16 }
0x134d   :  { %v5831_v38 = vadd.f32 %v5830_v46, %v5829_v28 }
0x134e   :  { %v5919_v19 = vpop.permute.xlu1 %5918 }
0x134f   :  { %v5832_v5 = vrot.slane %v5831_v38, 2 }
0x1351   :  { %v5833_v2 = vadd.f32 %v5832_v5, %v5831_v38 }
0x1352   :  { %v5921_v48 = vpop.permute.xlu1 %5920 }
0x1353   :  { %v5922_v12 = vsel %vm5407_vm7, %v5919_v19, %v5921_v48  ;;  %v5834_v0 = vrot.slane %v5833_v2, 1 }
0x1354   :  { %v5924_v17 = vsel %vm5240_vm4, %v5922_v12, 0.0 }
0x1355   :  { %5925 = vadd.xlane.f32.xlu1 %v5924_v17  ;;  %v5835_v23 = vadd.f32 %v5834_v0, %v5833_v2 }
0x1357   :  { %11212 = vpush %v5835_v23 }
0x1366   :  { %6032 = vrot.lane.b32.xlu1 %v6031_v35, %s11553_s17 }
0x1388   :  { %s11213_s5 = spop %11212 }
0x1389   :  { %s5839_s16 = smul.f32 0.010204081, %s11213_s5 }
0x138b   :  { %v5840_v30 = vstv %s5839_s16 }
0x138c   :  { %v5841_v54 = vsub.f32 %v13088_v37, %v5840_v30  ;;  %v5969_v30 = vstv %s10673_s22  ;;  %s10658_s22 = sld [smem:[#allocation16 + $0x2]] }
0x138e   :  { %v5842_v57 = vmul.f32 %v5841_v54, %v5841_v54  ;;  %v5869_v9 = vmul.f32 %v5868_v14, %v5841_v54  ;;  %v6076_v14 = vstv %s10676_s28 }
0x1390   :  { %v5850_v63 = vrot.slane %v5842_v57, %v11961_v15 }
0x1392   :  { %5851 = vrot.lane.b32.xlu0 %v5850_v63, %s11551_s18 }
0x13de   :  { %v5926_v52 = vpop.xlane.xlu1 %5925 }
0x13df   :  { %v5927_v32 = vrot.slane %v5926_v52, 4 }
0x13e1   :  { %v5928_v55 = vadd.f32 %v5927_v32, %v5926_v52 }
0x13e2   :  { %v6033_v41 = vpop.permute.xlu1 %6032 }
0x13e3   :  { %v6035_v42 = vsel %vm5240_vm4, %v6033_v41, 0.0  ;;  %v5929_v6 = vrot.slane %v5928_v55, 2 }
0x13e4   :  { %6036 = vadd.xlane.f32.xlu1 %v6035_v42 }
0x13e5   :  { %v5930_v13 = vadd.f32 %v5929_v6, %v5928_v55 }
0x13e7   :  { %v5931_v49 = vrot.slane %v5930_v13, 1 }
0x13e8   :  { %6271 = vadd.xlane.f32.xlu1 %v6270_v33 }
0x13e9   :  { %v5932_v3 = vadd.f32 %v5931_v49, %v5930_v13 }
0x1404   :  { %v5852_v25 = vpop.permute.xlu0 %5851 }
0x1405   :  { %v5854_v34 = vsel %vm5240_vm4, %v5852_v25, 0.0 }
0x1406   :  { %5855 = vadd.xlane.f32.xlu0 %v5854_v34 }
0x146d   :  { %v6037_v19 = vpop.xlane.xlu1 %6036 }
0x146e   :  { %v6038_v5 = vrot.slane %v6037_v19, 4 }
0x1470   :  { %v6039_v2 = vadd.f32 %v6038_v5, %v6037_v19 }
0x1471   :  { %v6272_v32 = vpop.xlane.xlu1 %6271 }
0x1472   :  { %v6040_v12 = vrot.slane %v6039_v2, 2  ;;  %v6273_v55 = vrot.slane %v6272_v32, 4 }
0x1474   :  { %v6041_v0 = vadd.f32 %v6040_v12, %v6039_v2  ;;  %v6309_v12 = vstv %s10684_s19  ;;  %s10671_s19 = sld [smem:[#allocation16 + $0x81]] }
0x1476   :  { %v6042_v17 = vrot.slane %v6041_v0, 1 }
0x1478   :  { %v6043_v35 = vadd.f32 %v6042_v17, %v6041_v0 }
0x148f   :  { %v5856_v37 = vpop.xlane.xlu0 %5855 }
0x1490   :  { %v5857_v1 = vrot.slane %v5856_v37, 4 }
0x1492   :  { %v5858_v8 = vadd.f32 %v5857_v1, %v5856_v37 }
0x1494   :  { %v5859_v50 = vrot.slane %v5858_v8, 2 }
0x1496   :  { %v5860_v36 = vadd.f32 %v5859_v50, %v5858_v8 }
0x1498   :  { %v5861_v10 = vrot.slane %v5860_v36, 1 }
0x149a   :  { %v5862_v22 = vadd.f32 %v5861_v10, %v5860_v36 }
0x149c   :  { %11214 = vpush %v5862_v22 }
0x14cd   :  { %s11215_s0 = spop %11214 }
0x14ce   :  { %s5866_s24 = smul.f32 0.010204081, %s11215_s0 }
0x14d0   :  { %s5870_s4 = sadd.f32 1e-05, %s5866_s24 }
0x14d2   :  { %v5871_v45 = vstv %s5870_s4  ;;  %s10683_s4 = sld [smem:[#allocation14 + $0x100]] }
0x14d3   :  { %11348 = vrsqrt.f32 %v5871_v45 }
0x14d8   :  { %v6300_v5 = vstv %s10683_s4  ;;  %s10674_s4 = sld [smem:[#allocation16 + $0x82]] }
0x14e0   :  { %v11349_v60 = vpop.eup %11348 }
0x14e1   :  { %11216 = vpush %v11349_v60 }
0x14e2   :  { %11218 = vpush %v5932_v3 }
0x1512   :  { %s11217_s1 = spop %11216 }
0x1513   :  { %v5874_v47 = vstv %s11217_s1  ;;  %s11219_s6 = spop %11218 }
0x1514   :  { %v13162_v44 = vmul.f32 %v5874_v47, %v5869_v9  ;;  %s5936_s3 = smul.f32 0.010204081, %s11219_s6 }
0x1516   :  { %v5937_v31 = vstv %s5936_s3 }
0x1517   :  { %v5938_v20 = vsub.f32 %v13090_v27, %v5937_v31 }
0x1519   :  { %v5939_v40 = vmul.f32 %v5938_v20, %v5938_v20  ;;  %v5970_v54 = vmul.f32 %v5969_v30, %v5938_v20 }
0x151b   :  { %v5947_v53 = vrot.slane %v5939_v40, %v11961_v15 }
0x151d   :  { %5949 = vrot.lane.b32.xlu0 %v5947_v53, %s11552_s2  ;;  %v5948_v62 = vcombine.high %v5947_v53, %v5947_v53 }
0x1521   :  { %5951 = vrot.lane.b32.xlu0 %v5948_v62, %s11552_s2 }
0x158f   :  { %v5950_v21 = vpop.permute.xlu0 %5949 }
0x1593   :  { %v5952_v43 = vpop.permute.xlu0 %5951 }
0x1594   :  { %v5953_v29 = vsel %vm5407_vm7, %v5950_v21, %v5952_v43  ;;  %v6329_v21 = vld [vmem:[#allocation4] sm:$0x3] }
0x1595   :  { %v5955_v56 = vsel %vm5240_vm4, %v5953_v29, 0.0  ;;  %v6337_v43 = vrot.slane %v6329_v21, %v11961_v15 }
0x1596   :  { %5956 = vadd.xlane.f32.xlu0 %v5955_v56 }
0x161f   :  { %v5957_v58 = vpop.xlane.xlu0 %5956 }
0x1620   :  { %v5958_v18 = vrot.slane %v5957_v58, 4 }
0x1622   :  { %v5959_v16 = vadd.f32 %v5958_v18, %v5957_v58 }
0x1624   :  { %v5960_v28 = vrot.slane %v5959_v16, 2 }
0x1626   :  { %v5961_v27 = vadd.f32 %v5960_v28, %v5959_v16 }
0x1628   :  { %v5962_v46 = vrot.slane %v5961_v27, 1 }
0x162a   :  { %v5963_v38 = vadd.f32 %v5962_v46, %v5961_v27 }
0x162c   :  { %11220 = vpush %v5963_v38 }
0x165d   :  { %s11221_s20 = spop %11220 }
0x165e   :  { %s5967_s21 = smul.f32 0.010204081, %s11221_s20 }
0x1660   :  { %s5971_s13 = sadd.f32 1e-05, %s5967_s21 }
0x1662   :  { %v5972_v48 = vstv %s5971_s13 }
0x1663   :  { %11350 = vrsqrt.f32 %v5972_v48 }
0x1670   :  { %v11351_v23 = vpop.eup %11350 }
0x1671   :  { %11222 = vpush %v11351_v23 }
0x1672   :  { %11224 = vpush %v6043_v35 }
0x16a2   :  { %s11223_s7 = spop %11222 }
0x16a3   :  { %v5975_v57 = vstv %s11223_s7  ;;  %s11225_s23 = spop %11224  ;;  %s10677_s7 = sld [smem:[#allocation16 + $0x83]] }
0x16a4   :  { %v13170_v63 = vmul.f32 %v5975_v57, %v5970_v54  ;;  %s6047_s25 = smul.f32 0.010204081, %s11225_s23 }
0x16a6   :  { %v6048_v52 = vstv %s6047_s25 }
0x16a7   :  { %v6049_v41 = vsub.f32 %v13092_v4, %v6048_v52  ;;  %v6274_v4 = vadd.f32 %v6273_v55, %v6272_v32 }
0x16a9   :  { %v6050_v42 = vmul.f32 %v6049_v41, %v6049_v41  ;;  %v6275_v6 = vrot.slane %v6274_v4, 2  ;;  %v6077_v9 = vmul.f32 %v6076_v14, %v6049_v41 }
0x16ab   :  { %v6058_v33 = vrot.slane %v6050_v42, %v11961_v15  ;;  %v6276_v13 = vadd.f32 %v6275_v6, %v6274_v4 }
0x16ad   :  { %6059 = vrot.lane.b32.xlu0 %v6058_v33, %s11553_s17  ;;  %v6277_v49 = vrot.slane %v6276_v13, 1 }
0x16af   :  { %v6278_v3 = vadd.f32 %v6277_v49, %v6276_v13 }
0x171f   :  { %v6060_v25 = vpop.permute.xlu0 %6059 }
0x1720   :  { %v6062_v34 = vsel %vm5240_vm4, %v6060_v25, 0.0 }
0x1721   :  { %6063 = vadd.xlane.f32.xlu0 %v6062_v34 }
0x17aa   :  { %v6064_v37 = vpop.xlane.xlu0 %6063 }
0x17ab   :  { %v6065_v1 = vrot.slane %v6064_v37, 4 }
0x17ad   :  { %v6066_v8 = vadd.f32 %v6065_v1, %v6064_v37 }
0x17af   :  { %v6067_v50 = vrot.slane %v6066_v8, 2 }
0x17b1   :  { %v6068_v36 = vadd.f32 %v6067_v50, %v6066_v8 }
0x17b3   :  { %v6069_v10 = vrot.slane %v6068_v36, 1 }
0x17b5   :  { %v6070_v22 = vadd.f32 %v6069_v10, %v6068_v36  ;;  %v13192_v36 = vld [vmem:[#allocation4] sm:$0xf] }
0x17b6   :  { %v6430_v10 = vrot.slane %v13192_v36, %v11961_v15 }
0x17b7   :  { %11226 = vpush %v6070_v22 }
0x17b8   :  { %v6431_v55 = vcombine.high %v6430_v10, %v6430_v10 }
0x17e8   :  { %s11227_s26 = spop %11226 }
0x17e9   :  { %s6074_s27 = smul.f32 0.010204081, %s11227_s26 }
0x17eb   :  { %s6078_s8 = sadd.f32 1e-05, %s6074_s27 }
0x17ed   :  { %v6079_v45 = vstv %s6078_s8 }
0x17ee   :  { %11352 = vrsqrt.f32 %v6079_v45 }
0x17fb   :  { %v11353_v60 = vpop.eup %11352 }
0x17fc   :  { %11228 = vpush %v11353_v60 }
0x17fd   :  { %11230 = vpush %v6278_v3 }
0x182d   :  { %s11229_s29 = spop %11228 }
0x182e   :  { %v6082_v47 = vstv %s11229_s29  ;;  %s11231_s30 = spop %11230  ;;  %s10655_s29 = sld [smem:[#allocation16 + $0x1]] }
0x182f   :  { %v13176_v31 = vmul.f32 %v6082_v47, %v6077_v9  ;;  %s6282_s5 = smul.f32 0.010204081, %s11231_s30  ;;  %s10689_s30 = sld [smem:[#allocation14 + $0x102]] }
0x1831   :  { %v6283_v20 = vstv %s6282_s5  ;;  %s10661_s5 = sld [smem:[#allocation16 + $0x3]] }
0x1832   :  { %v6284_v40 = vsub.f32 %v13157_v51, %v6283_v20 }
0x1834   :  { %v6285_v53 = vmul.f32 %v6284_v40, %v6284_v40  ;;  %v6301_v2 = vmul.f32 %v6300_v5, %v6284_v40  ;;  %v13202_v40 = vld [vmem:[#allocation4 + $0x2] sm:$0x3] }
0x1836   :  { %v6286_v62 = vsel %vm5240_vm4, %v6285_v53, 0.0  ;;  %v6545_v53 = vrot.slane %v13202_v40, %v11961_v15 }
0x1837   :  { %6287 = vadd.xlane.f32.xlu1 %v6286_v62 }
0x1848   :  { %6338 = vrot.lane.b32.xlu1 %v6337_v43, %s11551_s18  ;;  %v5464_v43 = vstv %s10658_s22  ;;  %s10693_s22 = sld [smem:[#allocation16 + $0x103]] }
0x18c0   :  { %v6288_v29 = vpop.xlane.xlu1 %6287 }
0x18c1   :  { %v6289_v56 = vrot.slane %v6288_v29, 4 }
0x18c3   :  { %v6290_v58 = vadd.f32 %v6289_v56, %v6288_v29  ;;  %v5465_v29 = vadd.f32 %v5464_v43, %v13126_v11 }
0x18c4   :  { %v6339_v18 = vpop.permute.xlu1 %6338 }
0x18c5   :  { %v6291_v16 = vrot.slane %v6290_v58, 2  ;;  %v6341_v28 = vsel %vm5240_vm4, %v6339_v18, 0.0  ;;  %v5466_v18 = vmul.f32 0.5, %v5465_v29 }
0x18c6   :  { %6342 = vadd.xlane.f32.xlu0 %v6341_v28  ;;  %v6085_v28 = vstv %s10677_s7 }
0x18c7   :  { %v6292_v27 = vadd.f32 %v6291_v16, %v6290_v58  ;;  %vm5467_vm11 = vcmp.ge.f32.partialorder %v5466_v18, 1.0 }
0x18c9   :  { %v6293_v46 = vrot.slane %v6292_v27, 1 }
0x18cb   :  { %v6294_v51 = vadd.f32 %v6293_v46, %v6292_v27 }
0x18cd   :  { %11232 = vpush %v6294_v51 }
0x18fe   :  { %s11233_s16 = spop %11232 }
0x18ff   :  { %s6298_s0 = smul.f32 0.010204081, %s11233_s16 }
0x1901   :  { %s6302_s24 = sadd.f32 1e-05, %s6298_s0 }
0x1903   :  { %v6303_v38 = vstv %s6302_s24 }
0x1904   :  { %11354 = vrsqrt.f32 %v6303_v38  ;;  %v6086_v38 = vadd.f32 %v6085_v28, %v13176_v31 }
0x1911   :  { %v11355_v19 = vpop.eup %11354 }
0x1912   :  { %11234 = vpush %v11355_v19 }
0x1943   :  { %s11235_s1 = spop %11234 }
0x1944   :  { %v6306_v48 = vstv %s11235_s1  ;;  %s10690_s1 = sld [smem:[#allocation16 + $0x102]] }
0x1945   :  { %v6307_v0 = vmul.f32 %v6306_v48, %v6301_v2  ;;  %v10659_v2 = vsel %vm5467_vm11, 1.0, %v11521_v7  ;;  %v6087_v48 = vmul.f32 0.5, %v6086_v38 }
0x1946   :  { %v13212_v11 = vrot.slane %v10659_v2, %v12349_v26 }
0x1947   :  { %v6310_v17 = vadd.f32 %v6309_v12, %v6307_v0  ;;  %vm6088_vm12 = vcmp.ge.f32.partialorder %v6087_v48, 1.0 }
0x1948   :  { %v13216_v0 = vcombine.high %v13212_v11, %v13212_v11  ;;  %v5486_v38 = vrot.slane %v13212_v11, %v13048_v39 }
0x1949   :  { %v6311_v23 = vmul.f32 0.5, %v6310_v17  ;;  %v10678_v17 = vsel %vm6088_vm12, 1.0, %v11521_v7 }
0x194a   :  { %v5494_v31 = vrot.slane %v13216_v0, %v13048_v39 }
0x194b   :  { %vm6312_vm10 = vcmp.ge.f32.partialorder %v6311_v23, 1.0  ;;  %v13220_v23 = vrot.slane %v10678_v17, %v12349_v26  ;;  %v5877_v17 = vstv %s10671_s19 }
0x194c   :  { %v10685_v35 = vsel %vm6312_vm10, 1.0, %v11521_v7  ;;  %vm6963_vm10 = vcmask 400384  }
0x194d   :  { %v6322_v30 = vrot.slane %v10685_v35, %v12349_v26  ;;  %v6103_v35 = vrot.slane %v13220_v23, %v13045_v61 }
0x194f   :  { %v6323_v54 = vcombine.high %v6322_v30, %v6322_v30  ;;  %6327 = vst.msk [vmem:[#allocation5 + $0x10] sm:$0x1] %vm5297_vm6, %v6322_v30  ;;  %v6343_v57 = vpop.xlane.xlu0 %6342 }
0x1950   :  { %v6344_v52 = vrot.slane %v6343_v57, 4 }
0x1951   :  { %6328 = vst.msk [vmem:[#allocation5 + $0x14] sm:$0x1] %vm5297_vm6, %v6323_v54 }
0x1952   :  { %v6345_v41 = vadd.f32 %v6344_v52, %v6343_v57 }
0x1954   :  { %v6346_v42 = vrot.slane %v6345_v41, 2 }
0x1956   :  { %v6347_v33 = vadd.f32 %v6346_v42, %v6345_v41 }
0x1958   :  { %v6348_v25 = vrot.slane %v6347_v33, 1 }
0x195a   :  { %v6349_v34 = vadd.f32 %v6348_v25, %v6347_v33 }
0x195c   :  { %11236 = vpush %v6349_v34 }
0x198d   :  { %s11237_s6 = spop %11236 }
0x198e   :  { %s6353_s3 = smul.f32 0.010204081, %s11237_s6  ;;  %s10686_s6 = sld [smem:[#allocation14 + $0x101]] }
0x1990   :  { %v6354_v37 = vstv %s6353_s3  ;;  %s10687_s3 = sld [smem:[#allocation16 + $0x101]] }
0x1991   :  { %v13187_v1 = vsub.f32 %v6329_v21, %v6354_v37 }
0x1993   :  { %v6356_v8 = vmul.f32 %v13187_v1, %v13187_v1 }
0x1995   :  { %v6364_v50 = vrot.slane %v6356_v8, %v11961_v15 }
0x1997   :  { %6365 = vrot.lane.b32.xlu1 %v6364_v50, %s11551_s18 }
0x199b   :  { %6432 = vrot.lane.b32.xlu1 %v6430_v10, %s11552_s2 }
0x1a09   :  { %v6366_v22 = vpop.permute.xlu1 %6365 }
0x1a0a   :  { %v6368_v32 = vsel %vm5240_vm4, %v6366_v22, 0.0 }
0x1a0b   :  { %6369 = vadd.xlane.f32.xlu0 %v6368_v32 }
0x1a0d   :  { %v6433_v13 = vpop.permute.xlu1 %6432 }
0x1a21   :  { %6434 = vrot.lane.b32.xlu0 %v6431_v55, %s11552_s2 }
0x1a94   :  { %v6370_v4 = vpop.xlane.xlu0 %6369 }
0x1a95   :  { %v6371_v45 = vrot.slane %v6370_v4, 4 }
0x1a97   :  { %v6372_v6 = vadd.f32 %v6371_v45, %v6370_v4 }
0x1a98   :  { %v6435_v49 = vpop.permute.xlu0 %6434 }
0x1a99   :  { %v6373_v60 = vrot.slane %v6372_v6, 2  ;;  %v6436_v3 = vsel %vm5407_vm7, %v6433_v13, %v6435_v49 }
0x1a9a   :  { %v6438_v14 = vsel %vm5240_vm4, %v6436_v3, 0.0 }
0x1a9b   :  { %6439 = vadd.xlane.f32.xlu1 %v6438_v14  ;;  %v6374_v9 = vadd.f32 %v6373_v60, %v6372_v6 }
0x1a9d   :  { %v6375_v47 = vrot.slane %v6374_v9, 1 }
0x1a9f   :  { %v6376_v20 = vadd.f32 %v6375_v47, %v6374_v9 }
0x1aa1   :  { %11238 = vpush %v6376_v20  ;;  %v5362_v20 = vstv %s10655_s29 }
0x1aac   :  { %6546 = vrot.lane.b32.xlu1 %v6545_v53, %s11553_s17  ;;  %v6483_v53 = vstv %s10689_s30 }
0x1ad2   :  { %s11239_s20 = spop %11238 }
0x1ad3   :  { %s6380_s21 = smul.f32 0.010204081, %s11239_s20 }
0x1ad5   :  { %s6384_s13 = sadd.f32 1e-05, %s6380_s21 }
0x1ad7   :  { %v6385_v62 = vstv %s6384_s13  ;;  %s10692_s13 = sld [smem:[#allocation14 + $0x103]] }
0x1ad8   :  { %11356 = vrsqrt.f32 %v6385_v62  ;;  %v5363_v62 = vadd.f32 %v5362_v20, %v13112_v59 }
0x1ae5   :  { %v11357_v21 = vpop.eup %11356 }
0x1ae6   :  { %11240 = vpush %v11357_v21  ;;  %v5571_v21 = vstv %s10661_s5 }
0x1ae7   :  { %v5572_v18 = vadd.f32 %v5571_v21, %v13132_v24 }
0x1b17   :  { %s13228_s23 = spop %11240 }
0x1b24   :  { %v6440_v56 = vpop.xlane.xlu1 %6439 }
0x1b25   :  { %v6441_v58 = vrot.slane %v6440_v56, 4 }
0x1b27   :  { %v6442_v16 = vadd.f32 %v6441_v58, %v6440_v56  ;;  %v5364_v58 = vmul.f32 0.5, %v5363_v62 }
0x1b28   :  { %v6547_v27 = vpop.permute.xlu1 %6546 }
0x1b29   :  { %v6443_v46 = vrot.slane %v6442_v16, 2  ;;  %v6549_v51 = vsel %vm5240_vm4, %v6547_v27, 0.0  ;;  %vm5365_vm13 = vcmp.ge.f32.partialorder %v5364_v58, 1.0  ;;  %v5573_v27 = vmul.f32 0.5, %v5572_v18 }
0x1b2a   :  { %6550 = vadd.xlane.f32.xlu1 %v6549_v51  ;;  %v5482_v51 = vrot.slane %v13212_v11, %v13045_v61  ;;  %v10656_v24 = vsel %vm5365_vm13, 1.0, %v11521_v7 }
0x1b2b   :  { %v6444_v19 = vadd.f32 %v6443_v46, %v6442_v16  ;;  %vm5574_vm14 = vcmp.ge.f32.partialorder %v5573_v27, 1.0 }
0x1b2c   :  { %v10662_v2 = vsel %vm5574_vm14, 1.0, %v11521_v7 }
0x1b2d   :  { %v6445_v5 = vrot.slane %v6444_v19, 1  ;;  %v5584_v48 = vrot.slane %v10662_v2, %v12349_v26 }
0x1b2f   :  { %v6446_v12 = vadd.f32 %v6445_v5, %v6444_v19  ;;  %v5375_v19 = vrot.slane %v10656_v24, %v12349_v26  ;;  %v11301_v5 = vpack.i.bf16 %v5486_v38, %v5482_v51 }
0x1b31   :  { %11242 = vpush %v6446_v12  ;;  %v5380_v12 = vrot.slane %v5375_v19, %v13045_v61 }
0x1b3b   :  { %5501 = vrot.lane.b32.xlu1 %v5494_v31, %s11552_s2  ;;  %v5589_v31 = vrot.slane %v5584_v48, %v13045_v61 }
0x1b3f   :  { %6108 = vrot.lane.b32.xlu1 %v6103_v35, %s11553_s17  ;;  %v5878_v35 = vadd.f32 %v5877_v17, %v13162_v44  ;;  %v6391_v17 = vstv %s10687_s3 }
0x1b62   :  { %s11243_s25 = spop %11242 }
0x1b63   :  { %s6450_s26 = smul.f32 0.010204081, %s11243_s25 }
0x1b65   :  { %v6451_v30 = vstv %s6450_s26 }
0x1b66   :  { %v6452_v54 = vsub.f32 %v13192_v36, %v6451_v30  ;;  %v5376_v30 = vcombine.high %v5375_v19, %v5375_v19 }
0x1b68   :  { %v6453_v57 = vmul.f32 %v6452_v54, %v6452_v54  ;;  %v6484_v43 = vmul.f32 %v6483_v53, %v6452_v54 }
0x1b6a   :  { %v6461_v52 = vrot.slane %v6453_v57, %v11961_v15  ;;  %v5879_v57 = vmul.f32 0.5, %v5878_v35 }
0x1b6c   :  { %6463 = vrot.lane.b32.xlu0 %v6461_v52, %s11552_s2  ;;  %v6462_v41 = vcombine.high %v6461_v52, %v6461_v52  ;;  %v5585_v52 = vcombine.high %v5584_v48, %v5584_v48  ;;  %vm5880_vm2 = vcmp.ge.f32.partialorder %v5879_v57, 1.0  ;;  %v6382_v48 = vstv %s10686_s6 }
0x1b6e   :  { %v5593_v44 = vrot.slane %v5585_v52, %v13045_v61 }
0x1b70   :  { %6465 = vrot.lane.b32.xlu0 %v6462_v41, %s11552_s2 }
0x1bb3   :  { %v6551_v42 = vpop.xlane.xlu1 %6550 }
0x1bb4   :  { %v6552_v6 = vrot.slane %v6551_v42, 4 }
0x1bb6   :  { %v6553_v13 = vadd.f32 %v6552_v6, %v6551_v42  ;;  %v5384_v42 = vrot.slane %v5376_v30, %v13045_v61 }
0x1bb7   :  { %v13234_v33 = vpop.permute.xlu1 %5501 }
0x1bb8   :  { %v6554_v60 = vrot.slane %v6553_v13, 2 }
0x1bba   :  { %v6555_v3 = vadd.f32 %v6554_v60, %v6553_v13 }
0x1bbb   :  { %v6109_v25 = vpop.permute.xlu1 %6108 }
0x1bbc   :  { %6114 = vst.msk [vmem:[#allocation5 + $0xb] sm:$0x1] %vm5297_vm6, %v6109_v25  ;;  %v6556_v14 = vrot.slane %v6555_v3, 1 }
0x1bbe   :  { %v6557_v47 = vadd.f32 %v6556_v14, %v6555_v3 }
0x1bde   :  { %v6464_v34 = vpop.permute.xlu0 %6463 }
0x1be2   :  { %v6466_v37 = vpop.permute.xlu0 %6465 }
0x1be3   :  { %v6467_v8 = vsel %vm5407_vm7, %v6464_v34, %v6466_v37 }
0x1be4   :  { %v6469_v50 = vsel %vm5240_vm4, %v6467_v8, 0.0 }
0x1be5   :  { %6470 = vadd.xlane.f32.xlu0 %v6469_v50 }
0x1c6e   :  { %v6471_v36 = vpop.xlane.xlu0 %6470 }
0x1c6f   :  { %v6472_v10 = vrot.slane %v6471_v36, 4 }
0x1c71   :  { %v6473_v22 = vadd.f32 %v6472_v10, %v6471_v36 }
0x1c73   :  { %v6474_v32 = vrot.slane %v6473_v22, 2 }
0x1c75   :  { %v6475_v55 = vadd.f32 %v6474_v32, %v6473_v22 }
0x1c77   :  { %v6476_v4 = vrot.slane %v6475_v55, 1 }
0x1c79   :  { %v6477_v45 = vadd.f32 %v6476_v4, %v6475_v55 }
0x1c7b   :  { %11244 = vpush %v6477_v45 }
0x1cac   :  { %s11245_s27 = spop %11244 }
0x1cad   :  { %s6481_s8 = smul.f32 0.010204081, %s11245_s27 }
0x1caf   :  { %s6485_s28 = sadd.f32 1e-05, %s6481_s8  ;;  %s11554_s8 = smov [#allocation19]  }
0x1cb1   :  { %v6486_v49 = vstv %s6485_s28  ;;  %s10546_s28 = sshll.u32 %s11554_s8, 4  ;;  %s10547_s28 = int_to_ptr.vmem [resolvable:$true] %s10546_s28 }
0x1cb2   :  { %11358 = vrsqrt.f32 %v6486_v49  ;;  %s11476_s29 = scalar_lea.vmem %s10547_s28, 32  ;;  %p11481_p8 = scmp.lt.s32.totalorder %s10547_s28, %s10547_s28 }
0x1cb3   :  { %p11477_p7 = scmp.ne.s32.totalorder %s10547_s28, %s11476_s29  ;;  %p11482_p9 = scmp.lt.s32.totalorder %s11476_s29, %s11476_s29 }
0x1cb5   :  { %p11483_p10 = por %p11482_p9, %p11481_p8 }
0x1cb7   :  { %p11484_p11 = pnand %p11483_p10, %p11477_p7 }
0x1cbf   :  { %v11359_v9 = vpop.eup %11358 }
0x1cc0   :  { %11246 = vpush %v11359_v9  ;;  %v6099_v9 = vcombine.high %v13220_v23, %v13220_v23 }
0x1cc1   :  { %11248 = vpush %v6557_v47 }
0x1cc2   :  { %v6107_v21 = vrot.slane %v6099_v9, %v13045_v61 }
0x1cf1   :  { %s11247_s16 = spop %11246 }
0x1cf2   :  { %v6489_v29 = vstv %s11247_s16  ;;  %s11249_s0 = spop %11248 }
0x1cf3   :  { %v13240_v56 = vmul.f32 %v6489_v29, %v6484_v43  ;;  %s6561_s24 = smul.f32 0.010204081, %s11249_s0 }
0x1cf5   :  { %v6562_v16 = vstv %s6561_s24 }
0x1cf6   :  { %v13244_v28 = vsub.f32 %v13202_v40, %v6562_v16  ;;  %v5978_v40 = vstv %s10674_s4 }
0x1cf8   :  { %v6564_v59 = vmul.f32 %v13244_v28, %v13244_v28 }
0x1cfa   :  { %v6572_v46 = vrot.slane %v6564_v59, %v11961_v15  ;;  %v5979_v15 = vadd.f32 %v5978_v40, %v13170_v63  ;;  %v5490_v63 = vrot.slane %v13216_v0, %v13045_v61  ;;  %v10672_v0 = vsel %vm5880_vm2, 1.0, %v11521_v7 }
0x1cfb   :  { %v5890_v37 = vrot.slane %v10672_v0, %v12349_v26 }
0x1cfc   :  { %6573 = vrot.lane.b32.xlu0 %v6572_v46, %s11553_s17  ;;  %v5980_v11 = vmul.f32 0.5, %v5979_v15  ;;  %v6492_v46 = vstv %s10690_s1 }
0x1cfd   :  { %v5895_v50 = vrot.slane %v5890_v37, %v13045_v61  ;;  %v5891_v10 = vcombine.high %v5890_v37, %v5890_v37  ;;  %v6493_v51 = vadd.f32 %v6492_v46, %v13240_v56  ;;  %v6383_v56 = vmul.f32 %v6382_v48, %v13187_v1 }
0x1cfe   :  { %vm5981_vm15 = vcmp.ge.f32.partialorder %v5980_v11, 1.0 }
0x1cff   :  { %v10675_v54 = vsel %vm5981_vm15, 1.0, %v11521_v7  ;;  %v5899_v32 = vrot.slane %v5891_v10, %v13045_v61  ;;  %v6494_v24 = vmul.f32 0.5, %v6493_v51  ;;  %v6599_v51 = vstv %s10693_s22 }
0x1d00   :  { %11302 = vrot.lane.b32.xlu0 %v11301_v5, %s11552_s2  ;;  %v5991_v41 = vrot.slane %v10675_v54, %v12349_v26 }
0x1d01   :  { %vm6495_vm3 = vcmp.ge.f32.partialorder %v6494_v24, 1.0 }
0x1d02   :  { %v5996_v25 = vrot.slane %v5991_v41, %v13045_v61  ;;  %v6000_v34 = vrot.slane %v5991_v41, %v13048_v39  ;;  %v5992_v36 = vcombine.high %v5991_v41, %v5991_v41  ;;  %v10691_v40 = vsel %vm6495_vm3, 1.0, %v11521_v7 }
0x1d03   :  { %v6505_v19 = vrot.slane %v10691_v40, %v12349_v26 }
0x1d04   :  { %5385 = vrot.lane.b32.xlu0 %v5380_v12, %s11551_s18  ;;  %v11306_v8 = vpack.i.bf16 %v6000_v34, %v5996_v25  ;;  %v6004_v22 = vrot.slane %v5992_v36, %v13045_v61  ;;  %v6008_v20 = vrot.slane %v5992_v36, %v13048_v39  ;;  %v6388_v12 = vstv %s13228_s23 }
0x1d05   :  { %v6510_v5 = vrot.slane %v6505_v19, %v13045_v61  ;;  %v6514_v2 = vrot.slane %v6505_v19, %v13048_v39  ;;  %v6389_v11 = vmul.f32 %v6388_v12, %v6383_v56  ;;  %v13318_v57 = vcombine.high %v6505_v19, %v6505_v19 }
0x1d07   :  { %v11311_v15 = vpack.i.bf16 %v6514_v2, %v6510_v5  ;;  %v6518_v41 = vrot.slane %v13318_v57, %v13045_v61  ;;  %v6522_v48 = vrot.slane %v13318_v57, %v13048_v39 }
0x1d08   :  { %5594 = vrot.lane.b32.xlu0 %v5589_v31, %s11553_s17  ;;  %v6392_v31 = vadd.f32 %v6391_v17, %v6389_v11 }
0x1d0a   :  { %v6393_v35 = vmul.f32 0.5, %v6392_v31 }
0x1d0c   :  { %5499 = vrot.lane.b32.xlu0 %v5490_v63, %s11552_s2 }
0x1d10   :  { %5387 = vrot.lane.b32.xlu0 %v5384_v42, %s11551_s18 }
0x1d14   :  { %5596 = vrot.lane.b32.xlu0 %v5593_v44, %s11553_s17 }
0x1d18   :  { %11307 = vrot.lane.b32.xlu0 %v11306_v8, %s11552_s2 }
0x1d1c   :  { %5900 = vrot.lane.b32.xlu0 %v5895_v50, %s11551_s18 }
0x1d20   :  { %6013 = vrot.lane.b32.xlu0 %v6004_v22, %s11552_s2 }
0x1d24   :  { %5902 = vrot.lane.b32.xlu0 %v5899_v32, %s11551_s18 }
0x1d6e   :  { %v6574_v55 = vpop.permute.xlu0 %6573 }
0x1d6f   :  { %v6576_v4 = vsel %vm5240_vm4, %v6574_v55, 0.0  ;;  %vm6394_vm4 = vcmp.ge.f32.partialorder %v6393_v35, 1.0 }
0x1d70   :  { %6577 = vadd.xlane.f32.xlu1 %v6576_v4  ;;  %v10688_v30 = vsel %vm6394_vm4, 1.0, %v11521_v7 }
0x1d71   :  { %v6404_v63 = vrot.slane %v10688_v30, %v12349_v26 }
0x1d72   :  { %v11303_v45 = vpop.permute.xlu0 %11302 }
0x1d73   :  { %v11305_v6 = vunpack.i.h.bf16 %v11303_v45  ;;  %v11304_v13 = vunpack.i.l.bf16 %v11303_v45  ;;  %v6409_v54 = vrot.slane %v6404_v63, %v13045_v61  ;;  %v6405_v52 = vcombine.high %v6404_v63, %v6404_v63 }
0x1d75   :  { %v5503_v49 = vsel %vm5407_vm7, %v11304_v13, %v11305_v6  ;;  %v6413_v1 = vrot.slane %v6405_v52, %v13045_v61 }
0x1d76   :  { %5507 = vst.msk [vmem:[#allocation5 + $0x2] sm:$0x1] %vm5297_vm6, %v5503_v49  ;;  %v5386_v60 = vpop.permute.xlu0 %5385 }
0x1d77   :  { %5391 = vst.msk [vmem:[#allocation5 + $0x1] sm:$0x1] %vm5297_vm6, %v5386_v60 }
0x1d7a   :  { %v5595_v3 = vpop.permute.xlu0 %5594 }
0x1d7b   :  { %5600 = vst.msk [vmem:[#allocation5 + $0x3] sm:$0x1] %vm5297_vm6, %v5595_v3 }
0x1d7e   :  { %v5500_v14 = vpop.permute.xlu0 %5499 }
0x1d7f   :  { %v5504_v47 = vsel %vm5407_vm7, %v5500_v14, %v13234_v33 }
0x1d80   :  { %5508 = vst.msk [vmem:[#allocation5 + $0x6] sm:$0x1] %vm5297_vm6, %v5504_v47 }
0x1d81   :  { %6015 = vrot.lane.b32.xlu1 %v6008_v20, %s11552_s2 }
0x1d82   :  { %v5388_v53 = vpop.permute.xlu0 %5387  ;;  %v6630_v62 = vld [vmem:[#allocation5] sm:$0xf] }
0x1d83   :  { %5392 = vst.msk [vmem:[#allocation5 + $0x5] sm:$0x1] %vm5297_vm6, %v5388_v53  ;;  %6632 = vxpose.xlu0.b32.start.end [1/1] (short) (narrow) %v6630_v62, 56 }
0x1d85   :  { %6110 = vrot.lane.b32.xlu1 %v6107_v21, %s11553_s17 }
0x1d86   :  { %v5597_v43 = vpop.permute.xlu0 %5596 }
0x1d87   :  { %5601 = vst.msk [vmem:[#allocation5 + $0x7] sm:$0x1] %vm5297_vm6, %v5597_v43 }
0x1d8a   :  { %v11308_v23 = vpop.permute.xlu0 %11307 }
0x1d8b   :  { %v11310_v33 = vunpack.i.h.bf16 %v11308_v23  ;;  %v11309_v29 = vunpack.i.l.bf16 %v11308_v23 }
0x1d8d   :  { %v6017_v58 = vsel %vm5407_vm7, %v11309_v29, %v11310_v33 }
0x1d8e   :  { %6021 = vst.msk [vmem:[#allocation5 + $0xa] sm:$0x1] %vm5297_vm6, %v6017_v58  ;;  %v5901_v18 = vpop.permute.xlu0 %5900  ;;  %v6631_v38 = vld [vmem:[#allocation5 + $0x4] sm:$0xf] }
0x1d8f   :  { %5906 = vst.msk [vmem:[#allocation5 + $0x9] sm:$0x1] %vm5297_vm6, %v5901_v18 }
0x1d92   :  { %v6014_v16 = vpop.permute.xlu0 %6013 }
0x1d96   :  { %v5903_v27 = vpop.permute.xlu0 %5902  ;;  %v6696_v59 = vld [vmem:[#allocation5 + $0x8] sm:$0xf] }
0x1d97   :  { %5907 = vst.msk [vmem:[#allocation5 + $0xd] sm:$0x1] %vm5297_vm6, %v5903_v27  ;;  %10958 = vmatpush3.msk.msra.mxu1 %vm5146_vm9, %v6696_v59  ;;  %v6590_v27 = vstv %s10692_s13 }
0x1d98   :  { %10980 = vmatprep.subr.mxu1 %v11521_v7  ;;  %v6591_v59 = vmul.f32 %v6590_v27, %v13244_v28 }
0x1dae   :  { %6664 = vxpose.xlu1.b32.start.end [1/1] (short) (narrow) %v6631_v38, 56 }
0x1dc4   :  { %11312 = vrot.lane.b32.xlu0 %v11311_v15, %s11552_s2 }
0x1de4   :  { %6414 = vrot.lane.b32.xlu1 %v6409_v54, %s11551_s18 }
0x1de8   :  { %6527 = vrot.lane.b32.xlu1 %v6518_v41, %s11552_s2 }
0x1dec   :  { %6416 = vrot.lane.b32.xlu1 %v6413_v1, %s11551_s18 }
0x1df9   :  { %v6578_v42 = vpop.xlane.xlu1 %6577 }
0x1dfa   :  { %v6579_v44 = vrot.slane %v6578_v42, 4 }
0x1dfc   :  { %v6580_v25 = vadd.f32 %v6579_v44, %v6578_v42 }
0x1dfd   :  { %v6016_v34 = vpop.permute.xlu1 %6015 }
0x1dfe   :  { %v6581_v0 = vrot.slane %v6580_v25, 2  ;;  %v6018_v37 = vsel %vm5407_vm7, %v6014_v16, %v6016_v34 }
0x1dff   :  { %6022 = vst.msk [vmem:[#allocation5 + $0xe] sm:$0x1] %vm5297_vm6, %v6018_v37  ;;  %v6648_v8 = vpop.trf.xlu0 }
0x1e00   :  { %v6582_v50 = vadd.f32 %v6581_v0, %v6580_v25  ;;  %10960 = vmatmul.mubr.msk.f32.vlgmr.msra.gmra.mxu1 %vm6700_vm5, %v6648_v8 }
0x1e01   :  { %v6111_v36 = vpop.permute.xlu1 %6110  ;;  %10962 = vmatprep.mubr.msk.f32.mxu1 %vm11524_vm0, %v11521_v7 }
0x1e02   :  { %6115 = vst.msk [vmem:[#allocation5 + $0xf] sm:$0x1] %vm5297_vm6, %v6111_v36  ;;  %v6583_v10 = vrot.slane %v6582_v50, 1 }
0x1e03   :  { %v6649_v22 = vpop.trf.xlu0 }
0x1e04   :  { %v6584_v32 = vadd.f32 %v6583_v10, %v6582_v50  ;;  %10963 = vmatmul.mubr.msk.f32.gmra.mxu1 %vm6700_vm5, %v6649_v22 }
0x1e05   :  { %10965 = vmatprep.mubr.msk.f32.mxu1 %vm11524_vm0, %v11521_v7 }
0x1e06   :  { %11250 = vpush %v6584_v32 }
0x1e07   :  { %v6650_v55 = vpop.trf.xlu0 }
0x1e08   :  { %10966 = vmatmul.mubr.msk.f32.gmra.mxu1 %vm6700_vm5, %v6650_v55 }
0x1e09   :  { %v6697_v4 = vld [vmem:[#allocation5 + $0xc] sm:$0xf]  ;;  %10968 = vmatprep.mubr.msk.f32.mxu1 %vm11524_vm0, %v11521_v7 }
0x1e0a   :  { %10981 = vmatpush3.msk.msra.mxu1 %vm5146_vm9, %v6697_v4 }
0x1e0b   :  { %v6651_v45 = vpop.trf.xlu0  ;;  %11026 = vmatprep.subr.mxu1 %v11521_v7 }
0x1e0c   :  { %10969 = vmatmul.mubr.msk.f32.gmra.mxu1 %vm6700_vm5, %v6651_v45 }
0x1e0d   :  { %10971 = vmatprep.mubr.msk.f32.mxu1 %vm11524_vm0, %v11521_v7 }
0x1e0f   :  { %v6652_v6 = vpop.trf.xlu0 }
0x1e10   :  { %10972 = vmatmul.mubr.msk.f32.gmra.mxu1 %vm6700_vm5, %v6652_v6 }
0x1e11   :  { %10974 = vmatprep.mubr.msk.f32.mxu1 %vm11524_vm0, %v11521_v7 }
0x1e13   :  { %v6653_v13 = vpop.trf.xlu0 }
0x1e14   :  { %10975 = vmatmul.mubr.msk.f32.gmra.mxu1 %vm6700_vm5, %v6653_v13 }
0x1e15   :  { %10977 = vmatprep.mubr.msk.f32.mxu1 %vm11524_vm0, %v11521_v7 }
0x1e17   :  { %v6654_v49 = vpop.trf.xlu0 }
0x1e18   :  { %10978 = vmatmul.mubr.msk.f32.gmra.mxu1 %vm6700_vm5, %v6654_v49 }
0x1e19   :  { %10982 = vmatprep.mubr.msk.f32.mxu1 %vm11524_vm0, %v11521_v7 }
0x1e2a   :  { %v6680_v60 = vpop.trf.xlu1 }
0x1e2b   :  { %10983 = vmatmul.mubr.msk.f32.vlgmr.msra.gmra.mxu1 %vm6700_vm5, %v6680_v60 }
0x1e2c   :  { %10985 = vmatprep.mubr.msk.f32.mxu1 %vm11524_vm0, %v11521_v7 }
0x1e2e   :  { %v6681_v3 = vpop.trf.xlu1 }
0x1e2f   :  { %10986 = vmatmul.mubr.msk.f32.gmra.mxu1 %vm6700_vm5, %v6681_v3 }
0x1e30   :  { %10988 = vmatprep.mubr.msk.f32.mxu1 %vm11524_vm0, %v11521_v7 }
0x1e32   :  { %v6682_v14 = vpop.trf.xlu1 }
0x1e33   :  { %10989 = vmatmul.mubr.msk.f32.gmra.mxu1 %vm6700_vm5, %v6682_v14 }
0x1e34   :  { %10991 = vmatprep.mubr.msk.f32.mxu1 %vm11524_vm0, %v11521_v7 }
0x1e36   :  { %v11313_v9 = vpop.permute.xlu0 %11312  ;;  %v6683_v47 = vpop.trf.xlu1 }
0x1e37   :  { %v11315_v20 = vunpack.i.h.bf16 %v11313_v9  ;;  %v11314_v53 = vunpack.i.l.bf16 %v11313_v9  ;;  %s11251_s18 = spop %11250  ;;  %10992 = vmatmul.mubr.msk.f32.gmra.mxu1 %vm6700_vm5, %v6683_v47 }
0x1e38   :  { %s6588_s20 = smul.f32 0.010204081, %s11251_s18  ;;  %10994 = vmatprep.mubr.msk.f32.mxu1 %vm11524_vm0, %v11521_v7 }
0x1e39   :  { %v6531_v62 = vsel %vm5407_vm7, %v11314_v53, %v11315_v20 }
0x1e3a   :  { %6535 = vst.msk [vmem:[#allocation5 + $0x12] sm:$0x1] %vm5297_vm6, %v6531_v62  ;;  %s6592_s21 = sadd.f32 1e-05, %s6588_s20  ;;  %v6684_v21 = vpop.trf.xlu1 }
0x1e3b   :  { %10995 = vmatmul.mubr.msk.f32.gmra.mxu1 %vm6700_vm5, %v6684_v21 }
0x1e3c   :  { %v6593_v43 = vstv %s6592_s21  ;;  %10997 = vmatprep.mubr.msk.f32.mxu1 %vm11524_vm0, %v11521_v7 }
0x1e3d   :  { %11360 = vrsqrt.f32 %v6593_v43 }
0x1e3e   :  { %v6685_v23 = vpop.trf.xlu1 }
0x1e3f   :  { %10998 = vmatmul.mubr.msk.f32.gmra.mxu1 %vm6700_vm5, %v6685_v23 }
0x1e40   :  { %11000 = vmatprep.mubr.msk.f32.mxu1 %vm11524_vm0, %v11521_v7 }
0x1e42   :  { %v6686_v33 = vpop.trf.xlu1 }
0x1e43   :  { %11001 = vmatmul.mubr.msk.f32.gmra.mxu1 %vm6700_vm5, %v6686_v33 }
0x1e44   :  { %11028 = vmatprep.mubr.msk.f32.mxu1 %vm11524_vm0, %v11521_v7 }
0x1e4a   :  { %v11361_v29 = vpop.eup %11360 }
0x1e4b   :  { %11252 = vpush %v11361_v29 }
0x1e56   :  { %v6415_v58 = vpop.permute.xlu1 %6414 }
0x1e57   :  { %6420 = vst.msk [vmem:[#allocation5 + $0x11] sm:$0x1] %vm5297_vm6, %v6415_v58 }
0x1e5a   :  { %v6528_v18 = vpop.permute.xlu1 %6527 }
0x1e5e   :  { %v6417_v16 = vpop.permute.xlu1 %6416 }
0x1e5f   :  { %6421 = vst.msk [vmem:[#allocation5 + $0x15] sm:$0x1] %vm5297_vm6, %v6417_v16  ;;  %v7898_v16 = vld [vmem:[%s14188_s9] sm:$0xf] }
0x1e7c   :  { %s11253_s7 = spop %11252 }
0x1e7d   :  { %v6596_v46 = vstv %s11253_s7 }
0x1e7e   :  { %v6597_v38 = vmul.f32 %v6596_v46, %v6591_v59 }
0x1e80   :  { %v6600_v24 = vadd.f32 %v6599_v51, %v6597_v38 }
0x1e82   :  { %v6601_v40 = vmul.f32 0.5, %v6600_v24 }
0x1e84   :  { %vm6602_vm8 = vcmp.ge.f32.partialorder %v6601_v40, 1.0 }
0x1e85   :  { %v10694_v19 = vsel %vm6602_vm8, 1.0, %v11521_v7 }
0x1e86   :  { %v6612_v5 = vrot.slane %v10694_v19, %v12349_v26 }
0x1e88   :  { %v6617_v2 = vrot.slane %v6612_v5, %v13045_v61  ;;  %v6613_v15 = vcombine.high %v6612_v5, %v6612_v5 }
0x1e8a   :  { %6622 = vrot.lane.b32.xlu0 %v6617_v2, %s11553_s17  ;;  %v6621_v28 = vrot.slane %v6613_v15, %v13045_v61 }
0x1e8e   :  { %6529 = vrot.lane.b32.xlu0 %v6522_v48, %s11552_s2 }
0x1e92   :  { %6624 = vrot.lane.b32.xlu0 %v6621_v28, %s11553_s17 }
0x1ec0   :  { %v6791_v12 = vpop.f32.mrf.mxu1 }
0x1ec1   :  { %v6949_v60 = vmul.f32 0.125, %v6791_v12 }
0x1ec2   :  { %v10961_v56 = vpop.f32.mrf.mxu1 }
0x1ec4   :  { %v6796_v11 = vpop.f32.mrf.mxu1 }
0x1ec5   :  { %v6950_v3 = vmul.f32 0.125, %v6796_v11 }
0x1ec6   :  { %v10964_v17 = vpop.f32.mrf.mxu1 }
0x1ec8   :  { %v6801_v31 = vpop.f32.mrf.mxu1 }
0x1ec9   :  { %v6951_v47 = vmul.f32 0.125, %v6801_v31 }
0x1eca   :  { %v10967_v35 = vpop.f32.mrf.mxu1 }
0x1ecc   :  { %v6806_v30 = vpop.f32.mrf.mxu1 }
0x1ecd   :  { %v6952_v53 = vmul.f32 0.125, %v6806_v30 }
0x1ece   :  { %v10970_v63 = vpop.f32.mrf.mxu1 }
0x1ed0   :  { %v6811_v54 = vpop.f32.mrf.mxu1 }
0x1ed1   :  { %v6953_v21 = vmul.f32 0.125, %v6811_v54 }
0x1ed2   :  { %v10973_v52 = vpop.f32.mrf.mxu1 }
0x1ed4   :  { %v6816_v41 = vpop.f32.mrf.mxu1 }
0x1ed5   :  { %v6954_v23 = vmul.f32 0.125, %v6816_v41 }
0x1ed6   :  { %v10976_v1 = vpop.f32.mrf.mxu1 }
0x1ed8   :  { %v6821_v42 = vpop.f32.mrf.mxu1 }
0x1ed9   :  { %v6955_v29 = vmul.f32 0.125, %v6821_v42 }
0x1eda   :  { %v10979_v39 = vpop.f32.mrf.mxu1 }
0x1eeb   :  { %v6915_v57 = vpop.f32.mrf.mxu1 }
0x1eec   :  { %v6956_v9 = vmul.f32 0.125, %v6915_v57 }
0x1eed   :  { %v10984_v44 = vpop.f32.mrf.mxu1 }
0x1eef   :  { %v6920_v25 = vpop.f32.mrf.mxu1 }
0x1ef0   :  { %v6957_v20 = vmul.f32 0.125, %v6920_v25 }
0x1ef1   :  { %v10987_v61 = vpop.f32.mrf.mxu1 }
0x1ef3   :  { %v6925_v34 = vpop.f32.mrf.mxu1 }
0x1ef4   :  { %v6958_v62 = vmul.f32 0.125, %v6925_v34 }
0x1ef5   :  { %v10990_v0 = vpop.f32.mrf.mxu1 }
0x1ef7   :  { %v6930_v37 = vpop.f32.mrf.mxu1 }
0x1ef8   :  { %v6959_v43 = vmul.f32 0.125, %v6930_v37 }
0x1ef9   :  { %v10993_v8 = vpop.f32.mrf.mxu1 }
0x1efb   :  { %v6935_v50 = vpop.f32.mrf.mxu1 }
0x1efc   :  { %v6623_v36 = vpop.permute.xlu0 %6622  ;;  %v6960_v33 = vmul.f32 0.125, %v6935_v50 }
0x1efd   :  { %6628 = vst.msk [vmem:[#allocation5 + $0x13] sm:$0x1] %vm5297_vm6, %v6623_v36  ;;  %v10996_v10 = vpop.f32.mrf.mxu1 }
0x1eff   :  { %v6940_v22 = vpop.f32.mrf.mxu1 }
0x1f00   :  { %v6530_v32 = vpop.permute.xlu0 %6529  ;;  %v6961_v58 = vmul.f32 0.125, %v6940_v22 }
0x1f01   :  { %v6532_v55 = vsel %vm5407_vm7, %v6528_v18, %v6530_v32  ;;  %v10999_v4 = vpop.f32.mrf.mxu1 }
0x1f02   :  { %6536 = vst.msk [vmem:[#allocation5 + $0x16] sm:$0x1] %vm5297_vm6, %v6532_v55 }
0x1f03   :  { %v6945_v45 = vpop.f32.mrf.mxu1 }
0x1f04   :  { %v6625_v6 = vpop.permute.xlu0 %6624  ;;  %v6698_v13 = vld [vmem:[#allocation5 + $0x10] sm:$0xf]  ;;  %v6962_v18 = vmul.f32 0.125, %v6945_v45 }
0x1f05   :  { %6629 = vst.msk [vmem:[#allocation5 + $0x17] sm:$0x1] %vm5297_vm6, %v6625_v6  ;;  %11004 = vmatpush3.xpose.msk.msra.mxu0 %vm6963_vm10, %v6698_v13  ;;  %v11002_v49 = vpop.f32.mrf.mxu1 }
0x1f06   :  { %11049 = vmatprep.subr.mxu0 %v11521_v7 }
0x1f08   :  { %11006 = vmatmul.mubr.msk.f32.vlgmr.msra.gmra.mxu0 %vm6963_vm10, %v6949_v60 }
0x1f09   :  { %11008 = vmatprep.mubr.msk.f32.mxu0 %vm11524_vm0, %v11521_v7  ;;  %11050 = vmatpush3.msk.msra.mxu0 %vm5146_vm9, %v7898_v16 }
0x1f0c   :  { %11009 = vmatmul.mubr.msk.f32.gmra.mxu0 %vm6963_vm10, %v6950_v3  ;;  %v6699_v14 = vld [vmem:[#allocation5 + $0x14] sm:$0xf] }
0x1f0d   :  { %11027 = vmatpush3.xpose.msk.msra.mxu1 %vm6963_vm10, %v6699_v14  ;;  %11011 = vmatprep.mubr.msk.f32.mxu0 %vm11524_vm0, %v11521_v7 }
0x1f0e   :  { %11090 = vmatprep.subr.mxu1 %v11521_v7 }
0x1f10   :  { %11012 = vmatmul.mubr.msk.f32.gmra.mxu0 %vm6963_vm10, %v6951_v47  ;;  %11029 = vmatmul.mubr.msk.f32.vlgmr.msra.gmra.mxu1 %vm6963_vm10, %v6956_v9 }
0x1f11   :  { %11014 = vmatprep.mubr.msk.f32.mxu0 %vm11524_vm0, %v11521_v7  ;;  %11031 = vmatprep.mubr.msk.f32.mxu1 %vm11524_vm0, %v11521_v7 }
0x1f14   :  { %11015 = vmatmul.mubr.msk.f32.gmra.mxu0 %vm6963_vm10, %v6952_v53  ;;  %11032 = vmatmul.mubr.msk.f32.gmra.mxu1 %vm6963_vm10, %v6957_v20 }
0x1f15   :  { %11017 = vmatprep.mubr.msk.f32.mxu0 %vm11524_vm0, %v11521_v7  ;;  %11034 = vmatprep.mubr.msk.f32.mxu1 %vm11524_vm0, %v11521_v7 }
0x1f18   :  { %11018 = vmatmul.mubr.msk.f32.gmra.mxu0 %vm6963_vm10, %v6953_v21  ;;  %11035 = vmatmul.mubr.msk.f32.gmra.mxu1 %vm6963_vm10, %v6958_v62 }
0x1f19   :  { %11020 = vmatprep.mubr.msk.f32.mxu0 %vm11524_vm0, %v11521_v7  ;;  %11037 = vmatprep.mubr.msk.f32.mxu1 %vm11524_vm0, %v11521_v7 }
0x1f1c   :  { %11021 = vmatmul.mubr.msk.f32.gmra.mxu0 %vm6963_vm10, %v6954_v23  ;;  %11038 = vmatmul.mubr.msk.f32.gmra.mxu1 %vm6963_vm10, %v6959_v43 }
0x1f1d   :  { %11023 = vmatprep.mubr.msk.f32.mxu0 %vm11524_vm0, %v11521_v7  ;;  %11040 = vmatprep.mubr.msk.f32.mxu1 %vm11524_vm0, %v11521_v7 }
0x1f20   :  { %11024 = vmatmul.mubr.msk.f32.gmra.mxu0 %vm6963_vm10, %v6955_v29  ;;  %11041 = vmatmul.mubr.msk.f32.gmra.mxu1 %vm6963_vm10, %v6960_v33 }
0x1f21   :  { %11043 = vmatprep.mubr.msk.f32.mxu1 %vm11524_vm0, %v11521_v7  ;;  %11051 = vmatprep.mubr.msk.f32.mxu0 %vm11524_vm0, %v11521_v7 }
0x1f24   :  { %11044 = vmatmul.mubr.msk.f32.gmra.mxu1 %vm6963_vm10, %v6961_v58 }
0x1f25   :  { %11046 = vmatprep.mubr.msk.f32.mxu1 %vm11524_vm0, %v11521_v7 }
0x1f28   :  { %11047 = vmatmul.mubr.msk.f32.gmra.mxu1 %vm6963_vm10, %v6962_v18 }
0x1f29   :  { %11104 = vmatprep.mubr.msk.f32.mxu1 %vm11524_vm0, %v11521_v7 }
0x1fc8   :  { %v7054_v27 = vpop.f32.mrf.mxu0 }
0x1fc9   :  { %v7212_v59 = vmul.f32 0.5, %v7054_v27 }
0x1fca   :  { %v11007_v46 = vpop.f32.mrf.mxu0 }
0x1fcb   :  { %vm7226_vm6 = vcmp.ge.f32.partialorder %v7212_v59, 0.5 }
0x1fcc   :  { %v10727_v51 = vsel %vm7226_vm6, 1.0, %v11521_v7  ;;  %v7059_v38 = vpop.f32.mrf.mxu0 }
0x1fcd   :  { %v7282_v24 = vcombine.high %v10727_v51, %v10727_v51  ;;  %v7289_v40 = vrot.slane %v10727_v51, %v12349_v26  ;;  %v7213_v19 = vmul.f32 0.5, %v7059_v38 }
0x1fce   :  { %v11010_v5 = vpop.f32.mrf.mxu0 }
0x1fcf   :  { %v7296_v2 = vrot.slane %v7282_v24, %v12349_v26  ;;  %v7297_v15 = vcombine.high %v7289_v40, %v7289_v40  ;;  %vm7227_vm7 = vcmp.ge.f32.partialorder %v7213_v19, 0.5  ;;  %v7305_v11 = vrot.slane %v7289_v40, %v12349_v26 }
0x1fd0   :  { %v10728_v48 = vsel %vm7227_vm7, 1.0, %v11521_v7  ;;  %v7064_v28 = vpop.f32.mrf.mxu0  ;;  %v7178_v12 = vpop.f32.mrf.mxu1 }
0x1fd1   :  { %v7298_v56 = vcombine.high %v7296_v2, %v7296_v2  ;;  %v7319_v17 = vrot.slane %v7297_v15, %v12349_v26  ;;  %v7331_v31 = vcombine.high %v10728_v48, %v10728_v48  ;;  %v7312_v35 = vrot.slane %v7296_v2, %v12349_v26 }
0x1fd2   :  { %v7338_v30 = vrot.slane %v10728_v48, %v12349_v26  ;;  %v7214_v63 = vmul.f32 0.5, %v7064_v28  ;;  %v11013_v54 = vpop.f32.mrf.mxu0  ;;  %v11030_v52 = vpop.f32.mrf.mxu1  ;;  %v7219_v33 = vmul.f32 0.5, %v7178_v12 }
0x1fd3   :  { %v7326_v41 = vrot.slane %v7298_v56, %v12349_v26  ;;  %v7906_v1 = vcombine.low %v7305_v11, %v7319_v17  ;;  %v10742_v42 = vcombine.high %v7305_v11, %v7319_v17  ;;  %v7345_v39 = vrot.slane %v7331_v31, %v12349_v26 }
0x1fd4   :  { %v7346_v57 = vcombine.high %v7338_v30, %v7338_v30  ;;  %v7354_v44 = vrot.slane %v7338_v30, %v12349_v26  ;;  %vm7228_vm9 = vcmp.ge.f32.partialorder %v7214_v63, 0.5  ;;  %v7069_v25 = vpop.f32.mrf.mxu0  ;;  %v13452_v61 = vpop.f32.mrf.mxu1  ;;  %vm7233_vm12 = vcmp.ge.f32.partialorder %v7219_v33, 0.5 }
0x1fd5   :  { %v7908_v34 = vcombine.low %v7312_v35, %v7326_v41  ;;  %v10743_v0 = vcombine.high %v7312_v35, %v7326_v41  ;;  %v7916_v37 = vrot.slane %v7906_v1, %v12349_v26  ;;  %v7923_v8 = vrot.slane %v10742_v42, %v12349_v26 }
0x1fd6   :  { %v7347_v50 = vcombine.high %v7345_v39, %v7345_v39  ;;  %v7361_v36 = vrot.slane %v7345_v39, %v12349_v26  ;;  %v7368_v10 = vrot.slane %v7346_v57, %v12349_v26  ;;  %v10729_v22 = vsel %vm7228_vm9, 1.0, %v11521_v7  ;;  %v11016_v32 = vpop.f32.mrf.mxu0  ;;  %v11033_v55 = vpop.f32.mrf.mxu1 }
0x1fd7   :  { %v7930_v4 = vrot.slane %v7908_v34, %v12349_v26  ;;  %v7937_v45 = vrot.slane %v10743_v0, %v12349_v26  ;;  %v7938_v6 = vcombine.low %v7916_v37, %v7923_v8  ;;  %v7380_v13 = vcombine.high %v10729_v22, %v10729_v22 }
0x1fd8   :  { %v7375_v49 = vrot.slane %v7347_v50, %v12349_v26  ;;  %v7955_v60 = vcombine.low %v7354_v44, %v7368_v10  ;;  %v10744_v3 = vcombine.high %v7354_v44, %v7368_v10  ;;  %v7387_v14 = vrot.slane %v10729_v22, %v12349_v26  ;;  %v7074_v9 = vpop.f32.mrf.mxu0  ;;  %v13463_v47 = vpop.f32.mrf.mxu1 }
0x1fd9   :  { %v7939_v20 = vcombine.low %v7930_v4, %v7937_v45  ;;  %v7394_v53 = vrot.slane %v7380_v13, %v12349_v26  ;;  %v7215_v62 = vmul.f32 0.5, %v7069_v25  ;;  %v7946_v21 = vrot.slane %v7938_v6, %v12349_v26 }
0x1fda   :  { %v7957_v43 = vcombine.low %v7361_v36, %v7375_v49  ;;  %v11019_v23 = vpop.f32.mrf.mxu0  ;;  %v11036_v29 = vpop.f32.mrf.mxu1  ;;  %v10745_v18 = vcombine.high %v7361_v36, %v7375_v49  ;;  %v7395_v16 = vcombine.high %v7387_v14, %v7387_v14  ;;  %v13469_v59 = vrot.slane %v7955_v60, %v12349_v26 }
0x1fdb   :  { %v7953_v58 = vrot.slane %v7939_v20, %v12349_v26  ;;  %v7396_v27 = vcombine.high %v7394_v53, %v7394_v53  ;;  %v13472_v46 = vrot.slane %v10744_v3, %v12349_v26  ;;  %v7403_v51 = vrot.slane %v7387_v14, %v12349_v26 }
0x1fdc   :  { %v7079_v38 = vpop.f32.mrf.mxu0  ;;  %v13475_v24 = vpop.f32.mrf.mxu1  ;;  %v7417_v19 = vrot.slane %v7395_v16, %v12349_v26  ;;  %vm7229_vm11 = vcmp.ge.f32.partialorder %v7215_v62, 0.5  ;;  %v7216_v15 = vmul.f32 0.5, %v7074_v9  ;;  %v13481_v56 = vrot.slane %v7957_v43, %v12349_v26 }
0x1fdd   :  { %v7954_v40 = vcombine.low %v7946_v21, %v7953_v58  ;;  %v7424_v5 = vrot.slane %v7396_v27, %v12349_v26  ;;  %v10730_v2 = vsel %vm7229_vm11, 1.0, %v11521_v7  ;;  %v7217_v48 = vmul.f32 0.5, %v7079_v38 }
0x1fde   :  { %v11022_v28 = vpop.f32.mrf.mxu0  ;;  %v11039_v12 = vpop.f32.mrf.mxu1  ;;  %v13484_v11 = vrot.slane %v10745_v18, %v12349_v26  ;;  %v7410_v17 = vrot.slane %v7394_v53, %v12349_v26  ;;  %v8004_v31 = vcombine.low %v7403_v51, %v7417_v19  ;;  %v7429_v35 = vcombine.high %v10730_v2, %v10730_v2 }
0x1fdf   :  { %11052 = vmatmul.mubr.msk.f32.vlgmr.msra.gmra.mxu0 %vm6700_vm5, %v7954_v40  ;;  %v7436_v30 = vrot.slane %v10730_v2, %v12349_v26  ;;  %vm7230_vm13 = vcmp.ge.f32.partialorder %v7216_v15, 0.5  ;;  %vm7231_vm14 = vcmp.ge.f32.partialorder %v7217_v48, 0.5  ;;  %v7987_v52 = vcombine.low %v13469_v59, %v13472_v46 }
0x1fe0   :  { %11054 = vmatprep.mubr.msk.f32.mxu0 %vm11524_vm0, %v11521_v7  ;;  %v13491_v63 = vpop.f32.mrf.mxu0  ;;  %v13493_v54 = vpop.f32.mrf.mxu1  ;;  %v10746_v41 = vcombine.high %v7403_v51, %v7417_v19  ;;  %v8006_v1 = vcombine.low %v7410_v17, %v7424_v5  ;;  %v10734_v42 = vsel %vm7233_vm12, 1.0, %v11521_v7  ;;  %v10747_v39 = vcombine.high %v7410_v17, %v7424_v5 }
0x1fe1   :  { %v7443_v57 = vrot.slane %v7429_v35, %v12349_v26  ;;  %v7444_v44 = vcombine.high %v7436_v30, %v7436_v30  ;;  %v10731_v25 = vsel %vm7230_vm13, 1.0, %v11521_v7  ;;  %v13502_v37 = vrot.slane %v8004_v31, %v12349_v26 }
0x1fe2   :  { %v11025_v34 = vpop.f32.mrf.mxu0  ;;  %v11042_v0 = vpop.f32.mrf.mxu1  ;;  %v7478_v8 = vcombine.high %v10731_v25, %v10731_v25  ;;  %v7485_v50 = vrot.slane %v10731_v25, %v12349_v26  ;;  %v10732_v36 = vsel %vm7231_vm14, 1.0, %v11521_v7  ;;  %v7452_v22 = vrot.slane %v7436_v30, %v12349_v26 }
0x1fe3   :  { %v7445_v10 = vcombine.high %v7443_v57, %v7443_v57  ;;  %v7466_v32 = vrot.slane %v7444_v44, %v12349_v26  ;;  %v7527_v55 = vcombine.high %v10732_v36, %v10732_v36  ;;  %v13512_v45 = vrot.slane %v10746_v41, %v12349_v26 }
0x1fe4   :  { %v13509_v4 = vpop.f32.mrf.mxu1  ;;  %v7492_v6 = vrot.slane %v7478_v8, %v12349_v26  ;;  %v7493_v13 = vcombine.high %v7485_v50, %v7485_v50  ;;  %v7534_v49 = vrot.slane %v10732_v36, %v12349_v26  ;;  %v7459_v60 = vrot.slane %v7443_v57, %v12349_v26 }
0x1fe5   :  { %v7473_v3 = vrot.slane %v7445_v10, %v12349_v26  ;;  %v8053_v14 = vcombine.low %v7452_v22, %v7466_v32  ;;  %v7541_v9 = vrot.slane %v7527_v55, %v12349_v26  ;;  %v10748_v53 = vcombine.high %v7452_v22, %v7466_v32 }
0x1fe6   :  { %v11045_v20 = vpop.f32.mrf.mxu1  ;;  %v7494_v62 = vcombine.high %v7492_v6, %v7492_v6  ;;  %v7501_v21 = vrot.slane %v7485_v50, %v12349_v26  ;;  %v7515_v43 = vrot.slane %v7493_v13, %v12349_v26  ;;  %v13522_v23 = vrot.slane %v8006_v1, %v12349_v26 }
0x1fe7   :  { %v8055_v33 = vcombine.low %v7459_v60, %v7473_v3  ;;  %v7508_v29 = vrot.slane %v7492_v6, %v12349_v26  ;;  %v7542_v58 = vcombine.high %v7534_v49, %v7534_v49  ;;  %v10749_v16 = vcombine.high %v7459_v60, %v7473_v3 }
0x1fe8   :  { %v13525_v18 = vpop.f32.mrf.mxu1  ;;  %v7522_v27 = vrot.slane %v7494_v62, %v12349_v26  ;;  %v8102_v51 = vcombine.low %v7501_v21, %v7515_v43  ;;  %v7543_v38 = vcombine.high %v7541_v9, %v7541_v9  ;;  %v8035_v40 = vrot.slane %v10747_v39, %v12349_v26 }
0x1fe9   :  { %v8036_v19 = vcombine.low %v13502_v37, %v13512_v45  ;;  %v13532_v5 = vrot.slane %v8053_v14, %v12349_v26  ;;  %v10750_v2 = vcombine.high %v7501_v21, %v7515_v43  ;;  %v13535_v48 = vrot.slane %v10748_v53, %v12349_v26 }
0x1fea   :  { %v11048_v15 = vpop.f32.mrf.mxu1  ;;  %v8104_v28 = vcombine.low %v7508_v29, %v7522_v27  ;;  %v10751_v12 = vcombine.high %v7508_v29, %v7522_v27  ;;  %v7550_v17 = vrot.slane %v7534_v49, %v12349_v26  ;;  %v7557_v31 = vrot.slane %v7541_v9, %v12349_v26 }
0x1feb   :  { %v7564_v35 = vrot.slane %v7542_v58, %v12349_v26  ;;  %v7571_v30 = vrot.slane %v7543_v38, %v12349_v26  ;;  %v7590_v41 = vcombine.high %v10734_v42, %v10734_v42  ;;  %v8077_v1 = vrot.slane %v8055_v33, %v12349_v26 }
0x1fec   :  { %v8084_v39 = vrot.slane %v10749_v16, %v12349_v26  ;;  %v13544_v57 = vrot.slane %v8102_v51, %v12349_v26  ;;  %v7597_v44 = vrot.slane %v10734_v42, %v12349_v26  ;;  %v13548_v25 = vrot.slane %v10750_v2, %v12349_v26 }
0x1fed   :  { %v8151_v34 = vcombine.low %v7550_v17, %v7564_v35  ;;  %v10752_v0 = vcombine.high %v7550_v17, %v7564_v35  ;;  %v8153_v37 = vcombine.low %v7557_v31, %v7571_v30  ;;  %v7604_v8 = vrot.slane %v7590_v41, %v12349_v26 }
0x1fee   :  { %v7605_v50 = vcombine.high %v7597_v44, %v7597_v44  ;;  %v13552_v36 = vrot.slane %v7597_v44, %v12349_v26  ;;  %v7218_v10 = vmul.f32 0.5, %v13491_v63  ;;  %v8085_v22 = vcombine.low %v13532_v5, %v13535_v48 }
0x1fef   :  { %v13558_v32 = vrot.slane %v8104_v28, %v12349_v26  ;;  %v13561_v42 = vrot.slane %v10751_v12, %v12349_v26  ;;  %v10753_v55 = vcombine.high %v7557_v31, %v7571_v30  ;;  %v13564_v45 = vrot.slane %v8151_v34, %v12349_v26 }
0x1ff0   :  { %v13567_v6 = vrot.slane %v10752_v0, %v12349_v26  ;;  %v7606_v13 = vcombine.high %v7604_v8, %v7604_v8  ;;  %v7627_v49 = vrot.slane %v7605_v50, %v12349_v26  ;;  %v7620_v63 = vrot.slane %v7604_v8, %v12349_v26 }
0x1ff1   :  { %v7635_v60 = vcombine.high %v13552_v36, %v13552_v36  ;;  %vm7232_vm15 = vcmp.ge.f32.partialorder %v7218_v10, 0.5  ;;  %v7988_v3 = vcombine.low %v13481_v56, %v13484_v11  ;;  %v8134_v14 = vcombine.low %v13544_v57, %v13548_v25 }
0x1ff2   :  { %v13578_v9 = vrot.slane %v8153_v37, %v12349_v26  ;;  %v7637_v20 = vcombine.high %v7627_v49, %v7627_v49  ;;  %v7995_v53 = vrot.slane %v7987_v52, %v12349_v26  ;;  %v10733_v62 = vsel %vm7232_vm15, 1.0, %v11521_v7 }
0x1ff3   :  { %v8002_v21 = vrot.slane %v7988_v3, %v12349_v26  ;;  %v7220_v43 = vmul.f32 0.5, %v13452_v61  ;;  %v8037_v56 = vcombine.low %v13522_v23, %v8035_v40  ;;  %v13589_v11 = vrot.slane %v10753_v55, %v12349_v26 }
0x1ff4   :  { %v8183_v33 = vcombine.low %v13564_v45, %v13567_v6  ;;  %v7634_v29 = vrot.slane %v7606_v13, %v12349_v26  ;;  %v7582_v58 = vrot.slane %v10733_v62, %v12349_v26  ;;  %v7636_v59 = vcombine.high %v7620_v63, %v7620_v63 }
0x1ff5   :  { %v13595_v46 = vcombine.low %v7627_v49, %v7635_v60  ;;  %v8003_v52 = vcombine.low %v7995_v53, %v8002_v21  ;;  %vm7234_vm2 = vcmp.ge.f32.partialorder %v7220_v43, 0.5  ;;  %v13597_v16 = vcombine.low %v7637_v20, %v7620_v63 }
0x1ff6   :  { %v7589_v61 = vrot.slane %v7582_v58, %v12349_v26  ;;  %v10735_v23 = vsel %vm7234_vm2, 1.0, %v11521_v7  ;;  %v8044_v27 = vrot.slane %v8036_v19, %v12349_v26  ;;  %v8051_v40 = vrot.slane %v8037_v56, %v12349_v26 }
0x1ff7   :  { %11055 = vmatmul.mubr.msk.f32.gmra.mxu0 %vm6700_vm5, %v8003_v52  ;;  %v7639_v51 = vcombine.high %v10735_v23, %v10735_v23  ;;  %v7646_v38 = vrot.slane %v10735_v23, %v12349_v26  ;;  %v7221_v5 = vmul.f32 0.5, %v13463_v47  ;;  %v7638_v15 = vcombine.high %v7634_v29, %v7634_v29 }
0x1ff8   :  { %v8200_v2 = vcombine.low %v7589_v61, %v13552_v36  ;;  %11057 = vmatprep.mubr.msk.f32.mxu0 %vm11524_vm0, %v11521_v7  ;;  %v8086_v48 = vcombine.low %v8077_v1, %v8084_v39  ;;  %v7222_v28 = vmul.f32 0.5, %v13475_v24  ;;  %v8052_v31 = vcombine.low %v8044_v27, %v8051_v40 }
0x1ff9   :  { %v7653_v19 = vrot.slane %v7639_v51, %v12349_v26  ;;  %v7654_v12 = vcombine.high %v7646_v38, %v7646_v38  ;;  %v7662_v17 = vrot.slane %v7646_v38, %v12349_v26  ;;  %vm7235_vm3 = vcmp.ge.f32.partialorder %v7221_v5, 0.5 }
0x1ffa   :  { %v8093_v35 = vrot.slane %v8085_v22, %v12349_v26  ;;  %v8100_v47 = vrot.slane %v8086_v48, %v12349_v26  ;;  %vm7236_vm4 = vcmp.ge.f32.partialorder %v7222_v28, 0.5  ;;  %v13617_v24 = vcombine.low %v7634_v29, %v7636_v59 }
0x1ffb   :  { %v7655_v30 = vcombine.high %v7653_v19, %v7653_v19  ;;  %v7669_v41 = vrot.slane %v7653_v19, %v12349_v26  ;;  %v7676_v44 = vrot.slane %v7654_v12, %v12349_v26  ;;  %v7684_v1 = vcombine.high %v7662_v17, %v7662_v17  ;;  %11058 = vmatmul.mubr.msk.f32.gmra.mxu0 %vm6700_vm5, %v8052_v31 }
0x1ffc   :  { %v8249_v39 = vcombine.low %v7638_v15, %v7662_v17  ;;  %v10736_v34 = vsel %vm7235_vm3, 1.0, %v11521_v7  ;;  %11060 = vmatprep.mubr.msk.f32.mxu0 %vm11524_vm0, %v11521_v7  ;;  %v8101_v0 = vcombine.low %v8093_v35, %v8100_v47  ;;  %v8217_v10 = vrot.slane %v13595_v46, %v12349_v26 }
0x1ffd   :  { %v7683_v37 = vrot.slane %v7655_v30, %v12349_v26  ;;  %v7685_v8 = vcombine.high %v7669_v41, %v7669_v41  ;;  %v7686_v50 = vcombine.high %v7676_v44, %v7676_v44  ;;  %v8250_v36 = vcombine.low %v7676_v44, %v7684_v1 }
0x1ffe   :  { %v7688_v22 = vcombine.high %v10736_v34, %v10736_v34  ;;  %v7695_v55 = vrot.slane %v10736_v34, %v12349_v26  ;;  %v10737_v13 = vsel %vm7236_vm4, 1.0, %v11521_v7  ;;  %v8224_v49 = vrot.slane %v13597_v16, %v12349_v26 }
0x1fff   :  { %v8210_v63 = vrot.slane %v8200_v2, %v12349_v26  ;;  %v8259_v60 = vrot.slane %v8249_v39, %v12349_v26  ;;  %v7687_v3 = vcombine.high %v7683_v37, %v7683_v37  ;;  %11061 = vmatmul.mubr.msk.f32.gmra.mxu0 %vm6700_vm5, %v8101_v0  ;;  %v7737_v21 = vcombine.high %v10737_v13, %v10737_v13 }
0x2000   :  { %v7702_v20 = vrot.slane %v7688_v22, %v12349_v26  ;;  %v7703_v53 = vcombine.high %v7695_v55, %v7695_v55  ;;  %v7711_v62 = vrot.slane %v7695_v55, %v12349_v26  ;;  %11063 = vmatprep.mubr.msk.f32.mxu0 %vm11524_vm0, %v11521_v7  ;;  %v13637_v43 = vcombine.low %v7686_v50, %v7669_v41 }
0x2001   :  { %v13639_v56 = vcombine.low %v7683_v37, %v7685_v8  ;;  %v8266_v29 = vrot.slane %v8250_v36, %v12349_v26  ;;  %v7744_v58 = vrot.slane %v10737_v13, %v12349_v26  ;;  %v7751_v23 = vrot.slane %v7737_v21, %v12349_v26 }
0x2002   :  { %v7704_v59 = vcombine.high %v7702_v20, %v7702_v20  ;;  %v7718_v46 = vrot.slane %v7702_v20, %v12349_v26  ;;  %v7725_v52 = vrot.slane %v7703_v53, %v12349_v26  ;;  %v7733_v16 = vcombine.high %v7711_v62, %v7711_v62 }
0x2003   :  { %v8298_v61 = vcombine.low %v7687_v3, %v7711_v62  ;;  %v7752_v27 = vcombine.high %v7744_v58, %v7744_v58  ;;  %v7760_v51 = vrot.slane %v7744_v58, %v12349_v26  ;;  %v7753_v48 = vcombine.high %v7751_v23, %v7751_v23 }
0x2004   :  { %v7732_v38 = vrot.slane %v7704_v59, %v12349_v26  ;;  %v7734_v40 = vcombine.high %v7718_v46, %v7718_v46  ;;  %v7735_v5 = vcombine.high %v7725_v52, %v7725_v52  ;;  %v8299_v2 = vcombine.low %v7725_v52, %v7733_v16 }
0x2005   :  { %v8308_v15 = vrot.slane %v8298_v61, %v12349_v26  ;;  %v7767_v28 = vrot.slane %v7751_v23, %v12349_v26  ;;  %v7774_v19 = vrot.slane %v7752_v27, %v12349_v26  ;;  %v7781_v47 = vrot.slane %v7753_v48, %v12349_v26 }
0x2006   :  { %v13651_v12 = vcombine.low %v7735_v5, %v7718_v46  ;;  %v13653_v17 = vcombine.low %v7732_v38, %v7734_v40  ;;  %v8315_v31 = vrot.slane %v8299_v2, %v12349_v26  ;;  %v7736_v35 = vcombine.high %v7732_v38, %v7732_v38 }
0x2007   :  { %v7782_v30 = vcombine.high %v7760_v51, %v7760_v51  ;;  %v7783_v41 = vcombine.high %v7767_v28, %v7767_v28  ;;  %v7784_v44 = vcombine.high %v7774_v19, %v7774_v19  ;;  %v8231_v1 = vrot.slane %v13617_v24, %v12349_v26 }
0x2008   :  { %v8232_v39 = vcombine.low %v8210_v63, %v8217_v10  ;;  %v8273_v34 = vrot.slane %v13637_v43, %v12349_v26  ;;  %v13661_v0 = vcombine.low %v7736_v35, %v7760_v51  ;;  %v8280_v37 = vrot.slane %v13639_v56, %v12349_v26 }
0x2009   :  { %v13665_v8 = vcombine.low %v8259_v60, %v8266_v29  ;;  %v8322_v50 = vrot.slane %v13651_v12, %v12349_v26  ;;  %v8135_v36 = vcombine.low %v13558_v32, %v13561_v42  ;;  %v8329_v24 = vrot.slane %v13653_v17, %v12349_v26 }
0x200a   :  { %v13673_v10 = vcombine.low %v8308_v15, %v8315_v31  ;;  %v8348_v22 = vcombine.low %v7774_v19, %v7782_v30  ;;  %v7223_v55 = vmul.f32 0.5, %v13493_v54  ;;  %v13676_v13 = vcombine.low %v7784_v44, %v7767_v28 }
0x200b   :  { %v13678_v63 = vcombine.low %v7781_v47, %v7783_v41  ;;  %v8142_v60 = vrot.slane %v8134_v14, %v12349_v26  ;;  %v8149_v3 = vrot.slane %v8135_v36, %v12349_v26  ;;  %v8357_v32 = vrot.slane %v13661_v0, %v12349_v26 }
0x200c   :  { %vm7237_vm8 = vcmp.ge.f32.partialorder %v7223_v55, 0.5  ;;  %v8184_v42 = vcombine.low %v13578_v9, %v13589_v11  ;;  %v7224_v54 = vmul.f32 0.5, %v13509_v4  ;;  %v8191_v57 = vrot.slane %v8183_v33, %v12349_v26 }
0x200d   :  { %v8150_v20 = vcombine.low %v8142_v60, %v8149_v3  ;;  %v10738_v53 = vsel %vm7237_vm8, 1.0, %v11521_v7  ;;  %v8233_v25 = vcombine.low %v8224_v49, %v8231_v1  ;;  %v7785_v9 = vcombine.high %v7781_v47, %v7781_v47 }
0x200e   :  { %v7786_v14 = vcombine.high %v10738_v53, %v10738_v53  ;;  %v7793_v62 = vrot.slane %v10738_v53, %v12349_v26  ;;  %v8198_v21 = vrot.slane %v8184_v42, %v12349_v26  ;;  %vm7238_vm6 = vcmp.ge.f32.partialorder %v7224_v54, 0.5 }
0x200f   :  { %11064 = vmatmul.mubr.msk.f32.gmra.mxu0 %vm6700_vm5, %v8150_v20  ;;  %v10739_v4 = vsel %vm7238_vm6, 1.0, %v11521_v7  ;;  %v8240_v11 = vrot.slane %v8232_v39, %v12349_v26  ;;  %v8247_v43 = vrot.slane %v8233_v25, %v12349_v26  ;;  %v8364_v49 = vrot.slane %v8348_v22, %v12349_v26 }
0x2010   :  { %v7800_v56 = vrot.slane %v7786_v14, %v12349_v26  ;;  %v7801_v45 = vcombine.high %v7793_v62, %v7793_v62  ;;  %v7809_v6 = vrot.slane %v7793_v62, %v12349_v26  ;;  %11066 = vmatprep.mubr.msk.f32.mxu0 %vm11524_vm0, %v11521_v7  ;;  %v8199_v33 = vcombine.low %v8191_v57, %v8198_v21 }
0x2011   :  { %v7835_v29 = vcombine.high %v10739_v4, %v10739_v4  ;;  %v7842_v58 = vrot.slane %v10739_v4, %v12349_v26  ;;  %v8282_v59 = vcombine.low %v8273_v34, %v8280_v37  ;;  %v8248_v38 = vcombine.low %v8240_v11, %v8247_v43 }
0x2012   :  { %v7802_v46 = vcombine.high %v7800_v56, %v7800_v56  ;;  %v7816_v52 = vrot.slane %v7800_v56, %v12349_v26  ;;  %v7823_v16 = vrot.slane %v7801_v45, %v12349_v26  ;;  %v7831_v61 = vcombine.high %v7809_v6, %v7809_v6 }
0x2013   :  { %11067 = vmatmul.mubr.msk.f32.gmra.mxu0 %vm6700_vm5, %v8199_v33  ;;  %v7849_v23 = vrot.slane %v7835_v29, %v12349_v26  ;;  %v7850_v27 = vcombine.high %v7842_v58, %v7842_v58  ;;  %v7858_v51 = vrot.slane %v7842_v58, %v12349_v26  ;;  %v8396_v15 = vcombine.low %v7785_v9, %v7809_v6 }
0x2014   :  { %v7830_v40 = vrot.slane %v7802_v46, %v12349_v26  ;;  %v7832_v5 = vcombine.high %v7816_v52, %v7816_v52  ;;  %v7833_v2 = vcombine.high %v7823_v16, %v7823_v16  ;;  %11069 = vmatprep.mubr.msk.f32.mxu0 %vm11524_vm0, %v11521_v7  ;;  %v8397_v48 = vcombine.low %v7823_v16, %v7831_v61 }
0x2015   :  { %v7851_v28 = vcombine.high %v7849_v23, %v7849_v23  ;;  %v7865_v19 = vrot.slane %v7849_v23, %v12349_v26  ;;  %v7872_v31 = vrot.slane %v7850_v27, %v12349_v26  ;;  %v8289_v41 = vrot.slane %v13665_v8, %v12349_v26 }
0x2016   :  { %v8398_v35 = vcombine.low %v7833_v2, %v7816_v52  ;;  %v8399_v47 = vcombine.low %v7830_v40, %v7832_v5  ;;  %v7834_v30 = vcombine.high %v7830_v40, %v7830_v40  ;;  %v7880_v1 = vcombine.high %v7858_v51, %v7858_v51 }
0x2017   :  { %v7879_v44 = vrot.slane %v7851_v28, %v12349_v26  ;;  %v7881_v39 = vcombine.high %v7865_v19, %v7865_v19  ;;  %v7882_v34 = vcombine.high %v7872_v31, %v7872_v31  ;;  %11070 = vmatmul.mubr.msk.f32.gmra.mxu0 %vm6700_vm5, %v8248_v38  ;;  %v8371_v0 = vrot.slane %v13676_v13, %v12349_v26 }
0x2018   :  { %v8378_v37 = vrot.slane %v13678_v63, %v12349_v26  ;;  %v8379_v36 = vcombine.low %v8357_v32, %v8364_v49  ;;  %v8406_v22 = vrot.slane %v8396_v15, %v12349_v26  ;;  %11072 = vmatprep.mubr.msk.f32.mxu0 %vm11524_vm0, %v11521_v7  ;;  %v8413_v8 = vrot.slane %v8397_v48, %v12349_v26 }
0x2019   :  { %v8445_v55 = vcombine.low %v7834_v30, %v7858_v51  ;;  %v8446_v60 = vcombine.low %v7872_v31, %v7880_v1  ;;  %v8296_v3 = vrot.slane %v8282_v59, %v12349_v26  ;;  %v8447_v42 = vcombine.low %v7882_v34, %v7865_v19 }
0x201a   :  { %v8448_v54 = vcombine.low %v7879_v44, %v7881_v39  ;;  %v8331_v13 = vcombine.low %v8322_v50, %v8329_v24  ;;  %v7225_v63 = vmul.f32 0.5, %v13525_v18  ;;  %v8420_v32 = vrot.slane %v8398_v35, %v12349_v26 }
0x201b   :  { %v8427_v20 = vrot.slane %v8399_v47, %v12349_v26  ;;  %v8297_v53 = vcombine.low %v8289_v41, %v8296_v3  ;;  %v8338_v57 = vrot.slane %v13673_v10, %v12349_v26  ;;  %v8380_v14 = vcombine.low %v8371_v0, %v8378_v37  ;;  %v10741_v47 = vld [vmem:[%s14189_s10] ss:$0 sm:$0xff] }
0x201c   :  { %v8345_v25 = vrot.slane %v8331_v13, %v12349_v26  ;;  %vm7239_vm7 = vcmp.ge.f32.partialorder %v7225_v63, 0.5  ;;  %v8428_v62 = vcombine.low %v8406_v22, %v8413_v8  ;;  %v8455_v17 = vrot.slane %v8445_v55, %v12349_v26 }
0x201d   :  { %11073 = vmatmul.mubr.msk.f32.gmra.mxu0 %vm6700_vm5, %v8297_v53  ;;  %v10740_v12 = vsel %vm7239_vm7, 1.0, %v11521_v7  ;;  %v8462_v18 = vrot.slane %v8446_v60, %v12349_v26  ;;  %v8469_v50 = vrot.slane %v8447_v42, %v12349_v26  ;;  %v8476_v24 = vrot.slane %v8448_v54, %v12349_v26 }
0x201e   :  { %11075 = vmatprep.mubr.msk.f32.mxu0 %vm11524_vm0, %v11521_v7  ;;  %v8387_v10 = vrot.slane %v8379_v36, %v12349_v26  ;;  %v8346_v21 = vcombine.low %v8338_v57, %v8345_v25  ;;  %v7890_v9 = vrot.slane %v10740_v12, %v12349_v26  ;;  %v8394_v4 = vrot.slane %v8380_v14, %v12349_v26 }
0x201f   :  { %v8429_v11 = vcombine.low %v8420_v32, %v8427_v20  ;;  %v8477_v43 = vcombine.low %v8455_v17, %v8462_v18  ;;  %v7883_v56 = vcombine.high %v7879_v44, %v7879_v44  ;;  %v8436_v45 = vrot.slane %v8428_v62, %v12349_v26 }
0x2020   :  { %v7897_v6 = vrot.slane %v7890_v9, %v12349_v26  ;;  %v8395_v33 = vcombine.low %v8387_v10, %v8394_v4  ;;  %v8478_v29 = vcombine.low %v8469_v50, %v8476_v24  ;;  %vm8691_vm9 = vcmask 25600  }
0x2021   :  { %11076 = vmatmul.mubr.msk.f32.gmra.mxu0 %vm6700_vm5, %v8346_v21  ;;  %v8443_v49 = vrot.slane %v8429_v11, %v12349_v26  ;;  %v8485_v46 = vrot.slane %v8477_v43, %v12349_v26  ;;  %vm10205_vm11 = vcmask 1040384  }
0x2022   :  { %11078 = vmatprep.mubr.msk.f32.mxu0 %vm11524_vm0, %v11521_v7  ;;  %v8494_v58 = vcombine.low %v7883_v56, %v7897_v6  ;;  %v8492_v52 = vrot.slane %v8478_v29, %v12349_v26 }
0x2023   :  { %v8444_v59 = vcombine.low %v8436_v45, %v8443_v49 }
0x2024   :  { %v8501_v16 = vrot.slane %v8494_v58, %v12349_v26  ;;  %v8493_v61 = vcombine.low %v8485_v46, %v8492_v52 }
0x2025   :  { %11079 = vmatmul.mubr.msk.f32.gmra.mxu0 %vm6700_vm5, %v8395_v33 }
0x2026   :  { %11081 = vmatprep.mubr.msk.f32.mxu0 %vm11524_vm0, %v11521_v7  ;;  %v8508_v23 = vrot.slane %v8501_v16, %v12349_v26 }
0x2029   :  { %11082 = vmatmul.mubr.msk.f32.gmra.mxu0 %vm6700_vm5, %v8444_v59 }
0x202a   :  { %11084 = vmatprep.mubr.msk.f32.mxu0 %vm11524_vm0, %v11521_v7 }
0x202d   :  { %11085 = vmatmul.mubr.msk.f32.gmra.mxu0 %vm6700_vm5, %v8493_v61 }
0x202e   :  { %11087 = vmatprep.mubr.msk.f32.mxu0 %vm11524_vm0, %v11521_v7 }
0x2031   :  { %11088 = vmatmul.mubr.msk.f32.gmra.mxu0 %vm6700_vm5, %v8508_v23 }
0x209f   :  { %v8604_v27 = vpop.f32.mrf.mxu0 }
0x20a0   :  { %v8605_v1 = vadd.f32 %v10741_v47, %v8604_v27 }
0x20a1   :  { %v11053_v51 = vpop.f32.mrf.mxu0 }
0x20a2   :  { %v8668_v36 = vsel %vm6700_vm5, %v8605_v1, 0.0 }
0x20b7   :  { %v8609_v38 = vpop.f32.mrf.mxu0 }
0x20b8   :  { %v8610_v41 = vadd.f32 %v10741_v47, %v8609_v38 }
0x20b9   :  { %v11056_v40 = vpop.f32.mrf.mxu0 }
0x20ba   :  { %v8669_v34 = vsel %vm6700_vm5, %v8610_v41, 0.0 }
0x20bb   :  { %v8614_v5 = vpop.f32.mrf.mxu0  ;;  %v8670_v55 = vadd.f32 %v8669_v34, %v8668_v36 }
0x20bc   :  { %v8615_v39 = vadd.f32 %v10741_v47, %v8614_v5 }
0x20bd   :  { %v11059_v2 = vpop.f32.mrf.mxu0 }
0x20be   :  { %v8671_v22 = vsel %vm6700_vm5, %v8615_v39, 0.0 }
0x20bf   :  { %v8619_v15 = vpop.f32.mrf.mxu0  ;;  %v8672_v54 = vadd.f32 %v8671_v22, %v8670_v55 }
0x20c0   :  { %v8620_v0 = vadd.f32 %v10741_v47, %v8619_v15 }
0x20c1   :  { %v11062_v48 = vpop.f32.mrf.mxu0 }
0x20c2   :  { %v8673_v3 = vsel %vm6700_vm5, %v8620_v0, 0.0 }
0x20c3   :  { %v8674_v20 = vadd.f32 %v8673_v3, %v8672_v54 }
0x20cf   :  { %v8624_v28 = vpop.f32.mrf.mxu0 }
0x20d0   :  { %v8625_v8 = vadd.f32 %v10741_v47, %v8624_v28 }
0x20d1   :  { %v11065_v19 = vpop.f32.mrf.mxu0 }
0x20d2   :  { %v8675_v63 = vsel %vm6700_vm5, %v8625_v8, 0.0 }
0x20d3   :  { %v8629_v31 = vpop.f32.mrf.mxu0  ;;  %v8676_v14 = vadd.f32 %v8675_v63, %v8674_v20 }
0x20d4   :  { %v8630_v42 = vadd.f32 %v10741_v47, %v8629_v31 }
0x20d5   :  { %v11068_v35 = vpop.f32.mrf.mxu0 }
0x20d6   :  { %v8677_v57 = vsel %vm6700_vm5, %v8630_v42, 0.0 }
0x20d7   :  { %v8634_v30 = vpop.f32.mrf.mxu0  ;;  %v8678_v18 = vadd.f32 %v8677_v57, %v8676_v14 }
0x20d8   :  { %v8635_v32 = vadd.f32 %v10741_v47, %v8634_v30 }
0x20d9   :  { %v11071_v44 = vpop.f32.mrf.mxu0 }
0x20da   :  { %v8679_v17 = vsel %vm6700_vm5, %v8635_v32, 0.0 }
0x20db   :  { %v8680_v21 = vadd.f32 %v8679_v17, %v8678_v18 }
0x20dd   :  { %v8639_v37 = vpop.f32.mrf.mxu0 }
0x20de   :  { %v8640_v25 = vadd.f32 %v10741_v47, %v8639_v37 }
0x20df   :  { %v11074_v60 = vpop.f32.mrf.mxu0 }
0x20e0   :  { %v8681_v24 = vsel %vm6700_vm5, %v8640_v25, 0.0 }
0x20e1   :  { %v8644_v13 = vpop.f32.mrf.mxu0  ;;  %v8682_v43 = vadd.f32 %v8681_v24, %v8680_v21 }
0x20e2   :  { %v8645_v12 = vadd.f32 %v10741_v47, %v8644_v13 }
0x20e3   :  { %v11077_v53 = vpop.f32.mrf.mxu0 }
0x20e4   :  { %v8683_v4 = vsel %vm6700_vm5, %v8645_v12, 0.0 }
0x20e5   :  { %v8649_v62 = vpop.f32.mrf.mxu0  ;;  %v8684_v6 = vadd.f32 %v8683_v4, %v8682_v43 }
0x20e6   :  { %v8650_v10 = vadd.f32 %v10741_v47, %v8649_v62 }
0x20e7   :  { %v11080_v50 = vpop.f32.mrf.mxu0 }
0x20e8   :  { %v8685_v45 = vsel %vm6700_vm5, %v8650_v10, 0.0 }
0x20e9   :  { %v8654_v9 = vpop.f32.mrf.mxu0  ;;  %v8686_v58 = vadd.f32 %v8685_v45, %v8684_v6 }
0x20ea   :  { %v8655_v11 = vadd.f32 %v10741_v47, %v8654_v9 }
0x20eb   :  { %v11083_v56 = vpop.f32.mrf.mxu0 }
0x20ec   :  { %v8687_v49 = vsel %vm6700_vm5, %v8655_v11, 0.0 }
0x20ed   :  { %v8659_v33 = vpop.f32.mrf.mxu0  ;;  %v8688_v52 = vadd.f32 %v8687_v49, %v8686_v58 }
0x20ee   :  { %v8660_v29 = vadd.f32 %v10741_v47, %v8659_v33 }
0x20ef   :  { %v11086_v59 = vpop.f32.mrf.mxu0 }
0x20f0   :  { %v8689_v46 = vsel %vm6700_vm5, %v8660_v29, 0.0 }
0x20f1   :  { %v8664_v16 = vpop.f32.mrf.mxu0  ;;  %v8690_v23 = vadd.f32 %v8689_v46, %v8688_v52 }
0x20f2   :  { %v8665_v61 = vadd.f32 %v10741_v47, %v8664_v16 }
0x20f3   :  { %v11089_v27 = vpop.f32.mrf.mxu0 }
0x20f4   :  { %v8692_v51 = vsel %vm8691_vm9, %v8665_v61, 0.0 }
0x20f5   :  { %v8693_v38 = vadd.f32 %v8692_v51, %v8690_v23 }
0x20f7   :  { %v8694_v40 = vrot.slane %v8693_v38, 4 }
0x20f9   :  { %v8695_v5 = vadd.f32 %v8694_v40, %v8693_v38 }
0x20fb   :  { %v8696_v2 = vrot.slane %v8695_v5, 2 }
0x20fd   :  { %v8697_v15 = vadd.f32 %v8696_v2, %v8695_v5  ;;  %v10198_v5 = vld [vmem:[#allocation17 + $0x68] sm:$0x1]  ;;  %v10197_v2 = vld [vmem:[#allocation17 + $0x60] sm:$0xff] }
0x20fe   :  { %11091 = vmatpush3.msk.msra.mxu1 %vm10205_vm11, %v10198_v5 }
0x20ff   :  { %v8698_v48 = vrot.slane %v8697_v15, 1  ;;  %11092 = vmatprep.subr.mxu1 %v11521_v7 }
0x2100   :  { %11093 = vmatpush3.msra.mxu1 %v10197_v2 }
0x2101   :  { %v8699_v28 = vadd.f32 %v8698_v48, %v8697_v15  ;;  %v10196_v48 = vld [vmem:[#allocation17 + $0x58] sm:$0xff]  ;;  %11094 = vmatprep.subr.mxu1 %v11521_v7 }
0x2102   :  { %11095 = vmatpush3.msra.mxu1 %v10196_v48 }
0x2103   :  { %v8701_v19 = vmul.f32 0.010204081, %v8699_v28  ;;  %11096 = vmatprep.subr.mxu1 %v11521_v7 }
0x2105   :  { %v13789_v31 = vsub.f32 %v8605_v1, %v8701_v19  ;;  %v13791_v35 = vsub.f32 %v8610_v41, %v8701_v19  ;;  %v13793_v30 = vsub.f32 %v8615_v39, %v8701_v19  ;;  %v13795_v44 = vsub.f32 %v8620_v0, %v8701_v19 }
0x2106   :  { %v13801_v37 = vsub.f32 %v8625_v8, %v8701_v19  ;;  %v8707_v22 = vsub.f32 %v8630_v42, %v8701_v19  ;;  %v13809_v55 = vsub.f32 %v8635_v32, %v8701_v19  ;;  %v8714_v60 = vsub.f32 %v8665_v61, %v8701_v19  ;;  %v13817_v42 = vld [vmem:[%s14190_s11] ss:$0 sm:$0xff] }
0x2107   :  { %v8715_v47 = vmul.f32 %v13789_v31, %v13789_v31  ;;  %v8716_v34 = vmul.f32 %v13791_v35, %v13791_v35  ;;  %v8717_v36 = vmul.f32 %v13793_v30, %v13793_v30  ;;  %v8718_v41 = vmul.f32 %v13795_v44, %v13795_v44 }
0x2108   :  { %v8719_v3 = vmul.f32 %v13801_v37, %v13801_v37  ;;  %v13819_v13 = vsub.f32 %v8640_v25, %v8701_v19  ;;  %v8720_v63 = vmul.f32 %v8707_v22, %v8707_v22  ;;  %v8710_v32 = vsub.f32 %v8645_v12, %v8701_v19 }
0x2109   :  { %v8728_v1 = vsel %vm6700_vm5, %v8715_v47, 0.0  ;;  %v8729_v39 = vsel %vm6700_vm5, %v8716_v34, 0.0  ;;  %v8731_v8 = vsel %vm6700_vm5, %v8717_v36, 0.0  ;;  %v8733_v20 = vsel %vm6700_vm5, %v8718_v41, 0.0  ;;  %v10194_v34 = vld [vmem:[#allocation17 + $0x48] sm:$0xff] }
0x210a   :  { %v8730_v0 = vadd.f32 %v8729_v39, %v8728_v1  ;;  %v8721_v57 = vmul.f32 %v13809_v55, %v13809_v55  ;;  %v8735_v14 = vsel %vm6700_vm5, %v8719_v3, 0.0  ;;  %v13826_v62 = vmul.f32 %v13817_v42, %v8714_v60 }
0x210b   :  { %v13829_v18 = vmul.f32 %v13817_v42, %v8707_v22  ;;  %v8711_v50 = vsub.f32 %v8650_v10, %v8701_v19  ;;  %v8722_v25 = vmul.f32 %v13819_v13, %v13819_v13  ;;  %v8737_v24 = vsel %vm6700_vm5, %v8720_v63, 0.0  ;;  %v10193_v22 = vld [vmem:[#allocation17 + $0x40] sm:$0xff] }
0x210c   :  { %v8732_v54 = vadd.f32 %v8731_v8, %v8730_v0  ;;  %v8712_v12 = vsub.f32 %v8655_v11, %v8701_v19  ;;  %v8723_v9 = vmul.f32 %v8710_v32, %v8710_v32  ;;  %v8739_v4 = vsel %vm6700_vm5, %v8721_v57, 0.0 }
0x210d   :  { %v8713_v56 = vsub.f32 %v8660_v29, %v8701_v19  ;;  %v8724_v45 = vmul.f32 %v8711_v50, %v8711_v50  ;;  %v8741_v6 = vsel %vm6700_vm5, %v8722_v25, 0.0  ;;  %v8727_v16 = vmul.f32 %v8714_v60, %v8714_v60  ;;  %v10195_v19 = vld [vmem:[#allocation17 + $0x50] sm:$0xff] }
0x210e   :  { %v8734_v53 = vadd.f32 %v8733_v20, %v8732_v54  ;;  %v8725_v49 = vmul.f32 %v8712_v12, %v8712_v12  ;;  %v8743_v58 = vsel %vm6700_vm5, %v8723_v9, 0.0  ;;  %11097 = vmatpush3.msra.mxu1 %v10195_v19  ;;  %v8773_v39 = vmul.f32 %v13817_v42, %v13809_v55  ;;  %v13861_v20 = vld [vmem:[%s14191_s12] ss:$0 sm:$0xff] }
0x210f   :  { %v8726_v59 = vmul.f32 %v8713_v56, %v8713_v56  ;;  %v8745_v46 = vsel %vm6700_vm5, %v8724_v45, 0.0  ;;  %v8751_v29 = vsel %vm8691_vm9, %v8727_v16, 0.0  ;;  %11098 = vmatprep.subr.mxu1 %v11521_v7  ;;  %v8775_v0 = vmul.f32 %v13817_v42, %v8710_v32 }
0x2110   :  { %v8736_v17 = vadd.f32 %v8735_v14, %v8734_v53  ;;  %v8747_v11 = vsel %vm6700_vm5, %v8725_v49, 0.0  ;;  %11099 = vmatpush3.msra.mxu1 %v10194_v34  ;;  %v8777_v60 = vmul.f32 %v13817_v42, %v8712_v12  ;;  %v8778_v3 = vmul.f32 %v13817_v42, %v8713_v56 }
0x2111   :  { %v8749_v23 = vsel %vm6700_vm5, %v8726_v59, 0.0  ;;  %11100 = vmatprep.subr.mxu1 %v11521_v7  ;;  %v8774_v54 = vmul.f32 %v13817_v42, %v13819_v13  ;;  %v8776_v63 = vmul.f32 %v13817_v42, %v8711_v50  ;;  %v8767_v55 = vmul.f32 %v13817_v42, %v13789_v31 }
0x2112   :  { %v8738_v21 = vadd.f32 %v8737_v24, %v8736_v17  ;;  %11101 = vmatpush3.msra.mxu1 %v10193_v22  ;;  %v8768_v53 = vmul.f32 %v13817_v42, %v13791_v35  ;;  %v8769_v13 = vmul.f32 %v13817_v42, %v13793_v30  ;;  %v13888_v45 = vmul.f32 %v13817_v42, %v13795_v44 }
0x2113   :  { %11102 = vmatprep.subr.mxu1 %v11521_v7 }
0x2114   :  { %v8740_v43 = vadd.f32 %v8739_v4, %v8738_v21 }
0x2116   :  { %v8742_v33 = vadd.f32 %v8741_v6, %v8740_v43  ;;  %v13892_v6 = vmul.f32 %v13817_v42, %v13801_v37 }
0x2118   :  { %v8744_v10 = vadd.f32 %v8743_v58, %v8742_v33 }
0x211a   :  { %v8746_v52 = vadd.f32 %v8745_v46, %v8744_v10 }
0x211c   :  { %v8748_v61 = vadd.f32 %v8747_v11, %v8746_v52 }
0x211e   :  { %v8750_v27 = vadd.f32 %v8749_v23, %v8748_v61 }
0x2120   :  { %v8752_v51 = vadd.f32 %v8751_v29, %v8750_v27 }
0x2122   :  { %v8753_v38 = vrot.slane %v8752_v51, 4 }
0x2124   :  { %v8754_v40 = vadd.f32 %v8753_v38, %v8752_v51 }
0x2126   :  { %v8755_v15 = vrot.slane %v8754_v40, 2 }
0x2128   :  { %v8756_v28 = vadd.f32 %v8755_v15, %v8754_v40 }
0x212a   :  { %v8757_v47 = vrot.slane %v8756_v28, 1 }
0x212c   :  { %v8758_v36 = vadd.f32 %v8757_v47, %v8756_v28 }
0x212e   :  { %v8759_v41 = vmul.f32 0.010204081, %v8758_v36 }
0x2130   :  { %v8780_v1 = vadd.f32 1e-05, %v8759_v41 }
0x2132   :  { %11362 = vrsqrt.f32 %v8780_v1 }
0x213f   :  { %v13853_v8 = vpop.eup %11362 }
0x2140   :  { %v8790_v32 = vmul.f32 %v13853_v8, %v8775_v0  ;;  %v8792_v57 = vmul.f32 %v13853_v8, %v8777_v60  ;;  %v8793_v14 = vmul.f32 %v13853_v8, %v8778_v3  ;;  %v8794_v17 = vmul.f32 %v13853_v8, %v13826_v62 }
0x2141   :  { %v8782_v50 = vmul.f32 %v13853_v8, %v8767_v55  ;;  %v8788_v25 = vmul.f32 %v13853_v8, %v8773_v39  ;;  %v8789_v31 = vmul.f32 %v13853_v8, %v8774_v54  ;;  %v8783_v21 = vmul.f32 %v13853_v8, %v8768_v53 }
0x2142   :  { %v8812_v35 = vadd.f32 %v13861_v20, %v8792_v57  ;;  %v8813_v24 = vadd.f32 %v13861_v20, %v8793_v14  ;;  %v8810_v12 = vadd.f32 %v13861_v20, %v8790_v32  ;;  %v8814_v9 = vadd.f32 %v13861_v20, %v8794_v17 }
0x2143   :  { %v8802_v30 = vadd.f32 %v13861_v20, %v8782_v50  ;;  %v8808_v62 = vadd.f32 %v13861_v20, %v8788_v25  ;;  %v8809_v4 = vadd.f32 %v13861_v20, %v8789_v31  ;;  %v8803_v43 = vadd.f32 %v13861_v20, %v8783_v21 }
0x2144   :  { %v8823_v56 = vmul.f32 0.5, %v8810_v12  ;;  %v8827_v33 = vmul.f32 0.5, %v8814_v9  ;;  %v13895_v59 = vmul.f32 %v13853_v8, %v8776_v63  ;;  %v13897_v46 = vmul.f32 0.5, %v8812_v35 }
0x2145   :  { %v8815_v49 = vmul.f32 0.5, %v8802_v30  ;;  %v8821_v58 = vmul.f32 0.5, %v8808_v62  ;;  %v8822_v10 = vmul.f32 0.5, %v8809_v4  ;;  %v13899_v52 = vmul.f32 0.5, %v8813_v24 }
0x2146   :  { %v8816_v16 = vmul.f32 0.5, %v8803_v43  ;;  %vm8840_vm5 = vcmp.ge.f32.partialorder %v8827_v33, 1.0  ;;  %vm8836_vm15 = vcmp.ge.f32.partialorder %v8823_v56, 1.0  ;;  %v13908_v27 = vmul.f32 %v13853_v8, %v8769_v13 }
0x2147   :  { %vm8828_vm12 = vcmp.ge.f32.partialorder %v8815_v49, 1.0  ;;  %vm8834_vm13 = vcmp.ge.f32.partialorder %v8821_v58, 1.0  ;;  %vm8835_vm14 = vcmp.ge.f32.partialorder %v8822_v10, 1.0  ;;  %v13911_v29 = vsel %vm8840_vm5, 1.0, %v11521_v7 }
0x2148   :  { %v10770_v44 = vsel %vm8828_vm12, 1.0, %v11521_v7  ;;  %v10776_v37 = vsel %vm8834_vm13, 1.0, %v11521_v7  ;;  %v13904_v42 = vsel %vm8835_vm14, 1.0, %v11521_v7  ;;  %vm8829_vm2 = vcmp.ge.f32.partialorder %v8816_v16, 1.0 }
0x2149   :  { %v8880_v11 = vcombine.high %v10770_v44, %v10770_v44  ;;  %v8887_v61 = vrot.slane %v10770_v44, %v12349_v26  ;;  %v9174_v23 = vcombine.high %v10776_v37, %v10776_v37  ;;  %v9181_v51 = vrot.slane %v10776_v37, %v12349_v26 }
0x214a   :  { %v13916_v38 = vrot.slane %v13904_v42, %v12349_v26  ;;  %v13921_v15 = vsel %vm8836_vm15, 1.0, %v11521_v7  ;;  %v10771_v41 = vsel %vm8829_vm2, 1.0, %v11521_v7  ;;  %vm8838_vm8 = vcmp.ge.f32.partialorder %v13897_v46, 1.0 }
0x214b   :  { %v8894_v40 = vrot.slane %v8880_v11, %v12349_v26  ;;  %v8895_v5 = vcombine.high %v8887_v61, %v8887_v61  ;;  %v8903_v2 = vrot.slane %v8887_v61, %v12349_v26  ;;  %v9188_v48 = vrot.slane %v9174_v23, %v12349_v26 }
0x214c   :  { %v9189_v28 = vcombine.high %v9181_v51, %v9181_v51  ;;  %v13925_v19 = vrot.slane %v9181_v51, %v12349_v26  ;;  %v13929_v47 = vrot.slane %v13916_v38, %v12349_v26  ;;  %v8929_v55 = vcombine.high %v10771_v41, %v10771_v41 }
0x214d   :  { %v8896_v34 = vcombine.high %v8894_v40, %v8894_v40  ;;  %v8910_v36 = vrot.slane %v8894_v40, %v12349_v26  ;;  %v8917_v22 = vrot.slane %v8895_v5, %v12349_v26  ;;  %v9190_v1 = vcombine.high %v9188_v48, %v9188_v48 }
0x214e   :  { %v9204_v39 = vrot.slane %v9188_v48, %v12349_v26  ;;  %v9211_v0 = vrot.slane %v9189_v28, %v12349_v26  ;;  %v9219_v60 = vcombine.high %v13925_v19, %v13925_v19  ;;  %v8936_v62 = vrot.slane %v10771_v41, %v12349_v26 }
0x214f   :  { %v8924_v3 = vrot.slane %v8896_v34, %v12349_v26  ;;  %v9490_v54 = vcombine.low %v8903_v2, %v8917_v22  ;;  %v10783_v63 = vcombine.high %v8903_v2, %v8917_v22  ;;  %v9218_v53 = vrot.slane %v9190_v1, %v12349_v26 }
0x2150   :  { %v9220_v32 = vcombine.high %v9204_v39, %v9204_v39  ;;  %v9221_v57 = vcombine.high %v9211_v0, %v9211_v0  ;;  %v9798_v14 = vcombine.low %v9211_v0, %v9219_v60  ;;  %v8943_v33 = vrot.slane %v8929_v55, %v12349_v26 }
0x2151   :  { %v9492_v13 = vcombine.low %v8910_v36, %v8924_v3  ;;  %v10784_v17 = vcombine.high %v8910_v36, %v8924_v3  ;;  %v9500_v50 = vrot.slane %v9490_v54, %v12349_v26  ;;  %v9507_v25 = vrot.slane %v10783_v63, %v12349_v26 }
0x2152   :  { %v9222_v31 = vcombine.high %v9218_v53, %v9218_v53  ;;  %v9799_v35 = vcombine.low %v9221_v57, %v9204_v39  ;;  %v9800_v24 = vcombine.low %v9218_v53, %v9220_v32  ;;  %v9808_v21 = vrot.slane %v9798_v14, %v12349_v26 }
0x2153   :  { %v9514_v12 = vrot.slane %v9492_v13, %v12349_v26  ;;  %v9521_v9 = vrot.slane %v10784_v17, %v12349_v26  ;;  %v9522_v30 = vcombine.low %v9500_v50, %v9507_v25  ;;  %v8944_v10 = vcombine.high %v8936_v62, %v8936_v62 }
0x2154   :  { %v9801_v4 = vcombine.low %v9222_v31, %v13929_v47  ;;  %v9815_v43 = vrot.slane %v9799_v35, %v12349_v26  ;;  %v9822_v56 = vrot.slane %v9800_v24, %v12349_v26  ;;  %v8952_v16 = vrot.slane %v8936_v62, %v12349_v26 }
0x2155   :  { %v9523_v49 = vcombine.low %v9514_v12, %v9521_v9  ;;  %v9530_v58 = vrot.slane %v9522_v30, %v12349_v26  ;;  %v8945_v11 = vcombine.high %v8943_v33, %v8943_v33  ;;  %v8959_v61 = vrot.slane %v8943_v33, %v12349_v26 }
0x2156   :  { %v9829_v44 = vrot.slane %v9801_v4, %v12349_v26  ;;  %v9830_v37 = vcombine.low %v9808_v21, %v9815_v43  ;;  %v8966_v51 = vrot.slane %v8944_v10, %v12349_v26  ;;  %v9223_v40 = vcombine.high %v13904_v42, %v13904_v42 }
0x2157   :  { %v9537_v23 = vrot.slane %v9523_v49, %v12349_v26  ;;  %v9238_v5 = vcombine.high %v13916_v38, %v13916_v38  ;;  %v8973_v28 = vrot.slane %v8945_v11, %v12349_v26  ;;  %v9268_v34 = vcombine.high %v13929_v47, %v13929_v47 }
0x2158   :  { %v9831_v2 = vcombine.low %v9822_v56, %v9829_v44  ;;  %v9838_v48 = vrot.slane %v9830_v37, %v12349_v26  ;;  %v9539_v22 = vcombine.low %v8952_v16, %v8966_v51  ;;  %v10785_v41 = vcombine.high %v8952_v16, %v8966_v51 }
0x2159   :  { %v9538_v36 = vcombine.low %v9530_v58, %v9537_v23  ;;  %v9237_v1 = vrot.slane %v9223_v40, %v12349_v26  ;;  %v9541_v0 = vcombine.low %v8959_v61, %v8973_v28  ;;  %v10786_v42 = vcombine.high %v8959_v61, %v8973_v28 }
0x215a   :  { %v9845_v39 = vrot.slane %v9831_v2, %v12349_v26  ;;  %v9260_v60 = vrot.slane %v9238_v5, %v12349_v26  ;;  %v9549_v38 = vrot.slane %v9539_v22, %v12349_v26  ;;  %v9556_v3 = vrot.slane %v10785_v41, %v12349_v26 }
0x215b   :  { %10120 = vxpose.xlu1.b32.start [1/7] (short) (narrow) %v9538_v36, 8  ;;  %v9239_v54 = vcombine.high %v9237_v1, %v9237_v1  ;;  %v9253_v63 = vrot.slane %v9237_v1, %v12349_v26  ;;  %v9563_v55 = vrot.slane %v9541_v0, %v12349_v26  ;;  %v9570_v53 = vrot.slane %v10786_v42, %v12349_v26 }
0x215c   :  { %v9846_v47 = vcombine.low %v9838_v48, %v9845_v39  ;;  %v9270_v32 = vcombine.high %v9260_v60, %v9260_v60  ;;  %v9571_v57 = vcombine.low %v9549_v38, %v9556_v3  ;;  %v9279_v17 = vrot.slane %v13921_v15, %v12349_v26 }
0x215d   :  { %v9267_v14 = vrot.slane %v9239_v54, %v12349_v26  ;;  %v9269_v13 = vcombine.high %v9253_v63, %v9253_v63  ;;  %v9572_v50 = vcombine.low %v9563_v55, %v9570_v53  ;;  %v9847_v25 = vcombine.low %v9260_v60, %v9268_v34 }
0x215e   :  { %10152 = vxpose.xlu0.b32.start [1/7] (short) (narrow) %v9846_v47, 8  ;;  %v9848_v31 = vcombine.low %v9270_v32, %v9253_v63  ;;  %v8804_v35 = vadd.f32 %v13861_v20, %v13908_v27  ;;  %v9579_v24 = vrot.slane %v9571_v57, %v12349_v26  ;;  %v9295_v12 = vrot.slane %v9279_v17, %v12349_v26 }
0x215f   :  { %v9271_v21 = vcombine.high %v9267_v14, %v9267_v14  ;;  %v9849_v9 = vcombine.low %v9267_v14, %v9269_v13  ;;  %v9586_v30 = vrot.slane %v9572_v50, %v12349_v26  ;;  %v9857_v62 = vrot.slane %v9847_v25, %v12349_v26 }
0x2160   :  { %v9864_v4 = vrot.slane %v9848_v31, %v12349_v26  ;;  %v8817_v43 = vmul.f32 0.5, %v8804_v35  ;;  %v8811_v49 = vadd.f32 %v13861_v20, %v13895_v59  ;;  %v9272_v27 = vcombine.high %v13921_v15, %v13921_v15 }
0x2161   :  { %v9850_v56 = vcombine.low %v9271_v21, %v9295_v12  ;;  %v9871_v33 = vrot.slane %v9849_v9, %v12349_v26  ;;  %v9587_v58 = vcombine.low %v9579_v24, %v9586_v30  ;;  %v9287_v16 = vcombine.high %v9279_v17, %v9279_v17 }
0x2162   :  { %v9879_v10 = vcombine.low %v9857_v62, %v9864_v4  ;;  %vm8830_vm3 = vcmp.ge.f32.partialorder %v8817_v43, 1.0  ;;  %v8824_v11 = vmul.f32 0.5, %v8811_v49  ;;  %v9286_v61 = vrot.slane %v9272_v27, %v12349_v26 }
0x2163   :  { %v9878_v44 = vrot.slane %v9850_v56, %v12349_v26  ;;  %v10772_v37 = vsel %vm8830_vm3, 1.0, %v11521_v7  ;;  %10121 = vxpose.xlu1.b32.cont [2/7] (short) (narrow) %v9587_v58, 8  ;;  %v9309_v40 = vrot.slane %v9287_v16, %v12349_v26  ;;  %v9317_v1 = vcombine.high %v9295_v12, %v9295_v12 }
0x2164   :  { %v9887_v23 = vrot.slane %v9879_v10, %v12349_v26  ;;  %v8978_v51 = vcombine.high %v10772_v37, %v10772_v37  ;;  %v8985_v59 = vrot.slane %v10772_v37, %v12349_v26  ;;  %vm8837_vm4 = vcmp.ge.f32.partialorder %v8824_v11, 1.0 }
0x2165   :  { %v9880_v15 = vcombine.low %v9871_v33, %v9878_v44  ;;  %v9288_v5 = vcombine.high %v9286_v61, %v9286_v61  ;;  %v9302_v2 = vrot.slane %v9286_v61, %v12349_v26  ;;  %v10779_v36 = vsel %vm8837_vm4, 1.0, %v11521_v7 }
0x2166   :  { %v8992_v48 = vrot.slane %v8978_v51, %v12349_v26  ;;  %v8993_v28 = vcombine.high %v8985_v59, %v8985_v59  ;;  %v9001_v34 = vrot.slane %v8985_v59, %v12349_v26  ;;  %v9319_v38 = vcombine.high %v9309_v40, %v9309_v40 }
0x2167   :  { %v9894_v22 = vrot.slane %v9880_v15, %v12349_v26  ;;  %v9316_v41 = vrot.slane %v9288_v5, %v12349_v26  ;;  %v9318_v39 = vcombine.high %v9302_v2, %v9302_v2  ;;  %v9328_v63 = vrot.slane %v10779_v36, %v12349_v26 }
0x2168   :  { %v8994_v0 = vcombine.high %v8992_v48, %v8992_v48  ;;  %v9008_v42 = vrot.slane %v8992_v48, %v12349_v26  ;;  %v9015_v60 = vrot.slane %v8993_v28, %v12349_v26  ;;  %v9896_v47 = vcombine.low %v9309_v40, %v9317_v1 }
0x2169   :  { %v9895_v3 = vcombine.low %v9887_v23, %v9894_v22  ;;  %v9320_v54 = vcombine.high %v9316_v41, %v9316_v41  ;;  %v9897_v57 = vcombine.low %v9319_v38, %v9302_v2  ;;  %v9344_v14 = vrot.slane %v9328_v63, %v12349_v26 }
0x216a   :  { %v9022_v55 = vrot.slane %v8994_v0, %v12349_v26  ;;  %v9588_v53 = vcombine.low %v9001_v34, %v9015_v60  ;;  %v10787_v32 = vcombine.high %v9001_v34, %v9015_v60  ;;  %v9898_v13 = vcombine.low %v9316_v41, %v9318_v39 }
0x216b   :  { %10153 = vxpose.xlu0.b32.cont [2/7] (short) (narrow) %v9895_v3, 8  ;;  %v9906_v17 = vrot.slane %v9896_v47, %v12349_v26  ;;  %v8785_v50 = vmul.f32 %v13853_v8, %v13888_v45  ;;  %v9899_v21 = vcombine.low %v9320_v54, %v9344_v14  ;;  %v9913_v12 = vrot.slane %v9897_v57, %v12349_v26 }
0x216c   :  { %v9590_v25 = vcombine.low %v9008_v42, %v9022_v55  ;;  %v10788_v31 = vcombine.high %v9008_v42, %v9022_v55  ;;  %v9598_v35 = vrot.slane %v9588_v53, %v12349_v26  ;;  %v9605_v24 = vrot.slane %v10787_v32, %v12349_v26 }
0x216d   :  { %v9920_v9 = vrot.slane %v9898_v13, %v12349_v26  ;;  %v8805_v30 = vadd.f32 %v13861_v20, %v8785_v50  ;;  %vm8839_vm6 = vcmp.ge.f32.partialorder %v13899_v52, 1.0  ;;  %v9927_v45 = vrot.slane %v9899_v21, %v12349_v26 }
0x216e   :  { %v9612_v62 = vrot.slane %v9590_v25, %v12349_v26  ;;  %v9619_v4 = vrot.slane %v10788_v31, %v12349_v26  ;;  %v9620_v43 = vcombine.low %v9598_v35, %v9605_v24  ;;  %v9928_v56 = vcombine.low %v9906_v17, %v9913_v12 }
0x216f   :  { %v8818_v33 = vmul.f32 0.5, %v8805_v30  ;;  %v14018_v49 = vsel %vm8838_vm8, 1.0, %v11521_v7  ;;  %v9321_v10 = vcombine.high %v10779_v36, %v10779_v36  ;;  %v9336_v16 = vcombine.high %v9328_v63, %v9328_v63 }
0x2170   :  { %v9621_v27 = vcombine.low %v9612_v62, %v9619_v4  ;;  %v9628_v58 = vrot.slane %v9620_v43, %v12349_v26  ;;  %v9929_v44 = vcombine.low %v9920_v9, %v9927_v45  ;;  %v9936_v37 = vrot.slane %v9928_v56, %v12349_v26 }
0x2171   :  { %vm8831_vm7 = vcmp.ge.f32.partialorder %v8818_v33, 1.0  ;;  %v9366_v11 = vcombine.high %v9344_v14, %v9344_v14  ;;  %v9335_v23 = vrot.slane %v9321_v10, %v12349_v26  ;;  %v9358_v51 = vrot.slane %v9336_v16, %v12349_v26 }
0x2172   :  { %v9635_v46 = vrot.slane %v9621_v27, %v12349_v26  ;;  %v10773_v61 = vsel %vm8831_vm7, 1.0, %v11521_v7  ;;  %v9943_v59 = vrot.slane %v9929_v44, %v12349_v26  ;;  %v9377_v5 = vrot.slane %v14018_v49, %v12349_v26 }
0x2173   :  { %v9027_v40 = vcombine.high %v10773_v61, %v10773_v61  ;;  %v9034_v15 = vrot.slane %v10773_v61, %v12349_v26  ;;  %v9337_v48 = vcombine.high %v9335_v23, %v9335_v23  ;;  %v9351_v28 = vrot.slane %v9335_v23, %v12349_v26 }
0x2174   :  { %v9636_v2 = vcombine.low %v9628_v58, %v9635_v46  ;;  %v9368_v34 = vcombine.high %v9358_v51, %v9358_v51  ;;  %v9944_v36 = vcombine.low %v9936_v37, %v9943_v59  ;;  %v9393_v42 = vrot.slane %v9377_v5, %v12349_v26 }
0x2175   :  { %v9041_v22 = vrot.slane %v9027_v40, %v12349_v26  ;;  %v9042_v41 = vcombine.high %v9034_v15, %v9034_v15  ;;  %v9050_v1 = vrot.slane %v9034_v15, %v12349_v26  ;;  %v9365_v39 = vrot.slane %v9337_v48, %v12349_v26 }
0x2176   :  { %10122 = vxpose.xlu1.b32.cont [3/7] (short) (narrow) %v9636_v2, 8  ;;  %v9367_v0 = vcombine.high %v9351_v28, %v9351_v28  ;;  %v9945_v60 = vcombine.low %v9358_v51, %v9366_v11  ;;  %10154 = vxpose.xlu0.b32.cont [3/7] (short) (narrow) %v9944_v36, 8  ;;  %v9946_v63 = vcombine.low %v9368_v34, %v9351_v28  ;;  %v14047_v35 = vsel %vm8839_vm6, 1.0, %v11521_v7 }
0x2177   :  { %v9043_v38 = vcombine.high %v9041_v22, %v9041_v22  ;;  %v9057_v3 = vrot.slane %v9041_v22, %v12349_v26  ;;  %v9064_v54 = vrot.slane %v9042_v41, %v12349_v26  ;;  %v9369_v47 = vcombine.high %v9365_v39, %v9365_v39 }
0x2178   :  { %v9947_v55 = vcombine.low %v9365_v39, %v9367_v0  ;;  %v9955_v53 = vrot.slane %v9945_v60, %v12349_v26  ;;  %v8786_v32 = vmul.f32 %v13853_v8, %v13892_v6  ;;  %v9962_v17 = vrot.slane %v9946_v63, %v12349_v26 }
0x2179   :  { %v9071_v57 = vrot.slane %v9043_v38, %v12349_v26  ;;  %v9637_v14 = vcombine.low %v9050_v1, %v9064_v54  ;;  %v10789_v13 = vcombine.high %v9050_v1, %v9064_v54  ;;  %v9948_v50 = vcombine.low %v9369_v47, %v9393_v42 }
0x217a   :  { %v9969_v25 = vrot.slane %v9947_v55, %v12349_v26  ;;  %v8806_v31 = vadd.f32 %v13861_v20, %v8786_v32  ;;  %v9977_v30 = vcombine.low %v9955_v53, %v9962_v17  ;;  %v9370_v4 = vcombine.high %v14018_v49, %v14018_v49 }
0x217b   :  { %v9639_v24 = vcombine.low %v9057_v3, %v9071_v57  ;;  %v10790_v21 = vcombine.high %v9057_v3, %v9071_v57  ;;  %v9647_v6 = vrot.slane %v9637_v14, %v12349_v26  ;;  %v9654_v12 = vrot.slane %v10789_v13, %v12349_v26 }
0x217c   :  { %v9976_v9 = vrot.slane %v9948_v50, %v12349_v26  ;;  %v8819_v62 = vmul.f32 0.5, %v8806_v31  ;;  %v9385_v56 = vcombine.high %v9377_v5, %v9377_v5  ;;  %v9985_v27 = vrot.slane %v9977_v30, %v12349_v26 }
0x217d   :  { %v9661_v43 = vrot.slane %v9639_v24, %v12349_v26  ;;  %v9668_v45 = vrot.slane %v10790_v21, %v12349_v26  ;;  %v9669_v52 = vcombine.low %v9647_v6, %v9654_v12  ;;  %v9384_v58 = vrot.slane %v9370_v4, %v12349_v26 }
0x217e   :  { %v9978_v33 = vcombine.low %v9969_v25, %v9976_v9  ;;  %vm8832_vm9 = vcmp.ge.f32.partialorder %v8819_v62, 1.0  ;;  %v9407_v37 = vrot.slane %v9385_v56, %v12349_v26  ;;  %v9415_v59 = vcombine.high %v9393_v42, %v9393_v42 }
0x217f   :  { %v9670_v10 = vcombine.low %v9661_v43, %v9668_v45  ;;  %v9677_v16 = vrot.slane %v9669_v52, %v12349_v26  ;;  %v10774_v44 = vsel %vm8832_vm9, 1.0, %v11521_v7  ;;  %v9386_v61 = vcombine.high %v9384_v58, %v9384_v58 }
0x2180   :  { %v9992_v49 = vrot.slane %v9978_v33, %v12349_v26  ;;  %v9076_v11 = vcombine.high %v10774_v44, %v10774_v44  ;;  %v9083_v46 = vrot.slane %v10774_v44, %v12349_v26  ;;  %v9400_v51 = vrot.slane %v9384_v58, %v12349_v26 }
0x2181   :  { %v9684_v23 = vrot.slane %v9670_v10, %v12349_v26  ;;  %v9417_v40 = vcombine.high %v9407_v37, %v9407_v37  ;;  %v9414_v34 = vrot.slane %v9386_v61, %v12349_v26  ;;  %v9426_v22 = vrot.slane %v14047_v35, %v12349_v26 }
0x2182   :  { %v9993_v15 = vcombine.low %v9985_v27, %v9992_v49  ;;  %v9090_v5 = vrot.slane %v9076_v11, %v12349_v26  ;;  %v9091_v2 = vcombine.high %v9083_v46, %v9083_v46  ;;  %v9099_v48 = vrot.slane %v9083_v46, %v12349_v26 }
0x2183   :  { %v9685_v28 = vcombine.low %v9677_v16, %v9684_v23  ;;  %v9416_v36 = vcombine.high %v9400_v51, %v9400_v51  ;;  %v9994_v0 = vcombine.low %v9407_v37, %v9415_v59  ;;  %v9418_v42 = vcombine.high %v9414_v34, %v9414_v34 }
0x2184   :  { %10155 = vxpose.xlu0.b32.cont [4/7] (short) (narrow) %v9993_v15, 8  ;;  %v9092_v41 = vcombine.high %v9090_v5, %v9090_v5  ;;  %v9106_v1 = vrot.slane %v9090_v5, %v12349_v26  ;;  %v9113_v39 = vrot.slane %v9091_v2, %v12349_v26  ;;  %v9442_v60 = vrot.slane %v9426_v22, %v12349_v26 }
0x2185   :  { %10123 = vxpose.xlu1.b32.cont [4/7] (short) (narrow) %v9685_v28, 8  ;;  %v9995_v38 = vcombine.low %v9417_v40, %v9400_v51  ;;  %v9996_v3 = vcombine.low %v9414_v34, %v9416_v36  ;;  %v10004_v55 = vrot.slane %v9994_v0, %v12349_v26  ;;  %v8787_v14 = vmul.f32 %v13853_v8, %v13829_v18  ;;  %v10192_v8 = vld [vmem:[#allocation17 + $0x38] sm:$0xff] }
0x2186   :  { %v9120_v54 = vrot.slane %v9092_v41, %v12349_v26  ;;  %v9686_v63 = vcombine.low %v9099_v48, %v9113_v39  ;;  %v10791_v47 = vcombine.high %v9099_v48, %v9113_v39  ;;  %v9997_v53 = vcombine.low %v9418_v42, %v9442_v60  ;;  %11103 = vmatpush3.msra.mxu1 %v10192_v8 }
0x2187   :  { %v10011_v32 = vrot.slane %v9995_v38, %v12349_v26  ;;  %v10018_v57 = vrot.slane %v9996_v3, %v12349_v26  ;;  %v8807_v21 = vadd.f32 %v13861_v20, %v8787_v14  ;;  %v9419_v6 = vcombine.high %v14047_v35, %v14047_v35  ;;  %11107 = vmatprep.subr.mxu1 %v11521_v7 }
0x2188   :  { %v9688_v13 = vcombine.low %v9106_v1, %v9120_v54  ;;  %v10792_v17 = vcombine.high %v9106_v1, %v9120_v54  ;;  %v9696_v50 = vrot.slane %v9686_v63, %v12349_v26  ;;  %v9703_v25 = vrot.slane %v10791_v47, %v12349_v26 }
0x2189   :  { %v10025_v31 = vrot.slane %v9997_v53, %v12349_v26  ;;  %v10026_v24 = vcombine.low %v10004_v55, %v10011_v32  ;;  %v9434_v18 = vcombine.high %v9426_v22, %v9426_v22  ;;  %v9474_v62 = vrot.slane %v13911_v29, %v12349_v26 }
0x218a   :  { %v9710_v12 = vrot.slane %v9688_v13, %v12349_v26  ;;  %v9717_v9 = vrot.slane %v10792_v17, %v12349_v26  ;;  %v9718_v30 = vcombine.low %v9696_v50, %v9703_v25  ;;  %v8820_v43 = vmul.f32 0.5, %v8807_v21 }
0x218b   :  { %v10027_v4 = vcombine.low %v10018_v57, %v10025_v31  ;;  %v9433_v45 = vrot.slane %v9419_v6, %v12349_v26  ;;  %v10034_v20 = vrot.slane %v10026_v24, %v12349_v26  ;;  %v9456_v35 = vrot.slane %v9434_v18, %v12349_v26 }
0x218c   :  { %v9719_v52 = vcombine.low %v9710_v12, %v9717_v9  ;;  %v9464_v56 = vcombine.high %v9442_v60, %v9442_v60  ;;  %vm8833_vm5 = vcmp.ge.f32.partialorder %v8820_v43, 1.0  ;;  %v9726_v29 = vrot.slane %v9718_v30, %v12349_v26 }
0x218d   :  { %v10041_v33 = vrot.slane %v10027_v4, %v12349_v26  ;;  %v9435_v27 = vcombine.high %v9433_v45, %v9433_v45  ;;  %v9449_v58 = vrot.slane %v9433_v45, %v12349_v26  ;;  %v10775_v16 = vsel %vm8833_vm5, 1.0, %v11521_v7 }
0x218e   :  { %v9733_v10 = vrot.slane %v9719_v52, %v12349_v26  ;;  %v9466_v44 = vcombine.high %v9456_v35, %v9456_v35  ;;  %v9125_v49 = vcombine.high %v10775_v16, %v10775_v16  ;;  %v9132_v11 = vrot.slane %v10775_v16, %v12349_v26  ;;  %v10190_v52 = vld [vmem:[#allocation17 + $0x30] sm:$0x1]  ;;  %v10362_v16 = vld [vmem:[#allocation17 + $0x98] sm:$0xff] }
0x218f   :  { %v10042_v37 = vcombine.low %v10034_v20, %v10041_v33  ;;  %v9463_v46 = vrot.slane %v9435_v27, %v12349_v26  ;;  %v9465_v23 = vcombine.high %v9449_v58, %v9449_v58  ;;  %v10043_v51 = vcombine.low %v9456_v35, %v9464_v56  ;;  %v10187_v35 = vld [vmem:[#allocation17 + $0x18] sm:$0xff]  ;;  %v10186_v56 = vld [vmem:[#allocation17 + $0x10] sm:$0xff]  ;;  %v10185_v33 = vld [vmem:[#allocation17 + $0x8] sm:$0xff] }
0x2190   :  { %v9734_v61 = vcombine.low %v9726_v29, %v9733_v10  ;;  %v10044_v59 = vcombine.low %v9466_v44, %v9449_v58  ;;  %v9482_v40 = vrot.slane %v9474_v62, %v12349_v26  ;;  %v9139_v15 = vrot.slane %v9125_v49, %v12349_v26  ;;  %v10184_v58 = vld [vmem:[#allocation17] sm:$0xff]  ;;  %v10361_v44 = vld [vmem:[#allocation17 + $0x90] sm:$0xff] }
0x2191   :  { %10156 = vxpose.xlu0.b32.cont [5/7] (short) (narrow) %v10042_v37, 8  ;;  %v9140_v5 = vcombine.high %v9132_v11, %v9132_v11  ;;  %v9467_v2 = vcombine.high %v9463_v46, %v9463_v46  ;;  %v10045_v48 = vcombine.low %v9463_v46, %v9465_v23  ;;  %v9148_v36 = vrot.slane %v9132_v11, %v12349_v26  ;;  %v10363_v29 = vld [vmem:[#allocation17 + $0xa0] sm:$0x1]  ;;  %v10360_v37 = vld [vmem:[#allocation17 + $0x88] sm:$0xff]  ;;  %v10358_v11 = vld [vmem:[#allocation17 + $0x78] sm:$0xff] }
0x2192   :  { %10124 = vxpose.xlu1.b32.cont [5/7] (short) (narrow) %v9734_v61, 8  ;;  %v10060_v28 = vrot.slane %v10044_v59, %v12349_v26  ;;  %v9141_v34 = vcombine.high %v9139_v15, %v9139_v15  ;;  %v9155_v1 = vrot.slane %v9139_v15, %v12349_v26  ;;  %v10053_v39 = vrot.slane %v10043_v51, %v12349_v26  ;;  %v10359_v49 = vld [vmem:[#allocation17 + $0x80] sm:$0xff]  ;;  %v10357_v61 = vld [vmem:[#allocation17 + $0x70] sm:$0xff]  ;;  %v10450_v51 = vld [vmem:[#allocation17 + $0xd8] sm:$0x1] }
0x2193   :  { %v9162_v22 = vrot.slane %v9140_v5, %v12349_v26  ;;  %v10046_v41 = vcombine.low %v9467_v2, %v9482_v40  ;;  %v9475_v0 = vcombine.high %v9474_v62, %v9474_v62  ;;  %v10067_v54 = vrot.slane %v10045_v48, %v12349_v26  ;;  %v10449_v40 = vld [vmem:[#allocation17 + $0xd0] sm:$0xff]  ;;  %v10448_v15 = vld [vmem:[#allocation17 + $0xc8] sm:$0xff]  ;;  %v10447_v5 = vld [vmem:[#allocation17 + $0xc0] sm:$0xff] }
0x2194   :  { %v9169_v42 = vrot.slane %v9141_v34, %v12349_v26  ;;  %v10075_v63 = vcombine.low %v10053_v39, %v10060_v28  ;;  %v9790_v18 = vrot.slane %v13925_v19, %v12349_v26  ;;  %v10189_v19 = vld [vmem:[#allocation17 + $0x28] sm:$0xff]  ;;  %v10446_v2 = vld [vmem:[#allocation17 + $0xb8] sm:$0xff]  ;;  %v10445_v48 = vld [vmem:[#allocation17 + $0xb0] sm:$0xff] }
0x2195   :  { %v9735_v60 = vcombine.low %v9148_v36, %v9162_v22  ;;  %v10793_v38 = vcombine.high %v9148_v36, %v9162_v22  ;;  %v10074_v3 = vrot.slane %v10046_v41, %v12349_v26  ;;  %v9489_v14 = vrot.slane %v9475_v0, %v12349_v26  ;;  %v10444_v34 = vld [vmem:[#allocation17 + $0xa8] sm:$0xff] }
0x2196   :  { %v9737_v47 = vcombine.low %v9155_v1, %v9169_v42  ;;  %v10794_v55 = vcombine.high %v9155_v1, %v9169_v42  ;;  %v10083_v25 = vrot.slane %v10075_v63, %v12349_v26  ;;  %v9797_v62 = vrot.slane %v9790_v18, %v12349_v26  ;;  %v10803_v63 = vld [vmem:[%s14193_s14] ss:$0 sm:$0xff] }
0x2197   :  { %v9745_v53 = vrot.slane %v9735_v60, %v12349_v26  ;;  %v9752_v32 = vrot.slane %v10793_v38, %v12349_v26  ;;  %v10076_v57 = vcombine.low %v10067_v54, %v10074_v3  ;;  %v10098_v6 = vrot.slane %v9489_v14, %v12349_v26 }
0x2198   :  { %v9759_v13 = vrot.slane %v9737_v47, %v12349_v26  ;;  %v9766_v17 = vrot.slane %v10794_v55, %v12349_v26 }
0x2199   :  { %v9767_v50 = vcombine.low %v9745_v53, %v9752_v32  ;;  %v10090_v31 = vrot.slane %v10076_v57, %v12349_v26  ;;  %v10105_v8 = vrot.slane %v10098_v6, %v12349_v26 }
0x219a   :  { %v9768_v24 = vcombine.low %v9759_v13, %v9766_v17 }
0x219b   :  { %v10091_v21 = vcombine.low %v10083_v25, %v10090_v31  ;;  %v9775_v12 = vrot.slane %v9767_v50, %v12349_v26 }
0x219c   :  { %v9782_v9 = vrot.slane %v9768_v24, %v12349_v26  ;;  %v10188_v26 = vld [vmem:[#allocation17 + $0x20] sm:$0xff] }
0x219d   :  { %10157 = vxpose.xlu0.b32.cont [6/7] (short) (narrow) %v10091_v21, 8 }
0x219e   :  { %v9783_v30 = vcombine.low %v9775_v12, %v9782_v9 }
0x21a0   :  { %10125 = vxpose.xlu1.b32.cont [6/7] (short) (narrow) %v9783_v30, 8 }
0x21a1   :  { %10158 = vxpose.xlu0.b32.end [7/7] (short) (narrow) %v10105_v8, 8 }
0x21a4   :  { %10126 = vxpose.xlu1.b32.end [7/7] (short) (narrow) %v9797_v62, 8 }
0x2205   :  { %v14126_v43 = vpop.trf.xlu0 }
0x2206   :  { %v10279_v27 = vrot.slane %v14126_v43, 7  ;;  %v10365_v46 = vrot.slane %v14126_v43, 1  ;;  %v10452_v28 = vrot.slane %v14126_v43, 2 }
0x2208   :  { %v14124_v4 = vpop.trf.xlu1 }
0x2209   :  { %v10201_v45 = vrot.slane %v14124_v4, 1  ;;  %v10280_v10 = vsel %vm4602_vm1, %v10279_v27, %v14124_v4  ;;  %v10364_v23 = vrot.slane %v14124_v4, 2  ;;  %v10451_v36 = vrot.slane %v14124_v4, 3 }
0x220b   :  { %v10202_v20 = vsel %vm4602_vm1, %v14126_v43, %v10201_v45  ;;  %v10366_v59 = vsel %vm4602_vm1, %v10365_v46, %v10364_v23  ;;  %v10453_v22 = vsel %vm4602_vm1, %v10452_v28, %v10451_v36 }
0x220c   :  { %11105 = vmatmul.mubr.msk.f32.vlgmr.msra.gmra.mxu1 %vm6963_vm10, %v10202_v20 }
0x220d   :  { %11108 = vmatpush3.msk.msra.mxu1 %vm10205_vm11, %v10190_v52  ;;  %11121 = vmatprep.mubr.msk.f32.mxu1 %vm11524_vm0, %v11521_v7 }
0x220e   :  { %11109 = vmatprep.subr.mxu1 %v11521_v7 }
0x220f   :  { %11110 = vmatpush3.msra.mxu1 %v10189_v19 }
0x2210   :  { %11111 = vmatprep.subr.mxu1 %v11521_v7 }
0x2211   :  { %11112 = vmatpush3.msra.mxu1 %v10188_v26 }
0x2212   :  { %11113 = vmatprep.subr.mxu1 %v11521_v7 }
0x2213   :  { %11114 = vmatpush3.msra.mxu1 %v10187_v35 }
0x2214   :  { %11115 = vmatprep.subr.mxu1 %v11521_v7 }
0x2215   :  { %11116 = vmatpush3.msra.mxu1 %v10186_v56 }
0x2216   :  { %11117 = vmatprep.subr.mxu1 %v11521_v7 }
0x2217   :  { %11118 = vmatpush3.msra.mxu1 %v10185_v33 }
0x2218   :  { %11119 = vmatprep.subr.mxu1 %v11521_v7 }
0x2219   :  { %11120 = vmatpush3.msra.mxu1 %v10184_v58 }
0x221a   :  { %11122 = vmatmul.mubr.msk.f32.vlgmr.msra.gmra.mxu1 %vm6963_vm10, %v10280_v10  ;;  %11124 = vmatprep.subr.mxu1 %v11521_v7 }
0x221b   :  { %11125 = vmatpush3.msk.msra.mxu1 %vm10205_vm11, %v10363_v29  ;;  %11138 = vmatprep.mubr.msk.f32.mxu1 %vm11524_vm0, %v11521_v7 }
0x221c   :  { %11126 = vmatprep.subr.mxu1 %v11521_v7 }
0x221d   :  { %11127 = vmatpush3.msra.mxu1 %v10362_v16 }
0x221e   :  { %11128 = vmatprep.subr.mxu1 %v11521_v7 }
0x221f   :  { %11129 = vmatpush3.msra.mxu1 %v10361_v44 }
0x2220   :  { %11130 = vmatprep.subr.mxu1 %v11521_v7 }
0x2221   :  { %11131 = vmatpush3.msra.mxu1 %v10360_v37 }
0x2222   :  { %11132 = vmatprep.subr.mxu1 %v11521_v7 }
0x2223   :  { %11133 = vmatpush3.msra.mxu1 %v10359_v49 }
0x2224   :  { %11134 = vmatprep.subr.mxu1 %v11521_v7 }
0x2225   :  { %11135 = vmatpush3.msra.mxu1 %v10358_v11 }
0x2226   :  { %11136 = vmatprep.subr.mxu1 %v11521_v7 }
0x2227   :  { %11137 = vmatpush3.msra.mxu1 %v10357_v61 }
0x2228   :  { %11139 = vmatmul.mubr.msk.f32.vlgmr.msra.gmra.mxu1 %vm6963_vm10, %v10366_v59  ;;  %11141 = vmatprep.subr.mxu1 %v11521_v7 }
0x2229   :  { %11142 = vmatpush3.msk.msra.mxu1 %vm10205_vm11, %v10450_v51  ;;  %11155 = vmatprep.mubr.msk.f32.mxu1 %vm11524_vm0, %v11521_v7  ;;  %vm10538_vm0 = vcmask 74752  }
0x222a   :  { %11143 = vmatprep.subr.mxu1 %v11521_v7 }
0x222b   :  { %11144 = vmatpush3.msra.mxu1 %v10449_v40 }
0x222c   :  { %11145 = vmatprep.subr.mxu1 %v11521_v7 }
0x222d   :  { %11146 = vmatpush3.msra.mxu1 %v10448_v15 }
0x222e   :  { %11147 = vmatprep.subr.mxu1 %v11521_v7 }
0x222f   :  { %11148 = vmatpush3.msra.mxu1 %v10447_v5 }
0x2230   :  { %11149 = vmatprep.subr.mxu1 %v11521_v7 }
0x2231   :  { %11150 = vmatpush3.msra.mxu1 %v10446_v2 }
0x2232   :  { %11151 = vmatprep.subr.mxu1 %v11521_v7 }
0x2233   :  { %11152 = vmatpush3.msra.mxu1 %v10445_v48 }
0x2234   :  { %11153 = vmatprep.subr.mxu1 %v11521_v7 }
0x2235   :  { %11154 = vmatpush3.msra.mxu1 %v10444_v34 }
0x2236   :  { %11156 = vmatmul.mubr.msk.f32.vlgmr.msra.gmra.mxu1 %vm6963_vm10, %v10453_v22 }
0x22cc   :  { %v10275_v41 = vpop.f32.mrf.mxu1 }
0x22ce   :  { %v11106_v1 = vpop.f32.mrf.mxu1 }
0x22da   :  { %v10352_v39 = vpop.f32.mrf.mxu1 }
0x22db   :  { %v10353_v38 = vadd.f32 %v10352_v39, %v10275_v41 }
0x22dc   :  { %v11123_v0 = vpop.f32.mrf.mxu1 }
0x22e8   :  { %v10438_v42 = vpop.f32.mrf.mxu1 }
0x22e9   :  { %v10442_v3 = vadd.f32 %v10438_v42, %v10353_v38 }
0x22ea   :  { %v11140_v60 = vpop.f32.mrf.mxu1 }
0x22f6   :  { %v10525_v54 = vpop.f32.mrf.mxu1 }
0x22f7   :  { %v10529_v7 = vadd.f32 %v10525_v54, %v10442_v3 }
0x22f8   :  { %v11157_v47 = vpop.f32.mrf.mxu1 }
0x22f9   :  { %v10537_v55 = vadd.f32 %v10803_v63, %v10529_v7 }
0x22fb   :  { %10539 = vst.msk [vmem:[#allocation19] sm:$0x3] %vm10538_vm0, %v10537_v55 }
0x22fc   :  { %11487 = shalt.err (!%p11484_p11)
}
0x22fd   :  { %10549 = dma.vmem_to_hbm [thread:$0]  %s10547_s28, 32, %s14194_s15, [#allocation8]  }
0x22fe   :  { %11506 = dma.done.wait [#allocation8], 32  }
0x22ff   :  { %11507 = vsyncadd [#allocation8], 4294967264 }
0x2300   :  { %10553 = vsyncpa [#allocation7], 1 }
0x2301   :  { %10554 = vsyncpa [#allocation18], 1 }
0x2302   :  { %10555 = vsyncpa [#allocation8], 1 }
0x2303   :  { %10556 = vsyncpa [#allocation9], 1 }
0x2304   :  { %10557 = vsyncpa [#allocation11], 1 }
0x2305   :  { %10558 = vsyncpa [#allocation15], 1 }

</bundles_post_ra>
